<compile_context>
chip_gen: v6e
topology: v6e:2x2x1
jax: 0.10.0
libtpu: 0.0.40
codegen_flags: <defaults>
</compile_context>

<pallas_src>
import math

import jax
import jax.numpy as jnp
import numpy as np
from jax.experimental import pallas as pl
from jax.experimental.pallas import tpu as pltpu


# ----------------------------------------------------------------------------
# host-side constant builders (lower the convs to structured matmuls)
# ----------------------------------------------------------------------------

def _shift_select(n_in, n_out, offset, stride):
    """(n_out, n_in) 0/1 selector: output index o reads input index stride*o + offset."""
    m = np.zeros((n_out, n_in), np.float32)
    for o in range(n_out):
        i = stride * o + offset
        if 0 <= i < n_in:
            m[o, i] = 1.0
    return m


def make_A_stack(n_in, n_out, stride):
    """(3, n_out, n_in): per-dy row selectors of a 3-tap conv with padding 1."""
    return jnp.asarray(np.stack([_shift_select(n_in, n_out, dy - 1, stride) for dy in range(3)]))


def make_R(W, C):
    """(W*C, C): sums the W lane-groups of width C (global average pool, up to a 1/HW factor)."""
    return jnp.asarray(np.tile(np.eye(C, dtype=np.float32), (W, 1)))


def make_G_stack(w_hwio, w_in, w_out, stride):
    """(3, w_in*Cin, w_out*Cout): per-dy banded lane-mixing matrices of a 3x3 conv acting on
    an (H, W*C) laid-out activation."""
    sel = np.stack([_shift_select(w_in, w_out, dx - 1, stride) for dx in range(3)])  # (3,Wo,Wi)
    g = jnp.einsum('xba,yxio->yaibo', jnp.asarray(sel), w_hwio)
    cin, cout = int(w_hwio.shape[2]), int(w_hwio.shape[3])
    return g.reshape(3, w_in * cin, w_out * cout)


def make_Gid(w_1x1, w_in, w_out, stride):
    """(w_in*Cin, w_out*Cout): banded lane-mixing matrix of a (strided) 1x1 conv."""
    sel = _shift_select(w_in, w_out, 0, stride)            # (Wo, Wi)
    g = jnp.einsum('ba,io->aibo', jnp.asarray(sel), w_1x1)
    cin, cout = int(w_1x1.shape[0]), int(w_1x1.shape[1])
    return g.reshape(w_in * cin, w_out * cout)


_A_NAME = {(16, 16): 'A16', (8, 8): 'A8', (16, 8): 'As2'}
_R_NAME = {(16, 8): 'R168', (8, 16): 'R816'}
_T_NAME = {(16, 8): 'T168', (8, 16): 'T816'}


# ----------------------------------------------------------------------------
# fused whole-network kernel (one image per grid step, everything VMEM-resident)
# ----------------------------------------------------------------------------

def _sigmoid(x):
    return 1.0 / (1.0 + jnp.exp(-x))


def _make_fused_kernel(treedef, cfg, nparams):

    def kernel(x_ref, *rest):
        param_refs = rest[:nparams]
        out_ref = rest[nparams]
        p = jax.tree_util.tree_unflatten(treedef, list(param_refs))
        f32 = jnp.float32

        def conv3x3(x, a_ref, g_ref):
            # x: (H_in, W_in*Cin); a_ref: (3, H_out, H_in); g_ref: (3, W_in*Cin, W_out*Cout)
            acc = None
            for dy in range(3):
                t = jnp.dot(a_ref[dy], x, preferred_element_type=f32)
                y = jnp.dot(t, g_ref[dy], preferred_element_type=f32)
                acc = y if acc is None else acc + y
            return acc

        def bn_relu(x, s_ref, b_ref):
            return jnp.maximum(x * s_ref[...] + b_ref[...], 0.0)

        def dia_attention(x, h, c_state, a, r_ref, t_ref):
            # x: (H, W*C); h, c_state: (1, C)
            hs = x.shape[0]
            ch = r_ref.shape[1]
            ws = x.shape[1] // ch
            # global average pool -> (1, C)
            colsum = jnp.dot(jnp.full((1, hs), 1.0 / float(hs * ws), f32), x,
                             preferred_element_type=f32)
            w = jnp.dot(colsum, r_ref[...], preferred_element_type=f32)
            # FirstLSTMAmp on the x- and h- branches (fc -> relu -> fc); fc2 pre-split per gate
            xm = jnp.maximum(jnp.dot(w, a['x_fc1_w'][...], preferred_element_type=f32)
                             + a['x_fc1_b'][...], 0.0)
            hm = jnp.maximum(jnp.dot(h, a['h_fc1_w'][...], preferred_element_type=f32)
                             + a['h_fc1_b'][...], 0.0)

            def gate(g):
                return (jnp.dot(xm, a['x_fc2'][g], preferred_element_type=f32)
                        + jnp.dot(hm, a['h_fc2'][g], preferred_element_type=f32)
                        + a['b2'][g])

            i_g = _sigmoid(gate(0))
            f_g = _sigmoid(gate(1))
            c_g = jnp.tanh(gate(2))
            o_g = _sigmoid(gate(3))
            c_new = f_g * c_state + i_g * c_g
            h_new = o_g * _sigmoid(c_new)   # pytorchcv DIA-LSTM uses sigmoid(cy), not tanh(cy)
            y = x * jnp.dot(h_new, t_ref[...], preferred_element_type=f32)  # channel reweight
            return y, h_new, c_new

        # ---- init block: plain 3x3 conv ----
        x = conv3x3(x_ref[...], p['A16'], p['init_G'])

        # ---- stages of DIA-PreRes units (LSTM state resets per stage, shared within it) ----
        for s_cfg, s_par in zip(cfg['stages'], p['stages']):
            ch = s_cfg['C']
            h = jnp.zeros((1, ch), f32)
            c_state = jnp.zeros((1, ch), f32)
            r_ref, t_ref = p[s_cfg['R']], p[s_cfg['T']]
            for u_cfg, u_par in zip(s_cfg['units'], s_par['units']):
                pre = bn_relu(x, u_par['bn1_s'], u_par['bn1_b'])       # x_pre_activ
                y = conv3x3(pre, p[u_cfg['A1']], u_par['G1'])
                y = bn_relu(y, u_par['bn2_s'], u_par['bn2_b'])
                y = conv3x3(y, p[u_cfg['A2']], u_par['G2'])
                y, h, c_state = dia_attention(y, h, c_state, s_par['attn'], r_ref, t_ref)
                if u_cfg['resize']:
                    # strided 1x1 identity conv on the pre-activation
                    t = jnp.dot(p[u_cfg['A1']][1], pre, preferred_element_type=f32)
                    identity = jnp.dot(t, u_par['Gid'][...], preferred_element_type=f32)
                else:
                    identity = x
                x = y + identity

        # ---- head: PreResActivation, global average pool (AvgPool2d(8) on 8x8), linear ----
        x = bn_relu(x, p['post_s'], p['post_b'])
        r_ref = p[cfg['head_R']]
        hs = x.shape[0]
        ch = r_ref.shape[1]
        ws = x.shape[1] // ch
        colsum = jnp.dot(jnp.full((1, hs), 1.0 / float(hs * ws), f32), x,
                         preferred_element_type=f32)
        pooled = jnp.dot(colsum, r_ref[...], preferred_element_type=f32)     # (1, C)
        logits = jnp.dot(pooled, p['fc_w'][...], preferred_element_type=f32) + p['fc_b'][...]
        out_ref[...] = logits

    return kernel


def build_model(packed, cfg, batch, in_hw=16, in_ch=3, num_classes=10):
    flat, treedef = jax.tree_util.tree_flatten(packed)
    nparams = len(flat)
    kernel = _make_fused_kernel(treedef, cfg, nparams)

    def _const_map(ndim):
        return lambda b: (0,) * ndim

    in_specs = [pl.BlockSpec((None, in_hw, in_hw * in_ch), lambda b: (b, 0, 0))]
    in_specs += [pl.BlockSpec(leaf.shape, _const_map(leaf.ndim)) for leaf in flat]

    fused = pl.pallas_call(
        kernel,
        grid=(batch,),
        in_specs=in_specs,
        out_specs=pl.BlockSpec((None, 1, num_classes), lambda b: (b, 0, 0)),
        out_shape=jax.ShapeDtypeStruct((batch, 1, num_classes), jnp.float32),
        compiler_params=pltpu.CompilerParams(
            dimension_semantics=("parallel",),          # v7x: one image per TensorCore
            vmem_limit_bytes=32 * 1024 * 1024,          # explicit; actual usage is ~4 MiB
        ),
    )

    @jax.jit
    def forward(x_nchw):
        xh = jnp.transpose(x_nchw, (0, 2, 3, 1)).astype(jnp.float32)   # NCHW -> NHWC
        xh = xh.reshape(batch, in_hw, in_hw * in_ch)                   # lane-dense (H, W*C)
        return fused(xh, *flat)[:, 0, :]

    return forward


# ----------------------------------------------------------------------------
# deterministic parameters (PyTorch-style "raw" form) + packing for the kernel
# ----------------------------------------------------------------------------

def build_raw_params(key):
    # Small DIA-PreResNet: init_block=8, channels=[[8,8],[16,16]], bottleneck=False, 10 classes.
    init_block_channels = 8
    channels = [[8, 8], [16, 16]]
    in_channels = 3
    num_classes = 10
    keys = iter(jax.random.split(key, 64))

    def conv_w(kh, kw, cin, cout):
        bound = math.sqrt(6.0 / (kh * kw * cin))       # kaiming_uniform-like
        return jax.random.uniform(next(keys), (kh, kw, cin, cout), jnp.float32, -bound, bound)

    def linear(cin, cout):
        bound = 1.0 / math.sqrt(cin)
        w = jax.random.uniform(next(keys), (cin, cout), jnp.float32, -bound, bound)
        b = jax.random.uniform(next(keys), (1, cout), jnp.float32, -bound, bound)
        return w, b

    def bn(c):
        # inference-mode BN (running_mean=0, running_var=1) folded to scale/shift
        gamma = jax.random.uniform(next(keys), (1, c), jnp.float32, 0.5, 1.5)
        beta = jax.random.uniform(next(keys), (1, c), jnp.float32, -0.1, 0.1)
        return gamma / jnp.sqrt(1.0 + 1e-5), beta

    raw = {'init_w': conv_w(3, 3, in_channels, init_block_channels)}
    in_c = init_block_channels
    stages = []
    for i, ch in enumerate(channels):
        c0 = ch[0]
        mid = c0 // 4
        xw1, xb1 = linear(c0, mid)
        xw2, xb2 = linear(mid, 4 * c0)
        hw1, hb1 = linear(c0, mid)
        hw2, hb2 = linear(mid, 4 * c0)
        attn = dict(x_fc1_w=xw1, x_fc1_b=xb1, x_fc2_w=xw2, x_fc2_b=xb2,
                    h_fc1_w=hw1, h_fc1_b=hb1, h_fc2_w=hw2, h_fc2_b=hb2)
        units = []
        for j, out_c in enumerate(ch):
            stride = 2 if (j == 0 and i != 0) else 1
            s1, b1 = bn(in_c)
            s2, b2 = bn(out_c)
            u = dict(stride=stride, bn1_s=s1, bn1_b=b1, conv1_w=conv_w(3, 3, in_c, out_c),
                     bn2_s=s2, bn2_b=b2, conv2_w=conv_w(3, 3, out_c, out_c))
            if (in_c != out_c) or (stride != 1):
                u['id_w'] = conv_w(1, 1, in_c, out_c)[0, 0]    # (Cin, Cout)
            units.append(u)
            in_c = out_c
        stages.append(dict(attn=attn, units=units))
    raw['stages'] = stages
    raw['post_s'], raw['post_b'] = bn(in_c)
    raw['fc_w'], raw['fc_b'] = linear(in_c, num_classes)
    return raw


def pack_params(raw, in_hw=16):
    """Re-pack parameters into the lane-dense structured-matmul form used by the fused kernel
    (pure host-side preprocessing; forward-pass math is unchanged)."""
    packed = {
        'A16': make_A_stack(16, 16, 1),
        'A8': make_A_stack(8, 8, 1),
        'As2': make_A_stack(16, 8, 2),
        'R168': make_R(16, 8), 'T168': make_R(16, 8).T,
        'R816': make_R(8, 16), 'T816': make_R(8, 16).T,
        'init_G': make_G_stack(raw['init_w'], in_hw, in_hw, 1),
        'fc_w': raw['fc_w'], 'fc_b': raw['fc_b'],
        'stages': [],
    }
    cfg = {'stages': []}
    w_cur = in_hw
    for stage in raw['stages']:
        c_out = int(stage['units'][0]['conv1_w'].shape[-1])
        a = stage['attn']
        attn_p = {
            'x_fc1_w': a['x_fc1_w'], 'x_fc1_b': a['x_fc1_b'],
            'h_fc1_w': a['h_fc1_w'], 'h_fc1_b': a['h_fc1_b'],
            'x_fc2': jnp.stack([a['x_fc2_w'][:, g * c_out:(g + 1) * c_out] for g in range(4)]),
            'h_fc2': jnp.stack([a['h_fc2_w'][:, g * c_out:(g + 1) * c_out] for g in range(4)]),
            'b2': jnp.stack([(a['x_fc2_b'] + a['h_fc2_b'])[:, g * c_out:(g + 1) * c_out]
                             for g in range(4)]),
        }
        units_p, units_c = [], []
        for u in stage['units']:
            stride = u['stride']
            w_in, w_out = w_cur, w_cur // stride
            up = {
                'bn1_s': jnp.tile(u['bn1_s'], (1, w_in)),
                'bn1_b': jnp.tile(u['bn1_b'], (1, w_in)),
                'G1': make_G_stack(u['conv1_w'], w_in, w_out, stride),
                'bn2_s': jnp.tile(u['bn2_s'], (1, w_out)),
                'bn2_b': jnp.tile(u['bn2_b'], (1, w_out)),
                'G2': make_G_stack(u['conv2_w'], w_out, w_out, 1),
            }
            uc = {'A1': _A_NAME[(w_in, w_out)], 'A2': _A_NAME[(w_out, w_out)],
                  'resize': 'id_w' in u}
            if 'id_w' in u:
                up['Gid'] = make_Gid(u['id_w'], w_in, w_out, stride)
            units_p.append(up)
            units_c.append(uc)
            w_cur = w_out
        packed['stages'].append({'attn': attn_p, 'units': units_p})
        cfg['stages'].append({'C': c_out, 'R': _R_NAME[(w_cur, c_out)],
                              'T': _T_NAME[(w_cur, c_out)], 'units': units_c})
    c_last = int(raw['post_s'].shape[-1])
    packed['post_s'] = jnp.tile(raw['post_s'], (1, w_cur))
    packed['post_b'] = jnp.tile(raw['post_b'], (1, w_cur))
    cfg['head_R'] = _R_NAME[(w_cur, c_last)]
    return packed, cfg


# ----------------------------------------------------------------------------
# plain-JAX reference (same forward semantics) for validation
# ----------------------------------------------------------------------------

def reference_forward(x_nchw, raw):
    hp = jax.lax.Precision.HIGHEST

    def conv3x3(x, w, stride):
        return jax.lax.conv_general_dilated(
            x, w, window_strides=(stride, stride), padding=((1, 1), (1, 1)),
            dimension_numbers=('NHWC', 'HWIO', 'NHWC'), precision=hp)

    def conv1x1(x, w, stride):
        return jax.lax.conv_general_dilated(
            x, w[None, None], window_strides=(stride, stride), padding='VALID',
            dimension_numbers=('NHWC', 'HWIO', 'NHWC'), precision=hp)

    def bn_relu(x, s, b):
        return jnp.maximum(x * s.reshape(1, 1, 1, -1) + b.reshape(1, 1, 1, -1), 0.0)

    def attention(x, h, c, a):
        cch = x.shape[-1]
        w = jnp.mean(x, axis=(1, 2))
        gx = jnp.dot(jnp.maximum(jnp.dot(w, a['x_fc1_w'], precision=hp) + a['x_fc1_b'], 0.0),
                     a['x_fc2_w'], precision=hp) + a['x_fc2_b']
        gh = jnp.dot(jnp.maximum(jnp.dot(h, a['h_fc1_w'], precision=hp) + a['h_fc1_b'], 0.0),
                     a['h_fc2_w'], precision=hp) + a['h_fc2_b']
        gates = gx + gh
        i_g = jax.nn.sigmoid(gates[:, 0 * cch:1 * cch])
        f_g = jax.nn.sigmoid(gates[:, 1 * cch:2 * cch])
        c_g = jnp.tanh(gates[:, 2 * cch:3 * cch])
        o_g = jax.nn.sigmoid(gates[:, 3 * cch:4 * cch])
        c_new = f_g * c + i_g * c_g
        h_new = o_g * jax.nn.sigmoid(c_new)
        return x * h_new[:, None, None, :], h_new, c_new

    x = jnp.transpose(x_nchw, (0, 2, 3, 1)).astype(jnp.float32)
    x = conv3x3(x, raw['init_w'], 1)
    for stage in raw['stages']:
        cch = int(stage['units'][0]['conv1_w'].shape[-1])
        h = jnp.zeros((x.shape[0], cch), jnp.float32)
        c = jnp.zeros((x.shape[0], cch), jnp.float32)
        for u in stage['units']:
            pre = bn_relu(x, u['bn1_s'], u['bn1_b'])
            y = conv3x3(pre, u['conv1_w'], u['stride'])
            y = bn_relu(y, u['bn2_s'], u['bn2_b'])
            y = conv3x3(y, u['conv2_w'], 1)
            y, h, c = attention(y, h, c, stage['attn'])
            identity = conv1x1(pre, u['id_w'], u['stride']) if 'id_w' in u else x
            x = y + identity
    x = bn_relu(x, raw['post_s'], raw['post_b'])
    pooled = jnp.mean(x, axis=(1, 2))
    return jnp.dot(pooled, raw['fc_w'], precision=hp) + raw['fc_b']


# ----------------------------------------------------------------------------

if __name__ == "__main__":
    key = jax.random.PRNGKey(0)
    kx, kp = jax.random.split(key)
    # Input 16x16 so the single stride-2 stage leaves an 8x8 map, matching the reference
    # model's AvgPool2d(kernel_size=8, stride=1) final pool.
    x = jax.random.normal(kx, (2, 3, 16, 16), jnp.float32)     # NCHW, like PyTorch

    raw = build_raw_params(kp)
    packed, cfg = pack_params(raw)
    forward = build_model(packed, cfg, batch=2)

    logits = jax.block_until_ready(forward(x))
    assert logits.shape == (2, 10)
    assert bool(jnp.all(jnp.isfinite(logits)))

    # validate the fused Pallas kernel against a plain-JAX reference of the same module
    ref = jax.block_until_ready(reference_forward(x, raw))
    assert jnp.allclose(logits, ref, rtol=5e-2, atol=5e-2)

    print("KERNEL_OK")
</pallas_src>

<mosaic_0001>
module attributes {stable_mosaic.version = 11 : i64} {
  func.func @kernel(%arg0: i32, %arg1: memref<1x16x48xf32, #tpu.memory_space<vmem>>, %arg2: memref<3x16x16xf32, #tpu.memory_space<vmem>>, %arg3: memref<3x8x8xf32, #tpu.memory_space<vmem>>, %arg4: memref<3x8x16xf32, #tpu.memory_space<vmem>>, %arg5: memref<128x8xf32, #tpu.memory_space<vmem>>, %arg6: memref<128x16xf32, #tpu.memory_space<vmem>>, %arg7: memref<8x128xf32, #tpu.memory_space<vmem>>, %arg8: memref<16x128xf32, #tpu.memory_space<vmem>>, %arg9: memref<1x10xf32, #tpu.memory_space<vmem>>, %arg10: memref<16x10xf32, #tpu.memory_space<vmem>>, %arg11: memref<3x48x128xf32, #tpu.memory_space<vmem>>, %arg12: memref<1x128xf32, #tpu.memory_space<vmem>>, %arg13: memref<1x128xf32, #tpu.memory_space<vmem>>, %arg14: memref<4x1x8xf32, #tpu.memory_space<vmem>>, %arg15: memref<1x2xf32, #tpu.memory_space<vmem>>, %arg16: memref<8x2xf32, #tpu.memory_space<vmem>>, %arg17: memref<4x2x8xf32, #tpu.memory_space<vmem>>, %arg18: memref<1x2xf32, #tpu.memory_space<vmem>>, %arg19: memref<8x2xf32, #tpu.memory_space<vmem>>, %arg20: memref<4x2x8xf32, #tpu.memory_space<vmem>>, %arg21: memref<3x128x128xf32, #tpu.memory_space<vmem>>, %arg22: memref<3x128x128xf32, #tpu.memory_space<vmem>>, %arg23: memref<1x128xf32, #tpu.memory_space<vmem>>, %arg24: memref<1x128xf32, #tpu.memory_space<vmem>>, %arg25: memref<1x128xf32, #tpu.memory_space<vmem>>, %arg26: memref<1x128xf32, #tpu.memory_space<vmem>>, %arg27: memref<3x128x128xf32, #tpu.memory_space<vmem>>, %arg28: memref<3x128x128xf32, #tpu.memory_space<vmem>>, %arg29: memref<1x128xf32, #tpu.memory_space<vmem>>, %arg30: memref<1x128xf32, #tpu.memory_space<vmem>>, %arg31: memref<1x128xf32, #tpu.memory_space<vmem>>, %arg32: memref<1x128xf32, #tpu.memory_space<vmem>>, %arg33: memref<4x1x16xf32, #tpu.memory_space<vmem>>, %arg34: memref<1x4xf32, #tpu.memory_space<vmem>>, %arg35: memref<16x4xf32, #tpu.memory_space<vmem>>, %arg36: memref<4x4x16xf32, #tpu.memory_space<vmem>>, %arg37: memref<1x4xf32, #tpu.memory_space<vmem>>, %arg38: memref<16x4xf32, #tpu.memory_space<vmem>>, %arg39: memref<4x4x16xf32, #tpu.memory_space<vmem>>, %arg40: memref<3x128x128xf32, #tpu.memory_space<vmem>>, %arg41: memref<3x128x128xf32, #tpu.memory_space<vmem>>, %arg42: memref<128x128xf32, #tpu.memory_space<vmem>>, %arg43: memref<1x128xf32, #tpu.memory_space<vmem>>, %arg44: memref<1x128xf32, #tpu.memory_space<vmem>>, %arg45: memref<1x128xf32, #tpu.memory_space<vmem>>, %arg46: memref<1x128xf32, #tpu.memory_space<vmem>>, %arg47: memref<3x128x128xf32, #tpu.memory_space<vmem>>, %arg48: memref<3x128x128xf32, #tpu.memory_space<vmem>>, %arg49: memref<1x128xf32, #tpu.memory_space<vmem>>, %arg50: memref<1x128xf32, #tpu.memory_space<vmem>>, %arg51: memref<1x128xf32, #tpu.memory_space<vmem>>, %arg52: memref<1x128xf32, #tpu.memory_space<vmem>>, %arg53: memref<1x1x10xf32, #tpu.memory_space<vmem>>) attributes {dimension_semantics = [#tpu.dimension_semantics<parallel>], iteration_bounds = array<i64: 2>, scalar_prefetch = 0 : i64, scratch_operands = 0 : i64, tpu.core_type = #tpu.core_type<tc>, window_params = [{transform_indices = @transform_0, window_bounds = array<i64: 1, 16, 48>}, {pipeline_mode = #tpu.pipeline_mode<synchronous>, transform_indices = @transform_1, window_bounds = array<i64: 3, 16, 16>}, {pipeline_mode = #tpu.pipeline_mode<synchronous>, transform_indices = @transform_2, window_bounds = array<i64: 3, 8, 8>}, {pipeline_mode = #tpu.pipeline_mode<synchronous>, transform_indices = @transform_3, window_bounds = array<i64: 3, 8, 16>}, {pipeline_mode = #tpu.pipeline_mode<synchronous>, transform_indices = @transform_4, window_bounds = array<i64: 128, 8>}, {pipeline_mode = #tpu.pipeline_mode<synchronous>, transform_indices = @transform_5, window_bounds = array<i64: 128, 16>}, {pipeline_mode = #tpu.pipeline_mode<synchronous>, transform_indices = @transform_6, window_bounds = array<i64: 8, 128>}, {pipeline_mode = #tpu.pipeline_mode<synchronous>, transform_indices = @transform_7, window_bounds = array<i64: 16, 128>}, {pipeline_mode = #tpu.pipeline_mode<synchronous>, transform_indices = @transform_8, window_bounds = array<i64: 1, 10>}, {pipeline_mode = #tpu.pipeline_mode<synchronous>, transform_indices = @transform_9, window_bounds = array<i64: 16, 10>}, {pipeline_mode = #tpu.pipeline_mode<synchronous>, transform_indices = @transform_10, window_bounds = array<i64: 3, 48, 128>}, {pipeline_mode = #tpu.pipeline_mode<synchronous>, transform_indices = @transform_11, window_bounds = array<i64: 1, 128>}, {pipeline_mode = #tpu.pipeline_mode<synchronous>, transform_indices = @transform_12, window_bounds = array<i64: 1, 128>}, {pipeline_mode = #tpu.pipeline_mode<synchronous>, transform_indices = @transform_13, window_bounds = array<i64: 4, 1, 8>}, {pipeline_mode = #tpu.pipeline_mode<synchronous>, transform_indices = @transform_14, window_bounds = array<i64: 1, 2>}, {pipeline_mode = #tpu.pipeline_mode<synchronous>, transform_indices = @transform_15, window_bounds = array<i64: 8, 2>}, {pipeline_mode = #tpu.pipeline_mode<synchronous>, transform_indices = @transform_16, window_bounds = array<i64: 4, 2, 8>}, {pipeline_mode = #tpu.pipeline_mode<synchronous>, transform_indices = @transform_17, window_bounds = array<i64: 1, 2>}, {pipeline_mode = #tpu.pipeline_mode<synchronous>, transform_indices = @transform_18, window_bounds = array<i64: 8, 2>}, {pipeline_mode = #tpu.pipeline_mode<synchronous>, transform_indices = @transform_19, window_bounds = array<i64: 4, 2, 8>}, {pipeline_mode = #tpu.pipeline_mode<synchronous>, transform_indices = @transform_20, window_bounds = array<i64: 3, 128, 128>}, {pipeline_mode = #tpu.pipeline_mode<synchronous>, transform_indices = @transform_21, window_bounds = array<i64: 3, 128, 128>}, {pipeline_mode = #tpu.pipeline_mode<synchronous>, transform_indices = @transform_22, window_bounds = array<i64: 1, 128>}, {pipeline_mode = #tpu.pipeline_mode<synchronous>, transform_indices = @transform_23, window_bounds = array<i64: 1, 128>}, {pipeline_mode = #tpu.pipeline_mode<synchronous>, transform_indices = @transform_24, window_bounds = array<i64: 1, 128>}, {pipeline_mode = #tpu.pipeline_mode<synchronous>, transform_indices = @transform_25, window_bounds = array<i64: 1, 128>}, {pipeline_mode = #tpu.pipeline_mode<synchronous>, transform_indices = @transform_26, window_bounds = array<i64: 3, 128, 128>}, {pipeline_mode = #tpu.pipeline_mode<synchronous>, transform_indices = @transform_27, window_bounds = array<i64: 3, 128, 128>}, {pipeline_mode = #tpu.pipeline_mode<synchronous>, transform_indices = @transform_28, window_bounds = array<i64: 1, 128>}, {pipeline_mode = #tpu.pipeline_mode<synchronous>, transform_indices = @transform_29, window_bounds = array<i64: 1, 128>}, {pipeline_mode = #tpu.pipeline_mode<synchronous>, transform_indices = @transform_30, window_bounds = array<i64: 1, 128>}, {pipeline_mode = #tpu.pipeline_mode<synchronous>, transform_indices = @transform_31, window_bounds = array<i64: 1, 128>}, {pipeline_mode = #tpu.pipeline_mode<synchronous>, transform_indices = @transform_32, window_bounds = array<i64: 4, 1, 16>}, {pipeline_mode = #tpu.pipeline_mode<synchronous>, transform_indices = @transform_33, window_bounds = array<i64: 1, 4>}, {pipeline_mode = #tpu.pipeline_mode<synchronous>, transform_indices = @transform_34, window_bounds = array<i64: 16, 4>}, {pipeline_mode = #tpu.pipeline_mode<synchronous>, transform_indices = @transform_35, window_bounds = array<i64: 4, 4, 16>}, {pipeline_mode = #tpu.pipeline_mode<synchronous>, transform_indices = @transform_36, window_bounds = array<i64: 1, 4>}, {pipeline_mode = #tpu.pipeline_mode<synchronous>, transform_indices = @transform_37, window_bounds = array<i64: 16, 4>}, {pipeline_mode = #tpu.pipeline_mode<synchronous>, transform_indices = @transform_38, window_bounds = array<i64: 4, 4, 16>}, {pipeline_mode = #tpu.pipeline_mode<synchronous>, transform_indices = @transform_39, window_bounds = array<i64: 3, 128, 128>}, {pipeline_mode = #tpu.pipeline_mode<synchronous>, transform_indices = @transform_40, window_bounds = array<i64: 3, 128, 128>}, {pipeline_mode = #tpu.pipeline_mode<synchronous>, transform_indices = @transform_41, window_bounds = array<i64: 128, 128>}, {pipeline_mode = #tpu.pipeline_mode<synchronous>, transform_indices = @transform_42, window_bounds = array<i64: 1, 128>}, {pipeline_mode = #tpu.pipeline_mode<synchronous>, transform_indices = @transform_43, window_bounds = array<i64: 1, 128>}, {pipeline_mode = #tpu.pipeline_mode<synchronous>, transform_indices = @transform_44, window_bounds = array<i64: 1, 128>}, {pipeline_mode = #tpu.pipeline_mode<synchronous>, transform_indices = @transform_45, window_bounds = array<i64: 1, 128>}, {pipeline_mode = #tpu.pipeline_mode<synchronous>, transform_indices = @transform_46, window_bounds = array<i64: 3, 128, 128>}, {pipeline_mode = #tpu.pipeline_mode<synchronous>, transform_indices = @transform_47, window_bounds = array<i64: 3, 128, 128>}, {pipeline_mode = #tpu.pipeline_mode<synchronous>, transform_indices = @transform_48, window_bounds = array<i64: 1, 128>}, {pipeline_mode = #tpu.pipeline_mode<synchronous>, transform_indices = @transform_49, window_bounds = array<i64: 1, 128>}, {pipeline_mode = #tpu.pipeline_mode<synchronous>, transform_indices = @transform_50, window_bounds = array<i64: 1, 128>}, {pipeline_mode = #tpu.pipeline_mode<synchronous>, transform_indices = @transform_51, window_bounds = array<i64: 1, 128>}, {transform_indices = @transform_52, window_bounds = array<i64: 1, 1, 10>}]} {
    %c0 = arith.constant 0 : index
    %c0_0 = arith.constant 0 : index
    %c0_1 = arith.constant 0 : index
    %0 = vector.load %arg1[%c0, %c0_0, %c0_1] : memref<1x16x48xf32, #tpu.memory_space<vmem>>, vector<1x16x48xf32>
    %1 = vector.shape_cast %0 : vector<1x16x48xf32> to vector<16x48xf32>
    %c0_2 = arith.constant 0 : index
    %c0_3 = arith.constant 0 : index
    %c0_4 = arith.constant 0 : index
    %2 = vector.load %arg2[%c0_2, %c0_3, %c0_4] : memref<3x16x16xf32, #tpu.memory_space<vmem>>, vector<1x16x16xf32>
    %3 = vector.shape_cast %2 : vector<1x16x16xf32> to vector<16x16xf32>
    %cst = arith.constant dense<0.000000e+00> : vector<16x48xf32>
    %4 = tpu.matmul %3, %1, %cst {dimension_numbers = #tpu.dot_dimension_numbers<[1], [0], [0], [1], [0, 0, 1, 1], [], []>} : vector<16x16xf32>, vector<16x48xf32>, vector<16x48xf32> -> vector<16x48xf32>
    %c0_5 = arith.constant 0 : index
    %c0_6 = arith.constant 0 : index
    %c0_7 = arith.constant 0 : index
    %5 = vector.load %arg11[%c0_5, %c0_6, %c0_7] : memref<3x48x128xf32, #tpu.memory_space<vmem>>, vector<1x48x128xf32>
    %6 = vector.shape_cast %5 : vector<1x48x128xf32> to vector<48x128xf32>
    %cst_8 = arith.constant dense<0.000000e+00> : vector<16x128xf32>
    %7 = tpu.matmul %4, %6, %cst_8 {dimension_numbers = #tpu.dot_dimension_numbers<[1], [0], [0], [1], [0, 0, 1, 1], [], []>} : vector<16x48xf32>, vector<48x128xf32>, vector<16x128xf32> -> vector<16x128xf32>
    %c1 = arith.constant 1 : index
    %c0_9 = arith.constant 0 : index
    %c0_10 = arith.constant 0 : index
    %8 = vector.load %arg2[%c1, %c0_9, %c0_10] : memref<3x16x16xf32, #tpu.memory_space<vmem>>, vector<1x16x16xf32>
    %9 = vector.shape_cast %8 : vector<1x16x16xf32> to vector<16x16xf32>
    %cst_11 = arith.constant dense<0.000000e+00> : vector<16x48xf32>
    %10 = tpu.matmul %9, %1, %cst_11 {dimension_numbers = #tpu.dot_dimension_numbers<[1], [0], [0], [1], [0, 0, 1, 1], [], []>} : vector<16x16xf32>, vector<16x48xf32>, vector<16x48xf32> -> vector<16x48xf32>
    %c1_12 = arith.constant 1 : index
    %c0_13 = arith.constant 0 : index
    %c0_14 = arith.constant 0 : index
    %11 = vector.load %arg11[%c1_12, %c0_13, %c0_14] : memref<3x48x128xf32, #tpu.memory_space<vmem>>, vector<1x48x128xf32>
    %12 = vector.shape_cast %11 : vector<1x48x128xf32> to vector<48x128xf32>
    %cst_15 = arith.constant dense<0.000000e+00> : vector<16x128xf32>
    %13 = tpu.matmul %10, %12, %cst_15 {dimension_numbers = #tpu.dot_dimension_numbers<[1], [0], [0], [1], [0, 0, 1, 1], [], []>} : vector<16x48xf32>, vector<48x128xf32>, vector<16x128xf32> -> vector<16x128xf32>
    %14 = arith.addf %7, %13 : vector<16x128xf32>
    %c2 = arith.constant 2 : index
    %c0_16 = arith.constant 0 : index
    %c0_17 = arith.constant 0 : index
    %15 = vector.load %arg2[%c2, %c0_16, %c0_17] : memref<3x16x16xf32, #tpu.memory_space<vmem>>, vector<1x16x16xf32>
    %16 = vector.shape_cast %15 : vector<1x16x16xf32> to vector<16x16xf32>
    %cst_18 = arith.constant dense<0.000000e+00> : vector<16x48xf32>
    %17 = tpu.matmul %16, %1, %cst_18 {dimension_numbers = #tpu.dot_dimension_numbers<[1], [0], [0], [1], [0, 0, 1, 1], [], []>} : vector<16x16xf32>, vector<16x48xf32>, vector<16x48xf32> -> vector<16x48xf32>
    %c2_19 = arith.constant 2 : index
    %c0_20 = arith.constant 0 : index
    %c0_21 = arith.constant 0 : index
    %18 = vector.load %arg11[%c2_19, %c0_20, %c0_21] : memref<3x48x128xf32, #tpu.memory_space<vmem>>, vector<1x48x128xf32>
    %19 = vector.shape_cast %18 : vector<1x48x128xf32> to vector<48x128xf32>
    %cst_22 = arith.constant dense<0.000000e+00> : vector<16x128xf32>
    %20 = tpu.matmul %17, %19, %cst_22 {dimension_numbers = #tpu.dot_dimension_numbers<[1], [0], [0], [1], [0, 0, 1, 1], [], []>} : vector<16x48xf32>, vector<48x128xf32>, vector<16x128xf32> -> vector<16x128xf32>
    %21 = arith.addf %14, %20 : vector<16x128xf32>
    %cst_23 = arith.constant 0.000000e+00 : f32
    %22 = vector.broadcast %cst_23 : f32 to vector<1x8xf32>
    %cst_24 = arith.constant 0.000000e+00 : f32
    %23 = vector.broadcast %cst_24 : f32 to vector<1x8xf32>
    %c0_25 = arith.constant 0 : index
    %c0_26 = arith.constant 0 : index
    %24 = vector.load %arg24[%c0_25, %c0_26] : memref<1x128xf32, #tpu.memory_space<vmem>>, vector<1x128xf32>
    %25 = vector.broadcast %24 : vector<1x128xf32> to vector<16x128xf32>
    %26 = arith.mulf %21, %25 : vector<16x128xf32>
    %c0_27 = arith.constant 0 : index
    %c0_28 = arith.constant 0 : index
    %27 = vector.load %arg23[%c0_27, %c0_28] : memref<1x128xf32, #tpu.memory_space<vmem>>, vector<1x128xf32>
    %28 = vector.broadcast %27 : vector<1x128xf32> to vector<16x128xf32>
    %29 = arith.addf %26, %28 : vector<16x128xf32>
    %cst_29 = arith.constant 0.000000e+00 : f32
    %30 = vector.broadcast %cst_29 : f32 to vector<16x128xf32>
    %31 = arith.maximumf %29, %30 : vector<16x128xf32>
    %c0_30 = arith.constant 0 : index
    %c0_31 = arith.constant 0 : index
    %c0_32 = arith.constant 0 : index
    %32 = vector.load %arg2[%c0_30, %c0_31, %c0_32] : memref<3x16x16xf32, #tpu.memory_space<vmem>>, vector<1x16x16xf32>
    %33 = vector.shape_cast %32 : vector<1x16x16xf32> to vector<16x16xf32>
    %cst_33 = arith.constant dense<0.000000e+00> : vector<16x128xf32>
    %34 = tpu.matmul %33, %31, %cst_33 {dimension_numbers = #tpu.dot_dimension_numbers<[1], [0], [0], [1], [0, 0, 1, 1], [], []>} : vector<16x16xf32>, vector<16x128xf32>, vector<16x128xf32> -> vector<16x128xf32>
    %c0_34 = arith.constant 0 : index
    %c0_35 = arith.constant 0 : index
    %c0_36 = arith.constant 0 : index
    %35 = vector.load %arg21[%c0_34, %c0_35, %c0_36] : memref<3x128x128xf32, #tpu.memory_space<vmem>>, vector<1x128x128xf32>
    %36 = vector.shape_cast %35 : vector<1x128x128xf32> to vector<128x128xf32>
    %cst_37 = arith.constant dense<0.000000e+00> : vector<16x128xf32>
    %37 = tpu.matmul %34, %36, %cst_37 {dimension_numbers = #tpu.dot_dimension_numbers<[1], [0], [0], [1], [0, 0, 1, 1], [], []>} : vector<16x128xf32>, vector<128x128xf32>, vector<16x128xf32> -> vector<16x128xf32>
    %c1_38 = arith.constant 1 : index
    %c0_39 = arith.constant 0 : index
    %c0_40 = arith.constant 0 : index
    %38 = vector.load %arg2[%c1_38, %c0_39, %c0_40] : memref<3x16x16xf32, #tpu.memory_space<vmem>>, vector<1x16x16xf32>
    %39 = vector.shape_cast %38 : vector<1x16x16xf32> to vector<16x16xf32>
    %cst_41 = arith.constant dense<0.000000e+00> : vector<16x128xf32>
    %40 = tpu.matmul %39, %31, %cst_41 {dimension_numbers = #tpu.dot_dimension_numbers<[1], [0], [0], [1], [0, 0, 1, 1], [], []>} : vector<16x16xf32>, vector<16x128xf32>, vector<16x128xf32> -> vector<16x128xf32>
    %c1_42 = arith.constant 1 : index
    %c0_43 = arith.constant 0 : index
    %c0_44 = arith.constant 0 : index
    %41 = vector.load %arg21[%c1_42, %c0_43, %c0_44] : memref<3x128x128xf32, #tpu.memory_space<vmem>>, vector<1x128x128xf32>
    %42 = vector.shape_cast %41 : vector<1x128x128xf32> to vector<128x128xf32>
    %cst_45 = arith.constant dense<0.000000e+00> : vector<16x128xf32>
    %43 = tpu.matmul %40, %42, %cst_45 {dimension_numbers = #tpu.dot_dimension_numbers<[1], [0], [0], [1], [0, 0, 1, 1], [], []>} : vector<16x128xf32>, vector<128x128xf32>, vector<16x128xf32> -> vector<16x128xf32>
    %44 = arith.addf %37, %43 : vector<16x128xf32>
    %c2_46 = arith.constant 2 : index
    %c0_47 = arith.constant 0 : index
    %c0_48 = arith.constant 0 : index
    %45 = vector.load %arg2[%c2_46, %c0_47, %c0_48] : memref<3x16x16xf32, #tpu.memory_space<vmem>>, vector<1x16x16xf32>
    %46 = vector.shape_cast %45 : vector<1x16x16xf32> to vector<16x16xf32>
    %cst_49 = arith.constant dense<0.000000e+00> : vector<16x128xf32>
    %47 = tpu.matmul %46, %31, %cst_49 {dimension_numbers = #tpu.dot_dimension_numbers<[1], [0], [0], [1], [0, 0, 1, 1], [], []>} : vector<16x16xf32>, vector<16x128xf32>, vector<16x128xf32> -> vector<16x128xf32>
    %c2_50 = arith.constant 2 : index
    %c0_51 = arith.constant 0 : index
    %c0_52 = arith.constant 0 : index
    %48 = vector.load %arg21[%c2_50, %c0_51, %c0_52] : memref<3x128x128xf32, #tpu.memory_space<vmem>>, vector<1x128x128xf32>
    %49 = vector.shape_cast %48 : vector<1x128x128xf32> to vector<128x128xf32>
    %cst_53 = arith.constant dense<0.000000e+00> : vector<16x128xf32>
    %50 = tpu.matmul %47, %49, %cst_53 {dimension_numbers = #tpu.dot_dimension_numbers<[1], [0], [0], [1], [0, 0, 1, 1], [], []>} : vector<16x128xf32>, vector<128x128xf32>, vector<16x128xf32> -> vector<16x128xf32>
    %51 = arith.addf %44, %50 : vector<16x128xf32>
    %c0_54 = arith.constant 0 : index
    %c0_55 = arith.constant 0 : index
    %52 = vector.load %arg26[%c0_54, %c0_55] : memref<1x128xf32, #tpu.memory_space<vmem>>, vector<1x128xf32>
    %53 = vector.broadcast %52 : vector<1x128xf32> to vector<16x128xf32>
    %54 = arith.mulf %51, %53 : vector<16x128xf32>
    %c0_56 = arith.constant 0 : index
    %c0_57 = arith.constant 0 : index
    %55 = vector.load %arg25[%c0_56, %c0_57] : memref<1x128xf32, #tpu.memory_space<vmem>>, vector<1x128xf32>
    %56 = vector.broadcast %55 : vector<1x128xf32> to vector<16x128xf32>
    %57 = arith.addf %54, %56 : vector<16x128xf32>
    %cst_58 = arith.constant 0.000000e+00 : f32
    %58 = vector.broadcast %cst_58 : f32 to vector<16x128xf32>
    %59 = arith.maximumf %57, %58 : vector<16x128xf32>
    %c0_59 = arith.constant 0 : index
    %c0_60 = arith.constant 0 : index
    %c0_61 = arith.constant 0 : index
    %60 = vector.load %arg2[%c0_59, %c0_60, %c0_61] : memref<3x16x16xf32, #tpu.memory_space<vmem>>, vector<1x16x16xf32>
    %61 = vector.shape_cast %60 : vector<1x16x16xf32> to vector<16x16xf32>
    %cst_62 = arith.constant dense<0.000000e+00> : vector<16x128xf32>
    %62 = tpu.matmul %61, %59, %cst_62 {dimension_numbers = #tpu.dot_dimension_numbers<[1], [0], [0], [1], [0, 0, 1, 1], [], []>} : vector<16x16xf32>, vector<16x128xf32>, vector<16x128xf32> -> vector<16x128xf32>
    %c0_63 = arith.constant 0 : index
    %c0_64 = arith.constant 0 : index
    %c0_65 = arith.constant 0 : index
    %63 = vector.load %arg22[%c0_63, %c0_64, %c0_65] : memref<3x128x128xf32, #tpu.memory_space<vmem>>, vector<1x128x128xf32>
    %64 = vector.shape_cast %63 : vector<1x128x128xf32> to vector<128x128xf32>
    %cst_66 = arith.constant dense<0.000000e+00> : vector<16x128xf32>
    %65 = tpu.matmul %62, %64, %cst_66 {dimension_numbers = #tpu.dot_dimension_numbers<[1], [0], [0], [1], [0, 0, 1, 1], [], []>} : vector<16x128xf32>, vector<128x128xf32>, vector<16x128xf32> -> vector<16x128xf32>
    %c1_67 = arith.constant 1 : index
    %c0_68 = arith.constant 0 : index
    %c0_69 = arith.constant 0 : index
    %66 = vector.load %arg2[%c1_67, %c0_68, %c0_69] : memref<3x16x16xf32, #tpu.memory_space<vmem>>, vector<1x16x16xf32>
    %67 = vector.shape_cast %66 : vector<1x16x16xf32> to vector<16x16xf32>
    %cst_70 = arith.constant dense<0.000000e+00> : vector<16x128xf32>
    %68 = tpu.matmul %67, %59, %cst_70 {dimension_numbers = #tpu.dot_dimension_numbers<[1], [0], [0], [1], [0, 0, 1, 1], [], []>} : vector<16x16xf32>, vector<16x128xf32>, vector<16x128xf32> -> vector<16x128xf32>
    %c1_71 = arith.constant 1 : index
    %c0_72 = arith.constant 0 : index
    %c0_73 = arith.constant 0 : index
    %69 = vector.load %arg22[%c1_71, %c0_72, %c0_73] : memref<3x128x128xf32, #tpu.memory_space<vmem>>, vector<1x128x128xf32>
    %70 = vector.shape_cast %69 : vector<1x128x128xf32> to vector<128x128xf32>
    %cst_74 = arith.constant dense<0.000000e+00> : vector<16x128xf32>
    %71 = tpu.matmul %68, %70, %cst_74 {dimension_numbers = #tpu.dot_dimension_numbers<[1], [0], [0], [1], [0, 0, 1, 1], [], []>} : vector<16x128xf32>, vector<128x128xf32>, vector<16x128xf32> -> vector<16x128xf32>
    %72 = arith.addf %65, %71 : vector<16x128xf32>
    %c2_75 = arith.constant 2 : index
    %c0_76 = arith.constant 0 : index
    %c0_77 = arith.constant 0 : index
    %73 = vector.load %arg2[%c2_75, %c0_76, %c0_77] : memref<3x16x16xf32, #tpu.memory_space<vmem>>, vector<1x16x16xf32>
    %74 = vector.shape_cast %73 : vector<1x16x16xf32> to vector<16x16xf32>
    %cst_78 = arith.constant dense<0.000000e+00> : vector<16x128xf32>
    %75 = tpu.matmul %74, %59, %cst_78 {dimension_numbers = #tpu.dot_dimension_numbers<[1], [0], [0], [1], [0, 0, 1, 1], [], []>} : vector<16x16xf32>, vector<16x128xf32>, vector<16x128xf32> -> vector<16x128xf32>
    %c2_79 = arith.constant 2 : index
    %c0_80 = arith.constant 0 : index
    %c0_81 = arith.constant 0 : index
    %76 = vector.load %arg22[%c2_79, %c0_80, %c0_81] : memref<3x128x128xf32, #tpu.memory_space<vmem>>, vector<1x128x128xf32>
    %77 = vector.shape_cast %76 : vector<1x128x128xf32> to vector<128x128xf32>
    %cst_82 = arith.constant dense<0.000000e+00> : vector<16x128xf32>
    %78 = tpu.matmul %75, %77, %cst_82 {dimension_numbers = #tpu.dot_dimension_numbers<[1], [0], [0], [1], [0, 0, 1, 1], [], []>} : vector<16x128xf32>, vector<128x128xf32>, vector<16x128xf32> -> vector<16x128xf32>
    %79 = arith.addf %72, %78 : vector<16x128xf32>
    %cst_83 = arith.constant 3.906250e-03 : f32
    %80 = vector.broadcast %cst_83 : f32 to vector<1x16xf32>
    %cst_84 = arith.constant dense<0.000000e+00> : vector<1x128xf32>
    %81 = tpu.matmul %80, %79, %cst_84 {dimension_numbers = #tpu.dot_dimension_numbers<[1], [0], [0], [1], [0, 0, 1, 1], [], []>} : vector<1x16xf32>, vector<16x128xf32>, vector<1x128xf32> -> vector<1x128xf32>
    %c0_85 = arith.constant 0 : index
    %c0_86 = arith.constant 0 : index
    %82 = vector.load %arg5[%c0_85, %c0_86] : memref<128x8xf32, #tpu.memory_space<vmem>>, vector<128x8xf32>
    %cst_87 = arith.constant dense<0.000000e+00> : vector<1x8xf32>
    %83 = tpu.matmul %81, %82, %cst_87 {dimension_numbers = #tpu.dot_dimension_numbers<[1], [0], [0], [1], [0, 0, 1, 1], [], []>} : vector<1x128xf32>, vector<128x8xf32>, vector<1x8xf32> -> vector<1x8xf32>
    %c0_88 = arith.constant 0 : index
    %c0_89 = arith.constant 0 : index
    %84 = vector.load %arg19[%c0_88, %c0_89] : memref<8x2xf32, #tpu.memory_space<vmem>>, vector<8x2xf32>
    %cst_90 = arith.constant dense<0.000000e+00> : vector<1x2xf32>
    %85 = tpu.matmul %83, %84, %cst_90 {dimension_numbers = #tpu.dot_dimension_numbers<[1], [0], [0], [1], [0, 0, 1, 1], [], []>} : vector<1x8xf32>, vector<8x2xf32>, vector<1x2xf32> -> vector<1x2xf32>
    %c0_91 = arith.constant 0 : index
    %c0_92 = arith.constant 0 : index
    %86 = vector.load %arg18[%c0_91, %c0_92] : memref<1x2xf32, #tpu.memory_space<vmem>>, vector<1x2xf32>
    %87 = arith.addf %85, %86 : vector<1x2xf32>
    %cst_93 = arith.constant 0.000000e+00 : f32
    %88 = vector.broadcast %cst_93 : f32 to vector<1x2xf32>
    %89 = arith.maximumf %87, %88 : vector<1x2xf32>
    %c0_94 = arith.constant 0 : index
    %c0_95 = arith.constant 0 : index
    %90 = vector.load %arg16[%c0_94, %c0_95] : memref<8x2xf32, #tpu.memory_space<vmem>>, vector<8x2xf32>
    %cst_96 = arith.constant dense<0.000000e+00> : vector<1x2xf32>
    %91 = tpu.matmul %22, %90, %cst_96 {dimension_numbers = #tpu.dot_dimension_numbers<[1], [0], [0], [1], [0, 0, 1, 1], [], []>} : vector<1x8xf32>, vector<8x2xf32>, vector<1x2xf32> -> vector<1x2xf32>
    %c0_97 = arith.constant 0 : index
    %c0_98 = arith.constant 0 : index
    %92 = vector.load %arg15[%c0_97, %c0_98] : memref<1x2xf32, #tpu.memory_space<vmem>>, vector<1x2xf32>
    %93 = arith.addf %91, %92 : vector<1x2xf32>
    %cst_99 = arith.constant 0.000000e+00 : f32
    %94 = vector.broadcast %cst_99 : f32 to vector<1x2xf32>
    %95 = arith.maximumf %93, %94 : vector<1x2xf32>
    %c0_100 = arith.constant 0 : index
    %c0_101 = arith.constant 0 : index
    %c0_102 = arith.constant 0 : index
    %96 = vector.load %arg20[%c0_100, %c0_101, %c0_102] : memref<4x2x8xf32, #tpu.memory_space<vmem>>, vector<1x2x8xf32>
    %97 = vector.shape_cast %96 : vector<1x2x8xf32> to vector<2x8xf32>
    %cst_103 = arith.constant dense<0.000000e+00> : vector<1x8xf32>
    %98 = tpu.matmul %89, %97, %cst_103 {dimension_numbers = #tpu.dot_dimension_numbers<[1], [0], [0], [1], [0, 0, 1, 1], [], []>} : vector<1x2xf32>, vector<2x8xf32>, vector<1x8xf32> -> vector<1x8xf32>
    %c0_104 = arith.constant 0 : index
    %c0_105 = arith.constant 0 : index
    %c0_106 = arith.constant 0 : index
    %99 = vector.load %arg17[%c0_104, %c0_105, %c0_106] : memref<4x2x8xf32, #tpu.memory_space<vmem>>, vector<1x2x8xf32>
    %100 = vector.shape_cast %99 : vector<1x2x8xf32> to vector<2x8xf32>
    %cst_107 = arith.constant dense<0.000000e+00> : vector<1x8xf32>
    %101 = tpu.matmul %95, %100, %cst_107 {dimension_numbers = #tpu.dot_dimension_numbers<[1], [0], [0], [1], [0, 0, 1, 1], [], []>} : vector<1x2xf32>, vector<2x8xf32>, vector<1x8xf32> -> vector<1x8xf32>
    %102 = arith.addf %98, %101 : vector<1x8xf32>
    %c0_108 = arith.constant 0 : index
    %c0_109 = arith.constant 0 : index
    %c0_110 = arith.constant 0 : index
    %103 = vector.load %arg14[%c0_108, %c0_109, %c0_110] : memref<4x1x8xf32, #tpu.memory_space<vmem>>, vector<1x1x8xf32>
    %104 = vector.shape_cast %103 : vector<1x1x8xf32> to vector<1x8xf32>
    %105 = arith.addf %102, %104 : vector<1x8xf32>
    %cst_111 = arith.constant 0.000000e+00 : f32
    %106 = vector.broadcast %cst_111 : f32 to vector<1x8xf32>
    %107 = arith.subf %106, %105 : vector<1x8xf32>
    %108 = math.exp %107 : vector<1x8xf32>
    %cst_112 = arith.constant 1.000000e+00 : f32
    %109 = vector.broadcast %cst_112 : f32 to vector<1x8xf32>
    %110 = arith.addf %109, %108 : vector<1x8xf32>
    %cst_113 = arith.constant 1.000000e+00 : f32
    %111 = vector.broadcast %cst_113 : f32 to vector<1x8xf32>
    %112 = arith.divf %111, %110 : vector<1x8xf32>
    %c1_114 = arith.constant 1 : index
    %c0_115 = arith.constant 0 : index
    %c0_116 = arith.constant 0 : index
    %113 = vector.load %arg20[%c1_114, %c0_115, %c0_116] : memref<4x2x8xf32, #tpu.memory_space<vmem>>, vector<1x2x8xf32>
    %114 = vector.shape_cast %113 : vector<1x2x8xf32> to vector<2x8xf32>
    %cst_117 = arith.constant dense<0.000000e+00> : vector<1x8xf32>
    %115 = tpu.matmul %89, %114, %cst_117 {dimension_numbers = #tpu.dot_dimension_numbers<[1], [0], [0], [1], [0, 0, 1, 1], [], []>} : vector<1x2xf32>, vector<2x8xf32>, vector<1x8xf32> -> vector<1x8xf32>
    %c1_118 = arith.constant 1 : index
    %c0_119 = arith.constant 0 : index
    %c0_120 = arith.constant 0 : index
    %116 = vector.load %arg17[%c1_118, %c0_119, %c0_120] : memref<4x2x8xf32, #tpu.memory_space<vmem>>, vector<1x2x8xf32>
    %117 = vector.shape_cast %116 : vector<1x2x8xf32> to vector<2x8xf32>
    %cst_121 = arith.constant dense<0.000000e+00> : vector<1x8xf32>
    %118 = tpu.matmul %95, %117, %cst_121 {dimension_numbers = #tpu.dot_dimension_numbers<[1], [0], [0], [1], [0, 0, 1, 1], [], []>} : vector<1x2xf32>, vector<2x8xf32>, vector<1x8xf32> -> vector<1x8xf32>
    %119 = arith.addf %115, %118 : vector<1x8xf32>
    %c1_122 = arith.constant 1 : index
    %c0_123 = arith.constant 0 : index
    %c0_124 = arith.constant 0 : index
    %120 = vector.load %arg14[%c1_122, %c0_123, %c0_124] : memref<4x1x8xf32, #tpu.memory_space<vmem>>, vector<1x1x8xf32>
    %121 = vector.shape_cast %120 : vector<1x1x8xf32> to vector<1x8xf32>
    %122 = arith.addf %119, %121 : vector<1x8xf32>
    %cst_125 = arith.constant 0.000000e+00 : f32
    %123 = vector.broadcast %cst_125 : f32 to vector<1x8xf32>
    %124 = arith.subf %123, %122 : vector<1x8xf32>
    %125 = math.exp %124 : vector<1x8xf32>
    %cst_126 = arith.constant 1.000000e+00 : f32
    %126 = vector.broadcast %cst_126 : f32 to vector<1x8xf32>
    %127 = arith.addf %126, %125 : vector<1x8xf32>
    %cst_127 = arith.constant 1.000000e+00 : f32
    %128 = vector.broadcast %cst_127 : f32 to vector<1x8xf32>
    %129 = arith.divf %128, %127 : vector<1x8xf32>
    %c2_128 = arith.constant 2 : index
    %c0_129 = arith.constant 0 : index
    %c0_130 = arith.constant 0 : index
    %130 = vector.load %arg20[%c2_128, %c0_129, %c0_130] : memref<4x2x8xf32, #tpu.memory_space<vmem>>, vector<1x2x8xf32>
    %131 = vector.shape_cast %130 : vector<1x2x8xf32> to vector<2x8xf32>
    %cst_131 = arith.constant dense<0.000000e+00> : vector<1x8xf32>
    %132 = tpu.matmul %89, %131, %cst_131 {dimension_numbers = #tpu.dot_dimension_numbers<[1], [0], [0], [1], [0, 0, 1, 1], [], []>} : vector<1x2xf32>, vector<2x8xf32>, vector<1x8xf32> -> vector<1x8xf32>
    %c2_132 = arith.constant 2 : index
    %c0_133 = arith.constant 0 : index
    %c0_134 = arith.constant 0 : index
    %133 = vector.load %arg17[%c2_132, %c0_133, %c0_134] : memref<4x2x8xf32, #tpu.memory_space<vmem>>, vector<1x2x8xf32>
    %134 = vector.shape_cast %133 : vector<1x2x8xf32> to vector<2x8xf32>
    %cst_135 = arith.constant dense<0.000000e+00> : vector<1x8xf32>
    %135 = tpu.matmul %95, %134, %cst_135 {dimension_numbers = #tpu.dot_dimension_numbers<[1], [0], [0], [1], [0, 0, 1, 1], [], []>} : vector<1x2xf32>, vector<2x8xf32>, vector<1x8xf32> -> vector<1x8xf32>
    %136 = arith.addf %132, %135 : vector<1x8xf32>
    %c2_136 = arith.constant 2 : index
    %c0_137 = arith.constant 0 : index
    %c0_138 = arith.constant 0 : index
    %137 = vector.load %arg14[%c2_136, %c0_137, %c0_138] : memref<4x1x8xf32, #tpu.memory_space<vmem>>, vector<1x1x8xf32>
    %138 = vector.shape_cast %137 : vector<1x1x8xf32> to vector<1x8xf32>
    %139 = arith.addf %136, %138 : vector<1x8xf32>
    %140 = math.tanh %139 : vector<1x8xf32>
    %c3 = arith.constant 3 : index
    %c0_139 = arith.constant 0 : index
    %c0_140 = arith.constant 0 : index
    %141 = vector.load %arg20[%c3, %c0_139, %c0_140] : memref<4x2x8xf32, #tpu.memory_space<vmem>>, vector<1x2x8xf32>
    %142 = vector.shape_cast %141 : vector<1x2x8xf32> to vector<2x8xf32>
    %cst_141 = arith.constant dense<0.000000e+00> : vector<1x8xf32>
    %143 = tpu.matmul %89, %142, %cst_141 {dimension_numbers = #tpu.dot_dimension_numbers<[1], [0], [0], [1], [0, 0, 1, 1], [], []>} : vector<1x2xf32>, vector<2x8xf32>, vector<1x8xf32> -> vector<1x8xf32>
    %c3_142 = arith.constant 3 : index
    %c0_143 = arith.constant 0 : index
    %c0_144 = arith.constant 0 : index
    %144 = vector.load %arg17[%c3_142, %c0_143, %c0_144] : memref<4x2x8xf32, #tpu.memory_space<vmem>>, vector<1x2x8xf32>
    %145 = vector.shape_cast %144 : vector<1x2x8xf32> to vector<2x8xf32>
    %cst_145 = arith.constant dense<0.000000e+00> : vector<1x8xf32>
    %146 = tpu.matmul %95, %145, %cst_145 {dimension_numbers = #tpu.dot_dimension_numbers<[1], [0], [0], [1], [0, 0, 1, 1], [], []>} : vector<1x2xf32>, vector<2x8xf32>, vector<1x8xf32> -> vector<1x8xf32>
    %147 = arith.addf %143, %146 : vector<1x8xf32>
    %c3_146 = arith.constant 3 : index
    %c0_147 = arith.constant 0 : index
    %c0_148 = arith.constant 0 : index
    %148 = vector.load %arg14[%c3_146, %c0_147, %c0_148] : memref<4x1x8xf32, #tpu.memory_space<vmem>>, vector<1x1x8xf32>
    %149 = vector.shape_cast %148 : vector<1x1x8xf32> to vector<1x8xf32>
    %150 = arith.addf %147, %149 : vector<1x8xf32>
    %cst_149 = arith.constant 0.000000e+00 : f32
    %151 = vector.broadcast %cst_149 : f32 to vector<1x8xf32>
    %152 = arith.subf %151, %150 : vector<1x8xf32>
    %153 = math.exp %152 : vector<1x8xf32>
    %cst_150 = arith.constant 1.000000e+00 : f32
    %154 = vector.broadcast %cst_150 : f32 to vector<1x8xf32>
    %155 = arith.addf %154, %153 : vector<1x8xf32>
    %cst_151 = arith.constant 1.000000e+00 : f32
    %156 = vector.broadcast %cst_151 : f32 to vector<1x8xf32>
    %157 = arith.divf %156, %155 : vector<1x8xf32>
    %158 = arith.mulf %129, %23 : vector<1x8xf32>
    %159 = arith.mulf %112, %140 : vector<1x8xf32>
    %160 = arith.addf %158, %159 : vector<1x8xf32>
    %cst_152 = arith.constant 0.000000e+00 : f32
    %161 = vector.broadcast %cst_152 : f32 to vector<1x8xf32>
    %162 = arith.subf %161, %160 : vector<1x8xf32>
    %163 = math.exp %162 : vector<1x8xf32>
    %cst_153 = arith.constant 1.000000e+00 : f32
    %164 = vector.broadcast %cst_153 : f32 to vector<1x8xf32>
    %165 = arith.addf %164, %163 : vector<1x8xf32>
    %cst_154 = arith.constant 1.000000e+00 : f32
    %166 = vector.broadcast %cst_154 : f32 to vector<1x8xf32>
    %167 = arith.divf %166, %165 : vector<1x8xf32>
    %168 = arith.mulf %157, %167 : vector<1x8xf32>
    %c0_155 = arith.constant 0 : index
    %c0_156 = arith.constant 0 : index
    %169 = vector.load %arg7[%c0_155, %c0_156] : memref<8x128xf32, #tpu.memory_space<vmem>>, vector<8x128xf32>
    %cst_157 = arith.constant dense<0.000000e+00> : vector<1x128xf32>
    %170 = tpu.matmul %168, %169, %cst_157 {dimension_numbers = #tpu.dot_dimension_numbers<[1], [0], [0], [1], [0, 0, 1, 1], [], []>} : vector<1x8xf32>, vector<8x128xf32>, vector<1x128xf32> -> vector<1x128xf32>
    %171 = vector.broadcast %170 : vector<1x128xf32> to vector<16x128xf32>
    %172 = arith.mulf %79, %171 : vector<16x128xf32>
    %173 = arith.addf %172, %21 : vector<16x128xf32>
    %c0_158 = arith.constant 0 : index
    %c0_159 = arith.constant 0 : index
    %174 = vector.load %arg30[%c0_158, %c0_159] : memref<1x128xf32, #tpu.memory_space<vmem>>, vector<1x128xf32>
    %175 = vector.broadcast %174 : vector<1x128xf32> to vector<16x128xf32>
    %176 = arith.mulf %173, %175 : vector<16x128xf32>
    %c0_160 = arith.constant 0 : index
    %c0_161 = arith.constant 0 : index
    %177 = vector.load %arg29[%c0_160, %c0_161] : memref<1x128xf32, #tpu.memory_space<vmem>>, vector<1x128xf32>
    %178 = vector.broadcast %177 : vector<1x128xf32> to vector<16x128xf32>
    %179 = arith.addf %176, %178 : vector<16x128xf32>
    %cst_162 = arith.constant 0.000000e+00 : f32
    %180 = vector.broadcast %cst_162 : f32 to vector<16x128xf32>
    %181 = arith.maximumf %179, %180 : vector<16x128xf32>
    %c0_163 = arith.constant 0 : index
    %c0_164 = arith.constant 0 : index
    %c0_165 = arith.constant 0 : index
    %182 = vector.load %arg2[%c0_163, %c0_164, %c0_165] : memref<3x16x16xf32, #tpu.memory_space<vmem>>, vector<1x16x16xf32>
    %183 = vector.shape_cast %182 : vector<1x16x16xf32> to vector<16x16xf32>
    %cst_166 = arith.constant dense<0.000000e+00> : vector<16x128xf32>
    %184 = tpu.matmul %183, %181, %cst_166 {dimension_numbers = #tpu.dot_dimension_numbers<[1], [0], [0], [1], [0, 0, 1, 1], [], []>} : vector<16x16xf32>, vector<16x128xf32>, vector<16x128xf32> -> vector<16x128xf32>
    %c0_167 = arith.constant 0 : index
    %c0_168 = arith.constant 0 : index
    %c0_169 = arith.constant 0 : index
    %185 = vector.load %arg27[%c0_167, %c0_168, %c0_169] : memref<3x128x128xf32, #tpu.memory_space<vmem>>, vector<1x128x128xf32>
    %186 = vector.shape_cast %185 : vector<1x128x128xf32> to vector<128x128xf32>
    %cst_170 = arith.constant dense<0.000000e+00> : vector<16x128xf32>
    %187 = tpu.matmul %184, %186, %cst_170 {dimension_numbers = #tpu.dot_dimension_numbers<[1], [0], [0], [1], [0, 0, 1, 1], [], []>} : vector<16x128xf32>, vector<128x128xf32>, vector<16x128xf32> -> vector<16x128xf32>
    %c1_171 = arith.constant 1 : index
    %c0_172 = arith.constant 0 : index
    %c0_173 = arith.constant 0 : index
    %188 = vector.load %arg2[%c1_171, %c0_172, %c0_173] : memref<3x16x16xf32, #tpu.memory_space<vmem>>, vector<1x16x16xf32>
    %189 = vector.shape_cast %188 : vector<1x16x16xf32> to vector<16x16xf32>
    %cst_174 = arith.constant dense<0.000000e+00> : vector<16x128xf32>
    %190 = tpu.matmul %189, %181, %cst_174 {dimension_numbers = #tpu.dot_dimension_numbers<[1], [0], [0], [1], [0, 0, 1, 1], [], []>} : vector<16x16xf32>, vector<16x128xf32>, vector<16x128xf32> -> vector<16x128xf32>
    %c1_175 = arith.constant 1 : index
    %c0_176 = arith.constant 0 : index
    %c0_177 = arith.constant 0 : index
    %191 = vector.load %arg27[%c1_175, %c0_176, %c0_177] : memref<3x128x128xf32, #tpu.memory_space<vmem>>, vector<1x128x128xf32>
    %192 = vector.shape_cast %191 : vector<1x128x128xf32> to vector<128x128xf32>
    %cst_178 = arith.constant dense<0.000000e+00> : vector<16x128xf32>
    %193 = tpu.matmul %190, %192, %cst_178 {dimension_numbers = #tpu.dot_dimension_numbers<[1], [0], [0], [1], [0, 0, 1, 1], [], []>} : vector<16x128xf32>, vector<128x128xf32>, vector<16x128xf32> -> vector<16x128xf32>
    %194 = arith.addf %187, %193 : vector<16x128xf32>
    %c2_179 = arith.constant 2 : index
    %c0_180 = arith.constant 0 : index
    %c0_181 = arith.constant 0 : index
    %195 = vector.load %arg2[%c2_179, %c0_180, %c0_181] : memref<3x16x16xf32, #tpu.memory_space<vmem>>, vector<1x16x16xf32>
    %196 = vector.shape_cast %195 : vector<1x16x16xf32> to vector<16x16xf32>
    %cst_182 = arith.constant dense<0.000000e+00> : vector<16x128xf32>
    %197 = tpu.matmul %196, %181, %cst_182 {dimension_numbers = #tpu.dot_dimension_numbers<[1], [0], [0], [1], [0, 0, 1, 1], [], []>} : vector<16x16xf32>, vector<16x128xf32>, vector<16x128xf32> -> vector<16x128xf32>
    %c2_183 = arith.constant 2 : index
    %c0_184 = arith.constant 0 : index
    %c0_185 = arith.constant 0 : index
    %198 = vector.load %arg27[%c2_183, %c0_184, %c0_185] : memref<3x128x128xf32, #tpu.memory_space<vmem>>, vector<1x128x128xf32>
    %199 = vector.shape_cast %198 : vector<1x128x128xf32> to vector<128x128xf32>
    %cst_186 = arith.constant dense<0.000000e+00> : vector<16x128xf32>
    %200 = tpu.matmul %197, %199, %cst_186 {dimension_numbers = #tpu.dot_dimension_numbers<[1], [0], [0], [1], [0, 0, 1, 1], [], []>} : vector<16x128xf32>, vector<128x128xf32>, vector<16x128xf32> -> vector<16x128xf32>
    %201 = arith.addf %194, %200 : vector<16x128xf32>
    %c0_187 = arith.constant 0 : index
    %c0_188 = arith.constant 0 : index
    %202 = vector.load %arg32[%c0_187, %c0_188] : memref<1x128xf32, #tpu.memory_space<vmem>>, vector<1x128xf32>
    %203 = vector.broadcast %202 : vector<1x128xf32> to vector<16x128xf32>
    %204 = arith.mulf %201, %203 : vector<16x128xf32>
    %c0_189 = arith.constant 0 : index
    %c0_190 = arith.constant 0 : index
    %205 = vector.load %arg31[%c0_189, %c0_190] : memref<1x128xf32, #tpu.memory_space<vmem>>, vector<1x128xf32>
    %206 = vector.broadcast %205 : vector<1x128xf32> to vector<16x128xf32>
    %207 = arith.addf %204, %206 : vector<16x128xf32>
    %cst_191 = arith.constant 0.000000e+00 : f32
    %208 = vector.broadcast %cst_191 : f32 to vector<16x128xf32>
    %209 = arith.maximumf %207, %208 : vector<16x128xf32>
    %c0_192 = arith.constant 0 : index
    %c0_193 = arith.constant 0 : index
    %c0_194 = arith.constant 0 : index
    %210 = vector.load %arg2[%c0_192, %c0_193, %c0_194] : memref<3x16x16xf32, #tpu.memory_space<vmem>>, vector<1x16x16xf32>
    %211 = vector.shape_cast %210 : vector<1x16x16xf32> to vector<16x16xf32>
    %cst_195 = arith.constant dense<0.000000e+00> : vector<16x128xf32>
    %212 = tpu.matmul %211, %209, %cst_195 {dimension_numbers = #tpu.dot_dimension_numbers<[1], [0], [0], [1], [0, 0, 1, 1], [], []>} : vector<16x16xf32>, vector<16x128xf32>, vector<16x128xf32> -> vector<16x128xf32>
    %c0_196 = arith.constant 0 : index
    %c0_197 = arith.constant 0 : index
    %c0_198 = arith.constant 0 : index
    %213 = vector.load %arg28[%c0_196, %c0_197, %c0_198] : memref<3x128x128xf32, #tpu.memory_space<vmem>>, vector<1x128x128xf32>
    %214 = vector.shape_cast %213 : vector<1x128x128xf32> to vector<128x128xf32>
    %cst_199 = arith.constant dense<0.000000e+00> : vector<16x128xf32>
    %215 = tpu.matmul %212, %214, %cst_199 {dimension_numbers = #tpu.dot_dimension_numbers<[1], [0], [0], [1], [0, 0, 1, 1], [], []>} : vector<16x128xf32>, vector<128x128xf32>, vector<16x128xf32> -> vector<16x128xf32>
    %c1_200 = arith.constant 1 : index
    %c0_201 = arith.constant 0 : index
    %c0_202 = arith.constant 0 : index
    %216 = vector.load %arg2[%c1_200, %c0_201, %c0_202] : memref<3x16x16xf32, #tpu.memory_space<vmem>>, vector<1x16x16xf32>
    %217 = vector.shape_cast %216 : vector<1x16x16xf32> to vector<16x16xf32>
    %cst_203 = arith.constant dense<0.000000e+00> : vector<16x128xf32>
    %218 = tpu.matmul %217, %209, %cst_203 {dimension_numbers = #tpu.dot_dimension_numbers<[1], [0], [0], [1], [0, 0, 1, 1], [], []>} : vector<16x16xf32>, vector<16x128xf32>, vector<16x128xf32> -> vector<16x128xf32>
    %c1_204 = arith.constant 1 : index
    %c0_205 = arith.constant 0 : index
    %c0_206 = arith.constant 0 : index
    %219 = vector.load %arg28[%c1_204, %c0_205, %c0_206] : memref<3x128x128xf32, #tpu.memory_space<vmem>>, vector<1x128x128xf32>
    %220 = vector.shape_cast %219 : vector<1x128x128xf32> to vector<128x128xf32>
    %cst_207 = arith.constant dense<0.000000e+00> : vector<16x128xf32>
    %221 = tpu.matmul %218, %220, %cst_207 {dimension_numbers = #tpu.dot_dimension_numbers<[1], [0], [0], [1], [0, 0, 1, 1], [], []>} : vector<16x128xf32>, vector<128x128xf32>, vector<16x128xf32> -> vector<16x128xf32>
    %222 = arith.addf %215, %221 : vector<16x128xf32>
    %c2_208 = arith.constant 2 : index
    %c0_209 = arith.constant 0 : index
    %c0_210 = arith.constant 0 : index
    %223 = vector.load %arg2[%c2_208, %c0_209, %c0_210] : memref<3x16x16xf32, #tpu.memory_space<vmem>>, vector<1x16x16xf32>
    %224 = vector.shape_cast %223 : vector<1x16x16xf32> to vector<16x16xf32>
    %cst_211 = arith.constant dense<0.000000e+00> : vector<16x128xf32>
    %225 = tpu.matmul %224, %209, %cst_211 {dimension_numbers = #tpu.dot_dimension_numbers<[1], [0], [0], [1], [0, 0, 1, 1], [], []>} : vector<16x16xf32>, vector<16x128xf32>, vector<16x128xf32> -> vector<16x128xf32>
    %c2_212 = arith.constant 2 : index
    %c0_213 = arith.constant 0 : index
    %c0_214 = arith.constant 0 : index
    %226 = vector.load %arg28[%c2_212, %c0_213, %c0_214] : memref<3x128x128xf32, #tpu.memory_space<vmem>>, vector<1x128x128xf32>
    %227 = vector.shape_cast %226 : vector<1x128x128xf32> to vector<128x128xf32>
    %cst_215 = arith.constant dense<0.000000e+00> : vector<16x128xf32>
    %228 = tpu.matmul %225, %227, %cst_215 {dimension_numbers = #tpu.dot_dimension_numbers<[1], [0], [0], [1], [0, 0, 1, 1], [], []>} : vector<16x128xf32>, vector<128x128xf32>, vector<16x128xf32> -> vector<16x128xf32>
    %229 = arith.addf %222, %228 : vector<16x128xf32>
    %cst_216 = arith.constant 3.906250e-03 : f32
    %230 = vector.broadcast %cst_216 : f32 to vector<1x16xf32>
    %cst_217 = arith.constant dense<0.000000e+00> : vector<1x128xf32>
    %231 = tpu.matmul %230, %229, %cst_217 {dimension_numbers = #tpu.dot_dimension_numbers<[1], [0], [0], [1], [0, 0, 1, 1], [], []>} : vector<1x16xf32>, vector<16x128xf32>, vector<1x128xf32> -> vector<1x128xf32>
    %c0_218 = arith.constant 0 : index
    %c0_219 = arith.constant 0 : index
    %232 = vector.load %arg5[%c0_218, %c0_219] : memref<128x8xf32, #tpu.memory_space<vmem>>, vector<128x8xf32>
    %cst_220 = arith.constant dense<0.000000e+00> : vector<1x8xf32>
    %233 = tpu.matmul %231, %232, %cst_220 {dimension_numbers = #tpu.dot_dimension_numbers<[1], [0], [0], [1], [0, 0, 1, 1], [], []>} : vector<1x128xf32>, vector<128x8xf32>, vector<1x8xf32> -> vector<1x8xf32>
    %c0_221 = arith.constant 0 : index
    %c0_222 = arith.constant 0 : index
    %234 = vector.load %arg19[%c0_221, %c0_222] : memref<8x2xf32, #tpu.memory_space<vmem>>, vector<8x2xf32>
    %cst_223 = arith.constant dense<0.000000e+00> : vector<1x2xf32>
    %235 = tpu.matmul %233, %234, %cst_223 {dimension_numbers = #tpu.dot_dimension_numbers<[1], [0], [0], [1], [0, 0, 1, 1], [], []>} : vector<1x8xf32>, vector<8x2xf32>, vector<1x2xf32> -> vector<1x2xf32>
    %c0_224 = arith.constant 0 : index
    %c0_225 = arith.constant 0 : index
    %236 = vector.load %arg18[%c0_224, %c0_225] : memref<1x2xf32, #tpu.memory_space<vmem>>, vector<1x2xf32>
    %237 = arith.addf %235, %236 : vector<1x2xf32>
    %cst_226 = arith.constant 0.000000e+00 : f32
    %238 = vector.broadcast %cst_226 : f32 to vector<1x2xf32>
    %239 = arith.maximumf %237, %238 : vector<1x2xf32>
    %c0_227 = arith.constant 0 : index
    %c0_228 = arith.constant 0 : index
    %240 = vector.load %arg16[%c0_227, %c0_228] : memref<8x2xf32, #tpu.memory_space<vmem>>, vector<8x2xf32>
    %cst_229 = arith.constant dense<0.000000e+00> : vector<1x2xf32>
    %241 = tpu.matmul %168, %240, %cst_229 {dimension_numbers = #tpu.dot_dimension_numbers<[1], [0], [0], [1], [0, 0, 1, 1], [], []>} : vector<1x8xf32>, vector<8x2xf32>, vector<1x2xf32> -> vector<1x2xf32>
    %c0_230 = arith.constant 0 : index
    %c0_231 = arith.constant 0 : index
    %242 = vector.load %arg15[%c0_230, %c0_231] : memref<1x2xf32, #tpu.memory_space<vmem>>, vector<1x2xf32>
    %243 = arith.addf %241, %242 : vector<1x2xf32>
    %cst_232 = arith.constant 0.000000e+00 : f32
    %244 = vector.broadcast %cst_232 : f32 to vector<1x2xf32>
    %245 = arith.maximumf %243, %244 : vector<1x2xf32>
    %c0_233 = arith.constant 0 : index
    %c0_234 = arith.constant 0 : index
    %c0_235 = arith.constant 0 : index
    %246 = vector.load %arg20[%c0_233, %c0_234, %c0_235] : memref<4x2x8xf32, #tpu.memory_space<vmem>>, vector<1x2x8xf32>
    %247 = vector.shape_cast %246 : vector<1x2x8xf32> to vector<2x8xf32>
    %cst_236 = arith.constant dense<0.000000e+00> : vector<1x8xf32>
    %248 = tpu.matmul %239, %247, %cst_236 {dimension_numbers = #tpu.dot_dimension_numbers<[1], [0], [0], [1], [0, 0, 1, 1], [], []>} : vector<1x2xf32>, vector<2x8xf32>, vector<1x8xf32> -> vector<1x8xf32>
    %c0_237 = arith.constant 0 : index
    %c0_238 = arith.constant 0 : index
    %c0_239 = arith.constant 0 : index
    %249 = vector.load %arg17[%c0_237, %c0_238, %c0_239] : memref<4x2x8xf32, #tpu.memory_space<vmem>>, vector<1x2x8xf32>
    %250 = vector.shape_cast %249 : vector<1x2x8xf32> to vector<2x8xf32>
    %cst_240 = arith.constant dense<0.000000e+00> : vector<1x8xf32>
    %251 = tpu.matmul %245, %250, %cst_240 {dimension_numbers = #tpu.dot_dimension_numbers<[1], [0], [0], [1], [0, 0, 1, 1], [], []>} : vector<1x2xf32>, vector<2x8xf32>, vector<1x8xf32> -> vector<1x8xf32>
    %252 = arith.addf %248, %251 : vector<1x8xf32>
    %c0_241 = arith.constant 0 : index
    %c0_242 = arith.constant 0 : index
    %c0_243 = arith.constant 0 : index
    %253 = vector.load %arg14[%c0_241, %c0_242, %c0_243] : memref<4x1x8xf32, #tpu.memory_space<vmem>>, vector<1x1x8xf32>
    %254 = vector.shape_cast %253 : vector<1x1x8xf32> to vector<1x8xf32>
    %255 = arith.addf %252, %254 : vector<1x8xf32>
    %cst_244 = arith.constant 0.000000e+00 : f32
    %256 = vector.broadcast %cst_244 : f32 to vector<1x8xf32>
    %257 = arith.subf %256, %255 : vector<1x8xf32>
    %258 = math.exp %257 : vector<1x8xf32>
    %cst_245 = arith.constant 1.000000e+00 : f32
    %259 = vector.broadcast %cst_245 : f32 to vector<1x8xf32>
    %260 = arith.addf %259, %258 : vector<1x8xf32>
    %cst_246 = arith.constant 1.000000e+00 : f32
    %261 = vector.broadcast %cst_246 : f32 to vector<1x8xf32>
    %262 = arith.divf %261, %260 : vector<1x8xf32>
    %c1_247 = arith.constant 1 : index
    %c0_248 = arith.constant 0 : index
    %c0_249 = arith.constant 0 : index
    %263 = vector.load %arg20[%c1_247, %c0_248, %c0_249] : memref<4x2x8xf32, #tpu.memory_space<vmem>>, vector<1x2x8xf32>
    %264 = vector.shape_cast %263 : vector<1x2x8xf32> to vector<2x8xf32>
    %cst_250 = arith.constant dense<0.000000e+00> : vector<1x8xf32>
    %265 = tpu.matmul %239, %264, %cst_250 {dimension_numbers = #tpu.dot_dimension_numbers<[1], [0], [0], [1], [0, 0, 1, 1], [], []>} : vector<1x2xf32>, vector<2x8xf32>, vector<1x8xf32> -> vector<1x8xf32>
    %c1_251 = arith.constant 1 : index
    %c0_252 = arith.constant 0 : index
    %c0_253 = arith.constant 0 : index
    %266 = vector.load %arg17[%c1_251, %c0_252, %c0_253] : memref<4x2x8xf32, #tpu.memory_space<vmem>>, vector<1x2x8xf32>
    %267 = vector.shape_cast %266 : vector<1x2x8xf32> to vector<2x8xf32>
    %cst_254 = arith.constant dense<0.000000e+00> : vector<1x8xf32>
    %268 = tpu.matmul %245, %267, %cst_254 {dimension_numbers = #tpu.dot_dimension_numbers<[1], [0], [0], [1], [0, 0, 1, 1], [], []>} : vector<1x2xf32>, vector<2x8xf32>, vector<1x8xf32> -> vector<1x8xf32>
    %269 = arith.addf %265, %268 : vector<1x8xf32>
    %c1_255 = arith.constant 1 : index
    %c0_256 = arith.constant 0 : index
    %c0_257 = arith.constant 0 : index
    %270 = vector.load %arg14[%c1_255, %c0_256, %c0_257] : memref<4x1x8xf32, #tpu.memory_space<vmem>>, vector<1x1x8xf32>
    %271 = vector.shape_cast %270 : vector<1x1x8xf32> to vector<1x8xf32>
    %272 = arith.addf %269, %271 : vector<1x8xf32>
    %cst_258 = arith.constant 0.000000e+00 : f32
    %273 = vector.broadcast %cst_258 : f32 to vector<1x8xf32>
    %274 = arith.subf %273, %272 : vector<1x8xf32>
    %275 = math.exp %274 : vector<1x8xf32>
    %cst_259 = arith.constant 1.000000e+00 : f32
    %276 = vector.broadcast %cst_259 : f32 to vector<1x8xf32>
    %277 = arith.addf %276, %275 : vector<1x8xf32>
    %cst_260 = arith.constant 1.000000e+00 : f32
    %278 = vector.broadcast %cst_260 : f32 to vector<1x8xf32>
    %279 = arith.divf %278, %277 : vector<1x8xf32>
    %c2_261 = arith.constant 2 : index
    %c0_262 = arith.constant 0 : index
    %c0_263 = arith.constant 0 : index
    %280 = vector.load %arg20[%c2_261, %c0_262, %c0_263] : memref<4x2x8xf32, #tpu.memory_space<vmem>>, vector<1x2x8xf32>
    %281 = vector.shape_cast %280 : vector<1x2x8xf32> to vector<2x8xf32>
    %cst_264 = arith.constant dense<0.000000e+00> : vector<1x8xf32>
    %282 = tpu.matmul %239, %281, %cst_264 {dimension_numbers = #tpu.dot_dimension_numbers<[1], [0], [0], [1], [0, 0, 1, 1], [], []>} : vector<1x2xf32>, vector<2x8xf32>, vector<1x8xf32> -> vector<1x8xf32>
    %c2_265 = arith.constant 2 : index
    %c0_266 = arith.constant 0 : index
    %c0_267 = arith.constant 0 : index
    %283 = vector.load %arg17[%c2_265, %c0_266, %c0_267] : memref<4x2x8xf32, #tpu.memory_space<vmem>>, vector<1x2x8xf32>
    %284 = vector.shape_cast %283 : vector<1x2x8xf32> to vector<2x8xf32>
    %cst_268 = arith.constant dense<0.000000e+00> : vector<1x8xf32>
    %285 = tpu.matmul %245, %284, %cst_268 {dimension_numbers = #tpu.dot_dimension_numbers<[1], [0], [0], [1], [0, 0, 1, 1], [], []>} : vector<1x2xf32>, vector<2x8xf32>, vector<1x8xf32> -> vector<1x8xf32>
    %286 = arith.addf %282, %285 : vector<1x8xf32>
    %c2_269 = arith.constant 2 : index
    %c0_270 = arith.constant 0 : index
    %c0_271 = arith.constant 0 : index
    %287 = vector.load %arg14[%c2_269, %c0_270, %c0_271] : memref<4x1x8xf32, #tpu.memory_space<vmem>>, vector<1x1x8xf32>
    %288 = vector.shape_cast %287 : vector<1x1x8xf32> to vector<1x8xf32>
    %289 = arith.addf %286, %288 : vector<1x8xf32>
    %290 = math.tanh %289 : vector<1x8xf32>
    %c3_272 = arith.constant 3 : index
    %c0_273 = arith.constant 0 : index
    %c0_274 = arith.constant 0 : index
    %291 = vector.load %arg20[%c3_272, %c0_273, %c0_274] : memref<4x2x8xf32, #tpu.memory_space<vmem>>, vector<1x2x8xf32>
    %292 = vector.shape_cast %291 : vector<1x2x8xf32> to vector<2x8xf32>
    %cst_275 = arith.constant dense<0.000000e+00> : vector<1x8xf32>
    %293 = tpu.matmul %239, %292, %cst_275 {dimension_numbers = #tpu.dot_dimension_numbers<[1], [0], [0], [1], [0, 0, 1, 1], [], []>} : vector<1x2xf32>, vector<2x8xf32>, vector<1x8xf32> -> vector<1x8xf32>
    %c3_276 = arith.constant 3 : index
    %c0_277 = arith.constant 0 : index
    %c0_278 = arith.constant 0 : index
    %294 = vector.load %arg17[%c3_276, %c0_277, %c0_278] : memref<4x2x8xf32, #tpu.memory_space<vmem>>, vector<1x2x8xf32>
    %295 = vector.shape_cast %294 : vector<1x2x8xf32> to vector<2x8xf32>
    %cst_279 = arith.constant dense<0.000000e+00> : vector<1x8xf32>
    %296 = tpu.matmul %245, %295, %cst_279 {dimension_numbers = #tpu.dot_dimension_numbers<[1], [0], [0], [1], [0, 0, 1, 1], [], []>} : vector<1x2xf32>, vector<2x8xf32>, vector<1x8xf32> -> vector<1x8xf32>
    %297 = arith.addf %293, %296 : vector<1x8xf32>
    %c3_280 = arith.constant 3 : index
    %c0_281 = arith.constant 0 : index
    %c0_282 = arith.constant 0 : index
    %298 = vector.load %arg14[%c3_280, %c0_281, %c0_282] : memref<4x1x8xf32, #tpu.memory_space<vmem>>, vector<1x1x8xf32>
    %299 = vector.shape_cast %298 : vector<1x1x8xf32> to vector<1x8xf32>
    %300 = arith.addf %297, %299 : vector<1x8xf32>
    %cst_283 = arith.constant 0.000000e+00 : f32
    %301 = vector.broadcast %cst_283 : f32 to vector<1x8xf32>
    %302 = arith.subf %301, %300 : vector<1x8xf32>
    %303 = math.exp %302 : vector<1x8xf32>
    %cst_284 = arith.constant 1.000000e+00 : f32
    %304 = vector.broadcast %cst_284 : f32 to vector<1x8xf32>
    %305 = arith.addf %304, %303 : vector<1x8xf32>
    %cst_285 = arith.constant 1.000000e+00 : f32
    %306 = vector.broadcast %cst_285 : f32 to vector<1x8xf32>
    %307 = arith.divf %306, %305 : vector<1x8xf32>
    %308 = arith.mulf %279, %160 : vector<1x8xf32>
    %309 = arith.mulf %262, %290 : vector<1x8xf32>
    %310 = arith.addf %308, %309 : vector<1x8xf32>
    %cst_286 = arith.constant 0.000000e+00 : f32
    %311 = vector.broadcast %cst_286 : f32 to vector<1x8xf32>
    %312 = arith.subf %311, %310 : vector<1x8xf32>
    %313 = math.exp %312 : vector<1x8xf32>
    %cst_287 = arith.constant 1.000000e+00 : f32
    %314 = vector.broadcast %cst_287 : f32 to vector<1x8xf32>
    %315 = arith.addf %314, %313 : vector<1x8xf32>
    %cst_288 = arith.constant 1.000000e+00 : f32
    %316 = vector.broadcast %cst_288 : f32 to vector<1x8xf32>
    %317 = arith.divf %316, %315 : vector<1x8xf32>
    %318 = arith.mulf %307, %317 : vector<1x8xf32>
    %c0_289 = arith.constant 0 : index
    %c0_290 = arith.constant 0 : index
    %319 = vector.load %arg7[%c0_289, %c0_290] : memref<8x128xf32, #tpu.memory_space<vmem>>, vector<8x128xf32>
    %cst_291 = arith.constant dense<0.000000e+00> : vector<1x128xf32>
    %320 = tpu.matmul %318, %319, %cst_291 {dimension_numbers = #tpu.dot_dimension_numbers<[1], [0], [0], [1], [0, 0, 1, 1], [], []>} : vector<1x8xf32>, vector<8x128xf32>, vector<1x128xf32> -> vector<1x128xf32>
    %321 = vector.broadcast %320 : vector<1x128xf32> to vector<16x128xf32>
    %322 = arith.mulf %229, %321 : vector<16x128xf32>
    %323 = arith.addf %322, %173 : vector<16x128xf32>
    %cst_292 = arith.constant 0.000000e+00 : f32
    %324 = vector.broadcast %cst_292 : f32 to vector<1x16xf32>
    %cst_293 = arith.constant 0.000000e+00 : f32
    %325 = vector.broadcast %cst_293 : f32 to vector<1x16xf32>
    %c0_294 = arith.constant 0 : index
    %c0_295 = arith.constant 0 : index
    %326 = vector.load %arg44[%c0_294, %c0_295] : memref<1x128xf32, #tpu.memory_space<vmem>>, vector<1x128xf32>
    %327 = vector.broadcast %326 : vector<1x128xf32> to vector<16x128xf32>
    %328 = arith.mulf %323, %327 : vector<16x128xf32>
    %c0_296 = arith.constant 0 : index
    %c0_297 = arith.constant 0 : index
    %329 = vector.load %arg43[%c0_296, %c0_297] : memref<1x128xf32, #tpu.memory_space<vmem>>, vector<1x128xf32>
    %330 = vector.broadcast %329 : vector<1x128xf32> to vector<16x128xf32>
    %331 = arith.addf %328, %330 : vector<16x128xf32>
    %cst_298 = arith.constant 0.000000e+00 : f32
    %332 = vector.broadcast %cst_298 : f32 to vector<16x128xf32>
    %333 = arith.maximumf %331, %332 : vector<16x128xf32>
    %c0_299 = arith.constant 0 : index
    %c0_300 = arith.constant 0 : index
    %c0_301 = arith.constant 0 : index
    %334 = vector.load %arg4[%c0_299, %c0_300, %c0_301] : memref<3x8x16xf32, #tpu.memory_space<vmem>>, vector<1x8x16xf32>
    %335 = vector.shape_cast %334 : vector<1x8x16xf32> to vector<8x16xf32>
    %cst_302 = arith.constant dense<0.000000e+00> : vector<8x128xf32>
    %336 = tpu.matmul %335, %333, %cst_302 {dimension_numbers = #tpu.dot_dimension_numbers<[1], [0], [0], [1], [0, 0, 1, 1], [], []>} : vector<8x16xf32>, vector<16x128xf32>, vector<8x128xf32> -> vector<8x128xf32>
    %c0_303 = arith.constant 0 : index
    %c0_304 = arith.constant 0 : index
    %c0_305 = arith.constant 0 : index
    %337 = vector.load %arg40[%c0_303, %c0_304, %c0_305] : memref<3x128x128xf32, #tpu.memory_space<vmem>>, vector<1x128x128xf32>
    %338 = vector.shape_cast %337 : vector<1x128x128xf32> to vector<128x128xf32>
    %cst_306 = arith.constant dense<0.000000e+00> : vector<8x128xf32>
    %339 = tpu.matmul %336, %338, %cst_306 {dimension_numbers = #tpu.dot_dimension_numbers<[1], [0], [0], [1], [0, 0, 1, 1], [], []>} : vector<8x128xf32>, vector<128x128xf32>, vector<8x128xf32> -> vector<8x128xf32>
    %c1_307 = arith.constant 1 : index
    %c0_308 = arith.constant 0 : index
    %c0_309 = arith.constant 0 : index
    %340 = vector.load %arg4[%c1_307, %c0_308, %c0_309] : memref<3x8x16xf32, #tpu.memory_space<vmem>>, vector<1x8x16xf32>
    %341 = vector.shape_cast %340 : vector<1x8x16xf32> to vector<8x16xf32>
    %cst_310 = arith.constant dense<0.000000e+00> : vector<8x128xf32>
    %342 = tpu.matmul %341, %333, %cst_310 {dimension_numbers = #tpu.dot_dimension_numbers<[1], [0], [0], [1], [0, 0, 1, 1], [], []>} : vector<8x16xf32>, vector<16x128xf32>, vector<8x128xf32> -> vector<8x128xf32>
    %c1_311 = arith.constant 1 : index
    %c0_312 = arith.constant 0 : index
    %c0_313 = arith.constant 0 : index
    %343 = vector.load %arg40[%c1_311, %c0_312, %c0_313] : memref<3x128x128xf32, #tpu.memory_space<vmem>>, vector<1x128x128xf32>
    %344 = vector.shape_cast %343 : vector<1x128x128xf32> to vector<128x128xf32>
    %cst_314 = arith.constant dense<0.000000e+00> : vector<8x128xf32>
    %345 = tpu.matmul %342, %344, %cst_314 {dimension_numbers = #tpu.dot_dimension_numbers<[1], [0], [0], [1], [0, 0, 1, 1], [], []>} : vector<8x128xf32>, vector<128x128xf32>, vector<8x128xf32> -> vector<8x128xf32>
    %346 = arith.addf %339, %345 : vector<8x128xf32>
    %c2_315 = arith.constant 2 : index
    %c0_316 = arith.constant 0 : index
    %c0_317 = arith.constant 0 : index
    %347 = vector.load %arg4[%c2_315, %c0_316, %c0_317] : memref<3x8x16xf32, #tpu.memory_space<vmem>>, vector<1x8x16xf32>
    %348 = vector.shape_cast %347 : vector<1x8x16xf32> to vector<8x16xf32>
    %cst_318 = arith.constant dense<0.000000e+00> : vector<8x128xf32>
    %349 = tpu.matmul %348, %333, %cst_318 {dimension_numbers = #tpu.dot_dimension_numbers<[1], [0], [0], [1], [0, 0, 1, 1], [], []>} : vector<8x16xf32>, vector<16x128xf32>, vector<8x128xf32> -> vector<8x128xf32>
    %c2_319 = arith.constant 2 : index
    %c0_320 = arith.constant 0 : index
    %c0_321 = arith.constant 0 : index
    %350 = vector.load %arg40[%c2_319, %c0_320, %c0_321] : memref<3x128x128xf32, #tpu.memory_space<vmem>>, vector<1x128x128xf32>
    %351 = vector.shape_cast %350 : vector<1x128x128xf32> to vector<128x128xf32>
    %cst_322 = arith.constant dense<0.000000e+00> : vector<8x128xf32>
    %352 = tpu.matmul %349, %351, %cst_322 {dimension_numbers = #tpu.dot_dimension_numbers<[1], [0], [0], [1], [0, 0, 1, 1], [], []>} : vector<8x128xf32>, vector<128x128xf32>, vector<8x128xf32> -> vector<8x128xf32>
    %353 = arith.addf %346, %352 : vector<8x128xf32>
    %c0_323 = arith.constant 0 : index
    %c0_324 = arith.constant 0 : index
    %354 = vector.load %arg46[%c0_323, %c0_324] : memref<1x128xf32, #tpu.memory_space<vmem>>, vector<1x128xf32>
    %355 = vector.broadcast %354 : vector<1x128xf32> to vector<8x128xf32>
    %356 = arith.mulf %353, %355 : vector<8x128xf32>
    %c0_325 = arith.constant 0 : index
    %c0_326 = arith.constant 0 : index
    %357 = vector.load %arg45[%c0_325, %c0_326] : memref<1x128xf32, #tpu.memory_space<vmem>>, vector<1x128xf32>
    %358 = vector.broadcast %357 : vector<1x128xf32> to vector<8x128xf32>
    %359 = arith.addf %356, %358 : vector<8x128xf32>
    %cst_327 = arith.constant 0.000000e+00 : f32
    %360 = vector.broadcast %cst_327 : f32 to vector<8x128xf32>
    %361 = arith.maximumf %359, %360 : vector<8x128xf32>
    %c0_328 = arith.constant 0 : index
    %c0_329 = arith.constant 0 : index
    %c0_330 = arith.constant 0 : index
    %362 = vector.load %arg3[%c0_328, %c0_329, %c0_330] : memref<3x8x8xf32, #tpu.memory_space<vmem>>, vector<1x8x8xf32>
    %363 = vector.shape_cast %362 : vector<1x8x8xf32> to vector<8x8xf32>
    %cst_331 = arith.constant dense<0.000000e+00> : vector<8x128xf32>
    %364 = tpu.matmul %363, %361, %cst_331 {dimension_numbers = #tpu.dot_dimension_numbers<[1], [0], [0], [1], [0, 0, 1, 1], [], []>} : vector<8x8xf32>, vector<8x128xf32>, vector<8x128xf32> -> vector<8x128xf32>
    %c0_332 = arith.constant 0 : index
    %c0_333 = arith.constant 0 : index
    %c0_334 = arith.constant 0 : index
    %365 = vector.load %arg41[%c0_332, %c0_333, %c0_334] : memref<3x128x128xf32, #tpu.memory_space<vmem>>, vector<1x128x128xf32>
    %366 = vector.shape_cast %365 : vector<1x128x128xf32> to vector<128x128xf32>
    %cst_335 = arith.constant dense<0.000000e+00> : vector<8x128xf32>
    %367 = tpu.matmul %364, %366, %cst_335 {dimension_numbers = #tpu.dot_dimension_numbers<[1], [0], [0], [1], [0, 0, 1, 1], [], []>} : vector<8x128xf32>, vector<128x128xf32>, vector<8x128xf32> -> vector<8x128xf32>
    %c1_336 = arith.constant 1 : index
    %c0_337 = arith.constant 0 : index
    %c0_338 = arith.constant 0 : index
    %368 = vector.load %arg3[%c1_336, %c0_337, %c0_338] : memref<3x8x8xf32, #tpu.memory_space<vmem>>, vector<1x8x8xf32>
    %369 = vector.shape_cast %368 : vector<1x8x8xf32> to vector<8x8xf32>
    %cst_339 = arith.constant dense<0.000000e+00> : vector<8x128xf32>
    %370 = tpu.matmul %369, %361, %cst_339 {dimension_numbers = #tpu.dot_dimension_numbers<[1], [0], [0], [1], [0, 0, 1, 1], [], []>} : vector<8x8xf32>, vector<8x128xf32>, vector<8x128xf32> -> vector<8x128xf32>
    %c1_340 = arith.constant 1 : index
    %c0_341 = arith.constant 0 : index
    %c0_342 = arith.constant 0 : index
    %371 = vector.load %arg41[%c1_340, %c0_341, %c0_342] : memref<3x128x128xf32, #tpu.memory_space<vmem>>, vector<1x128x128xf32>
    %372 = vector.shape_cast %371 : vector<1x128x128xf32> to vector<128x128xf32>
    %cst_343 = arith.constant dense<0.000000e+00> : vector<8x128xf32>
    %373 = tpu.matmul %370, %372, %cst_343 {dimension_numbers = #tpu.dot_dimension_numbers<[1], [0], [0], [1], [0, 0, 1, 1], [], []>} : vector<8x128xf32>, vector<128x128xf32>, vector<8x128xf32> -> vector<8x128xf32>
    %374 = arith.addf %367, %373 : vector<8x128xf32>
    %c2_344 = arith.constant 2 : index
    %c0_345 = arith.constant 0 : index
    %c0_346 = arith.constant 0 : index
    %375 = vector.load %arg3[%c2_344, %c0_345, %c0_346] : memref<3x8x8xf32, #tpu.memory_space<vmem>>, vector<1x8x8xf32>
    %376 = vector.shape_cast %375 : vector<1x8x8xf32> to vector<8x8xf32>
    %cst_347 = arith.constant dense<0.000000e+00> : vector<8x128xf32>
    %377 = tpu.matmul %376, %361, %cst_347 {dimension_numbers = #tpu.dot_dimension_numbers<[1], [0], [0], [1], [0, 0, 1, 1], [], []>} : vector<8x8xf32>, vector<8x128xf32>, vector<8x128xf32> -> vector<8x128xf32>
    %c2_348 = arith.constant 2 : index
    %c0_349 = arith.constant 0 : index
    %c0_350 = arith.constant 0 : index
    %378 = vector.load %arg41[%c2_348, %c0_349, %c0_350] : memref<3x128x128xf32, #tpu.memory_space<vmem>>, vector<1x128x128xf32>
    %379 = vector.shape_cast %378 : vector<1x128x128xf32> to vector<128x128xf32>
    %cst_351 = arith.constant dense<0.000000e+00> : vector<8x128xf32>
    %380 = tpu.matmul %377, %379, %cst_351 {dimension_numbers = #tpu.dot_dimension_numbers<[1], [0], [0], [1], [0, 0, 1, 1], [], []>} : vector<8x128xf32>, vector<128x128xf32>, vector<8x128xf32> -> vector<8x128xf32>
    %381 = arith.addf %374, %380 : vector<8x128xf32>
    %cst_352 = arith.constant 1.562500e-02 : f32
    %382 = vector.broadcast %cst_352 : f32 to vector<1x8xf32>
    %cst_353 = arith.constant dense<0.000000e+00> : vector<1x128xf32>
    %383 = tpu.matmul %382, %381, %cst_353 {dimension_numbers = #tpu.dot_dimension_numbers<[1], [0], [0], [1], [0, 0, 1, 1], [], []>} : vector<1x8xf32>, vector<8x128xf32>, vector<1x128xf32> -> vector<1x128xf32>
    %c0_354 = arith.constant 0 : index
    %c0_355 = arith.constant 0 : index
    %384 = vector.load %arg6[%c0_354, %c0_355] : memref<128x16xf32, #tpu.memory_space<vmem>>, vector<128x16xf32>
    %cst_356 = arith.constant dense<0.000000e+00> : vector<1x16xf32>
    %385 = tpu.matmul %383, %384, %cst_356 {dimension_numbers = #tpu.dot_dimension_numbers<[1], [0], [0], [1], [0, 0, 1, 1], [], []>} : vector<1x128xf32>, vector<128x16xf32>, vector<1x16xf32> -> vector<1x16xf32>
    %c0_357 = arith.constant 0 : index
    %c0_358 = arith.constant 0 : index
    %386 = vector.load %arg38[%c0_357, %c0_358] : memref<16x4xf32, #tpu.memory_space<vmem>>, vector<16x4xf32>
    %cst_359 = arith.constant dense<0.000000e+00> : vector<1x4xf32>
    %387 = tpu.matmul %385, %386, %cst_359 {dimension_numbers = #tpu.dot_dimension_numbers<[1], [0], [0], [1], [0, 0, 1, 1], [], []>} : vector<1x16xf32>, vector<16x4xf32>, vector<1x4xf32> -> vector<1x4xf32>
    %c0_360 = arith.constant 0 : index
    %c0_361 = arith.constant 0 : index
    %388 = vector.load %arg37[%c0_360, %c0_361] : memref<1x4xf32, #tpu.memory_space<vmem>>, vector<1x4xf32>
    %389 = arith.addf %387, %388 : vector<1x4xf32>
    %cst_362 = arith.constant 0.000000e+00 : f32
    %390 = vector.broadcast %cst_362 : f32 to vector<1x4xf32>
    %391 = arith.maximumf %389, %390 : vector<1x4xf32>
    %c0_363 = arith.constant 0 : index
    %c0_364 = arith.constant 0 : index
    %392 = vector.load %arg35[%c0_363, %c0_364] : memref<16x4xf32, #tpu.memory_space<vmem>>, vector<16x4xf32>
    %cst_365 = arith.constant dense<0.000000e+00> : vector<1x4xf32>
    %393 = tpu.matmul %324, %392, %cst_365 {dimension_numbers = #tpu.dot_dimension_numbers<[1], [0], [0], [1], [0, 0, 1, 1], [], []>} : vector<1x16xf32>, vector<16x4xf32>, vector<1x4xf32> -> vector<1x4xf32>
    %c0_366 = arith.constant 0 : index
    %c0_367 = arith.constant 0 : index
    %394 = vector.load %arg34[%c0_366, %c0_367] : memref<1x4xf32, #tpu.memory_space<vmem>>, vector<1x4xf32>
    %395 = arith.addf %393, %394 : vector<1x4xf32>
    %cst_368 = arith.constant 0.000000e+00 : f32
    %396 = vector.broadcast %cst_368 : f32 to vector<1x4xf32>
    %397 = arith.maximumf %395, %396 : vector<1x4xf32>
    %c0_369 = arith.constant 0 : index
    %c0_370 = arith.constant 0 : index
    %c0_371 = arith.constant 0 : index
    %398 = vector.load %arg39[%c0_369, %c0_370, %c0_371] : memref<4x4x16xf32, #tpu.memory_space<vmem>>, vector<1x4x16xf32>
    %399 = vector.shape_cast %398 : vector<1x4x16xf32> to vector<4x16xf32>
    %cst_372 = arith.constant dense<0.000000e+00> : vector<1x16xf32>
    %400 = tpu.matmul %391, %399, %cst_372 {dimension_numbers = #tpu.dot_dimension_numbers<[1], [0], [0], [1], [0, 0, 1, 1], [], []>} : vector<1x4xf32>, vector<4x16xf32>, vector<1x16xf32> -> vector<1x16xf32>
    %c0_373 = arith.constant 0 : index
    %c0_374 = arith.constant 0 : index
    %c0_375 = arith.constant 0 : index
    %401 = vector.load %arg36[%c0_373, %c0_374, %c0_375] : memref<4x4x16xf32, #tpu.memory_space<vmem>>, vector<1x4x16xf32>
    %402 = vector.shape_cast %401 : vector<1x4x16xf32> to vector<4x16xf32>
    %cst_376 = arith.constant dense<0.000000e+00> : vector<1x16xf32>
    %403 = tpu.matmul %397, %402, %cst_376 {dimension_numbers = #tpu.dot_dimension_numbers<[1], [0], [0], [1], [0, 0, 1, 1], [], []>} : vector<1x4xf32>, vector<4x16xf32>, vector<1x16xf32> -> vector<1x16xf32>
    %404 = arith.addf %400, %403 : vector<1x16xf32>
    %c0_377 = arith.constant 0 : index
    %c0_378 = arith.constant 0 : index
    %c0_379 = arith.constant 0 : index
    %405 = vector.load %arg33[%c0_377, %c0_378, %c0_379] : memref<4x1x16xf32, #tpu.memory_space<vmem>>, vector<1x1x16xf32>
    %406 = vector.shape_cast %405 : vector<1x1x16xf32> to vector<1x16xf32>
    %407 = arith.addf %404, %406 : vector<1x16xf32>
    %cst_380 = arith.constant 0.000000e+00 : f32
    %408 = vector.broadcast %cst_380 : f32 to vector<1x16xf32>
    %409 = arith.subf %408, %407 : vector<1x16xf32>
    %410 = math.exp %409 : vector<1x16xf32>
    %cst_381 = arith.constant 1.000000e+00 : f32
    %411 = vector.broadcast %cst_381 : f32 to vector<1x16xf32>
    %412 = arith.addf %411, %410 : vector<1x16xf32>
    %cst_382 = arith.constant 1.000000e+00 : f32
    %413 = vector.broadcast %cst_382 : f32 to vector<1x16xf32>
    %414 = arith.divf %413, %412 : vector<1x16xf32>
    %c1_383 = arith.constant 1 : index
    %c0_384 = arith.constant 0 : index
    %c0_385 = arith.constant 0 : index
    %415 = vector.load %arg39[%c1_383, %c0_384, %c0_385] : memref<4x4x16xf32, #tpu.memory_space<vmem>>, vector<1x4x16xf32>
    %416 = vector.shape_cast %415 : vector<1x4x16xf32> to vector<4x16xf32>
    %cst_386 = arith.constant dense<0.000000e+00> : vector<1x16xf32>
    %417 = tpu.matmul %391, %416, %cst_386 {dimension_numbers = #tpu.dot_dimension_numbers<[1], [0], [0], [1], [0, 0, 1, 1], [], []>} : vector<1x4xf32>, vector<4x16xf32>, vector<1x16xf32> -> vector<1x16xf32>
    %c1_387 = arith.constant 1 : index
    %c0_388 = arith.constant 0 : index
    %c0_389 = arith.constant 0 : index
    %418 = vector.load %arg36[%c1_387, %c0_388, %c0_389] : memref<4x4x16xf32, #tpu.memory_space<vmem>>, vector<1x4x16xf32>
    %419 = vector.shape_cast %418 : vector<1x4x16xf32> to vector<4x16xf32>
    %cst_390 = arith.constant dense<0.000000e+00> : vector<1x16xf32>
    %420 = tpu.matmul %397, %419, %cst_390 {dimension_numbers = #tpu.dot_dimension_numbers<[1], [0], [0], [1], [0, 0, 1, 1], [], []>} : vector<1x4xf32>, vector<4x16xf32>, vector<1x16xf32> -> vector<1x16xf32>
    %421 = arith.addf %417, %420 : vector<1x16xf32>
    %c1_391 = arith.constant 1 : index
    %c0_392 = arith.constant 0 : index
    %c0_393 = arith.constant 0 : index
    %422 = vector.load %arg33[%c1_391, %c0_392, %c0_393] : memref<4x1x16xf32, #tpu.memory_space<vmem>>, vector<1x1x16xf32>
    %423 = vector.shape_cast %422 : vector<1x1x16xf32> to vector<1x16xf32>
    %424 = arith.addf %421, %423 : vector<1x16xf32>
    %cst_394 = arith.constant 0.000000e+00 : f32
    %425 = vector.broadcast %cst_394 : f32 to vector<1x16xf32>
    %426 = arith.subf %425, %424 : vector<1x16xf32>
    %427 = math.exp %426 : vector<1x16xf32>
    %cst_395 = arith.constant 1.000000e+00 : f32
    %428 = vector.broadcast %cst_395 : f32 to vector<1x16xf32>
    %429 = arith.addf %428, %427 : vector<1x16xf32>
    %cst_396 = arith.constant 1.000000e+00 : f32
    %430 = vector.broadcast %cst_396 : f32 to vector<1x16xf32>
    %431 = arith.divf %430, %429 : vector<1x16xf32>
    %c2_397 = arith.constant 2 : index
    %c0_398 = arith.constant 0 : index
    %c0_399 = arith.constant 0 : index
    %432 = vector.load %arg39[%c2_397, %c0_398, %c0_399] : memref<4x4x16xf32, #tpu.memory_space<vmem>>, vector<1x4x16xf32>
    %433 = vector.shape_cast %432 : vector<1x4x16xf32> to vector<4x16xf32>
    %cst_400 = arith.constant dense<0.000000e+00> : vector<1x16xf32>
    %434 = tpu.matmul %391, %433, %cst_400 {dimension_numbers = #tpu.dot_dimension_numbers<[1], [0], [0], [1], [0, 0, 1, 1], [], []>} : vector<1x4xf32>, vector<4x16xf32>, vector<1x16xf32> -> vector<1x16xf32>
    %c2_401 = arith.constant 2 : index
    %c0_402 = arith.constant 0 : index
    %c0_403 = arith.constant 0 : index
    %435 = vector.load %arg36[%c2_401, %c0_402, %c0_403] : memref<4x4x16xf32, #tpu.memory_space<vmem>>, vector<1x4x16xf32>
    %436 = vector.shape_cast %435 : vector<1x4x16xf32> to vector<4x16xf32>
    %cst_404 = arith.constant dense<0.000000e+00> : vector<1x16xf32>
    %437 = tpu.matmul %397, %436, %cst_404 {dimension_numbers = #tpu.dot_dimension_numbers<[1], [0], [0], [1], [0, 0, 1, 1], [], []>} : vector<1x4xf32>, vector<4x16xf32>, vector<1x16xf32> -> vector<1x16xf32>
    %438 = arith.addf %434, %437 : vector<1x16xf32>
    %c2_405 = arith.constant 2 : index
    %c0_406 = arith.constant 0 : index
    %c0_407 = arith.constant 0 : index
    %439 = vector.load %arg33[%c2_405, %c0_406, %c0_407] : memref<4x1x16xf32, #tpu.memory_space<vmem>>, vector<1x1x16xf32>
    %440 = vector.shape_cast %439 : vector<1x1x16xf32> to vector<1x16xf32>
    %441 = arith.addf %438, %440 : vector<1x16xf32>
    %442 = math.tanh %441 : vector<1x16xf32>
    %c3_408 = arith.constant 3 : index
    %c0_409 = arith.constant 0 : index
    %c0_410 = arith.constant 0 : index
    %443 = vector.load %arg39[%c3_408, %c0_409, %c0_410] : memref<4x4x16xf32, #tpu.memory_space<vmem>>, vector<1x4x16xf32>
    %444 = vector.shape_cast %443 : vector<1x4x16xf32> to vector<4x16xf32>
    %cst_411 = arith.constant dense<0.000000e+00> : vector<1x16xf32>
    %445 = tpu.matmul %391, %444, %cst_411 {dimension_numbers = #tpu.dot_dimension_numbers<[1], [0], [0], [1], [0, 0, 1, 1], [], []>} : vector<1x4xf32>, vector<4x16xf32>, vector<1x16xf32> -> vector<1x16xf32>
    %c3_412 = arith.constant 3 : index
    %c0_413 = arith.constant 0 : index
    %c0_414 = arith.constant 0 : index
    %446 = vector.load %arg36[%c3_412, %c0_413, %c0_414] : memref<4x4x16xf32, #tpu.memory_space<vmem>>, vector<1x4x16xf32>
    %447 = vector.shape_cast %446 : vector<1x4x16xf32> to vector<4x16xf32>
    %cst_415 = arith.constant dense<0.000000e+00> : vector<1x16xf32>
    %448 = tpu.matmul %397, %447, %cst_415 {dimension_numbers = #tpu.dot_dimension_numbers<[1], [0], [0], [1], [0, 0, 1, 1], [], []>} : vector<1x4xf32>, vector<4x16xf32>, vector<1x16xf32> -> vector<1x16xf32>
    %449 = arith.addf %445, %448 : vector<1x16xf32>
    %c3_416 = arith.constant 3 : index
    %c0_417 = arith.constant 0 : index
    %c0_418 = arith.constant 0 : index
    %450 = vector.load %arg33[%c3_416, %c0_417, %c0_418] : memref<4x1x16xf32, #tpu.memory_space<vmem>>, vector<1x1x16xf32>
    %451 = vector.shape_cast %450 : vector<1x1x16xf32> to vector<1x16xf32>
    %452 = arith.addf %449, %451 : vector<1x16xf32>
    %cst_419 = arith.constant 0.000000e+00 : f32
    %453 = vector.broadcast %cst_419 : f32 to vector<1x16xf32>
    %454 = arith.subf %453, %452 : vector<1x16xf32>
    %455 = math.exp %454 : vector<1x16xf32>
    %cst_420 = arith.constant 1.000000e+00 : f32
    %456 = vector.broadcast %cst_420 : f32 to vector<1x16xf32>
    %457 = arith.addf %456, %455 : vector<1x16xf32>
    %cst_421 = arith.constant 1.000000e+00 : f32
    %458 = vector.broadcast %cst_421 : f32 to vector<1x16xf32>
    %459 = arith.divf %458, %457 : vector<1x16xf32>
    %460 = arith.mulf %431, %325 : vector<1x16xf32>
    %461 = arith.mulf %414, %442 : vector<1x16xf32>
    %462 = arith.addf %460, %461 : vector<1x16xf32>
    %cst_422 = arith.constant 0.000000e+00 : f32
    %463 = vector.broadcast %cst_422 : f32 to vector<1x16xf32>
    %464 = arith.subf %463, %462 : vector<1x16xf32>
    %465 = math.exp %464 : vector<1x16xf32>
    %cst_423 = arith.constant 1.000000e+00 : f32
    %466 = vector.broadcast %cst_423 : f32 to vector<1x16xf32>
    %467 = arith.addf %466, %465 : vector<1x16xf32>
    %cst_424 = arith.constant 1.000000e+00 : f32
    %468 = vector.broadcast %cst_424 : f32 to vector<1x16xf32>
    %469 = arith.divf %468, %467 : vector<1x16xf32>
    %470 = arith.mulf %459, %469 : vector<1x16xf32>
    %c0_425 = arith.constant 0 : index
    %c0_426 = arith.constant 0 : index
    %471 = vector.load %arg8[%c0_425, %c0_426] : memref<16x128xf32, #tpu.memory_space<vmem>>, vector<16x128xf32>
    %cst_427 = arith.constant dense<0.000000e+00> : vector<1x128xf32>
    %472 = tpu.matmul %470, %471, %cst_427 {dimension_numbers = #tpu.dot_dimension_numbers<[1], [0], [0], [1], [0, 0, 1, 1], [], []>} : vector<1x16xf32>, vector<16x128xf32>, vector<1x128xf32> -> vector<1x128xf32>
    %473 = vector.broadcast %472 : vector<1x128xf32> to vector<8x128xf32>
    %474 = arith.mulf %381, %473 : vector<8x128xf32>
    %c1_428 = arith.constant 1 : index
    %c0_429 = arith.constant 0 : index
    %c0_430 = arith.constant 0 : index
    %475 = vector.load %arg4[%c1_428, %c0_429, %c0_430] : memref<3x8x16xf32, #tpu.memory_space<vmem>>, vector<1x8x16xf32>
    %476 = vector.shape_cast %475 : vector<1x8x16xf32> to vector<8x16xf32>
    %cst_431 = arith.constant dense<0.000000e+00> : vector<8x128xf32>
    %477 = tpu.matmul %476, %333, %cst_431 {dimension_numbers = #tpu.dot_dimension_numbers<[1], [0], [0], [1], [0, 0, 1, 1], [], []>} : vector<8x16xf32>, vector<16x128xf32>, vector<8x128xf32> -> vector<8x128xf32>
    %c0_432 = arith.constant 0 : index
    %c0_433 = arith.constant 0 : index
    %478 = vector.load %arg42[%c0_432, %c0_433] : memref<128x128xf32, #tpu.memory_space<vmem>>, vector<128x128xf32>
    %cst_434 = arith.constant dense<0.000000e+00> : vector<8x128xf32>
    %479 = tpu.matmul %477, %478, %cst_434 {dimension_numbers = #tpu.dot_dimension_numbers<[1], [0], [0], [1], [0, 0, 1, 1], [], []>} : vector<8x128xf32>, vector<128x128xf32>, vector<8x128xf32> -> vector<8x128xf32>
    %480 = arith.addf %474, %479 : vector<8x128xf32>
    %c0_435 = arith.constant 0 : index
    %c0_436 = arith.constant 0 : index
    %481 = vector.load %arg50[%c0_435, %c0_436] : memref<1x128xf32, #tpu.memory_space<vmem>>, vector<1x128xf32>
    %482 = vector.broadcast %481 : vector<1x128xf32> to vector<8x128xf32>
    %483 = arith.mulf %480, %482 : vector<8x128xf32>
    %c0_437 = arith.constant 0 : index
    %c0_438 = arith.constant 0 : index
    %484 = vector.load %arg49[%c0_437, %c0_438] : memref<1x128xf32, #tpu.memory_space<vmem>>, vector<1x128xf32>
    %485 = vector.broadcast %484 : vector<1x128xf32> to vector<8x128xf32>
    %486 = arith.addf %483, %485 : vector<8x128xf32>
    %cst_439 = arith.constant 0.000000e+00 : f32
    %487 = vector.broadcast %cst_439 : f32 to vector<8x128xf32>
    %488 = arith.maximumf %486, %487 : vector<8x128xf32>
    %c0_440 = arith.constant 0 : index
    %c0_441 = arith.constant 0 : index
    %c0_442 = arith.constant 0 : index
    %489 = vector.load %arg3[%c0_440, %c0_441, %c0_442] : memref<3x8x8xf32, #tpu.memory_space<vmem>>, vector<1x8x8xf32>
    %490 = vector.shape_cast %489 : vector<1x8x8xf32> to vector<8x8xf32>
    %cst_443 = arith.constant dense<0.000000e+00> : vector<8x128xf32>
    %491 = tpu.matmul %490, %488, %cst_443 {dimension_numbers = #tpu.dot_dimension_numbers<[1], [0], [0], [1], [0, 0, 1, 1], [], []>} : vector<8x8xf32>, vector<8x128xf32>, vector<8x128xf32> -> vector<8x128xf32>
    %c0_444 = arith.constant 0 : index
    %c0_445 = arith.constant 0 : index
    %c0_446 = arith.constant 0 : index
    %492 = vector.load %arg47[%c0_444, %c0_445, %c0_446] : memref<3x128x128xf32, #tpu.memory_space<vmem>>, vector<1x128x128xf32>
    %493 = vector.shape_cast %492 : vector<1x128x128xf32> to vector<128x128xf32>
    %cst_447 = arith.constant dense<0.000000e+00> : vector<8x128xf32>
    %494 = tpu.matmul %491, %493, %cst_447 {dimension_numbers = #tpu.dot_dimension_numbers<[1], [0], [0], [1], [0, 0, 1, 1], [], []>} : vector<8x128xf32>, vector<128x128xf32>, vector<8x128xf32> -> vector<8x128xf32>
    %c1_448 = arith.constant 1 : index
    %c0_449 = arith.constant 0 : index
    %c0_450 = arith.constant 0 : index
    %495 = vector.load %arg3[%c1_448, %c0_449, %c0_450] : memref<3x8x8xf32, #tpu.memory_space<vmem>>, vector<1x8x8xf32>
    %496 = vector.shape_cast %495 : vector<1x8x8xf32> to vector<8x8xf32>
    %cst_451 = arith.constant dense<0.000000e+00> : vector<8x128xf32>
    %497 = tpu.matmul %496, %488, %cst_451 {dimension_numbers = #tpu.dot_dimension_numbers<[1], [0], [0], [1], [0, 0, 1, 1], [], []>} : vector<8x8xf32>, vector<8x128xf32>, vector<8x128xf32> -> vector<8x128xf32>
    %c1_452 = arith.constant 1 : index
    %c0_453 = arith.constant 0 : index
    %c0_454 = arith.constant 0 : index
    %498 = vector.load %arg47[%c1_452, %c0_453, %c0_454] : memref<3x128x128xf32, #tpu.memory_space<vmem>>, vector<1x128x128xf32>
    %499 = vector.shape_cast %498 : vector<1x128x128xf32> to vector<128x128xf32>
    %cst_455 = arith.constant dense<0.000000e+00> : vector<8x128xf32>
    %500 = tpu.matmul %497, %499, %cst_455 {dimension_numbers = #tpu.dot_dimension_numbers<[1], [0], [0], [1], [0, 0, 1, 1], [], []>} : vector<8x128xf32>, vector<128x128xf32>, vector<8x128xf32> -> vector<8x128xf32>
    %501 = arith.addf %494, %500 : vector<8x128xf32>
    %c2_456 = arith.constant 2 : index
    %c0_457 = arith.constant 0 : index
    %c0_458 = arith.constant 0 : index
    %502 = vector.load %arg3[%c2_456, %c0_457, %c0_458] : memref<3x8x8xf32, #tpu.memory_space<vmem>>, vector<1x8x8xf32>
    %503 = vector.shape_cast %502 : vector<1x8x8xf32> to vector<8x8xf32>
    %cst_459 = arith.constant dense<0.000000e+00> : vector<8x128xf32>
    %504 = tpu.matmul %503, %488, %cst_459 {dimension_numbers = #tpu.dot_dimension_numbers<[1], [0], [0], [1], [0, 0, 1, 1], [], []>} : vector<8x8xf32>, vector<8x128xf32>, vector<8x128xf32> -> vector<8x128xf32>
    %c2_460 = arith.constant 2 : index
    %c0_461 = arith.constant 0 : index
    %c0_462 = arith.constant 0 : index
    %505 = vector.load %arg47[%c2_460, %c0_461, %c0_462] : memref<3x128x128xf32, #tpu.memory_space<vmem>>, vector<1x128x128xf32>
    %506 = vector.shape_cast %505 : vector<1x128x128xf32> to vector<128x128xf32>
    %cst_463 = arith.constant dense<0.000000e+00> : vector<8x128xf32>
    %507 = tpu.matmul %504, %506, %cst_463 {dimension_numbers = #tpu.dot_dimension_numbers<[1], [0], [0], [1], [0, 0, 1, 1], [], []>} : vector<8x128xf32>, vector<128x128xf32>, vector<8x128xf32> -> vector<8x128xf32>
    %508 = arith.addf %501, %507 : vector<8x128xf32>
    %c0_464 = arith.constant 0 : index
    %c0_465 = arith.constant 0 : index
    %509 = vector.load %arg52[%c0_464, %c0_465] : memref<1x128xf32, #tpu.memory_space<vmem>>, vector<1x128xf32>
    %510 = vector.broadcast %509 : vector<1x128xf32> to vector<8x128xf32>
    %511 = arith.mulf %508, %510 : vector<8x128xf32>
    %c0_466 = arith.constant 0 : index
    %c0_467 = arith.constant 0 : index
    %512 = vector.load %arg51[%c0_466, %c0_467] : memref<1x128xf32, #tpu.memory_space<vmem>>, vector<1x128xf32>
    %513 = vector.broadcast %512 : vector<1x128xf32> to vector<8x128xf32>
    %514 = arith.addf %511, %513 : vector<8x128xf32>
    %cst_468 = arith.constant 0.000000e+00 : f32
    %515 = vector.broadcast %cst_468 : f32 to vector<8x128xf32>
    %516 = arith.maximumf %514, %515 : vector<8x128xf32>
    %c0_469 = arith.constant 0 : index
    %c0_470 = arith.constant 0 : index
    %c0_471 = arith.constant 0 : index
    %517 = vector.load %arg3[%c0_469, %c0_470, %c0_471] : memref<3x8x8xf32, #tpu.memory_space<vmem>>, vector<1x8x8xf32>
    %518 = vector.shape_cast %517 : vector<1x8x8xf32> to vector<8x8xf32>
    %cst_472 = arith.constant dense<0.000000e+00> : vector<8x128xf32>
    %519 = tpu.matmul %518, %516, %cst_472 {dimension_numbers = #tpu.dot_dimension_numbers<[1], [0], [0], [1], [0, 0, 1, 1], [], []>} : vector<8x8xf32>, vector<8x128xf32>, vector<8x128xf32> -> vector<8x128xf32>
    %c0_473 = arith.constant 0 : index
    %c0_474 = arith.constant 0 : index
    %c0_475 = arith.constant 0 : index
    %520 = vector.load %arg48[%c0_473, %c0_474, %c0_475] : memref<3x128x128xf32, #tpu.memory_space<vmem>>, vector<1x128x128xf32>
    %521 = vector.shape_cast %520 : vector<1x128x128xf32> to vector<128x128xf32>
    %cst_476 = arith.constant dense<0.000000e+00> : vector<8x128xf32>
    %522 = tpu.matmul %519, %521, %cst_476 {dimension_numbers = #tpu.dot_dimension_numbers<[1], [0], [0], [1], [0, 0, 1, 1], [], []>} : vector<8x128xf32>, vector<128x128xf32>, vector<8x128xf32> -> vector<8x128xf32>
    %c1_477 = arith.constant 1 : index
    %c0_478 = arith.constant 0 : index
    %c0_479 = arith.constant 0 : index
    %523 = vector.load %arg3[%c1_477, %c0_478, %c0_479] : memref<3x8x8xf32, #tpu.memory_space<vmem>>, vector<1x8x8xf32>
    %524 = vector.shape_cast %523 : vector<1x8x8xf32> to vector<8x8xf32>
    %cst_480 = arith.constant dense<0.000000e+00> : vector<8x128xf32>
    %525 = tpu.matmul %524, %516, %cst_480 {dimension_numbers = #tpu.dot_dimension_numbers<[1], [0], [0], [1], [0, 0, 1, 1], [], []>} : vector<8x8xf32>, vector<8x128xf32>, vector<8x128xf32> -> vector<8x128xf32>
    %c1_481 = arith.constant 1 : index
    %c0_482 = arith.constant 0 : index
    %c0_483 = arith.constant 0 : index
    %526 = vector.load %arg48[%c1_481, %c0_482, %c0_483] : memref<3x128x128xf32, #tpu.memory_space<vmem>>, vector<1x128x128xf32>
    %527 = vector.shape_cast %526 : vector<1x128x128xf32> to vector<128x128xf32>
    %cst_484 = arith.constant dense<0.000000e+00> : vector<8x128xf32>
    %528 = tpu.matmul %525, %527, %cst_484 {dimension_numbers = #tpu.dot_dimension_numbers<[1], [0], [0], [1], [0, 0, 1, 1], [], []>} : vector<8x128xf32>, vector<128x128xf32>, vector<8x128xf32> -> vector<8x128xf32>
    %529 = arith.addf %522, %528 : vector<8x128xf32>
    %c2_485 = arith.constant 2 : index
    %c0_486 = arith.constant 0 : index
    %c0_487 = arith.constant 0 : index
    %530 = vector.load %arg3[%c2_485, %c0_486, %c0_487] : memref<3x8x8xf32, #tpu.memory_space<vmem>>, vector<1x8x8xf32>
    %531 = vector.shape_cast %530 : vector<1x8x8xf32> to vector<8x8xf32>
    %cst_488 = arith.constant dense<0.000000e+00> : vector<8x128xf32>
    %532 = tpu.matmul %531, %516, %cst_488 {dimension_numbers = #tpu.dot_dimension_numbers<[1], [0], [0], [1], [0, 0, 1, 1], [], []>} : vector<8x8xf32>, vector<8x128xf32>, vector<8x128xf32> -> vector<8x128xf32>
    %c2_489 = arith.constant 2 : index
    %c0_490 = arith.constant 0 : index
    %c0_491 = arith.constant 0 : index
    %533 = vector.load %arg48[%c2_489, %c0_490, %c0_491] : memref<3x128x128xf32, #tpu.memory_space<vmem>>, vector<1x128x128xf32>
    %534 = vector.shape_cast %533 : vector<1x128x128xf32> to vector<128x128xf32>
    %cst_492 = arith.constant dense<0.000000e+00> : vector<8x128xf32>
    %535 = tpu.matmul %532, %534, %cst_492 {dimension_numbers = #tpu.dot_dimension_numbers<[1], [0], [0], [1], [0, 0, 1, 1], [], []>} : vector<8x128xf32>, vector<128x128xf32>, vector<8x128xf32> -> vector<8x128xf32>
    %536 = arith.addf %529, %535 : vector<8x128xf32>
    %cst_493 = arith.constant 1.562500e-02 : f32
    %537 = vector.broadcast %cst_493 : f32 to vector<1x8xf32>
    %cst_494 = arith.constant dense<0.000000e+00> : vector<1x128xf32>
    %538 = tpu.matmul %537, %536, %cst_494 {dimension_numbers = #tpu.dot_dimension_numbers<[1], [0], [0], [1], [0, 0, 1, 1], [], []>} : vector<1x8xf32>, vector<8x128xf32>, vector<1x128xf32> -> vector<1x128xf32>
    %c0_495 = arith.constant 0 : index
    %c0_496 = arith.constant 0 : index
    %539 = vector.load %arg6[%c0_495, %c0_496] : memref<128x16xf32, #tpu.memory_space<vmem>>, vector<128x16xf32>
    %cst_497 = arith.constant dense<0.000000e+00> : vector<1x16xf32>
    %540 = tpu.matmul %538, %539, %cst_497 {dimension_numbers = #tpu.dot_dimension_numbers<[1], [0], [0], [1], [0, 0, 1, 1], [], []>} : vector<1x128xf32>, vector<128x16xf32>, vector<1x16xf32> -> vector<1x16xf32>
    %c0_498 = arith.constant 0 : index
    %c0_499 = arith.constant 0 : index
    %541 = vector.load %arg38[%c0_498, %c0_499] : memref<16x4xf32, #tpu.memory_space<vmem>>, vector<16x4xf32>
    %cst_500 = arith.constant dense<0.000000e+00> : vector<1x4xf32>
    %542 = tpu.matmul %540, %541, %cst_500 {dimension_numbers = #tpu.dot_dimension_numbers<[1], [0], [0], [1], [0, 0, 1, 1], [], []>} : vector<1x16xf32>, vector<16x4xf32>, vector<1x4xf32> -> vector<1x4xf32>
    %c0_501 = arith.constant 0 : index
    %c0_502 = arith.constant 0 : index
    %543 = vector.load %arg37[%c0_501, %c0_502] : memref<1x4xf32, #tpu.memory_space<vmem>>, vector<1x4xf32>
    %544 = arith.addf %542, %543 : vector<1x4xf32>
    %cst_503 = arith.constant 0.000000e+00 : f32
    %545 = vector.broadcast %cst_503 : f32 to vector<1x4xf32>
    %546 = arith.maximumf %544, %545 : vector<1x4xf32>
    %c0_504 = arith.constant 0 : index
    %c0_505 = arith.constant 0 : index
    %547 = vector.load %arg35[%c0_504, %c0_505] : memref<16x4xf32, #tpu.memory_space<vmem>>, vector<16x4xf32>
    %cst_506 = arith.constant dense<0.000000e+00> : vector<1x4xf32>
    %548 = tpu.matmul %470, %547, %cst_506 {dimension_numbers = #tpu.dot_dimension_numbers<[1], [0], [0], [1], [0, 0, 1, 1], [], []>} : vector<1x16xf32>, vector<16x4xf32>, vector<1x4xf32> -> vector<1x4xf32>
    %c0_507 = arith.constant 0 : index
    %c0_508 = arith.constant 0 : index
    %549 = vector.load %arg34[%c0_507, %c0_508] : memref<1x4xf32, #tpu.memory_space<vmem>>, vector<1x4xf32>
    %550 = arith.addf %548, %549 : vector<1x4xf32>
    %cst_509 = arith.constant 0.000000e+00 : f32
    %551 = vector.broadcast %cst_509 : f32 to vector<1x4xf32>
    %552 = arith.maximumf %550, %551 : vector<1x4xf32>
    %c0_510 = arith.constant 0 : index
    %c0_511 = arith.constant 0 : index
    %c0_512 = arith.constant 0 : index
    %553 = vector.load %arg39[%c0_510, %c0_511, %c0_512] : memref<4x4x16xf32, #tpu.memory_space<vmem>>, vector<1x4x16xf32>
    %554 = vector.shape_cast %553 : vector<1x4x16xf32> to vector<4x16xf32>
    %cst_513 = arith.constant dense<0.000000e+00> : vector<1x16xf32>
    %555 = tpu.matmul %546, %554, %cst_513 {dimension_numbers = #tpu.dot_dimension_numbers<[1], [0], [0], [1], [0, 0, 1, 1], [], []>} : vector<1x4xf32>, vector<4x16xf32>, vector<1x16xf32> -> vector<1x16xf32>
    %c0_514 = arith.constant 0 : index
    %c0_515 = arith.constant 0 : index
    %c0_516 = arith.constant 0 : index
    %556 = vector.load %arg36[%c0_514, %c0_515, %c0_516] : memref<4x4x16xf32, #tpu.memory_space<vmem>>, vector<1x4x16xf32>
    %557 = vector.shape_cast %556 : vector<1x4x16xf32> to vector<4x16xf32>
    %cst_517 = arith.constant dense<0.000000e+00> : vector<1x16xf32>
    %558 = tpu.matmul %552, %557, %cst_517 {dimension_numbers = #tpu.dot_dimension_numbers<[1], [0], [0], [1], [0, 0, 1, 1], [], []>} : vector<1x4xf32>, vector<4x16xf32>, vector<1x16xf32> -> vector<1x16xf32>
    %559 = arith.addf %555, %558 : vector<1x16xf32>
    %c0_518 = arith.constant 0 : index
    %c0_519 = arith.constant 0 : index
    %c0_520 = arith.constant 0 : index
    %560 = vector.load %arg33[%c0_518, %c0_519, %c0_520] : memref<4x1x16xf32, #tpu.memory_space<vmem>>, vector<1x1x16xf32>
    %561 = vector.shape_cast %560 : vector<1x1x16xf32> to vector<1x16xf32>
    %562 = arith.addf %559, %561 : vector<1x16xf32>
    %cst_521 = arith.constant 0.000000e+00 : f32
    %563 = vector.broadcast %cst_521 : f32 to vector<1x16xf32>
    %564 = arith.subf %563, %562 : vector<1x16xf32>
    %565 = math.exp %564 : vector<1x16xf32>
    %cst_522 = arith.constant 1.000000e+00 : f32
    %566 = vector.broadcast %cst_522 : f32 to vector<1x16xf32>
    %567 = arith.addf %566, %565 : vector<1x16xf32>
    %cst_523 = arith.constant 1.000000e+00 : f32
    %568 = vector.broadcast %cst_523 : f32 to vector<1x16xf32>
    %569 = arith.divf %568, %567 : vector<1x16xf32>
    %c1_524 = arith.constant 1 : index
    %c0_525 = arith.constant 0 : index
    %c0_526 = arith.constant 0 : index
    %570 = vector.load %arg39[%c1_524, %c0_525, %c0_526] : memref<4x4x16xf32, #tpu.memory_space<vmem>>, vector<1x4x16xf32>
    %571 = vector.shape_cast %570 : vector<1x4x16xf32> to vector<4x16xf32>
    %cst_527 = arith.constant dense<0.000000e+00> : vector<1x16xf32>
    %572 = tpu.matmul %546, %571, %cst_527 {dimension_numbers = #tpu.dot_dimension_numbers<[1], [0], [0], [1], [0, 0, 1, 1], [], []>} : vector<1x4xf32>, vector<4x16xf32>, vector<1x16xf32> -> vector<1x16xf32>
    %c1_528 = arith.constant 1 : index
    %c0_529 = arith.constant 0 : index
    %c0_530 = arith.constant 0 : index
    %573 = vector.load %arg36[%c1_528, %c0_529, %c0_530] : memref<4x4x16xf32, #tpu.memory_space<vmem>>, vector<1x4x16xf32>
    %574 = vector.shape_cast %573 : vector<1x4x16xf32> to vector<4x16xf32>
    %cst_531 = arith.constant dense<0.000000e+00> : vector<1x16xf32>
    %575 = tpu.matmul %552, %574, %cst_531 {dimension_numbers = #tpu.dot_dimension_numbers<[1], [0], [0], [1], [0, 0, 1, 1], [], []>} : vector<1x4xf32>, vector<4x16xf32>, vector<1x16xf32> -> vector<1x16xf32>
    %576 = arith.addf %572, %575 : vector<1x16xf32>
    %c1_532 = arith.constant 1 : index
    %c0_533 = arith.constant 0 : index
    %c0_534 = arith.constant 0 : index
    %577 = vector.load %arg33[%c1_532, %c0_533, %c0_534] : memref<4x1x16xf32, #tpu.memory_space<vmem>>, vector<1x1x16xf32>
    %578 = vector.shape_cast %577 : vector<1x1x16xf32> to vector<1x16xf32>
    %579 = arith.addf %576, %578 : vector<1x16xf32>
    %cst_535 = arith.constant 0.000000e+00 : f32
    %580 = vector.broadcast %cst_535 : f32 to vector<1x16xf32>
    %581 = arith.subf %580, %579 : vector<1x16xf32>
    %582 = math.exp %581 : vector<1x16xf32>
    %cst_536 = arith.constant 1.000000e+00 : f32
    %583 = vector.broadcast %cst_536 : f32 to vector<1x16xf32>
    %584 = arith.addf %583, %582 : vector<1x16xf32>
    %cst_537 = arith.constant 1.000000e+00 : f32
    %585 = vector.broadcast %cst_537 : f32 to vector<1x16xf32>
    %586 = arith.divf %585, %584 : vector<1x16xf32>
    %c2_538 = arith.constant 2 : index
    %c0_539 = arith.constant 0 : index
    %c0_540 = arith.constant 0 : index
    %587 = vector.load %arg39[%c2_538, %c0_539, %c0_540] : memref<4x4x16xf32, #tpu.memory_space<vmem>>, vector<1x4x16xf32>
    %588 = vector.shape_cast %587 : vector<1x4x16xf32> to vector<4x16xf32>
    %cst_541 = arith.constant dense<0.000000e+00> : vector<1x16xf32>
    %589 = tpu.matmul %546, %588, %cst_541 {dimension_numbers = #tpu.dot_dimension_numbers<[1], [0], [0], [1], [0, 0, 1, 1], [], []>} : vector<1x4xf32>, vector<4x16xf32>, vector<1x16xf32> -> vector<1x16xf32>
    %c2_542 = arith.constant 2 : index
    %c0_543 = arith.constant 0 : index
    %c0_544 = arith.constant 0 : index
    %590 = vector.load %arg36[%c2_542, %c0_543, %c0_544] : memref<4x4x16xf32, #tpu.memory_space<vmem>>, vector<1x4x16xf32>
    %591 = vector.shape_cast %590 : vector<1x4x16xf32> to vector<4x16xf32>
    %cst_545 = arith.constant dense<0.000000e+00> : vector<1x16xf32>
    %592 = tpu.matmul %552, %591, %cst_545 {dimension_numbers = #tpu.dot_dimension_numbers<[1], [0], [0], [1], [0, 0, 1, 1], [], []>} : vector<1x4xf32>, vector<4x16xf32>, vector<1x16xf32> -> vector<1x16xf32>
    %593 = arith.addf %589, %592 : vector<1x16xf32>
    %c2_546 = arith.constant 2 : index
    %c0_547 = arith.constant 0 : index
    %c0_548 = arith.constant 0 : index
    %594 = vector.load %arg33[%c2_546, %c0_547, %c0_548] : memref<4x1x16xf32, #tpu.memory_space<vmem>>, vector<1x1x16xf32>
    %595 = vector.shape_cast %594 : vector<1x1x16xf32> to vector<1x16xf32>
    %596 = arith.addf %593, %595 : vector<1x16xf32>
    %597 = math.tanh %596 : vector<1x16xf32>
    %c3_549 = arith.constant 3 : index
    %c0_550 = arith.constant 0 : index
    %c0_551 = arith.constant 0 : index
    %598 = vector.load %arg39[%c3_549, %c0_550, %c0_551] : memref<4x4x16xf32, #tpu.memory_space<vmem>>, vector<1x4x16xf32>
    %599 = vector.shape_cast %598 : vector<1x4x16xf32> to vector<4x16xf32>
    %cst_552 = arith.constant dense<0.000000e+00> : vector<1x16xf32>
    %600 = tpu.matmul %546, %599, %cst_552 {dimension_numbers = #tpu.dot_dimension_numbers<[1], [0], [0], [1], [0, 0, 1, 1], [], []>} : vector<1x4xf32>, vector<4x16xf32>, vector<1x16xf32> -> vector<1x16xf32>
    %c3_553 = arith.constant 3 : index
    %c0_554 = arith.constant 0 : index
    %c0_555 = arith.constant 0 : index
    %601 = vector.load %arg36[%c3_553, %c0_554, %c0_555] : memref<4x4x16xf32, #tpu.memory_space<vmem>>, vector<1x4x16xf32>
    %602 = vector.shape_cast %601 : vector<1x4x16xf32> to vector<4x16xf32>
    %cst_556 = arith.constant dense<0.000000e+00> : vector<1x16xf32>
    %603 = tpu.matmul %552, %602, %cst_556 {dimension_numbers = #tpu.dot_dimension_numbers<[1], [0], [0], [1], [0, 0, 1, 1], [], []>} : vector<1x4xf32>, vector<4x16xf32>, vector<1x16xf32> -> vector<1x16xf32>
    %604 = arith.addf %600, %603 : vector<1x16xf32>
    %c3_557 = arith.constant 3 : index
    %c0_558 = arith.constant 0 : index
    %c0_559 = arith.constant 0 : index
    %605 = vector.load %arg33[%c3_557, %c0_558, %c0_559] : memref<4x1x16xf32, #tpu.memory_space<vmem>>, vector<1x1x16xf32>
    %606 = vector.shape_cast %605 : vector<1x1x16xf32> to vector<1x16xf32>
    %607 = arith.addf %604, %606 : vector<1x16xf32>
    %cst_560 = arith.constant 0.000000e+00 : f32
    %608 = vector.broadcast %cst_560 : f32 to vector<1x16xf32>
    %609 = arith.subf %608, %607 : vector<1x16xf32>
    %610 = math.exp %609 : vector<1x16xf32>
    %cst_561 = arith.constant 1.000000e+00 : f32
    %611 = vector.broadcast %cst_561 : f32 to vector<1x16xf32>
    %612 = arith.addf %611, %610 : vector<1x16xf32>
    %cst_562 = arith.constant 1.000000e+00 : f32
    %613 = vector.broadcast %cst_562 : f32 to vector<1x16xf32>
    %614 = arith.divf %613, %612 : vector<1x16xf32>
    %615 = arith.mulf %586, %462 : vector<1x16xf32>
    %616 = arith.mulf %569, %597 : vector<1x16xf32>
    %617 = arith.addf %615, %616 : vector<1x16xf32>
    %cst_563 = arith.constant 0.000000e+00 : f32
    %618 = vector.broadcast %cst_563 : f32 to vector<1x16xf32>
    %619 = arith.subf %618, %617 : vector<1x16xf32>
    %620 = math.exp %619 : vector<1x16xf32>
    %cst_564 = arith.constant 1.000000e+00 : f32
    %621 = vector.broadcast %cst_564 : f32 to vector<1x16xf32>
    %622 = arith.addf %621, %620 : vector<1x16xf32>
    %cst_565 = arith.constant 1.000000e+00 : f32
    %623 = vector.broadcast %cst_565 : f32 to vector<1x16xf32>
    %624 = arith.divf %623, %622 : vector<1x16xf32>
    %625 = arith.mulf %614, %624 : vector<1x16xf32>
    %c0_566 = arith.constant 0 : index
    %c0_567 = arith.constant 0 : index
    %626 = vector.load %arg8[%c0_566, %c0_567] : memref<16x128xf32, #tpu.memory_space<vmem>>, vector<16x128xf32>
    %cst_568 = arith.constant dense<0.000000e+00> : vector<1x128xf32>
    %627 = tpu.matmul %625, %626, %cst_568 {dimension_numbers = #tpu.dot_dimension_numbers<[1], [0], [0], [1], [0, 0, 1, 1], [], []>} : vector<1x16xf32>, vector<16x128xf32>, vector<1x128xf32> -> vector<1x128xf32>
    %628 = vector.broadcast %627 : vector<1x128xf32> to vector<8x128xf32>
    %629 = arith.mulf %536, %628 : vector<8x128xf32>
    %630 = arith.addf %629, %480 : vector<8x128xf32>
    %c0_569 = arith.constant 0 : index
    %c0_570 = arith.constant 0 : index
    %631 = vector.load %arg13[%c0_569, %c0_570] : memref<1x128xf32, #tpu.memory_space<vmem>>, vector<1x128xf32>
    %632 = vector.broadcast %631 : vector<1x128xf32> to vector<8x128xf32>
    %633 = arith.mulf %630, %632 : vector<8x128xf32>
    %c0_571 = arith.constant 0 : index
    %c0_572 = arith.constant 0 : index
    %634 = vector.load %arg12[%c0_571, %c0_572] : memref<1x128xf32, #tpu.memory_space<vmem>>, vector<1x128xf32>
    %635 = vector.broadcast %634 : vector<1x128xf32> to vector<8x128xf32>
    %636 = arith.addf %633, %635 : vector<8x128xf32>
    %cst_573 = arith.constant 0.000000e+00 : f32
    %637 = vector.broadcast %cst_573 : f32 to vector<8x128xf32>
    %638 = arith.maximumf %636, %637 : vector<8x128xf32>
    %cst_574 = arith.constant 1.562500e-02 : f32
    %639 = vector.broadcast %cst_574 : f32 to vector<1x8xf32>
    %cst_575 = arith.constant dense<0.000000e+00> : vector<1x128xf32>
    %640 = tpu.matmul %639, %638, %cst_575 {dimension_numbers = #tpu.dot_dimension_numbers<[1], [0], [0], [1], [0, 0, 1, 1], [], []>} : vector<1x8xf32>, vector<8x128xf32>, vector<1x128xf32> -> vector<1x128xf32>
    %c0_576 = arith.constant 0 : index
    %c0_577 = arith.constant 0 : index
    %641 = vector.load %arg6[%c0_576, %c0_577] : memref<128x16xf32, #tpu.memory_space<vmem>>, vector<128x16xf32>
    %cst_578 = arith.constant dense<0.000000e+00> : vector<1x16xf32>
    %642 = tpu.matmul %640, %641, %cst_578 {dimension_numbers = #tpu.dot_dimension_numbers<[1], [0], [0], [1], [0, 0, 1, 1], [], []>} : vector<1x128xf32>, vector<128x16xf32>, vector<1x16xf32> -> vector<1x16xf32>
    %c0_579 = arith.constant 0 : index
    %c0_580 = arith.constant 0 : index
    %643 = vector.load %arg10[%c0_579, %c0_580] : memref<16x10xf32, #tpu.memory_space<vmem>>, vector<16x10xf32>
    %cst_581 = arith.constant dense<0.000000e+00> : vector<1x10xf32>
    %644 = tpu.matmul %642, %643, %cst_581 {dimension_numbers = #tpu.dot_dimension_numbers<[1], [0], [0], [1], [0, 0, 1, 1], [], []>} : vector<1x16xf32>, vector<16x10xf32>, vector<1x10xf32> -> vector<1x10xf32>
    %c0_582 = arith.constant 0 : index
    %c0_583 = arith.constant 0 : index
    %645 = vector.load %arg9[%c0_582, %c0_583] : memref<1x10xf32, #tpu.memory_space<vmem>>, vector<1x10xf32>
    %646 = arith.addf %644, %645 : vector<1x10xf32>
    %c0_584 = arith.constant 0 : index
    %c0_585 = arith.constant 0 : index
    %c0_586 = arith.constant 0 : index
    %647 = vector.load %arg53[%c0_584, %c0_585, %c0_586] : memref<1x1x10xf32, #tpu.memory_space<vmem>>, vector<1x1x10xf32>
    %648 = vector.shape_cast %647 : vector<1x1x10xf32> to vector<1x10xf32>
    %649 = vector.shape_cast %646 : vector<1x10xf32> to vector<1x1x10xf32>
    tpu.vector_store %arg53[%c0_584, %c0_585, %c0_586], %649 {strides = array<i32>} : memref<1x1x10xf32, #tpu.memory_space<vmem>>, vector<1x1x10xf32>,
    return
  }
  func.func @transform_0(%arg0: i32) -> (i32, i32, i32) {
    %c0_i32 = arith.constant 0 : i32
    %c0_i32_0 = arith.constant 0 : i32
    %c0_i32_1 = arith.constant 0 : i32
    return %arg0, %c0_i32, %c0_i32_0 : i32, i32, i32
  }
  func.func @transform_1(%arg0: i32) -> (i32, i32, i32) {
    %c0_i32 = arith.constant 0 : i32
    %c0_i32_0 = arith.constant 0 : i32
    %c0_i32_1 = arith.constant 0 : i32
    %c0_i32_2 = arith.constant 0 : i32
    return %c0_i32, %c0_i32_0, %c0_i32_1 : i32, i32, i32
  }
  func.func @transform_2(%arg0: i32) -> (i32, i32, i32) {
    %c0_i32 = arith.constant 0 : i32
    %c0_i32_0 = arith.constant 0 : i32
    %c0_i32_1 = arith.constant 0 : i32
    %c0_i32_2 = arith.constant 0 : i32
    return %c0_i32, %c0_i32_0, %c0_i32_1 : i32, i32, i32
  }
  func.func @transform_3(%arg0: i32) -> (i32, i32, i32) {
    %c0_i32 = arith.constant 0 : i32
    %c0_i32_0 = arith.constant 0 : i32
    %c0_i32_1 = arith.constant 0 : i32
    %c0_i32_2 = arith.constant 0 : i32
    return %c0_i32, %c0_i32_0, %c0_i32_1 : i32, i32, i32
  }
  func.func @transform_4(%arg0: i32) -> (i32, i32) {
    %c0_i32 = arith.constant 0 : i32
    %c0_i32_0 = arith.constant 0 : i32
    %c0_i32_1 = arith.constant 0 : i32
    return %c0_i32, %c0_i32_0 : i32, i32
  }
  func.func @transform_5(%arg0: i32) -> (i32, i32) {
    %c0_i32 = arith.constant 0 : i32
    %c0_i32_0 = arith.constant 0 : i32
    %c0_i32_1 = arith.constant 0 : i32
    return %c0_i32, %c0_i32_0 : i32, i32
  }
  func.func @transform_6(%arg0: i32) -> (i32, i32) {
    %c0_i32 = arith.constant 0 : i32
    %c0_i32_0 = arith.constant 0 : i32
    %c0_i32_1 = arith.constant 0 : i32
    return %c0_i32, %c0_i32_0 : i32, i32
  }
  func.func @transform_7(%arg0: i32) -> (i32, i32) {
    %c0_i32 = arith.constant 0 : i32
    %c0_i32_0 = arith.constant 0 : i32
    %c0_i32_1 = arith.constant 0 : i32
    return %c0_i32, %c0_i32_0 : i32, i32
  }
  func.func @transform_8(%arg0: i32) -> (i32, i32) {
    %c0_i32 = arith.constant 0 : i32
    %c0_i32_0 = arith.constant 0 : i32
    %c0_i32_1 = arith.constant 0 : i32
    return %c0_i32, %c0_i32_0 : i32, i32
  }
  func.func @transform_9(%arg0: i32) -> (i32, i32) {
    %c0_i32 = arith.constant 0 : i32
    %c0_i32_0 = arith.constant 0 : i32
    %c0_i32_1 = arith.constant 0 : i32
    return %c0_i32, %c0_i32_0 : i32, i32
  }
  func.func @transform_10(%arg0: i32) -> (i32, i32, i32) {
    %c0_i32 = arith.constant 0 : i32
    %c0_i32_0 = arith.constant 0 : i32
    %c0_i32_1 = arith.constant 0 : i32
    %c0_i32_2 = arith.constant 0 : i32
    return %c0_i32, %c0_i32_0, %c0_i32_1 : i32, i32, i32
  }
  func.func @transform_11(%arg0: i32) -> (i32, i32) {
    %c0_i32 = arith.constant 0 : i32
    %c0_i32_0 = arith.constant 0 : i32
    %c0_i32_1 = arith.constant 0 : i32
    return %c0_i32, %c0_i32_0 : i32, i32
  }
  func.func @transform_12(%arg0: i32) -> (i32, i32) {
    %c0_i32 = arith.constant 0 : i32
    %c0_i32_0 = arith.constant 0 : i32
    %c0_i32_1 = arith.constant 0 : i32
    return %c0_i32, %c0_i32_0 : i32, i32
  }
  func.func @transform_13(%arg0: i32) -> (i32, i32, i32) {
    %c0_i32 = arith.constant 0 : i32
    %c0_i32_0 = arith.constant 0 : i32
    %c0_i32_1 = arith.constant 0 : i32
    %c0_i32_2 = arith.constant 0 : i32
    return %c0_i32, %c0_i32_0, %c0_i32_1 : i32, i32, i32
  }
  func.func @transform_14(%arg0: i32) -> (i32, i32) {
    %c0_i32 = arith.constant 0 : i32
    %c0_i32_0 = arith.constant 0 : i32
    %c0_i32_1 = arith.constant 0 : i32
    return %c0_i32, %c0_i32_0 : i32, i32
  }
  func.func @transform_15(%arg0: i32) -> (i32, i32) {
    %c0_i32 = arith.constant 0 : i32
    %c0_i32_0 = arith.constant 0 : i32
    %c0_i32_1 = arith.constant 0 : i32
    return %c0_i32, %c0_i32_0 : i32, i32
  }
  func.func @transform_16(%arg0: i32) -> (i32, i32, i32) {
    %c0_i32 = arith.constant 0 : i32
    %c0_i32_0 = arith.constant 0 : i32
    %c0_i32_1 = arith.constant 0 : i32
    %c0_i32_2 = arith.constant 0 : i32
    return %c0_i32, %c0_i32_0, %c0_i32_1 : i32, i32, i32
  }
  func.func @transform_17(%arg0: i32) -> (i32, i32) {
    %c0_i32 = arith.constant 0 : i32
    %c0_i32_0 = arith.constant 0 : i32
    %c0_i32_1 = arith.constant 0 : i32
    return %c0_i32, %c0_i32_0 : i32, i32
  }
  func.func @transform_18(%arg0: i32) -> (i32, i32) {
    %c0_i32 = arith.constant 0 : i32
    %c0_i32_0 = arith.constant 0 : i32
    %c0_i32_1 = arith.constant 0 : i32
    return %c0_i32, %c0_i32_0 : i32, i32
  }
  func.func @transform_19(%arg0: i32) -> (i32, i32, i32) {
    %c0_i32 = arith.constant 0 : i32
    %c0_i32_0 = arith.constant 0 : i32
    %c0_i32_1 = arith.constant 0 : i32
    %c0_i32_2 = arith.constant 0 : i32
    return %c0_i32, %c0_i32_0, %c0_i32_1 : i32, i32, i32
  }
  func.func @transform_20(%arg0: i32) -> (i32, i32, i32) {
    %c0_i32 = arith.constant 0 : i32
    %c0_i32_0 = arith.constant 0 : i32
    %c0_i32_1 = arith.constant 0 : i32
    %c0_i32_2 = arith.constant 0 : i32
    return %c0_i32, %c0_i32_0, %c0_i32_1 : i32, i32, i32
  }
  func.func @transform_21(%arg0: i32) -> (i32, i32, i32) {
    %c0_i32 = arith.constant 0 : i32
    %c0_i32_0 = arith.constant 0 : i32
    %c0_i32_1 = arith.constant 0 : i32
    %c0_i32_2 = arith.constant 0 : i32
    return %c0_i32, %c0_i32_0, %c0_i32_1 : i32, i32, i32
  }
  func.func @transform_22(%arg0: i32) -> (i32, i32) {
    %c0_i32 = arith.constant 0 : i32
    %c0_i32_0 = arith.constant 0 : i32
    %c0_i32_1 = arith.constant 0 : i32
    return %c0_i32, %c0_i32_0 : i32, i32
  }
  func.func @transform_23(%arg0: i32) -> (i32, i32) {
    %c0_i32 = arith.constant 0 : i32
    %c0_i32_0 = arith.constant 0 : i32
    %c0_i32_1 = arith.constant 0 : i32
    return %c0_i32, %c0_i32_0 : i32, i32
  }
  func.func @transform_24(%arg0: i32) -> (i32, i32) {
    %c0_i32 = arith.constant 0 : i32
    %c0_i32_0 = arith.constant 0 : i32
    %c0_i32_1 = arith.constant 0 : i32
    return %c0_i32, %c0_i32_0 : i32, i32
  }
  func.func @transform_25(%arg0: i32) -> (i32, i32) {
    %c0_i32 = arith.constant 0 : i32
    %c0_i32_0 = arith.constant 0 : i32
    %c0_i32_1 = arith.constant 0 : i32
    return %c0_i32, %c0_i32_0 : i32, i32
  }
  func.func @transform_26(%arg0: i32) -> (i32, i32, i32) {
    %c0_i32 = arith.constant 0 : i32
    %c0_i32_0 = arith.constant 0 : i32
    %c0_i32_1 = arith.constant 0 : i32
    %c0_i32_2 = arith.constant 0 : i32
    return %c0_i32, %c0_i32_0, %c0_i32_1 : i32, i32, i32
  }
  func.func @transform_27(%arg0: i32) -> (i32, i32, i32) {
    %c0_i32 = arith.constant 0 : i32
    %c0_i32_0 = arith.constant 0 : i32
    %c0_i32_1 = arith.constant 0 : i32
    %c0_i32_2 = arith.constant 0 : i32
    return %c0_i32, %c0_i32_0, %c0_i32_1 : i32, i32, i32
  }
  func.func @transform_28(%arg0: i32) -> (i32, i32) {
    %c0_i32 = arith.constant 0 : i32
    %c0_i32_0 = arith.constant 0 : i32
    %c0_i32_1 = arith.constant 0 : i32
    return %c0_i32, %c0_i32_0 : i32, i32
  }
  func.func @transform_29(%arg0: i32) -> (i32, i32) {
    %c0_i32 = arith.constant 0 : i32
    %c0_i32_0 = arith.constant 0 : i32
    %c0_i32_1 = arith.constant 0 : i32
    return %c0_i32, %c0_i32_0 : i32, i32
  }
  func.func @transform_30(%arg0: i32) -> (i32, i32) {
    %c0_i32 = arith.constant 0 : i32
    %c0_i32_0 = arith.constant 0 : i32
    %c0_i32_1 = arith.constant 0 : i32
    return %c0_i32, %c0_i32_0 : i32, i32
  }
  func.func @transform_31(%arg0: i32) -> (i32, i32) {
    %c0_i32 = arith.constant 0 : i32
    %c0_i32_0 = arith.constant 0 : i32
    %c0_i32_1 = arith.constant 0 : i32
    return %c0_i32, %c0_i32_0 : i32, i32
  }
  func.func @transform_32(%arg0: i32) -> (i32, i32, i32) {
    %c0_i32 = arith.constant 0 : i32
    %c0_i32_0 = arith.constant 0 : i32
    %c0_i32_1 = arith.constant 0 : i32
    %c0_i32_2 = arith.constant 0 : i32
    return %c0_i32, %c0_i32_0, %c0_i32_1 : i32, i32, i32
  }
  func.func @transform_33(%arg0: i32) -> (i32, i32) {
    %c0_i32 = arith.constant 0 : i32
    %c0_i32_0 = arith.constant 0 : i32
    %c0_i32_1 = arith.constant 0 : i32
    return %c0_i32, %c0_i32_0 : i32, i32
  }
  func.func @transform_34(%arg0: i32) -> (i32, i32) {
    %c0_i32 = arith.constant 0 : i32
    %c0_i32_0 = arith.constant 0 : i32
    %c0_i32_1 = arith.constant 0 : i32
    return %c0_i32, %c0_i32_0 : i32, i32
  }
  func.func @transform_35(%arg0: i32) -> (i32, i32, i32) {
    %c0_i32 = arith.constant 0 : i32
    %c0_i32_0 = arith.constant 0 : i32
    %c0_i32_1 = arith.constant 0 : i32
    %c0_i32_2 = arith.constant 0 : i32
    return %c0_i32, %c0_i32_0, %c0_i32_1 : i32, i32, i32
  }
  func.func @transform_36(%arg0: i32) -> (i32, i32) {
    %c0_i32 = arith.constant 0 : i32
    %c0_i32_0 = arith.constant 0 : i32
    %c0_i32_1 = arith.constant 0 : i32
    return %c0_i32, %c0_i32_0 : i32, i32
  }
  func.func @transform_37(%arg0: i32) -> (i32, i32) {
    %c0_i32 = arith.constant 0 : i32
    %c0_i32_0 = arith.constant 0 : i32
    %c0_i32_1 = arith.constant 0 : i32
    return %c0_i32, %c0_i32_0 : i32, i32
  }
  func.func @transform_38(%arg0: i32) -> (i32, i32, i32) {
    %c0_i32 = arith.constant 0 : i32
    %c0_i32_0 = arith.constant 0 : i32
    %c0_i32_1 = arith.constant 0 : i32
    %c0_i32_2 = arith.constant 0 : i32
    return %c0_i32, %c0_i32_0, %c0_i32_1 : i32, i32, i32
  }
  func.func @transform_39(%arg0: i32) -> (i32, i32, i32) {
    %c0_i32 = arith.constant 0 : i32
    %c0_i32_0 = arith.constant 0 : i32
    %c0_i32_1 = arith.constant 0 : i32
    %c0_i32_2 = arith.constant 0 : i32
    return %c0_i32, %c0_i32_0, %c0_i32_1 : i32, i32, i32
  }
  func.func @transform_40(%arg0: i32) -> (i32, i32, i32) {
    %c0_i32 = arith.constant 0 : i32
    %c0_i32_0 = arith.constant 0 : i32
    %c0_i32_1 = arith.constant 0 : i32
    %c0_i32_2 = arith.constant 0 : i32
    return %c0_i32, %c0_i32_0, %c0_i32_1 : i32, i32, i32
  }
  func.func @transform_41(%arg0: i32) -> (i32, i32) {
    %c0_i32 = arith.constant 0 : i32
    %c0_i32_0 = arith.constant 0 : i32
    %c0_i32_1 = arith.constant 0 : i32
    return %c0_i32, %c0_i32_0 : i32, i32
  }
  func.func @transform_42(%arg0: i32) -> (i32, i32) {
    %c0_i32 = arith.constant 0 : i32
    %c0_i32_0 = arith.constant 0 : i32
    %c0_i32_1 = arith.constant 0 : i32
    return %c0_i32, %c0_i32_0 : i32, i32
  }
  func.func @transform_43(%arg0: i32) -> (i32, i32) {
    %c0_i32 = arith.constant 0 : i32
    %c0_i32_0 = arith.constant 0 : i32
    %c0_i32_1 = arith.constant 0 : i32
    return %c0_i32, %c0_i32_0 : i32, i32
  }
  func.func @transform_44(%arg0: i32) -> (i32, i32) {
    %c0_i32 = arith.constant 0 : i32
    %c0_i32_0 = arith.constant 0 : i32
    %c0_i32_1 = arith.constant 0 : i32
    return %c0_i32, %c0_i32_0 : i32, i32
  }
  func.func @transform_45(%arg0: i32) -> (i32, i32) {
    %c0_i32 = arith.constant 0 : i32
    %c0_i32_0 = arith.constant 0 : i32
    %c0_i32_1 = arith.constant 0 : i32
    return %c0_i32, %c0_i32_0 : i32, i32
  }
  func.func @transform_46(%arg0: i32) -> (i32, i32, i32) {
    %c0_i32 = arith.constant 0 : i32
    %c0_i32_0 = arith.constant 0 : i32
    %c0_i32_1 = arith.constant 0 : i32
    %c0_i32_2 = arith.constant 0 : i32
    return %c0_i32, %c0_i32_0, %c0_i32_1 : i32, i32, i32
  }
  func.func @transform_47(%arg0: i32) -> (i32, i32, i32) {
    %c0_i32 = arith.constant 0 : i32
    %c0_i32_0 = arith.constant 0 : i32
    %c0_i32_1 = arith.constant 0 : i32
    %c0_i32_2 = arith.constant 0 : i32
    return %c0_i32, %c0_i32_0, %c0_i32_1 : i32, i32, i32
  }
  func.func @transform_48(%arg0: i32) -> (i32, i32) {
    %c0_i32 = arith.constant 0 : i32
    %c0_i32_0 = arith.constant 0 : i32
    %c0_i32_1 = arith.constant 0 : i32
    return %c0_i32, %c0_i32_0 : i32, i32
  }
  func.func @transform_49(%arg0: i32) -> (i32, i32) {
    %c0_i32 = arith.constant 0 : i32
    %c0_i32_0 = arith.constant 0 : i32
    %c0_i32_1 = arith.constant 0 : i32
    return %c0_i32, %c0_i32_0 : i32, i32
  }
  func.func @transform_50(%arg0: i32) -> (i32, i32) {
    %c0_i32 = arith.constant 0 : i32
    %c0_i32_0 = arith.constant 0 : i32
    %c0_i32_1 = arith.constant 0 : i32
    return %c0_i32, %c0_i32_0 : i32, i32
  }
  func.func @transform_51(%arg0: i32) -> (i32, i32) {
    %c0_i32 = arith.constant 0 : i32
    %c0_i32_0 = arith.constant 0 : i32
    %c0_i32_1 = arith.constant 0 : i32
    return %c0_i32, %c0_i32_0 : i32, i32
  }
  func.func @transform_52(%arg0: i32) -> (i32, i32, i32) {
    %c0_i32 = arith.constant 0 : i32
    %c0_i32_0 = arith.constant 0 : i32
    %c0_i32_1 = arith.constant 0 : i32
    return %arg0, %c0_i32, %c0_i32_0 : i32, i32, i32
  }
}

</mosaic_0001>

<bundles_post_ra>
// kernel: forward.1
= control target key start
LH: loop header
LB: loop body
LE: loop exit
PB: predicated region body
PF: predicated region fallthrough
CT: control target
= control target key end

     0   :  { %s16094_s6 = smov 1   ;;  %s16095_s10 = smov 2   ;;  %s17989_s0 = inlined_call_operand.smem [shape: u32[53], index: -1, kind: input, shape index: {}] }
   0x1   :  { %s16214_s5 = sld [smem:[%s17989_s0]]   ;;  %s16096_s14 = smov 3  }
   0x2   :  { %s16219_s9 = sld [smem:[%s17989_s0 + %s16094_s6]]   ;;  %s16097_s18 = smov 4  }
   0x3   :  { %s16224_s13 = sld [smem:[%s17989_s0 + %s16095_s10]]   ;;  %s16098_s22 = smov 5  }
   0x4   :  { %s16229_s17 = sld [smem:[%s17989_s0 + %s16096_s14]]   ;;  %s16099_s26 = smov 6  }
   0x5   :  { %s16234_s21 = sld [smem:[%s17989_s0 + %s16097_s18]]   ;;  %s16100_s30 = smov 7  }
   0x6   :  { %s16239_s25 = sld [smem:[%s17989_s0 + %s16098_s22]]   ;;  %s16101_s4 = smov 8  }
   0x7   :  { %18008 = sst [smem:[#allocation100_spill]] %s16214_s5  ;;  %s16102_s10 = smov 9  }
   0x8   :  { %18009 = sst [smem:[#allocation101_spill]] %s16219_s9  ;;  %s16103_s15 = smov 10  }
   0x9   :  { %18010 = sst [smem:[#allocation102_spill]] %s16224_s13  ;;  %s16104_s20 = smov 11  }
   0xa   :  { %18011 = sst [smem:[#allocation103_spill]] %s16229_s17  ;;  %s16106_s1 = smov 13  }
   0xb   :  { %18012 = sst [smem:[#allocation104_spill]] %s16234_s21  ;;  %s16107_s7 = smov 14  }
   0xc   :  { %s16244_s29 = sld [smem:[%s17989_s0 + %s16099_s26]]   ;;  %s16105_s26 = smov 12  }
   0xd   :  { %s16249_s3 = sld [smem:[%s17989_s0 + %s16100_s30]]   ;;  %s16109_s22 = smov 16  }
   0xe   :  { %s16254_s8 = sld [smem:[%s17989_s0 + %s16101_s4]]   ;;  %s16110_s28 = smov 17  }
   0xf   :  { %s16259_s14 = sld [smem:[%s17989_s0 + %s16102_s10]]  }
  0x10   :  { %s16264_s19 = sld [smem:[%s17989_s0 + %s16103_s15]]   ;;  %s16108_s15 = smov 15  }
  0x11   :  { %s16269_s24 = sld [smem:[%s17989_s0 + %s16104_s20]]  }
  0x12   :  { %18013 = sst [smem:[#allocation105_spill]] %s16244_s29 }
  0x13   :  { %18014 = sst [smem:[#allocation106_spill]] %s16249_s3 }
  0x14   :  { %18015 = sst [smem:[#allocation107_spill]] %s16254_s8 }
  0x15   :  { %s16274_s30 = sld [smem:[%s17989_s0 + %s16105_s26]]  }
  0x16   :  { %18016 = sst [smem:[#allocation108_spill]] %s16264_s19 }
  0x17   :  { %s16279_s6 = sld [smem:[%s17989_s0 + %s16106_s1]]  }
  0x18   :  { %s16284_s12 = sld [smem:[%s17989_s0 + %s16107_s7]]   ;;  %s16111_s7 = smov 18  }
  0x19   :  { %s16289_s20 = sld [smem:[%s17989_s0 + %s16108_s15]]   ;;  %s16112_s15 = smov 19  }
  0x1a   :  { %s16294_s27 = sld [smem:[%s17989_s0 + %s16109_s22]]   ;;  %s16113_s22 = smov 20  }
  0x1b   :  { %18017 = sst [smem:[#allocation109_spill]] %s16274_s30 }
  0x1c   :  { %s16299_s4 = sld [smem:[%s17989_s0 + %s16110_s28]]   ;;  %s16114_s28 = smov 21  }
  0x1d   :  { %s16304_s17 = sld [smem:[%s17989_s0 + %s16111_s7]]   ;;  %s16115_s7 = smov 22  }
  0x1e   :  { %18018 = sst [smem:[#allocation110_spill]] %s16284_s12 }
  0x1f   :  { %s16309_s5 = sld [smem:[%s17989_s0 + %s16112_s15]]   ;;  %s16116_s15 = smov 23  }
  0x20   :  { %18019 = sst [smem:[#allocation111_spill]] %s16294_s27 }
  0x21   :  { %s16314_s27 = sld [smem:[%s17989_s0 + %s16113_s22]]   ;;  %s16117_s22 = smov 24  }
  0x22   :  { %18020 = sst [smem:[#allocation112_spill]] %s16299_s4 }
  0x23   :  { %18021 = sst [smem:[#allocation113_spill]] %s16304_s17 }
  0x24   :  { %s16319_s12 = sld [smem:[%s17989_s0 + %s16114_s28]]   ;;  %s16118_s28 = smov 25  }
  0x25   :  { %18022 = sst [smem:[#allocation114_spill]] %s16309_s5 }
  0x26   :  { %s16324_s17 = sld [smem:[%s17989_s0 + %s16115_s7]]   ;;  %s16119_s7 = smov 26  }
  0x27   :  { %18023 = sst [smem:[#allocation115_spill]] %s16314_s27 }
  0x28   :  { %s16329_s30 = sld [smem:[%s17989_s0 + %s16116_s15]]   ;;  %s16120_s15 = smov 27  }
  0x29   :  { %s16334_s27 = sld [smem:[%s17989_s0 + %s16117_s22]]   ;;  %s16121_s22 = smov 28  }
  0x2a   :  { %s16339_s19 = sld [smem:[%s17989_s0 + %s16118_s28]]   ;;  %s16122_s28 = smov 29  }
  0x2b   :  { %s16349_s8 = sld [smem:[%s17989_s0 + %s16120_s15]]   ;;  %s16124_s15 = smov 31  }
  0x2c   :  { %18024 = sst [smem:[#allocation116_spill]] %s16324_s17 }
  0x2d   :  { %s16344_s17 = sld [smem:[%s17989_s0 + %s16119_s7]]   ;;  %s16123_s7 = smov 30  }
  0x2e   :  { %s16359_s29 = sld [smem:[%s17989_s0 + %s16122_s28]]   ;;  %s16126_s28 = smov 33  }
  0x2f   :  { %18025 = sst [smem:[#allocation117_spill]] %s16334_s27 }
  0x30   :  { %s16354_s27 = sld [smem:[%s17989_s0 + %s16121_s22]]   ;;  %s16125_s22 = smov 32  }
  0x31   :  { %s16369_s21 = sld [smem:[%s17989_s0 + %s16124_s15]]   ;;  %s16128_s15 = smov 35  }
  0x32   :  { %s16379_s9 = sld [smem:[%s17989_s0 + %s16126_s28]]   ;;  %s16130_s28 = smov 37  }
  0x33   :  { %18026 = sst [smem:[#allocation118_spill]] %s16344_s17 }
  0x34   :  { %s16364_s17 = sld [smem:[%s17989_s0 + %s16123_s7]]   ;;  %s16127_s7 = smov 34  }
  0x36   :  { %18027 = sst [smem:[#allocation119_spill]] %s16354_s27 }
  0x37   :  { %18029 = sst [smem:[#allocation121_spill]] %s16369_s21 }
  0x38   :  { %s16374_s27 = sld [smem:[%s17989_s0 + %s16125_s22]]   ;;  %s16129_s22 = smov 36  }
  0x39   :  { %18031 = sst [smem:[#allocation123_spill]] %s16379_s9 }
  0x3a   :  { %18028 = sst [smem:[#allocation120_spill]] %s16364_s17 }
  0x3b   :  { %s16384_s17 = sld [smem:[%s17989_s0 + %s16127_s7]]   ;;  %s16131_s7 = smov 38  }
  0x3c   :  { %s16389_s21 = sld [smem:[%s17989_s0 + %s16128_s15]]   ;;  %s16132_s15 = smov 39  }
  0x3d   :  { %s16399_s9 = sld [smem:[%s17989_s0 + %s16130_s28]]   ;;  %s16134_s28 = smov 41  }
  0x3e   :  { %18030 = sst [smem:[#allocation122_spill]] %s16374_s27 }
  0x3f   :  { %s16394_s27 = sld [smem:[%s17989_s0 + %s16129_s22]]   ;;  %s16133_s22 = smov 40  }
  0x41   :  { %18032 = sst [smem:[#allocation124_spill]] %s16384_s17 }
  0x42   :  { %18033 = sst [smem:[#allocation125_spill]] %s16389_s21 }
  0x43   :  { %18035 = sst [smem:[#allocation127_spill]] %s16399_s9 }
  0x44   :  { %s16404_s17 = sld [smem:[%s17989_s0 + %s16131_s7]]   ;;  %s16135_s7 = smov 42  }
  0x45   :  { %18034 = sst [smem:[#allocation126_spill]] %s16394_s27 }
  0x46   :  { %s16409_s21 = sld [smem:[%s17989_s0 + %s16132_s15]]   ;;  %s16136_s15 = smov 43  }
  0x47   :  { %s16414_s27 = sld [smem:[%s17989_s0 + %s16133_s22]]   ;;  %s16137_s22 = smov 44  }
  0x48   :  { %s16419_s9 = sld [smem:[%s17989_s0 + %s16134_s28]]   ;;  %s16138_s28 = smov 45  }
  0x4a   :  { %18036 = sst [smem:[#allocation128_spill]] %s16404_s17 }
  0x4b   :  { %s16424_s17 = sld [smem:[%s17989_s0 + %s16135_s7]]   ;;  %s16139_s7 = smov 46  }
  0x4c   :  { %18037 = sst [smem:[#allocation129_spill]] %s16409_s21 }
  0x4d   :  { %18038 = sst [smem:[#allocation130_spill]] %s16414_s27 }
  0x4e   :  { %18039 = sst [smem:[#allocation131_spill]] %s16419_s9 }
  0x4f   :  { %s16429_s21 = sld [smem:[%s17989_s0 + %s16136_s15]]   ;;  %s16140_s15 = smov 47  }
  0x50   :  { %s16434_s27 = sld [smem:[%s17989_s0 + %s16137_s22]]   ;;  %s16141_s22 = smov 48  }
  0x51   :  { %18040 = sst [smem:[#allocation132_spill]] %s16424_s17 }
  0x52   :  { %s16439_s9 = sld [smem:[%s17989_s0 + %s16138_s28]]   ;;  %s16142_s28 = smov 49  }
  0x53   :  { %s16444_s17 = sld [smem:[%s17989_s0 + %s16139_s7]]   ;;  %s16143_s7 = smov 50  }
  0x55   :  { %18041 = sst [smem:[#allocation133_spill]] %s16429_s21 }
  0x56   :  { %18042 = sst [smem:[#allocation134_spill]] %s16434_s27 }
  0x57   :  { %s16449_s21 = sld [smem:[%s17989_s0 + %s16140_s15]]   ;;  %s16144_s15 = smov 51  }
  0x58   :  { %18043 = sst [smem:[#allocation135_spill]] %s16439_s9 }
  0x59   :  { %18044 = sst [smem:[#allocation136_spill]] %s16444_s17 }
  0x5a   :  { %s16454_s27 = sld [smem:[%s17989_s0 + %s16141_s22]]   ;;  %s16145_s22 = smov 52  }
  0x5b   :  { %s16459_s9 = sld [smem:[%s17989_s0 + %s16142_s28]]  }
  0x5c   :  { %s16464_s17 = sld [smem:[%s17989_s0 + %s16143_s7]]  }
  0x5d   :  { %18045 = sst [smem:[#allocation137_spill]] %s16449_s21 }
  0x5e   :  { %s16469_s21 = sld [smem:[%s17989_s0 + %s16144_s15]]  }
  0x60   :  { %18046 = sst [smem:[#allocation138_spill]] %s16454_s27 }
  0x61   :  { %s16474_s27 = sld [smem:[%s17989_s0 + %s16145_s22]]  }
  0x62   :  { %110 = vsyncpa [#allocation3], 0 }
  0x63   :  { %111 = vsyncpa [#allocation6], 0 }
  0x64   :  { %112 = vsyncpa [#allocation9], 0 }
  0x65   :  { %113 = vsyncpa [#allocation12], 0 }
  0x66   :  { %114 = vsyncpa [#allocation15], 0 }
  0x67   :  { %115 = vsyncpa [#allocation18], 0 }
  0x68   :  { %116 = vsyncpa [#allocation21], 0 }
  0x69   :  { %117 = vsyncpa [#allocation24], 0 }
  0x6a   :  { %118 = vsyncpa [#allocation27], 0 }
  0x6b   :  { %119 = vsyncpa [#allocation30], 0 }
  0x6c   :  { %120 = vsyncpa [#allocation33], 0 }
  0x6d   :  { %121 = vsyncpa [#allocation36], 0 }
  0x6e   :  { %122 = vsyncpa [#allocation39], 0 }
  0x6f   :  { %123 = vsyncpa [#allocation42], 0 }
  0x70   :  { %124 = vsyncpa [#allocation45], 0 }
  0x71   :  { %125 = vsyncpa [#allocation48], 0 }
  0x72   :  { %126 = vsyncpa [#allocation51], 0 }
  0x73   :  { %127 = vsyncpa [#allocation54], 0 }
  0x74   :  { %128 = vsyncpa [#allocation57], 0 }
  0x75   :  { %129 = vsyncpa [#allocation60], 0 }
  0x76   :  { %130 = vsyncpa [#allocation63], 0 }
  0x77   :  { %131 = vsyncpa [#allocation66], 0 }
  0x78   :  { %132 = vsyncpa [#allocation69], 0 }
  0x79   :  { %133 = vsyncpa [#allocation72], 0 }
  0x7a   :  { %134 = vsyncpa [#allocation4], 0 }
  0x7b   :  { %136 = vsyncpa [#allocation4 + $0x1], 0  ;;  %s16476_s0 = smov 0   ;;  %s16478_s28 = smov 0  }
  0x7c   :  { %s16480_s1 = smov 0   ;;  %s16482_s2 = smov 0  }
  0x7d LB: > { %18047 = sst [smem:[#allocation139_spill]] %s16080_s0  ;;  %s16497_s7 = sadd.s32 4294967295, %s16092_s2   ;;  %s16092_s2 = sphi %s16482_s2, %s18106_s2   ;;  %s16088_s1 = sphi %s16480_s1, %s18108_s1   ;;  %s16084_s28 = sphi %s16478_s28, %s18110_s28   ;;  %s16080_s0 = sphi %s16476_s0, %s18109_s0  }
  0x7e   : > { %18048 = sst [smem:[#allocation140_spill]] %s16088_s1  ;;  %s11666_s10 = sadd.s32 4294967294, %s16092_s2  }
  0x7f   : > { %s16501_s11 = sadd.s32 1, %s16092_s2   ;;  %s1246_s15 = sadd.s32 1, %s16088_s1 }
  0x80   : > { %18049 = sst [smem:[#allocation141_spill]] %s16501_s11  ;;  %s1243_s16 = ssub.s32 %s16092_s2, %s16501_s11 }
  0x81   : > { %p1256_p0 = scmp.ne.s32.totalorder %s16088_s1, %s16084_s28  ;;  %p1244_p1 = scmp.eq.s32.totalorder %s1243_s16, 0 }
  0x82   : > { %p1257_p2 = scmp.eq.s32.totalorder %s16497_s7, 1  ;;  %p1262_p3 = scmp.ne.s32.totalorder %s16084_s28, %s16080_s0 }
  0x83   : > { %p1263_p4 = scmp.eq.s32.totalorder %s11666_s10, 1  ;;  %p11667_p7 = scmp.ge.s32.totalorder %s16092_s2, 1 }
  0x84   : > { %s16512_s18 = scalar_select %p1244_p1, %s16088_s1, %s1246_s15  }
  0x85   : > { %p16514_p5 = por %p1257_p2, %p1256_p0  ;;  %p16518_p6 = por %p1263_p4, %p1262_p3 }
  0x86   : > { %18050 = sst [smem:[#allocation142_spill]] %s16512_s18  ;;  %p1270_p8 = scmp.lt.s32.totalorder %s16092_s2, 3 }
  0x87   : > { %s18051_s22 = scalar_select %p16514_p5, 1, 0 }
  0x88   : > { %s18052_s23 = scalar_select %p16518_p6, 1, 0 }
  0x89   : > { %p16524_p9 = pnand %p11667_p7, %p1270_p8 }
  0x8a   : > { %18053 = sst [smem:[#allocation143_spill]] %s18052_s23  ;;  %p14420_p10 = scmp.eq.s32.totalorder (!%p16524_p9), %s16497_s7, 0 }
  0x8b   : > { %1274 = sbr.rel (%p16524_p9) target bundleno = 679 (0x2a7), region = 12  ;;  %s16146_s10 = smov (!%p16524_p9), [#allocation5]  }
  0x8c   : > { %s1295_s15 = sshll.u32 (!%p16524_p9), %s16146_s10, 4  ;;  %s16147_s16 = smov (!%p16524_p9), [#allocation8]   ;;  %s1296_s15 = int_to_ptr.vmem [resolvable:$true] %s1295_s15 }
  0x8d   : > { %s1324_s18 = sshll.u32 (!%p16524_p9), %s16147_s16, 4  ;;  %s14818_s1 = scalar_lea.vmem (!%p16524_p9), %s1296_s15, 384  ;;  %s1325_s18 = int_to_ptr.vmem [resolvable:$true] %s1324_s18 }
  0x8e   : > { %p14819_p11 = scmp.ne.s32.totalorder (!%p16524_p9), %s1296_s15, %s14818_s1  ;;  %p14825_p0 = scmp.lt.s32.totalorder (!%p16524_p9), %s1296_s15, %s1296_s15 }
  0x8f   : > { %p14826_p1 = scmp.lt.s32.totalorder (!%p16524_p9), %s14818_s1, %s14818_s1 }
  0x90   : > { %p14820_p12 = pnand %p14819_p11, %p14420_p10 }
  0x91   : > { %p14827_p2 = por %p14826_p1, %p14825_p0 }
  0x92   : > { %p14821_p13 = pneg %p14820_p12 }
  0x94   : > { %p14828_p3 = pnand %p14827_p2, %p14821_p13 }
  0x96   : > { %14831 = shalt.err (!%p14828_p3)
}
  0x97   : > { %s17998_s11 = smov 128   ;;  %s18055_s13 = sld [smem:[#allocation102_spill]] }
  0x98   : > { %s18000_s23 = smov 8   ;;  %s14842_s10 = scalar_lea.vmem %s1325_s18, 2048 }
  0x99   : > { %p14843_p4 = scmp.ne.s32.totalorder %s1325_s18, %s14842_s10  ;;  %p14849_p11 = scmp.lt.s32.totalorder %s1325_s18, %s1325_s18 }
  0x9a   : > { %p14850_p12 = scmp.lt.s32.totalorder %s14842_s10, %s14842_s10 }
  0x9b   : > { %p14844_p7 = pnand %p14843_p4, %p14420_p10 }
  0x9c   : > { %p14851_p13 = por %p14850_p12, %p14849_p11 }
  0x9d   : > { %14229 = dma.hbm_to_vmem [thread:$0]  (%p14420_p10), %s18055_s13, 384, %s1296_s15, [#allocation6], %s17998_s11, %s17998_s11, %s18000_s23  }
  0x9e   : > { %p14845_p8 = pneg %p14844_p7 }
  0xa0   : > { %p14852_p0 = pnand %p14851_p13, %p14845_p8 }
  0xa2   : > { %14855 = shalt.err (!%p14852_p0)
}
  0xa3   : > { %14233 = dma.hbm_to_vmem [thread:$0]  (%p14420_p10), %s16239_s25, 2048, %s1325_s18, [#allocation9], %s17998_s11, %s17998_s11, %s18000_s23  }
  0xa4   : > { %s16150_s1 = smov [#allocation11]   ;;  %s16151_s16 = smov [#allocation14]  }
  0xa5   : > { %s1348_s15 = sshll.u32 %s16150_s1, 4  ;;  %s1372_s13 = sshll.u32 %s16151_s16, 4  ;;  %s1349_s15 = int_to_ptr.vmem [resolvable:$true] %s1348_s15  ;;  %s1373_s13 = int_to_ptr.vmem [resolvable:$true] %s1372_s13 }
  0xa6   : > { %s14866_s0 = scalar_lea.vmem %s1349_s15, 256  ;;  %p14873_p4 = scmp.lt.s32.totalorder %s1349_s15, %s1349_s15 }
  0xa7   : > { %p14867_p1 = scmp.ne.s32.totalorder %s1349_s15, %s14866_s0  ;;  %p14874_p7 = scmp.lt.s32.totalorder %s14866_s0, %s14866_s0 }
  0xa9   : > { %p14868_p2 = pnand %p14867_p1, %p14420_p10  ;;  %p14875_p8 = por %p14874_p7, %p14873_p4 }
  0xab   : > { %p14869_p3 = pneg %p14868_p2 }
  0xad   : > { %p14876_p11 = pnand %p14875_p8, %p14869_p3 }
  0xaf   : > { %14879 = shalt.err (!%p14876_p11)
}
  0xb0   : > { %s18056_s3 = sld [smem:[#allocation106_spill]]  ;;  %s14890_s18 = scalar_lea.vmem %s1373_s13, 256 }
  0xb1   : > { %p14891_p12 = scmp.ne.s32.totalorder %s1373_s13, %s14890_s18  ;;  %p14897_p1 = scmp.lt.s32.totalorder %s1373_s13, %s1373_s13 }
  0xb2   : > { %p14898_p2 = scmp.lt.s32.totalorder %s14890_s18, %s14890_s18 }
  0xb3   : > { %p14892_p13 = pnand %p14891_p12, %p14420_p10 }
  0xb4   : > { %p14899_p6 = por %p14898_p2, %p14897_p1 }
  0xb5   : > { %p14893_p0 = pneg %p14892_p13 }
  0xb6   : > { %14237 = dma.hbm_to_vmem [thread:$0]  (%p14420_p10), %s18056_s3, 256, %s1349_s15, [#allocation12], %s17998_s11, %s17998_s11, %s18000_s23  }
  0xb7   : > { %p14900_p4 = pnand %p14899_p6, %p14893_p0 }
  0xb9   : > { %14903 = shalt.err (!%p14900_p4)
}
  0xba   : > { %14241 = dma.hbm_to_vmem [thread:$0]  (%p14420_p10), %s16259_s14, 256, %s1373_s13, [#allocation15], %s17998_s11, %s17998_s11, %s18000_s23  }
  0xbb   : > { %s16152_s0 = smov [#allocation17]   ;;  %s16153_s1 = smov [#allocation20]  }
  0xbc   : > { %s1399_s10 = sshll.u32 %s16152_s0, 4  ;;  %s1420_s15 = sshll.u32 %s16153_s1, 4  ;;  %s1400_s10 = int_to_ptr.vmem [resolvable:$true] %s1399_s10  ;;  %s1421_s15 = int_to_ptr.vmem [resolvable:$true] %s1420_s15 }
  0xbd   : > { %s14914_s16 = scalar_lea.vmem %s1400_s10, 16  ;;  %s14920_s18 = scalar_lea.vmem %s1400_s10, 32 }
  0xbe   : > { %p14915_p3 = scmp.ne.s32.totalorder %s1400_s10, %s14914_s16  ;;  %p14921_p6 = scmp.lt.s32.totalorder %s1400_s10, %s1400_s10 }
  0xbf   : > { %p14922_p11 = scmp.lt.s32.totalorder %s14920_s18, %s14914_s16 }
  0xc0   : > { %p14916_p7 = pnand %p14915_p3, %p14420_p10 }
  0xc1   : > { %p14923_p12 = por %p14922_p11, %p14921_p6 }
  0xc2   : > { %p14917_p8 = pneg %p14916_p7 }
  0xc4   : > { %p14924_p13 = pnand %p14923_p12, %p14917_p8 }
  0xc6   : > { %14927 = shalt.err (!%p14924_p13)
}
  0xc7   : > { %14245 = dma.hbm_to_vmem [thread:$0]  (%p14420_p10), %s16269_s24, 16, %s1400_s10, [#allocation18]  }
  0xc8   : > { %s14938_s13 = scalar_lea.vmem %s1421_s15, 64  ;;  %p14945_p4 = scmp.lt.s32.totalorder %s1421_s15, %s1421_s15 }
  0xc9   : > { %p14939_p0 = scmp.ne.s32.totalorder %s1421_s15, %s14938_s13  ;;  %p14946_p3 = scmp.lt.s32.totalorder %s14938_s13, %s14938_s13 }
  0xcb   : > { %p14940_p1 = pnand %p14939_p0, %p14420_p10  ;;  %p14947_p7 = por %p14946_p3, %p14945_p4 }
  0xcd   : > { %p14941_p2 = pneg %p14940_p1 }
  0xcf   : > { %p14948_p5 = pnand %p14947_p7, %p14941_p2 }
  0xd1   : > { %14951 = shalt.err (!%p14948_p5)
}
  0xd2   : > { %s18002_s0 = smov 16   ;;  %s18003_s1 = smov 1  }
  0xd3   : > { %14249 = dma.hbm_to_vmem [thread:$0]  (%p14420_p10), %s16279_s6, 64, %s1421_s15, [#allocation21], %s18002_s0, %s18002_s0, %s18003_s1  }
  0xd4   : > { %s16156_s10 = smov [#allocation23]   ;;  %s16157_s18 = smov [#allocation26]  }
  0xd5   : > { %s1445_s16 = sshll.u32 %s16156_s10, 4  ;;  %s1469_s11 = sshll.u32 %s16157_s18, 4  ;;  %s1446_s16 = int_to_ptr.vmem [resolvable:$true] %s1445_s16  ;;  %s1470_s11 = int_to_ptr.vmem [resolvable:$true] %s1469_s11 }
  0xd6   : > { %s14962_s23 = scalar_lea.vmem %s1446_s16, 128  ;;  %p14969_p11 = scmp.lt.s32.totalorder %s1446_s16, %s1446_s16 }
  0xd7   : > { %p14963_p8 = scmp.ne.s32.totalorder %s1446_s16, %s14962_s23  ;;  %p14970_p12 = scmp.lt.s32.totalorder %s14962_s23, %s14962_s23 }
  0xd9   : > { %p14964_p6 = pnand %p14963_p8, %p14420_p10  ;;  %p14971_p13 = por %p14970_p12, %p14969_p11 }
  0xdb   : > { %p14965_p5 = pneg %p14964_p6 }
  0xdd   : > { %p14972_p0 = pnand %p14971_p13, %p14965_p5 }
  0xdf   : > { %14975 = shalt.err (!%p14972_p0)
}
  0xe0   : > { %14253 = dma.hbm_to_vmem [thread:$0]  (%p14420_p10), %s16289_s20, 128, %s1446_s16, [#allocation24]  }
  0xe1   : > { %s14986_s15 = scalar_lea.vmem %s1470_s11, 16  ;;  %s14992_s13 = scalar_lea.vmem %s1470_s11, 32 }
  0xe2   : > { %p14987_p1 = scmp.ne.s32.totalorder %s1470_s11, %s14986_s15  ;;  %p14993_p3 = scmp.lt.s32.totalorder %s1470_s11, %s1470_s11 }
  0xe3   : > { %p14994_p7 = scmp.lt.s32.totalorder %s14992_s13, %s14986_s15 }
  0xe4   : > { %p14988_p2 = pnand %p14987_p1, %p14420_p10 }
  0xe5   : > { %p14995_p8 = por %p14994_p7, %p14993_p3 }
  0xe6   : > { %p14989_p4 = pneg %p14988_p2 }
  0xe8   : > { %p14996_p6 = pnand %p14995_p8, %p14989_p4 }
  0xea   : > { %14999 = shalt.err (!%p14996_p6)
}
  0xeb   : > { %s18057_s4 = sld [smem:[#allocation112_spill]]  ;;  %s16158_s23 = smov [#allocation29]  }
  0xec   : > { %s1490_s10 = sshll.u32 %s16158_s23, 4  ;;  %s16159_s16 = smov [#allocation32]   ;;  %s1491_s10 = int_to_ptr.vmem [resolvable:$true] %s1490_s10 }
  0xed   : > { %s1516_s18 = sshll.u32 %s16159_s16, 4  ;;  %s15010_s0 = scalar_lea.vmem %s1491_s10, 128  ;;  %s1517_s18 = int_to_ptr.vmem [resolvable:$true] %s1516_s18 }
  0xee   : > { %p15011_p5 = scmp.ne.s32.totalorder %s1491_s10, %s15010_s0  ;;  %p15017_p13 = scmp.lt.s32.totalorder %s1491_s10, %s1491_s10 }
  0xef   : > { %p15018_p0 = scmp.lt.s32.totalorder %s15010_s0, %s15010_s0 }
  0xf0   : > { %p15012_p11 = pnand %p15011_p5, %p14420_p10 }
  0xf1   : > { %14257 = dma.hbm_to_vmem [thread:$0]  (%p14420_p10), %s18057_s4, 16, %s1470_s11, [#allocation27]  }
  0xf2   : > { %p15013_p12 = pneg %p15012_p11  ;;  %p15019_p1 = por %p15018_p0, %p15017_p13 }
  0xf4   : > { %p15020_p2 = pnand %p15019_p1, %p15013_p12 }
  0xf6   : > { %15023 = shalt.err (!%p15020_p2)
}
  0xf7   : > { %s18004_s15 = smov 32   ;;  %s18058_s5 = sld [smem:[#allocation114_spill]] }
  0xf8   : > { %s18005_s11 = smov 2   ;;  %s15034_s13 = scalar_lea.vmem %s1517_s18, 6144 }
  0xf9   : > { %p15035_p4 = scmp.ne.s32.totalorder %s1517_s18, %s15034_s13  ;;  %p15041_p8 = scmp.lt.s32.totalorder %s1517_s18, %s1517_s18 }
  0xfa   : > { %p15042_p6 = scmp.lt.s32.totalorder %s15034_s13, %s15034_s13 }
  0xfb   : > { %p15036_p3 = pnand %p15035_p4, %p14420_p10 }
  0xfc   : > { %p15043_p5 = por %p15042_p6, %p15041_p8 }
  0xfd   : > { %14261 = dma.hbm_to_vmem [thread:$0]  (%p14420_p10), %s18058_s5, 128, %s1491_s10, [#allocation30], %s18004_s15, %s18004_s15, %s18005_s11  }
  0xfe   : > { %p15037_p7 = pneg %p15036_p3 }
 0x100   : > { %p15044_p11 = pnand %p15043_p5, %p15037_p7 }
 0x102   : > { %15047 = shalt.err (!%p15044_p11)
}
 0x103   : > { %s18059_s0 = smov 8   ;;  %s18060_s23 = smov 128  }
 0x104   : > { %14265 = dma.hbm_to_vmem [thread:$0]  (%p14420_p10), %s16319_s12, 6144, %s1517_s18, [#allocation33], %s18060_s23, %s18060_s23, %s18059_s0  }
 0x105   : > { %s16162_s10 = smov [#allocation35]   ;;  %s16163_s1 = smov [#allocation38]  }
 0x106   : > { %s1541_s16 = sshll.u32 %s16162_s10, 4  ;;  %s1563_s15 = sshll.u32 %s16163_s1, 4  ;;  %s1542_s16 = int_to_ptr.vmem [resolvable:$true] %s1541_s16  ;;  %s1564_s15 = int_to_ptr.vmem [resolvable:$true] %s1563_s15 }
 0x107   : > { %s15058_s11 = scalar_lea.vmem %s1542_s16, 16  ;;  %s15064_s13 = scalar_lea.vmem %s1542_s16, 32 }
 0x108   : > { %p15059_p12 = scmp.ne.s32.totalorder %s1542_s16, %s15058_s11  ;;  %p15065_p1 = scmp.lt.s32.totalorder %s1542_s16, %s1542_s16 }
 0x109   : > { %p15066_p2 = scmp.lt.s32.totalorder %s15064_s13, %s15058_s11 }
 0x10a   : > { %p15060_p13 = pnand %p15059_p12, %p14420_p10 }
 0x10b   : > { %p15067_p4 = por %p15066_p2, %p15065_p1 }
 0x10c   : > { %p15061_p0 = pneg %p15060_p13 }
 0x10e   : > { %p15068_p3 = pnand %p15067_p4, %p15061_p0 }
 0x110   : > { %15071 = shalt.err (!%p15068_p3)
}
 0x111   : > { %14269 = dma.hbm_to_vmem [thread:$0]  (%p14420_p10), %s16329_s30, 16, %s1542_s16, [#allocation36]  }
 0x112   : > { %s15082_s18 = scalar_lea.vmem %s1564_s15, 16  ;;  %s15088_s1 = scalar_lea.vmem %s1564_s15, 32 }
 0x113   : > { %p15083_p7 = scmp.ne.s32.totalorder %s1564_s15, %s15082_s18  ;;  %p15089_p5 = scmp.lt.s32.totalorder %s1564_s15, %s1564_s15 }
 0x114   : > { %p15090_p11 = scmp.lt.s32.totalorder %s15088_s1, %s15082_s18 }
 0x115   : > { %p15084_p8 = pnand %p15083_p7, %p14420_p10 }
 0x116   : > { %p15091_p12 = por %p15090_p11, %p15089_p5 }
 0x117   : > { %p15085_p6 = pneg %p15084_p8 }
 0x119   : > { %p15092_p13 = pnand %p15091_p12, %p15085_p6 }
 0x11b   : > { %15095 = shalt.err (!%p15092_p13)
}
 0x11c   : > { %14273 = dma.hbm_to_vmem [thread:$0]  (%p14420_p10), %s16339_s19, 16, %s1564_s15, [#allocation39]  }
 0x11d   : > { %s16164_s11 = smov [#allocation41]   ;;  %s16165_s16 = smov [#allocation44]  }
 0x11e   : > { %s1586_s10 = sshll.u32 %s16164_s11, 4  ;;  %s1611_s13 = sshll.u32 %s16165_s16, 4  ;;  %s1587_s10 = int_to_ptr.vmem [resolvable:$true] %s1586_s10  ;;  %s1612_s13 = int_to_ptr.vmem [resolvable:$true] %s1611_s13 }
 0x11f   : > { %s15106_s3 = scalar_lea.vmem %s1587_s10, 6144  ;;  %p15113_p4 = scmp.lt.s32.totalorder %s1587_s10, %s1587_s10 }
 0x120   : > { %p15107_p0 = scmp.ne.s32.totalorder %s1587_s10, %s15106_s3  ;;  %p15114_p3 = scmp.lt.s32.totalorder %s15106_s3, %s15106_s3 }
 0x122   : > { %p15108_p1 = pnand %p15107_p0, %p14420_p10  ;;  %p15115_p7 = por %p15114_p3, %p15113_p4 }
 0x124   : > { %p15109_p2 = pneg %p15108_p1 }
 0x126   : > { %p15116_p8 = pnand %p15115_p7, %p15109_p2 }
 0x128   : > { %15119 = shalt.err (!%p15116_p8)
}
 0x129   : > { %14277 = dma.hbm_to_vmem [thread:$0]  (%p14420_p10), %s16349_s8, 6144, %s1587_s10, [#allocation42], %s18060_s23, %s18060_s23, %s18059_s0  }
 0x12a   : > { %s15130_s15 = scalar_lea.vmem %s1612_s13, 16  ;;  %s15136_s18 = scalar_lea.vmem %s1612_s13, 32 }
 0x12b   : > { %p15131_p6 = scmp.ne.s32.totalorder %s1612_s13, %s15130_s15  ;;  %p15137_p12 = scmp.lt.s32.totalorder %s1612_s13, %s1612_s13 }
 0x12c   : > { %p15138_p13 = scmp.lt.s32.totalorder %s15136_s18, %s15130_s15 }
 0x12d   : > { %p15132_p5 = pnand %p15131_p6, %p14420_p10 }
 0x12e   : > { %p15139_p0 = por %p15138_p13, %p15137_p12 }
 0x12f   : > { %p15133_p11 = pneg %p15132_p5 }
 0x131   : > { %p15140_p1 = pnand %p15139_p0, %p15133_p11 }
 0x133   : > { %15143 = shalt.err (!%p15140_p1)
}
 0x134   : > { %14281 = dma.hbm_to_vmem [thread:$0]  (%p14420_p10), %s16359_s29, 16, %s1612_s13, [#allocation45]  }
 0x135   : > { %s16166_s3 = smov [#allocation47]   ;;  %s16167_s11 = smov [#allocation50]  }
 0x136   : > { %s1633_s1 = sshll.u32 %s16166_s3, 4  ;;  %s1657_s10 = sshll.u32 %s16167_s11, 4  ;;  %s1634_s1 = int_to_ptr.vmem [resolvable:$true] %s1633_s1  ;;  %s1658_s10 = int_to_ptr.vmem [resolvable:$true] %s1657_s10 }
 0x137   : > { %s15154_s16 = scalar_lea.vmem %s1634_s1, 16  ;;  %s15160_s4 = scalar_lea.vmem %s1634_s1, 32 }
 0x138   : > { %p15155_p2 = scmp.ne.s32.totalorder %s1634_s1, %s15154_s16  ;;  %p15161_p7 = scmp.lt.s32.totalorder %s1634_s1, %s1634_s1 }
 0x139   : > { %p15162_p8 = scmp.lt.s32.totalorder %s15160_s4, %s15154_s16 }
 0x13a   : > { %p15156_p4 = pnand %p15155_p2, %p14420_p10 }
 0x13b   : > { %p15163_p6 = por %p15162_p8, %p15161_p7 }
 0x13c   : > { %p15157_p3 = pneg %p15156_p4 }
 0x13e   : > { %p15164_p5 = pnand %p15163_p6, %p15157_p3 }
 0x140   : > { %15167 = shalt.err (!%p15164_p5)
}
 0x141   : > { %s18061_s15 = sld [smem:[#allocation121_spill]]  ;;  %s15178_s13 = scalar_lea.vmem %s1658_s10, 16 }
 0x142   : > { %p15179_p11 = scmp.ne.s32.totalorder %s1658_s10, %s15178_s13  ;;  %s15184_s18 = scalar_lea.vmem %s1658_s10, 32 }
 0x143   : > { %p15185_p0 = scmp.lt.s32.totalorder %s1658_s10, %s1658_s10  ;;  %p15186_p1 = scmp.lt.s32.totalorder %s15184_s18, %s15178_s13 }
 0x144   : > { %p15180_p12 = pnand %p15179_p11, %p14420_p10 }
 0x145   : > { %p15187_p2 = por %p15186_p1, %p15185_p0 }
 0x146   : > { %p15181_p13 = pneg %p15180_p12 }
 0x147   : > { %14285 = dma.hbm_to_vmem [thread:$0]  (%p14420_p10), %s18061_s15, 16, %s1634_s1, [#allocation48]  }
 0x148   : > { %p15188_p4 = pnand %p15187_p2, %p15181_p13 }
 0x14a   : > { %15191 = shalt.err (!%p15188_p4)
}
 0x14b   : > { %s18062_s4 = sld [smem:[#allocation123_spill]]  ;;  %s16168_s3 = smov [#allocation53]  }
 0x14c   : > { %s1680_s11 = sshll.u32 %s16168_s3, 4  ;;  %s1681_s11 = int_to_ptr.vmem [resolvable:$true] %s1680_s11 }
 0x14d   : > { %s15202_s1 = scalar_lea.vmem %s1681_s11, 256  ;;  %p15209_p6 = scmp.lt.s32.totalorder %s1681_s11, %s1681_s11 }
 0x14e   : > { %p15203_p3 = scmp.ne.s32.totalorder %s1681_s11, %s15202_s1  ;;  %p15210_p5 = scmp.lt.s32.totalorder %s15202_s1, %s15202_s1 }
 0x150   : > { %p15204_p7 = pnand %p15203_p3, %p14420_p10  ;;  %p15211_p11 = por %p15210_p5, %p15209_p6 }
 0x151   : > { %14289 = dma.hbm_to_vmem [thread:$0]  (%p14420_p10), %s18062_s4, 16, %s1658_s10, [#allocation51]  }
 0x152   : > { %p15205_p8 = pneg %p15204_p7 }
 0x154   : > { %p15212_p12 = pnand %p15211_p11, %p15205_p8 }
 0x156   : > { %15215 = shalt.err (!%p15212_p12)
}
 0x157   : > { %s18006_s16 = smov 64   ;;  %s18063_s15 = sld [smem:[#allocation125_spill]] }
 0x158   : > { %s18007_s13 = smov 4   ;;  %s16171_s10 = smov [#allocation56]  }
 0x159   : > { %s1704_s18 = sshll.u32 %s16171_s10, 4  ;;  %s16172_s4 = smov [#allocation59]   ;;  %s1705_s18 = int_to_ptr.vmem [resolvable:$true] %s1704_s18 }
 0x15a   : > { %s1730_s3 = sshll.u32 %s16172_s4, 4  ;;  %s15226_s1 = scalar_lea.vmem %s1705_s18, 256  ;;  %s1731_s3 = int_to_ptr.vmem [resolvable:$true] %s1730_s3 }
 0x15b   : > { %p15227_p13 = scmp.ne.s32.totalorder %s1705_s18, %s15226_s1  ;;  %p15233_p2 = scmp.lt.s32.totalorder %s1705_s18, %s1705_s18 }
 0x15c   : > { %p15234_p4 = scmp.lt.s32.totalorder %s15226_s1, %s15226_s1 }
 0x15d   : > { %14293 = dma.hbm_to_vmem [thread:$0]  (%p14420_p10), %s18063_s15, 256, %s1681_s11, [#allocation54], %s18006_s16, %s18006_s16, %s18007_s13  }
 0x15e   : > { %p15228_p0 = pnand %p15227_p13, %p14420_p10  ;;  %p15235_p3 = por %p15234_p4, %p15233_p2 }
 0x160   : > { %p15229_p1 = pneg %p15228_p0 }
 0x162   : > { %p15236_p7 = pnand %p15235_p3, %p15229_p1 }
 0x164   : > { %15239 = shalt.err (!%p15236_p7)
}
 0x165   : > { %s18064_s11 = sld [smem:[#allocation127_spill]]  ;;  %s15250_s15 = scalar_lea.vmem %s1731_s3, 6144 }
 0x166   : > { %p15251_p8 = scmp.ne.s32.totalorder %s1731_s3, %s15250_s15  ;;  %p15257_p11 = scmp.lt.s32.totalorder %s1731_s3, %s1731_s3 }
 0x167   : > { %p15258_p12 = scmp.lt.s32.totalorder %s15250_s15, %s15250_s15 }
 0x168   : > { %p15252_p6 = pnand %p15251_p8, %p14420_p10 }
 0x169   : > { %p15259_p13 = por %p15258_p12, %p15257_p11 }
 0x16a   : > { %p15253_p5 = pneg %p15252_p6 }
 0x16b   : > { %14297 = dma.hbm_to_vmem [thread:$0]  (%p14420_p10), %s18064_s11, 256, %s1705_s18, [#allocation57], %s18060_s23, %s18060_s23, %s18059_s0  }
 0x16c   : > { %p15260_p0 = pnand %p15259_p13, %p15253_p5 }
 0x16e   : > { %15263 = shalt.err (!%p15260_p0)
}
 0x16f   : > { %s18065_s10 = sld [smem:[#allocation129_spill]]  ;;  %s16173_s4 = smov [#allocation62]  }
 0x170   : > { %s1756_s18 = sshll.u32 %s16173_s4, 4  ;;  %s16174_s1 = smov [#allocation65]   ;;  %s1757_s18 = int_to_ptr.vmem [resolvable:$true] %s1756_s18 }
 0x171   : > { %s1781_s11 = sshll.u32 %s16174_s1, 4  ;;  %s15274_s16 = scalar_lea.vmem %s1757_s18, 2048  ;;  %s1782_s11 = int_to_ptr.vmem [resolvable:$true] %s1781_s11 }
 0x172   : > { %p15275_p1 = scmp.ne.s32.totalorder %s1757_s18, %s15274_s16  ;;  %p15281_p3 = scmp.lt.s32.totalorder %s1757_s18, %s1757_s18 }
 0x173   : > { %p15282_p7 = scmp.lt.s32.totalorder %s15274_s16, %s15274_s16 }
 0x174   : > { %p15276_p2 = pnand %p15275_p1, %p14420_p10 }
 0x175   : > { %14301 = dma.hbm_to_vmem [thread:$0]  (%p14420_p10), %s18065_s10, 6144, %s1731_s3, [#allocation60], %s18060_s23, %s18060_s23, %s18059_s0  }
 0x176   : > { %p15277_p4 = pneg %p15276_p2  ;;  %p15283_p8 = por %p15282_p7, %p15281_p3 }
 0x178   : > { %p15284_p6 = pnand %p15283_p8, %p15277_p4 }
 0x17a   : > { %15287 = shalt.err (!%p15284_p6)
}
 0x17b   : > { %s18066_s3 = sld [smem:[#allocation131_spill]]  ;;  %s15298_s15 = scalar_lea.vmem %s1782_s11, 16 }
 0x17c   : > { %p15299_p5 = scmp.ne.s32.totalorder %s1782_s11, %s15298_s15  ;;  %s15304_s10 = scalar_lea.vmem %s1782_s11, 32 }
 0x17d   : > { %p15305_p13 = scmp.lt.s32.totalorder %s1782_s11, %s1782_s11  ;;  %p15306_p0 = scmp.lt.s32.totalorder %s15304_s10, %s15298_s15 }
 0x17e   : > { %p15300_p11 = pnand %p15299_p5, %p14420_p10 }
 0x17f   : > { %p15307_p1 = por %p15306_p0, %p15305_p13 }
 0x180   : > { %p15301_p12 = pneg %p15300_p11 }
 0x181   : > { %14305 = dma.hbm_to_vmem [thread:$0]  (%p14420_p10), %s18066_s3, 2048, %s1757_s18, [#allocation63], %s18060_s23, %s18060_s23, %s18059_s0  }
 0x182   : > { %p15308_p2 = pnand %p15307_p1, %p15301_p12 }
 0x184   : > { %15311 = shalt.err (!%p15308_p2)
}
 0x185   : > { %s18067_s16 = sld [smem:[#allocation133_spill]]  ;;  %s16175_s4 = smov [#allocation68]  }
 0x186   : > { %s1803_s1 = sshll.u32 %s16175_s4, 4  ;;  %s16176_s13 = smov [#allocation71]   ;;  %s1804_s1 = int_to_ptr.vmem [resolvable:$true] %s1803_s1 }
 0x187   : > { %s1830_s18 = sshll.u32 %s16176_s13, 4  ;;  %s15322_s3 = scalar_lea.vmem %s1804_s1, 16  ;;  %s1831_s18 = int_to_ptr.vmem [resolvable:$true] %s1830_s18 }
 0x188   : > { %p15323_p4 = scmp.ne.s32.totalorder %s1804_s1, %s15322_s3  ;;  %s15328_s15 = scalar_lea.vmem %s1804_s1, 32 }
 0x189   : > { %p15329_p8 = scmp.lt.s32.totalorder %s1804_s1, %s1804_s1  ;;  %p15330_p6 = scmp.lt.s32.totalorder %s15328_s15, %s15322_s3 }
 0x18a   : > { %p15324_p3 = pnand %p15323_p4, %p14420_p10 }
 0x18b   : > { %14309 = dma.hbm_to_vmem [thread:$0]  (%p14420_p10), %s18067_s16, 16, %s1782_s11, [#allocation66]  }
 0x18c   : > { %p15325_p7 = pneg %p15324_p3  ;;  %p15331_p5 = por %p15330_p6, %p15329_p8 }
 0x18e   : > { %p15332_p11 = pnand %p15331_p5, %p15325_p7 }
 0x190   : > { %15335 = shalt.err (!%p15332_p11)
}
 0x191   : > { %s18068_s11 = sld [smem:[#allocation135_spill]]  ;;  %s15346_s10 = scalar_lea.vmem %s1831_s18, 16 }
 0x192   : > { %p15347_p12 = scmp.ne.s32.totalorder %s1831_s18, %s15346_s10  ;;  %s15352_s13 = scalar_lea.vmem %s1831_s18, 32 }
 0x193   : > { %p15353_p1 = scmp.lt.s32.totalorder %s1831_s18, %s1831_s18  ;;  %p15354_p2 = scmp.lt.s32.totalorder %s15352_s13, %s15346_s10 }
 0x194   : > { %p15348_p13 = pnand %p15347_p12, %p14420_p10 }
 0x195   : > { %p15355_p4 = por %p15354_p2, %p15353_p1 }
 0x196   : > { %p15349_p0 = pneg %p15348_p13 }
 0x197   : > { %14313 = dma.hbm_to_vmem [thread:$0]  (%p14420_p10), %s18068_s11, 16, %s1804_s1, [#allocation69]  }
 0x198   : > { %p15356_p3 = pnand %p15355_p4, %p15349_p0 }
 0x19a   : > { %15359 = shalt.err (!%p15356_p3)
}
 0x19b   : > { %s18069_s16 = sld [smem:[#allocation138_spill]]  ;;  %s16177_s4 = smov [#allocation2]  }
 0x19c   : > { %s1282_s3 = sshll.u32 %s16177_s4, 4  ;;  %s16178_s1 = smov [#allocation7]   ;;  %s1283_s3 = int_to_ptr.vmem [resolvable:$true] %s1282_s3 }
 0x19d   : > { %s1311_s15 = sshll.u32 %s16178_s1, 4  ;;  %s15370_s11 = scalar_lea.vmem %s1283_s3, 768  ;;  %s1312_s15 = int_to_ptr.vmem [resolvable:$true] %s1311_s15 }
 0x19e   : > { %p15371_p7 = scmp.ne.s32.totalorder %s1283_s3, %s15370_s11  ;;  %p15377_p5 = scmp.lt.s32.totalorder %s1283_s3, %s1283_s3 }
 0x19f   : > { %p15378_p11 = scmp.lt.s32.totalorder %s15370_s11, %s15370_s11 }
 0x1a0   : > { %p15372_p8 = pnand %p15371_p7, %p14420_p10 }
 0x1a1   : > { %14317 = dma.hbm_to_vmem [thread:$0]  (%p14420_p10), %s18069_s16, 16, %s1831_s18, [#allocation72]  }
 0x1a2   : > { %p15373_p6 = pneg %p15372_p8  ;;  %p15379_p12 = por %p15378_p11, %p15377_p5 }
 0x1a4   : > { %p15380_p13 = pnand %p15379_p12, %p15373_p6 }
 0x1a6   : > { %15383 = shalt.err (!%p15380_p13)
}
 0x1a7   : > { %s18070_s18 = sld [smem:[#allocation101_spill]]  ;;  %s15394_s10 = scalar_lea.vmem %s1312_s15, 2048 }
 0x1a8   : > { %p15395_p0 = scmp.ne.s32.totalorder %s1312_s15, %s15394_s10  ;;  %p15401_p4 = scmp.lt.s32.totalorder %s1312_s15, %s1312_s15 }
 0x1a9   : > { %p15402_p3 = scmp.lt.s32.totalorder %s15394_s10, %s15394_s10 }
 0x1aa   : > { %p15396_p1 = pnand %p15395_p0, %p14420_p10 }
 0x1ab   : > { %p15403_p7 = por %p15402_p3, %p15401_p4 }
 0x1ac   : > { %p15397_p2 = pneg %p15396_p1 }
 0x1ad   : > { %14227 = dma.hbm_to_vmem [thread:$0]  (%p14420_p10), %s18070_s18, 768, %s1283_s3, [#allocation3], %s18060_s23, %s18060_s23, %s18059_s0  }
 0x1ae   : > { %p15404_p8 = pnand %p15403_p7, %p15397_p2 }
 0x1b0   : > { %15407 = shalt.err (!%p15404_p8)
}
 0x1b1   : > { %s18071_s13 = sld [smem:[#allocation104_spill]]  ;;  %s16179_s16 = smov [#allocation10]  }
 0x1b2   : > { %s1338_s4 = sshll.u32 %s16179_s16, 4  ;;  %s16180_s3 = smov [#allocation13]   ;;  %s1339_s4 = int_to_ptr.vmem [resolvable:$true] %s1338_s4 }
 0x1b3   : > { %s1362_s1 = sshll.u32 %s16180_s3, 4  ;;  %s15418_s11 = scalar_lea.vmem %s1339_s4, 128  ;;  %s1363_s1 = int_to_ptr.vmem [resolvable:$true] %s1362_s1 }
 0x1b4   : > { %p15419_p6 = scmp.ne.s32.totalorder %s1339_s4, %s15418_s11  ;;  %p15425_p12 = scmp.lt.s32.totalorder %s1339_s4, %s1339_s4 }
 0x1b5   : > { %p15426_p13 = scmp.lt.s32.totalorder %s15418_s11, %s15418_s11 }
 0x1b6   : > { %p15420_p5 = pnand %p15419_p6, %p14420_p10 }
 0x1b7   : > { %14231 = dma.hbm_to_vmem [thread:$0]  (%p14420_p10), %s18071_s13, 2048, %s1312_s15, [#allocation6], %s18060_s23, %s18060_s23, %s18059_s0  }
 0x1b8   : > { %p15421_p11 = pneg %p15420_p5  ;;  %p15427_p0 = por %p15426_p13, %p15425_p12 }
 0x1ba   : > { %p15428_p1 = pnand %p15427_p0, %p15421_p11 }
 0x1bc   : > { %15431 = shalt.err (!%p15428_p1)
}
 0x1bd   : > { %s18072_s18 = sld [smem:[#allocation105_spill]]  ;;  %s15442_s15 = scalar_lea.vmem %s1363_s1, 16 }
 0x1be   : > { %p15443_p2 = scmp.ne.s32.totalorder %s1363_s1, %s15442_s15  ;;  %s15448_s10 = scalar_lea.vmem %s1363_s1, 32 }
 0x1bf   : > { %p15449_p7 = scmp.lt.s32.totalorder %s1363_s1, %s1363_s1  ;;  %p15450_p8 = scmp.lt.s32.totalorder %s15448_s10, %s15442_s15 }
 0x1c0   : > { %p15444_p4 = pnand %p15443_p2, %p14420_p10 }
 0x1c1   : > { %p15451_p6 = por %p15450_p8, %p15449_p7 }
 0x1c2   : > { %p15445_p3 = pneg %p15444_p4 }
 0x1c3   : > { %14235 = dma.hbm_to_vmem [thread:$0]  (%p14420_p10), %s18072_s18, 128, %s1339_s4, [#allocation9]  }
 0x1c4   : > { %p15452_p5 = pnand %p15451_p6, %p15445_p3 }
 0x1c6   : > { %15455 = shalt.err (!%p15452_p5)
}
 0x1c7   : > { %s18073_s13 = sld [smem:[#allocation107_spill]]  ;;  %s16181_s16 = smov [#allocation16]  }
 0x1c8   : > { %s1385_s3 = sshll.u32 %s16181_s16, 4  ;;  %s16182_s4 = smov [#allocation19]   ;;  %s1386_s3 = int_to_ptr.vmem [resolvable:$true] %s1385_s3 }
 0x1c9   : > { %s1410_s11 = sshll.u32 %s16182_s4, 4  ;;  %s15466_s18 = scalar_lea.vmem %s1386_s3, 2304  ;;  %s1411_s11 = int_to_ptr.vmem [resolvable:$true] %s1410_s11 }
 0x1ca   : > { %p15467_p11 = scmp.ne.s32.totalorder %s1386_s3, %s15466_s18  ;;  %p15473_p0 = scmp.lt.s32.totalorder %s1386_s3, %s1386_s3 }
 0x1cb   : > { %p15474_p1 = scmp.lt.s32.totalorder %s15466_s18, %s15466_s18 }
 0x1cc   : > { %p15468_p12 = pnand %p15467_p11, %p14420_p10 }
 0x1cd   : > { %14239 = dma.hbm_to_vmem [thread:$0]  (%p14420_p10), %s18073_s13, 16, %s1363_s1, [#allocation12]  }
 0x1ce   : > { %p15469_p13 = pneg %p15468_p12  ;;  %p15475_p2 = por %p15474_p1, %p15473_p0 }
 0x1d0   : > { %p15476_p4 = pnand %p15475_p2, %p15469_p13 }
 0x1d2   : > { %15479 = shalt.err (!%p15476_p4)
}
 0x1d3   : > { %s18074_s1 = sld [smem:[#allocation108_spill]]  ;;  %s15490_s15 = scalar_lea.vmem %s1411_s11, 16 }
 0x1d4   : > { %p15491_p3 = scmp.ne.s32.totalorder %s1411_s11, %s15490_s15  ;;  %s15496_s10 = scalar_lea.vmem %s1411_s11, 32 }
 0x1d5   : > { %p15497_p6 = scmp.lt.s32.totalorder %s1411_s11, %s1411_s11  ;;  %p15498_p5 = scmp.lt.s32.totalorder %s15496_s10, %s15490_s15 }
 0x1d6   : > { %p15492_p7 = pnand %p15491_p3, %p14420_p10 }
 0x1d7   : > { %p15499_p11 = por %p15498_p5, %p15497_p6 }
 0x1d8   : > { %p15493_p8 = pneg %p15492_p7 }
 0x1d9   : > { %14243 = dma.hbm_to_vmem [thread:$0]  (%p14420_p10), %s18074_s1, 2304, %s1386_s3, [#allocation15], %s18060_s23, %s18060_s23, %s18059_s0  }
 0x1da   : > { %p15500_p12 = pnand %p15499_p11, %p15493_p8 }
 0x1dc   : > { %15503 = shalt.err (!%p15500_p12)
}
 0x1dd   : > { %s18075_s13 = sld [smem:[#allocation109_spill]]  ;;  %s16183_s16 = smov [#allocation22]  }
 0x1de   : > { %s1434_s4 = sshll.u32 %s16183_s16, 4  ;;  %s16184_s3 = smov [#allocation25]   ;;  %s1435_s4 = int_to_ptr.vmem [resolvable:$true] %s1434_s4 }
 0x1df   : > { %s1455_s18 = sshll.u32 %s16184_s3, 4  ;;  %s15514_s1 = scalar_lea.vmem %s1435_s4, 16  ;;  %s1456_s18 = int_to_ptr.vmem [resolvable:$true] %s1455_s18 }
 0x1e0   : > { %p15515_p13 = scmp.ne.s32.totalorder %s1435_s4, %s15514_s1  ;;  %s15520_s5 = scalar_lea.vmem %s1435_s4, 32 }
 0x1e1   : > { %p15521_p2 = scmp.lt.s32.totalorder %s1435_s4, %s1435_s4  ;;  %p15522_p4 = scmp.lt.s32.totalorder %s15520_s5, %s15514_s1 }
 0x1e2   : > { %p15516_p0 = pnand %p15515_p13, %p14420_p10 }
 0x1e3   : > { %14247 = dma.hbm_to_vmem [thread:$0]  (%p14420_p10), %s18075_s13, 16, %s1411_s11, [#allocation18]  }
 0x1e4   : > { %p15517_p1 = pneg %p15516_p0  ;;  %p15523_p3 = por %p15522_p4, %p15521_p2 }
 0x1e6   : > { %p15524_p7 = pnand %p15523_p3, %p15517_p1 }
 0x1e8   : > { %15527 = shalt.err (!%p15524_p7)
}
 0x1e9   : > { %s18076_s15 = sld [smem:[#allocation110_spill]]  ;;  %s15538_s11 = scalar_lea.vmem %s1456_s18, 128 }
 0x1ea   : > { %p15539_p8 = scmp.ne.s32.totalorder %s1456_s18, %s15538_s11  ;;  %p15545_p11 = scmp.lt.s32.totalorder %s1456_s18, %s1456_s18 }
 0x1eb   : > { %p15546_p12 = scmp.lt.s32.totalorder %s15538_s11, %s15538_s11 }
 0x1ec   : > { %p15540_p6 = pnand %p15539_p8, %p14420_p10 }
 0x1ed   : > { %p15547_p13 = por %p15546_p12, %p15545_p11 }
 0x1ee   : > { %p15541_p5 = pneg %p15540_p6 }
 0x1ef   : > { %14251 = dma.hbm_to_vmem [thread:$0]  (%p14420_p10), %s18076_s15, 16, %s1435_s4, [#allocation21]  }
 0x1f0   : > { %p15548_p0 = pnand %p15547_p13, %p15541_p5 }
 0x1f2   : > { %15551 = shalt.err (!%p15548_p0)
}
 0x1f3   : > { %s18077_s5 = smov 2   ;;  %s18078_s10 = smov 32  }
 0x1f4   : > { %s18079_s13 = sld [smem:[#allocation111_spill]]  ;;  %s16185_s16 = smov [#allocation28]  }
 0x1f5   : > { %s1480_s4 = sshll.u32 %s16185_s16, 4  ;;  %s16186_s3 = smov [#allocation31]   ;;  %s1481_s4 = int_to_ptr.vmem [resolvable:$true] %s1480_s4 }
 0x1f6   : > { %s1503_s1 = sshll.u32 %s16186_s3, 4  ;;  %s15562_s15 = scalar_lea.vmem %s1481_s4, 128  ;;  %s1504_s1 = int_to_ptr.vmem [resolvable:$true] %s1503_s1 }
 0x1f7   : > { %p15563_p1 = scmp.ne.s32.totalorder %s1481_s4, %s15562_s15  ;;  %p15569_p3 = scmp.lt.s32.totalorder %s1481_s4, %s1481_s4 }
 0x1f8   : > { %p15570_p7 = scmp.lt.s32.totalorder %s15562_s15, %s15562_s15 }
 0x1f9   : > { %p15564_p2 = pnand %p15563_p1, %p14420_p10 }
 0x1fa   : > { %14255 = dma.hbm_to_vmem [thread:$0]  (%p14420_p10), %s18079_s13, 128, %s1456_s18, [#allocation24], %s18078_s10, %s18078_s10, %s18077_s5  }
 0x1fb   : > { %p15565_p4 = pneg %p15564_p2  ;;  %p15571_p8 = por %p15570_p7, %p15569_p3 }
 0x1fd   : > { %p15572_p6 = pnand %p15571_p8, %p15565_p4 }
 0x1ff   : > { %15575 = shalt.err (!%p15572_p6)
}
 0x200   : > { %s18080_s11 = sld [smem:[#allocation113_spill]]  ;;  %s15586_s18 = scalar_lea.vmem %s1504_s1, 6144 }
 0x201   : > { %p15587_p5 = scmp.ne.s32.totalorder %s1504_s1, %s15586_s18  ;;  %p15593_p13 = scmp.lt.s32.totalorder %s1504_s1, %s1504_s1 }
 0x202   : > { %p15594_p0 = scmp.lt.s32.totalorder %s15586_s18, %s15586_s18 }
 0x203   : > { %p15588_p11 = pnand %p15587_p5, %p14420_p10 }
 0x204   : > { %p15595_p1 = por %p15594_p0, %p15593_p13 }
 0x205   : > { %p15589_p12 = pneg %p15588_p11 }
 0x206   : > { %14259 = dma.hbm_to_vmem [thread:$0]  (%p14420_p10), %s18080_s11, 128, %s1481_s4, [#allocation27]  }
 0x207   : > { %p15596_p2 = pnand %p15595_p1, %p15589_p12 }
 0x209   : > { %15599 = shalt.err (!%p15596_p2)
}
 0x20a   : > { %s18081_s5 = sld [smem:[#allocation115_spill]]  ;;  %s16187_s10 = smov [#allocation34]  }
 0x20b   : > { %s1530_s13 = sshll.u32 %s16187_s10, 4  ;;  %s16188_s16 = smov [#allocation37]   ;;  %s1531_s13 = int_to_ptr.vmem [resolvable:$true] %s1530_s13 }
 0x20c   : > { %s1552_s4 = sshll.u32 %s16188_s16, 4  ;;  %s15610_s3 = scalar_lea.vmem %s1531_s13, 16  ;;  %s1553_s4 = int_to_ptr.vmem [resolvable:$true] %s1552_s4 }
 0x20d   : > { %p15611_p4 = scmp.ne.s32.totalorder %s1531_s13, %s15610_s3  ;;  %s15616_s15 = scalar_lea.vmem %s1531_s13, 32 }
 0x20e   : > { %p15617_p8 = scmp.lt.s32.totalorder %s1531_s13, %s1531_s13  ;;  %p15618_p6 = scmp.lt.s32.totalorder %s15616_s15, %s15610_s3 }
 0x20f   : > { %p15612_p3 = pnand %p15611_p4, %p14420_p10 }
 0x210   : > { %14263 = dma.hbm_to_vmem [thread:$0]  (%p14420_p10), %s18081_s5, 6144, %s1504_s1, [#allocation30], %s18060_s23, %s18060_s23, %s18059_s0  }
 0x211   : > { %p15613_p7 = pneg %p15612_p3  ;;  %p15619_p5 = por %p15618_p6, %p15617_p8 }
 0x213   : > { %p15620_p11 = pnand %p15619_p5, %p15613_p7 }
 0x215   : > { %15623 = shalt.err (!%p15620_p11)
}
 0x216   : > { %s18082_s11 = sld [smem:[#allocation116_spill]]  ;;  %s15634_s1 = scalar_lea.vmem %s1553_s4, 16 }
 0x217   : > { %p15635_p12 = scmp.ne.s32.totalorder %s1553_s4, %s15634_s1  ;;  %s15640_s18 = scalar_lea.vmem %s1553_s4, 32 }
 0x218   : > { %p15641_p1 = scmp.lt.s32.totalorder %s1553_s4, %s1553_s4  ;;  %p15642_p2 = scmp.lt.s32.totalorder %s15640_s18, %s15634_s1 }
 0x219   : > { %p15636_p13 = pnand %p15635_p12, %p14420_p10 }
 0x21a   : > { %p15643_p4 = por %p15642_p2, %p15641_p1 }
 0x21b   : > { %p15637_p0 = pneg %p15636_p13 }
 0x21c   : > { %14267 = dma.hbm_to_vmem [thread:$0]  (%p14420_p10), %s18082_s11, 16, %s1531_s13, [#allocation33]  }
 0x21d   : > { %p15644_p3 = pnand %p15643_p4, %p15637_p0 }
 0x21f   : > { %15647 = shalt.err (!%p15644_p3)
}
 0x220   : > { %s18083_s5 = sld [smem:[#allocation117_spill]]  ;;  %s16189_s10 = smov [#allocation40]  }
 0x221   : > { %s1573_s16 = sshll.u32 %s16189_s10, 4  ;;  %s16190_s13 = smov [#allocation43]   ;;  %s1574_s16 = int_to_ptr.vmem [resolvable:$true] %s1573_s16 }
 0x222   : > { %s1600_s3 = sshll.u32 %s16190_s13, 4  ;;  %s15658_s15 = scalar_lea.vmem %s1574_s16, 6144  ;;  %s1601_s3 = int_to_ptr.vmem [resolvable:$true] %s1600_s3 }
 0x223   : > { %p15659_p7 = scmp.ne.s32.totalorder %s1574_s16, %s15658_s15  ;;  %p15665_p5 = scmp.lt.s32.totalorder %s1574_s16, %s1574_s16 }
 0x224   : > { %p15666_p11 = scmp.lt.s32.totalorder %s15658_s15, %s15658_s15 }
 0x225   : > { %p15660_p8 = pnand %p15659_p7, %p14420_p10 }
 0x226   : > { %14271 = dma.hbm_to_vmem [thread:$0]  (%p14420_p10), %s18083_s5, 16, %s1553_s4, [#allocation36]  }
 0x227   : > { %p15661_p6 = pneg %p15660_p8  ;;  %p15667_p12 = por %p15666_p11, %p15665_p5 }
 0x229   : > { %p15668_p13 = pnand %p15667_p12, %p15661_p6 }
 0x22b   : > { %15671 = shalt.err (!%p15668_p13)
}
 0x22c   : > { %s18084_s4 = sld [smem:[#allocation118_spill]]  ;;  %s15682_s11 = scalar_lea.vmem %s1601_s3, 16 }
 0x22d   : > { %p15683_p0 = scmp.ne.s32.totalorder %s1601_s3, %s15682_s11  ;;  %s15688_s1 = scalar_lea.vmem %s1601_s3, 32 }
 0x22e   : > { %p15689_p4 = scmp.lt.s32.totalorder %s1601_s3, %s1601_s3  ;;  %p15690_p3 = scmp.lt.s32.totalorder %s15688_s1, %s15682_s11 }
 0x22f   : > { %p15684_p1 = pnand %p15683_p0, %p14420_p10 }
 0x230   : > { %p15691_p7 = por %p15690_p3, %p15689_p4 }
 0x231   : > { %p15685_p2 = pneg %p15684_p1 }
 0x232   : > { %14275 = dma.hbm_to_vmem [thread:$0]  (%p14420_p10), %s18084_s4, 6144, %s1574_s16, [#allocation39], %s18060_s23, %s18060_s23, %s18059_s0  }
 0x233   : > { %p15692_p8 = pnand %p15691_p7, %p15685_p2 }
 0x235   : > { %15695 = shalt.err (!%p15692_p8)
}
 0x236   : > { %s18085_s18 = sld [smem:[#allocation119_spill]]  ;;  %s16191_s5 = smov [#allocation46]  }
 0x237   : > { %s1622_s10 = sshll.u32 %s16191_s5, 4  ;;  %s16192_s16 = smov [#allocation49]   ;;  %s1623_s10 = int_to_ptr.vmem [resolvable:$true] %s1622_s10 }
 0x238   : > { %s1643_s13 = sshll.u32 %s16192_s16, 4  ;;  %s15706_s15 = scalar_lea.vmem %s1623_s10, 16  ;;  %s1644_s13 = int_to_ptr.vmem [resolvable:$true] %s1643_s13 }
 0x239   : > { %p15707_p6 = scmp.ne.s32.totalorder %s1623_s10, %s15706_s15  ;;  %s15712_s4 = scalar_lea.vmem %s1623_s10, 32 }
 0x23a   : > { %p15713_p12 = scmp.lt.s32.totalorder %s1623_s10, %s1623_s10  ;;  %p15714_p13 = scmp.lt.s32.totalorder %s15712_s4, %s15706_s15 }
 0x23b   : > { %p15708_p5 = pnand %p15707_p6, %p14420_p10 }
 0x23c   : > { %14279 = dma.hbm_to_vmem [thread:$0]  (%p14420_p10), %s18085_s18, 16, %s1601_s3, [#allocation42]  }
 0x23d   : > { %p15709_p11 = pneg %p15708_p5  ;;  %p15715_p0 = por %p15714_p13, %p15713_p12 }
 0x23f   : > { %p15716_p1 = pnand %p15715_p0, %p15709_p11 }
 0x241   : > { %15719 = shalt.err (!%p15716_p1)
}
 0x242   : > { %s18086_s11 = sld [smem:[#allocation120_spill]]  ;;  %s15730_s3 = scalar_lea.vmem %s1644_s13, 64 }
 0x243   : > { %p15731_p2 = scmp.ne.s32.totalorder %s1644_s13, %s15730_s3  ;;  %p15737_p7 = scmp.lt.s32.totalorder %s1644_s13, %s1644_s13 }
 0x244   : > { %p15738_p8 = scmp.lt.s32.totalorder %s15730_s3, %s15730_s3 }
 0x245   : > { %p15732_p4 = pnand %p15731_p2, %p14420_p10 }
 0x246   : > { %p15739_p6 = por %p15738_p8, %p15737_p7 }
 0x247   : > { %p15733_p3 = pneg %p15732_p4 }
 0x248   : > { %14283 = dma.hbm_to_vmem [thread:$0]  (%p14420_p10), %s18086_s11, 16, %s1623_s10, [#allocation45]  }
 0x249   : > { %p15740_p5 = pnand %p15739_p6, %p15733_p3 }
 0x24b   : > { %15743 = shalt.err (!%p15740_p5)
}
 0x24c   : > { %s18087_s1 = smov 1   ;;  %s18088_s18 = smov 16  }
 0x24d   : > { %s18089_s5 = sld [smem:[#allocation122_spill]]  ;;  %s16193_s10 = smov [#allocation52]  }
 0x24e   : > { %s1667_s16 = sshll.u32 %s16193_s10, 4  ;;  %s16194_s15 = smov [#allocation55]   ;;  %s1668_s16 = int_to_ptr.vmem [resolvable:$true] %s1667_s16 }
 0x24f   : > { %s1694_s4 = sshll.u32 %s16194_s15, 4  ;;  %s15754_s11 = scalar_lea.vmem %s1668_s16, 256  ;;  %s1695_s4 = int_to_ptr.vmem [resolvable:$true] %s1694_s4 }
 0x250   : > { %p15755_p11 = scmp.ne.s32.totalorder %s1668_s16, %s15754_s11  ;;  %p15761_p0 = scmp.lt.s32.totalorder %s1668_s16, %s1668_s16 }
 0x251   : > { %p15762_p1 = scmp.lt.s32.totalorder %s15754_s11, %s15754_s11 }
 0x252   : > { %p15756_p12 = pnand %p15755_p11, %p14420_p10 }
 0x253   : > { %14287 = dma.hbm_to_vmem [thread:$0]  (%p14420_p10), %s18089_s5, 64, %s1644_s13, [#allocation48], %s18088_s18, %s18088_s18, %s18087_s1  }
 0x254   : > { %p15757_p13 = pneg %p15756_p12  ;;  %p15763_p2 = por %p15762_p1, %p15761_p0 }
 0x256   : > { %p15764_p4 = pnand %p15763_p2, %p15757_p13 }
 0x258   : > { %15767 = shalt.err (!%p15764_p4)
}
 0x259   : > { %s18090_s13 = sld [smem:[#allocation124_spill]]  ;;  %s15778_s3 = scalar_lea.vmem %s1695_s4, 16 }
 0x25a   : > { %p15779_p3 = scmp.ne.s32.totalorder %s1695_s4, %s15778_s3  ;;  %s15784_s1 = scalar_lea.vmem %s1695_s4, 32 }
 0x25b   : > { %p15785_p6 = scmp.lt.s32.totalorder %s1695_s4, %s1695_s4  ;;  %p15786_p5 = scmp.lt.s32.totalorder %s15784_s1, %s15778_s3 }
 0x25c   : > { %p15780_p7 = pnand %p15779_p3, %p14420_p10 }
 0x25d   : > { %p15787_p11 = por %p15786_p5, %p15785_p6 }
 0x25e   : > { %p15781_p8 = pneg %p15780_p7 }
 0x25f   : > { %14291 = dma.hbm_to_vmem [thread:$0]  (%p14420_p10), %s18090_s13, 256, %s1668_s16, [#allocation51], %s18060_s23, %s18060_s23, %s18059_s0  }
 0x260   : > { %p15788_p12 = pnand %p15787_p11, %p15781_p8 }
 0x262   : > { %15791 = shalt.err (!%p15788_p12)
}
 0x263   : > { %s18091_s18 = sld [smem:[#allocation126_spill]]  ;;  %s16195_s5 = smov [#allocation58]  }
 0x264   : > { %s1717_s10 = sshll.u32 %s16195_s5, 4  ;;  %s16196_s16 = smov [#allocation61]   ;;  %s1718_s10 = int_to_ptr.vmem [resolvable:$true] %s1717_s10 }
 0x265   : > { %s1743_s15 = sshll.u32 %s16196_s16, 4  ;;  %s15802_s11 = scalar_lea.vmem %s1718_s10, 256  ;;  %s1744_s15 = int_to_ptr.vmem [resolvable:$true] %s1743_s15 }
 0x266   : > { %p15803_p13 = scmp.ne.s32.totalorder %s1718_s10, %s15802_s11  ;;  %p15809_p2 = scmp.lt.s32.totalorder %s1718_s10, %s1718_s10 }
 0x267   : > { %p15810_p4 = scmp.lt.s32.totalorder %s15802_s11, %s15802_s11 }
 0x268   : > { %p15804_p0 = pnand %p15803_p13, %p14420_p10 }
 0x269   : > { %14295 = dma.hbm_to_vmem [thread:$0]  (%p14420_p10), %s18091_s18, 16, %s1695_s4, [#allocation54]  }
 0x26a   : > { %p15805_p1 = pneg %p15804_p0  ;;  %p15811_p3 = por %p15810_p4, %p15809_p2 }
 0x26c   : > { %p15812_p7 = pnand %p15811_p3, %p15805_p1 }
 0x26e   : > { %15815 = shalt.err (!%p15812_p7)
}
 0x26f   : > { %s18092_s13 = smov 4   ;;  %s18093_s3 = smov 64  }
 0x270   : > { %s18094_s4 = sld [smem:[#allocation128_spill]]  ;;  %s15826_s1 = scalar_lea.vmem %s1744_s15, 6144 }
 0x271   : > { %p15827_p8 = scmp.ne.s32.totalorder %s1744_s15, %s15826_s1  ;;  %p15833_p11 = scmp.lt.s32.totalorder %s1744_s15, %s1744_s15 }
 0x272   : > { %p15834_p12 = scmp.lt.s32.totalorder %s15826_s1, %s15826_s1 }
 0x273   : > { %p15828_p6 = pnand %p15827_p8, %p14420_p10 }
 0x274   : > { %p15835_p13 = por %p15834_p12, %p15833_p11 }
 0x275   : > { %p15829_p5 = pneg %p15828_p6 }
 0x276   : > { %14299 = dma.hbm_to_vmem [thread:$0]  (%p14420_p10), %s18094_s4, 256, %s1718_s10, [#allocation57], %s18093_s3, %s18093_s3, %s18092_s13  }
 0x277   : > { %p15836_p0 = pnand %p15835_p13, %p15829_p5 }
 0x279   : > { %15839 = shalt.err (!%p15836_p0)
}
 0x27a   : > { %s18095_s18 = sld [smem:[#allocation130_spill]]  ;;  %s16197_s5 = smov [#allocation64]  }
 0x27b   : > { %s1770_s10 = sshll.u32 %s16197_s5, 4  ;;  %s16198_s16 = smov [#allocation67]   ;;  %s1771_s10 = int_to_ptr.vmem [resolvable:$true] %s1770_s10 }
 0x27c   : > { %s1792_s11 = sshll.u32 %s16198_s16, 4  ;;  %s15850_s13 = scalar_lea.vmem %s1771_s10, 16  ;;  %s1793_s11 = int_to_ptr.vmem [resolvable:$true] %s1792_s11 }
 0x27d   : > { %p15851_p1 = scmp.ne.s32.totalorder %s1771_s10, %s15850_s13  ;;  %s15856_s3 = scalar_lea.vmem %s1771_s10, 32 }
 0x27e   : > { %p15857_p3 = scmp.lt.s32.totalorder %s1771_s10, %s1771_s10  ;;  %p15858_p7 = scmp.lt.s32.totalorder %s15856_s3, %s15850_s13 }
 0x27f   : > { %p15852_p2 = pnand %p15851_p1, %p14420_p10 }
 0x280   : > { %14303 = dma.hbm_to_vmem [thread:$0]  (%p14420_p10), %s18095_s18, 6144, %s1744_s15, [#allocation60], %s18060_s23, %s18060_s23, %s18059_s0  }
 0x281   : > { %p15853_p4 = pneg %p15852_p2  ;;  %p15859_p8 = por %p15858_p7, %p15857_p3 }
 0x283   : > { %p15860_p6 = pnand %p15859_p8, %p15853_p4 }
 0x285   : > { %15863 = shalt.err (!%p15860_p6)
}
 0x286   : > { %s18096_s4 = sld [smem:[#allocation132_spill]]  ;;  %s15874_s15 = scalar_lea.vmem %s1793_s11, 16 }
 0x287   : > { %p15875_p5 = scmp.ne.s32.totalorder %s1793_s11, %s15874_s15  ;;  %s15880_s1 = scalar_lea.vmem %s1793_s11, 32 }
 0x288   : > { %p15881_p13 = scmp.lt.s32.totalorder %s1793_s11, %s1793_s11  ;;  %p15882_p0 = scmp.lt.s32.totalorder %s15880_s1, %s15874_s15 }
 0x289   : > { %p15876_p11 = pnand %p15875_p5, %p14420_p10 }
 0x28a   : > { %p15883_p1 = por %p15882_p0, %p15881_p13 }
 0x28b   : > { %p15877_p12 = pneg %p15876_p11 }
 0x28c   : > { %14307 = dma.hbm_to_vmem [thread:$0]  (%p14420_p10), %s18096_s4, 16, %s1771_s10, [#allocation63]  }
 0x28d   : > { %p15884_p2 = pnand %p15883_p1, %p15877_p12 }
 0x28f   : > { %15887 = shalt.err (!%p15884_p2)
}
 0x290   : > { %s18097_s18 = sld [smem:[#allocation134_spill]]  ;;  %s16199_s5 = smov [#allocation70]  }
 0x291   : > { %s1813_s16 = sshll.u32 %s16199_s5, 4  ;;  %s16200_s10 = smov [#allocation73]   ;;  %s1814_s16 = int_to_ptr.vmem [resolvable:$true] %s1813_s16 }
 0x292   : > { %s1841_s13 = sshll.u32 %s16200_s10, 4  ;;  %s15898_s3 = scalar_lea.vmem %s1814_s16, 6144  ;;  %s1842_s13 = int_to_ptr.vmem [resolvable:$true] %s1841_s13 }
 0x293   : > { %p15899_p4 = scmp.ne.s32.totalorder %s1814_s16, %s15898_s3  ;;  %p15905_p8 = scmp.lt.s32.totalorder %s1814_s16, %s1814_s16 }
 0x294   : > { %p15906_p6 = scmp.lt.s32.totalorder %s15898_s3, %s15898_s3 }
 0x295   : > { %p15900_p3 = pnand %p15899_p4, %p14420_p10 }
 0x296   : > { %14311 = dma.hbm_to_vmem [thread:$0]  (%p14420_p10), %s18097_s18, 16, %s1793_s11, [#allocation66]  }
 0x297   : > { %p15901_p7 = pneg %p15900_p3  ;;  %p15907_p5 = por %p15906_p6, %p15905_p8 }
 0x299   : > { %p15908_p11 = pnand %p15907_p5, %p15901_p7 }
 0x29b   : > { %15911 = shalt.err (!%p15908_p11)
}
 0x29c   : > { %s18098_s11 = sld [smem:[#allocation136_spill]]  ;;  %s15922_s4 = scalar_lea.vmem %s1842_s13, 16 }
 0x29d   : > { %p15923_p12 = scmp.ne.s32.totalorder %s1842_s13, %s15922_s4  ;;  %s15928_s15 = scalar_lea.vmem %s1842_s13, 32 }
 0x29e   : > { %p15929_p1 = scmp.lt.s32.totalorder %s1842_s13, %s1842_s13  ;;  %p15930_p2 = scmp.lt.s32.totalorder %s15928_s15, %s15922_s4 }
 0x29f   : > { %p15924_p13 = pnand %p15923_p12, %p14420_p10 }
 0x2a0   : > { %p15931_p4 = por %p15930_p2, %p15929_p1 }
 0x2a1   : > { %p15925_p0 = pneg %p15924_p13 }
 0x2a2   : > { %14315 = dma.hbm_to_vmem [thread:$0]  (%p14420_p10), %s18098_s11, 6144, %s1814_s16, [#allocation69], %s18060_s23, %s18060_s23, %s18059_s0  }
 0x2a3   : > { %p15932_p3 = pnand %p15931_p4, %p15925_p0 }
 0x2a5   : > { %15935 = shalt.err (!%p15932_p3)
}
 0x2a6   : > { %14319 = dma.hbm_to_vmem [thread:$0]  (%p14420_p10), %s16459_s9, 16, %s1842_s13, [#allocation72]  }
 0x2a7 PF: > { %1868 = sbr.rel (%p16524_p9) target bundleno = 11021 (0x2b0d), region = 228  ;;  %p14467_p7 = scmp.eq.s32.totalorder (!%p16524_p9), %s16497_s7, 0 }
 0x2ac   : > { %15979 = dma.done.wait (%p14467_p7), [#allocation3], 768  }
 0x2ad   : > { %15981 = vsyncadd (%p14467_p7), [#allocation3], 4294966528 }
 0x2ae   : > { %15983 = dma.done.wait (%p14467_p7), [#allocation6], 2432  }
 0x2af   : > { %15985 = vsyncadd (%p14467_p7), [#allocation6], 4294964864 }
 0x2b0   : > { %15987 = dma.done.wait (%p14467_p7), [#allocation9], 2176  }
 0x2b1   : > { %15989 = vsyncadd (%p14467_p7), [#allocation9], 4294965120 }
 0x2b2   : > { %15991 = dma.done.wait (%p14467_p7), [#allocation12], 272  }
 0x2b3   : > { %15993 = vsyncadd (%p14467_p7), [#allocation12], 4294967024 }
 0x2b4   : > { %15995 = dma.done.wait (%p14467_p7), [#allocation15], 2560  }
 0x2b5   : > { %15997 = vsyncadd (%p14467_p7), [#allocation15], 4294964736 }
 0x2b6   : > { %15999 = dma.done.wait (%p14467_p7), [#allocation18], 32  }
 0x2b7   : > { %16001 = vsyncadd (%p14467_p7), [#allocation18], 4294967264 }
 0x2b8   : > { %16003 = dma.done.wait (%p14467_p7), [#allocation21], 80  }
 0x2b9   : > { %16005 = vsyncadd (%p14467_p7), [#allocation21], 4294967216 }
 0x2ba   : > { %16007 = dma.done.wait (%p14467_p7), [#allocation24], 256  }
 0x2bb   : > { %16009 = vsyncadd (%p14467_p7), [#allocation24], 4294967040 }
 0x2bc   : > { %16011 = dma.done.wait (%p14467_p7), [#allocation27], 144  }
 0x2bd   : > { %16013 = vsyncadd (%p14467_p7), [#allocation27], 4294967152 }
 0x2be   : > { %16015 = dma.done.wait (%p14467_p7), [#allocation30], 6272  }
 0x2bf   : > { %16017 = vsyncadd (%p14467_p7), [#allocation30], 4294961024 }
 0x2c0   : > { %16019 = dma.done.wait (%p14467_p7), [#allocation33], 6160  }
 0x2c1   : > { %16021 = vsyncadd (%p14467_p7), [#allocation33], 4294961136 }
 0x2c2   : > { %16023 = dma.done.wait (%p14467_p7), [#allocation36], 32  }
 0x2c3   : > { %16025 = vsyncadd (%p14467_p7), [#allocation36], 4294967264 }
 0x2c4   : > { %16027 = dma.done.wait (%p14467_p7), [#allocation39], 6160  }
 0x2c5   : > { %16029 = vsyncadd (%p14467_p7), [#allocation39], 4294961136 }
 0x2c6   : > { %16031 = dma.done.wait (%p14467_p7), [#allocation42], 6160  }
 0x2c7   : > { %16033 = vsyncadd (%p14467_p7), [#allocation42], 4294961136 }
 0x2c8   : > { %16035 = dma.done.wait (%p14467_p7), [#allocation45], 32  }
 0x2c9   : > { %16037 = vsyncadd (%p14467_p7), [#allocation45], 4294967264 }
 0x2ca   : > { %16039 = dma.done.wait (%p14467_p7), [#allocation48], 80  }
 0x2cb   : > { %16041 = vsyncadd (%p14467_p7), [#allocation48], 4294967216 }
 0x2cc   : > { %16043 = dma.done.wait (%p14467_p7), [#allocation51], 272  }
 0x2cd   : > { %16045 = vsyncadd (%p14467_p7), [#allocation51], 4294967024 }
 0x2ce   : > { %16047 = dma.done.wait (%p14467_p7), [#allocation54], 272  }
 0x2cf   : > { %16049 = vsyncadd (%p14467_p7), [#allocation54], 4294967024 }
 0x2d0   : > { %16051 = dma.done.wait (%p14467_p7), [#allocation57], 512  }
 0x2d1   : > { %16053 = vsyncadd (%p14467_p7), [#allocation57], 4294966784 }
 0x2d2   : > { %16055 = dma.done.wait (%p14467_p7), [#allocation60], 12288  }
 0x2d3   : > { %16057 = vsyncadd (%p14467_p7), [#allocation60], 4294955008 }
 0x2d4   : > { %16059 = dma.done.wait (%p14467_p7), [#allocation63], 2064  }
 0x2d5   : > { %16061 = vsyncadd (%p14467_p7), [#allocation63], 4294965232 }
 0x2d6   : > { %16063 = dma.done.wait (%p14467_p7), [#allocation66], 32  }
 0x2d7   : > { %16065 = vsyncadd (%p14467_p7), [#allocation66], 4294967264 }
 0x2d8   : > { %16067 = dma.done.wait (%p14467_p7), [#allocation69], 6160  }
 0x2d9   : > { %16069 = vsyncadd (%p14467_p7), [#allocation69], 4294961136 }
 0x2da   : > { %16071 = dma.done.wait (%p14467_p7), [#allocation72], 32  }
 0x2db   : > { %16073 = vsyncadd (%p14467_p7), [#allocation72], 4294967264  ;;  %s18099_s26 = sld [smem:[#allocation100_spill]]  ;;  %p2173_p9 = scmp.lt.s32.totalorder %s16497_s7, 1  ;;  %vm2182_vm0 = vcmask 130048   ;;  %v16941_v2 = vld [vmem:[#allocation2 + $0x10] sm:$0xff] }
 0x2dc   : > { %12703 = vmatprep.mubr.msk.f32.mxu1 %vm2182_vm0, %v16941_v2  ;;  %v16947_v3 = vld [vmem:[#allocation2 + $0x18] sm:$0xff]  ;;  %v16952_v4 = vld [vmem:[#allocation2] sm:$0xff]  ;;  %v2360_v5 = vld [vmem:[#allocation16 + $0x58] sm:$0xff]  ;;  %vm2361_vm1 = vcmask 392192   ;;  %vm16202_vm2 = vmmov 0   ;;  %vm3903_vm3 = vcmask 64512  }
 0x2dd   : > { %s2174_s0 = scalar_select %p2173_p9, %s16497_s7, 1  ;;  %v16956_v6 = vld [vmem:[#allocation2 + $0x8] sm:$0xff]  ;;  %12696 = vmatprep.mubr.msk.f32.mxu0 %vm2182_vm0, %v16952_v4  ;;  %v2358_v8 = vld [vmem:[#allocation16 + $0x48] sm:$0xff]  ;;  %v2357_v9 = vld [vmem:[#allocation16 + $0x40] sm:$0xff]  ;;  %vm4060_vm4 = vcmask 1041408   ;;  %vm4056_vm5 = vcmask 15360  }
 0x2de   : > { %v2359_v7 = vld [vmem:[#allocation16 + $0x50] sm:$0xff]  ;;  %v2356_v10 = vld [vmem:[#allocation16 + $0x38] sm:$0xff]  ;;  %v2269_v12 = vld [vmem:[#allocation16 + $0x28] sm:$0xff]  ;;  %s18100_s18 = sld [smem:[#allocation103_spill]]  ;;  %vm8116_vm6 = vcmask 1043456   ;;  %vm8112_vm7 = vcmask 31744  }
 0x2df   : > { %s11949_s23 = sshll.u32 %s2174_s0, 4  ;;  %v2355_v11 = vld [vmem:[#allocation16 + $0x30] sm:$0xff]  ;;  %v2268_v16 = vld [vmem:[#allocation16 + $0x20] sm:$0xff]  ;;  %v2267_v18 = vld [vmem:[#allocation16 + $0x18] sm:$0xff]  ;;  %s18101_s5 = sld [smem:[#allocation137_spill]]  ;;  %vm11095_vm8 = vcmask 73728  }
 0x2e0   : > { %v2266_v19 = vld [vmem:[#allocation16 + $0x10] sm:$0xff]  ;;  %v2265_v20 = vld [vmem:[#allocation16 + $0x8] sm:$0xff]  ;;  %v2264_v21 = vld [vmem:[#allocation16] sm:$0xff]  ;;  %s2171_s16 = sand.u32 1, %s16084_s28   ;;  %s11946_s10 = sshll.u32 %s16497_s7, 4 }
 0x2e1   : > { %s2177_s1 = scalar_lea.vmem %s18099_s26, %s11949_s23  ;;  %v16968_v22 = vld [vmem:[#allocation2 + $0x20] sm:$0xff]  ;;  %v16975_v23 = vld [vmem:[#allocation2 + $0x28] sm:$0xff]  ;;  %v2613_v25 = vld [vmem:[#allocation16 + $0x80] sm:$0xff]  ;;  %s2172_s13 = scalar_lea.vmem [#allocation74], %s2171_s16 }
 0x2e2   : > { %v16937_v0 = vld [vmem:[%s2177_s1 + $0x8] sm:$0xff]  ;;  %v16939_v1 = vld [vmem:[%s2177_s1] sm:$0xff]  ;;  %v2609_v29 = vld [vmem:[#allocation16 + $0x60] sm:$0xff]  ;;  %s11110_s3 = sshll.u32 %s2172_s13, 4  ;;  %s17958_s11 = scalar_lea.hbm %s16474_s27, %s11946_s10  ;;  %s11111_s3 = int_to_ptr.vmem [resolvable:$true] %s11110_s3 }
 0x2e3   : > { %12699 = vmatprep.subr.mxu1 %v16937_v0  ;;  %12692 = vmatprep.subr.mxu0 %v16937_v0  ;;  %v2614_v24 = vld [vmem:[#allocation16 + $0x88] sm:$0xff]  ;;  %v2612_v26 = vld [vmem:[#allocation16 + $0x78] sm:$0xff]  ;;  %v2611_v27 = vld [vmem:[#allocation16 + $0x70] sm:$0xff]  ;;  %s11098_s4 = scalar_lea.sflag [#allocation4], %s2171_s16  ;;  %s15936_s15 = scalar_lea.vmem %s11111_s3, 16 }
 0x2e4   : > { %12700 = vmatpush3.msra.mxu1 %v16937_v0  ;;  %12693 = vmatpush3.msra.mxu0 %v16937_v0  ;;  %v2610_v28 = vld [vmem:[#allocation16 + $0x68] sm:$0xff]  ;;  %v2808_v37 = vld [vmem:[#allocation31 + $0x78] sm:$0xff]  ;;  %v2805_v40 = vld [vmem:[#allocation31 + $0x60] sm:$0xff]  ;;  %p15937_p10 = scmp.ne.s32.totalorder %s11111_s3, %s15936_s15  ;;  %p18102_p8 = scmp.ne.s32.totalorder %s18051_s22, 0 }
 0x2e5   : > { %12701 = vmatprep.subr.mxu1 %v16939_v1  ;;  %12694 = vmatprep.subr.mxu0 %v16939_v1  ;;  %v2807_v38 = vld [vmem:[#allocation31 + $0x70] sm:$0xff]  ;;  %v2806_v39 = vld [vmem:[#allocation31 + $0x68] sm:$0xff]  ;;  %v2804_v41 = vld [vmem:[#allocation31 + $0x58] sm:$0xff]  ;;  %s16205_s26 = smov [#allocation74]  }
 0x2e6   : > { %12702 = vmatpush3.msra.mxu1 %v16939_v1  ;;  %12695 = vmatpush3.msra.mxu0 %v16939_v1  ;;  %v2803_v42 = vld [vmem:[#allocation31 + $0x50] sm:$0xff]  ;;  %v2802_v43 = vld [vmem:[#allocation31 + $0x48] sm:$0xff]  ;;  %v2801_v44 = vld [vmem:[#allocation31 + $0x40] sm:$0xff]  ;;  %p15938_p6 = pnand %p15937_p10, %p18102_p8  ;;  %s15940_s0 = sshll.u32 %s16205_s26, 4  ;;  %s15941_s0 = int_to_ptr.vmem [resolvable:$false] %s15940_s0 }
 0x2e7   : > { %12704 = vmatmul.mubr.msk.f32.vlgmr.msra.gmra.mxu1 %vm2182_vm0, %v16947_v3  ;;  %12706 = vmatprep.subr.mxu0 %v2360_v5  ;;  %v2800_v45 = vld [vmem:[#allocation31 + $0x38] sm:$0xff]  ;;  %v2799_v46 = vld [vmem:[#allocation31 + $0x30] sm:$0xff]  ;;  %v2798_v47 = vld [vmem:[#allocation31 + $0x28] sm:$0xff]  ;;  %s15942_s7 = scalar_lea.vmem %s15941_s0, 32  ;;  %p15943_p11 = scmp.lt.s32.totalorder %s11111_s3, %s15941_s0 }
 0x2e8   : > { %12697 = vmatmul.mubr.msk.f32.vlgmr.msra.gmra.mxu0 %vm2182_vm0, %v16956_v6  ;;  %12743 = vmatprep.subr.mxu1 %v2614_v24  ;;  %v2797_v48 = vld [vmem:[#allocation31 + $0x20] sm:$0xff]  ;;  %v2796_v49 = vld [vmem:[#allocation31 + $0x18] sm:$0xff]  ;;  %v2795_v50 = vld [vmem:[#allocation31 + $0x10] sm:$0xff]  ;;  %p15939_p5 = pneg %p15938_p6  ;;  %p15944_p12 = scmp.lt.s32.totalorder %s15942_s7, %s15936_s15 }
 0x2e9   : > { %12707 = vmatpush3.msra.mxu0 %v2360_v5  ;;  %12744 = vmatpush3.msra.mxu1 %v2614_v24  ;;  %v11778_v52 = vld [vmem:[#allocation35] ss:$0 sm:$0xff]  ;;  %v11779_v55 = vld [vmem:[#allocation34] ss:$0 sm:$0xff]  ;;  %v2898_v5 = vld [vmem:[#allocation31 + $0xe8] sm:$0xff] }
 0x2ea   : > { %12708 = vmatprep.subr.mxu0 %v2359_v7  ;;  %12745 = vmatprep.subr.mxu1 %v2613_v25  ;;  %v3142_v24 = vld [vmem:[#allocation31 + $0x178] sm:$0xff]  ;;  %p15945_p13 = por %p15944_p12, %p15943_p11 }
 0x2eb   : > { %12709 = vmatpush3.msra.mxu0 %v2359_v7  ;;  %12746 = vmatpush3.msra.mxu1 %v2613_v25  ;;  %v2897_v7 = vld [vmem:[#allocation31 + $0xe0] sm:$0xff] }
 0x2ec   : > { %12710 = vmatprep.subr.mxu0 %v2358_v8  ;;  %12747 = vmatprep.subr.mxu1 %v2612_v26  ;;  %p15946_p0 = pnand %p15945_p13, %p15939_p5 }
 0x2ed   : > { %12711 = vmatpush3.msra.mxu0 %v2358_v8  ;;  %12748 = vmatpush3.msra.mxu1 %v2612_v26  ;;  %v2896_v8 = vld [vmem:[#allocation31 + $0xd8] sm:$0xff] }
 0x2ee   : > { %12712 = vmatprep.subr.mxu0 %v2357_v9  ;;  %12749 = vmatprep.subr.mxu1 %v2611_v27 }
 0x2ef   : > { %12713 = vmatpush3.msra.mxu0 %v2357_v9  ;;  %12750 = vmatpush3.msra.mxu1 %v2611_v27  ;;  %v2895_v9 = vld [vmem:[#allocation31 + $0xd0] sm:$0xff] }
 0x2f0   : > { %12714 = vmatprep.subr.mxu0 %v2356_v10  ;;  %12751 = vmatprep.subr.mxu1 %v2610_v28  ;;  %v3141_v27 = vld [vmem:[#allocation31 + $0x170] sm:$0xff] }
 0x2f1   : > { %12715 = vmatpush3.msra.mxu0 %v2356_v10  ;;  %12752 = vmatpush3.msra.mxu1 %v2610_v28  ;;  %v2894_v10 = vld [vmem:[#allocation31 + $0xc8] sm:$0xff] }
 0x2f2   : > { %12716 = vmatprep.subr.mxu0 %v2355_v11  ;;  %12753 = vmatprep.subr.mxu1 %v2609_v29 }
 0x2f3   : > { %12717 = vmatpush3.msra.mxu0 %v2355_v11  ;;  %12754 = vmatpush3.msra.mxu1 %v2609_v29  ;;  %v2893_v11 = vld [vmem:[#allocation31 + $0xc0] sm:$0xff]  ;;  %v3140_v29 = vld [vmem:[#allocation31 + $0x168] sm:$0xff] }
 0x2f4   : > { %12721 = vmatprep.subr.mxu0 %v2269_v12  ;;  %12807 = vmatprep.subr.mxu1 %v2808_v37 }
 0x3a7   : > { %v12705_v13 = vpop.f32.mrf.mxu1 }
 0x3a8   : > { %v12698_v15 = vpop.f32.mrf.mxu0 }
 0x3a9   : > { %v2345_v14 = vpop.f32.mrf.mxu1 }
 0x3aa   : > { %12718 = vmatprep.mubr.msk.f32.mxu0 %vm2361_vm1, %v2345_v14  ;;  %v2255_v17 = vpop.f32.mrf.mxu0  ;;  %v2890_v14 = vld [vmem:[#allocation31 + $0xa8] sm:$0xff] }
 0x3ab   : > { %12719 = vmatmul.mubr.msk.f32.vlgmr.msra.gmra.mxu0 %vm2361_vm1, %v12705_v13  ;;  %v2891_v13 = vld [vmem:[#allocation31 + $0xb0] sm:$0xff] }
 0x3ac   : > { %12722 = vmatpush3.msra.mxu0 %v2269_v12  ;;  %12733 = vmatprep.mubr.msk.f32.mxu0 %vm2361_vm1, %v2255_v17  ;;  %v2892_v12 = vld [vmem:[#allocation31 + $0xb8] sm:$0xff]  ;;  %v2887_v17 = vld [vmem:[#allocation31 + $0x90] sm:$0xff] }
 0x3ad   : > { %12723 = vmatprep.subr.mxu0 %v2268_v16 }
 0x3ae   : > { %12724 = vmatpush3.msra.mxu0 %v2268_v16  ;;  %v2888_v16 = vld [vmem:[#allocation31 + $0x98] sm:$0xff] }
 0x3af   : > { %12725 = vmatprep.subr.mxu0 %v2267_v18 }
 0x3b0   : > { %12726 = vmatpush3.msra.mxu0 %v2267_v18  ;;  %v2886_v18 = vld [vmem:[#allocation31 + $0x88] sm:$0xff] }
 0x3b1   : > { %12727 = vmatprep.subr.mxu0 %v2266_v19 }
 0x3b2   : > { %12728 = vmatpush3.msra.mxu0 %v2266_v19  ;;  %v2885_v19 = vld [vmem:[#allocation31 + $0x80] sm:$0xff] }
 0x3b3   : > { %12729 = vmatprep.subr.mxu0 %v2265_v20 }
 0x3b4   : > { %12730 = vmatpush3.msra.mxu0 %v2265_v20  ;;  %v2794_v20 = vld [vmem:[#allocation31 + $0x8] sm:$0xff] }
 0x3b5   : > { %12731 = vmatprep.subr.mxu0 %v2264_v21 }
 0x3b6   : > { %12732 = vmatpush3.msra.mxu0 %v2264_v21  ;;  %v2793_v21 = vld [vmem:[#allocation31] sm:$0xff] }
 0x3b7   : > { %12734 = vmatmul.mubr.msk.f32.vlgmr.msra.gmra.mxu0 %vm2361_vm1, %v12698_v15  ;;  %12736 = vmatprep.subr.mxu0 %v16937_v0  ;;  %v2889_v15 = vld [vmem:[#allocation31 + $0xa0] sm:$0xff] }
 0x3b8   : > { %12737 = vmatpush3.msra.mxu0 %v16937_v0  ;;  %12740 = vmatprep.mubr.msk.f32.mxu0 %vm2182_vm0, %v16968_v22  ;;  %v2900_v0 = vld [vmem:[#allocation31 + $0xf8] sm:$0xff] }
 0x3b9   : > { %12738 = vmatprep.subr.mxu0 %v16939_v1 }
 0x3ba   : > { %12739 = vmatpush3.msra.mxu0 %v16939_v1  ;;  %v2899_v1 = vld [vmem:[#allocation31 + $0xf0] sm:$0xff] }
 0x3bb   : > { %12741 = vmatmul.mubr.msk.f32.vlgmr.msra.gmra.mxu0 %vm2182_vm0, %v16975_v23 }
 0x3bc   : > { %12762 = vmatprep.mubr.msk.f32.mxu0 %vm2182_vm0, %v16952_v4 }
 0x46b   : > { %v12720_v30 = vpop.f32.mrf.mxu0 }
 0x46d   : > { %v2434_v31 = vpop.f32.mrf.mxu0 }
 0x477   : > { %v12735_v32 = vpop.f32.mrf.mxu0 }
 0x478   : > { %v2521_v33 = vadd.f32 %v12735_v32, %v12720_v30  ;;  %v3138_v32 = vld [vmem:[#allocation31 + $0x158] sm:$0xff] }
 0x479   : > { %v2515_v34 = vpop.f32.mrf.mxu0 }
 0x47a   : > { %v2516_v53 = vadd.f32 %v2515_v34, %v2434_v31  ;;  %v3139_v31 = vld [vmem:[#allocation31 + $0x160] sm:$0xff]  ;;  %v3136_v34 = vld [vmem:[#allocation31 + $0x148] sm:$0xff] }
 0x47b   : > { %v12742_v35 = vpop.f32.mrf.mxu0 }
 0x47d   : > { %v2599_v36 = vpop.f32.mrf.mxu0 }
 0x47e   : > { %12755 = vmatprep.mubr.msk.f32.mxu1 %vm2361_vm1, %v2599_v36  ;;  %v3134_v36 = vld [vmem:[#allocation31 + $0x138] sm:$0xff] }
 0x47f   : > { %12756 = vmatmul.mubr.msk.f32.vlgmr.msra.gmra.mxu1 %vm2361_vm1, %v12742_v35  ;;  %v3135_v35 = vld [vmem:[#allocation31 + $0x140] sm:$0xff] }
 0x480   : > { %12808 = vmatpush3.msra.mxu1 %v2808_v37  ;;  %v3133_v37 = vld [vmem:[#allocation31 + $0x130] sm:$0xff] }
 0x481   : > { %12809 = vmatprep.subr.mxu1 %v2807_v38 }
 0x482   : > { %12810 = vmatpush3.msra.mxu1 %v2807_v38  ;;  %v3132_v38 = vld [vmem:[#allocation31 + $0x128] sm:$0xff] }
 0x483   : > { %12811 = vmatprep.subr.mxu1 %v2806_v39 }
 0x484   : > { %12812 = vmatpush3.msra.mxu1 %v2806_v39  ;;  %v3131_v39 = vld [vmem:[#allocation31 + $0x120] sm:$0xff] }
 0x485   : > { %12813 = vmatprep.subr.mxu1 %v2805_v40 }
 0x486   : > { %12814 = vmatpush3.msra.mxu1 %v2805_v40  ;;  %v3129_v40 = vld [vmem:[#allocation31 + $0x110] sm:$0xff] }
 0x487   : > { %12815 = vmatprep.subr.mxu1 %v2804_v41 }
 0x488   : > { %12816 = vmatpush3.msra.mxu1 %v2804_v41  ;;  %v3128_v41 = vld [vmem:[#allocation31 + $0x108] sm:$0xff] }
 0x489   : > { %12817 = vmatprep.subr.mxu1 %v2803_v42 }
 0x48a   : > { %12818 = vmatpush3.msra.mxu1 %v2803_v42  ;;  %v3127_v42 = vld [vmem:[#allocation31 + $0x100] sm:$0xff] }
 0x48b   : > { %12819 = vmatprep.subr.mxu1 %v2802_v43 }
 0x48c   : > { %12820 = vmatpush3.msra.mxu1 %v2802_v43 }
 0x48d   : > { %12821 = vmatprep.subr.mxu1 %v2801_v44 }
 0x48e   : > { %12822 = vmatpush3.msra.mxu1 %v2801_v44 }
 0x48f   : > { %12823 = vmatprep.subr.mxu1 %v2800_v45 }
 0x490   : > { %12824 = vmatpush3.msra.mxu1 %v2800_v45 }
 0x491   : > { %12825 = vmatprep.subr.mxu1 %v2799_v46 }
 0x492   : > { %12826 = vmatpush3.msra.mxu1 %v2799_v46 }
 0x493   : > { %12827 = vmatprep.subr.mxu1 %v2798_v47 }
 0x494   : > { %12828 = vmatpush3.msra.mxu1 %v2798_v47  ;;  %v3330_v47 = vld [vmem:[#allocation32 + $0x78] sm:$0xff] }
 0x495   : > { %12829 = vmatprep.subr.mxu1 %v2797_v48 }
 0x496   : > { %12830 = vmatpush3.msra.mxu1 %v2797_v48  ;;  %v3329_v48 = vld [vmem:[#allocation32 + $0x70] sm:$0xff] }
 0x497   : > { %12831 = vmatprep.subr.mxu1 %v2796_v49 }
 0x498   : > { %12832 = vmatpush3.msra.mxu1 %v2796_v49  ;;  %v3328_v49 = vld [vmem:[#allocation32 + $0x68] sm:$0xff] }
 0x499   : > { %12833 = vmatprep.subr.mxu1 %v2795_v50 }
 0x49a   : > { %12834 = vmatpush3.msra.mxu1 %v2795_v50  ;;  %v3327_v50 = vld [vmem:[#allocation32 + $0x60] sm:$0xff] }
 0x49b   : > { %12835 = vmatprep.subr.mxu1 %v2794_v20 }
 0x49c   : > { %12836 = vmatpush3.msra.mxu1 %v2794_v20  ;;  %v3421_v20 = vld [vmem:[#allocation32 + $0xf0] sm:$0xff] }
 0x49d   : > { %12837 = vmatprep.subr.mxu1 %v2793_v21 }
 0x49e   : > { %12838 = vmatpush3.msra.mxu1 %v2793_v21  ;;  %v3420_v21 = vld [vmem:[#allocation32 + $0xe8] sm:$0xff] }
 0x49f   : > { %12849 = vmatprep.subr.mxu1 %v3142_v24 }
 0x53f   : > { %v12757_v51 = vpop.f32.mrf.mxu1 }
 0x540   : > { %v16985_v54 = vadd.f32 %v12757_v51, %v2521_v33  ;;  %v3137_v33 = vld [vmem:[#allocation31 + $0x150] sm:$0xff]  ;;  %v3326_v51 = vld [vmem:[#allocation32 + $0x58] sm:$0xff] }
 0x541   : > { %v2687_v56 = vpop.f32.mrf.mxu1 }
 0x542   : > { %v2706_v57 = vmul.f32 %v11778_v52, %v16985_v54  ;;  %v16988_v58 = vadd.f32 %v2687_v56, %v2516_v53  ;;  %v3324_v53 = vld [vmem:[#allocation32 + $0x48] sm:$0xff]  ;;  %v3322_v56 = vld [vmem:[#allocation32 + $0x38] sm:$0xff] }
 0x544   : > { %v2715_v59 = vadd.f32 %v11779_v55, %v2706_v57  ;;  %v2705_v60 = vmul.f32 %v11778_v52, %v16988_v58  ;;  %v3325_v52 = vld [vmem:[#allocation32 + $0x50] sm:$0xff] }
 0x545   : > { %v3321_v57 = vld [vmem:[#allocation32 + $0x30] sm:$0xff] }
 0x546   : > { %v16991_v61 = vmax.f32 %v2715_v59, 0.0  ;;  %v2714_v62 = vadd.f32 %v11779_v55, %v2705_v60  ;;  %v3323_v55 = vld [vmem:[#allocation32 + $0x40] sm:$0xff]  ;;  %v3320_v59 = vld [vmem:[#allocation32 + $0x28] sm:$0xff] }
 0x547   : > { %v3319_v60 = vld [vmem:[#allocation32 + $0x20] sm:$0xff] }
 0x548   : > { %v16993_v63 = vmax.f32 %v2714_v62, 0.0  ;;  %12758 = vmatprep.subr.mxu0 %v16991_v61  ;;  %v3317_v62 = vld [vmem:[#allocation32 + $0x10] sm:$0xff] }
 0x549   : > { %12759 = vmatpush3.msra.mxu0 %v16991_v61 }
 0x54a   : > { %12760 = vmatprep.subr.mxu0 %v16993_v63 }
 0x54b   : > { %12761 = vmatpush3.msra.mxu0 %v16993_v63 }
 0x54c   : > { %12763 = vmatmul.mubr.msk.f32.vlgmr.msra.gmra.mxu0 %vm2182_vm0, %v16956_v6  ;;  %12765 = vmatprep.subr.mxu0 %v16991_v61 }
 0x54d   : > { %12766 = vmatpush3.msra.mxu0 %v16991_v61  ;;  %12769 = vmatprep.mubr.msk.f32.mxu0 %vm2182_vm0, %v16941_v2 }
 0x54e   : > { %12767 = vmatprep.subr.mxu0 %v16993_v63 }
 0x54f   : > { %12768 = vmatpush3.msra.mxu0 %v16993_v63 }
 0x550   : > { %12770 = vmatmul.mubr.msk.f32.vlgmr.msra.gmra.mxu0 %vm2182_vm0, %v16947_v3  ;;  %12772 = vmatprep.subr.mxu0 %v2900_v0 }
 0x551   : > { %12773 = vmatpush3.msra.mxu0 %v2900_v0 }
 0x552   : > { %12774 = vmatprep.subr.mxu0 %v2899_v1 }
 0x553   : > { %12775 = vmatpush3.msra.mxu0 %v2899_v1 }
 0x554   : > { %12776 = vmatprep.subr.mxu0 %v2898_v5 }
 0x555   : > { %12777 = vmatpush3.msra.mxu0 %v2898_v5 }
 0x556   : > { %12778 = vmatprep.subr.mxu0 %v2897_v7 }
 0x557   : > { %12779 = vmatpush3.msra.mxu0 %v2897_v7  ;;  %v11786_v7 = vld [vmem:[#allocation38] ss:$0 sm:$0xff] }
 0x558   : > { %12780 = vmatprep.subr.mxu0 %v2896_v8 }
 0x559   : > { %12781 = vmatpush3.msra.mxu0 %v2896_v8 }
 0x55a   : > { %12782 = vmatprep.subr.mxu0 %v2895_v9 }
 0x55b   : > { %12783 = vmatpush3.msra.mxu0 %v2895_v9 }
 0x55c   : > { %12784 = vmatprep.subr.mxu0 %v2894_v10 }
 0x55d   : > { %12785 = vmatpush3.msra.mxu0 %v2894_v10  ;;  %v11787_v10 = vld [vmem:[#allocation37] ss:$0 sm:$0xff] }
 0x55e   : > { %12786 = vmatprep.subr.mxu0 %v2893_v11 }
 0x55f   : > { %12787 = vmatpush3.msra.mxu0 %v2893_v11 }
 0x560   : > { %12788 = vmatprep.subr.mxu0 %v2892_v12 }
 0x561   : > { %12789 = vmatpush3.msra.mxu0 %v2892_v12 }
 0x562   : > { %12790 = vmatprep.subr.mxu0 %v2891_v13 }
 0x563   : > { %12791 = vmatpush3.msra.mxu0 %v2891_v13 }
 0x564   : > { %12792 = vmatprep.subr.mxu0 %v2890_v14 }
 0x565   : > { %12793 = vmatpush3.msra.mxu0 %v2890_v14 }
 0x566   : > { %12794 = vmatprep.subr.mxu0 %v2889_v15 }
 0x567   : > { %12795 = vmatpush3.msra.mxu0 %v2889_v15 }
 0x568   : > { %12796 = vmatprep.subr.mxu0 %v2888_v16 }
 0x569   : > { %12797 = vmatpush3.msra.mxu0 %v2888_v16 }
 0x56a   : > { %12798 = vmatprep.subr.mxu0 %v2887_v17 }
 0x56b   : > { %12799 = vmatpush3.msra.mxu0 %v2887_v17 }
 0x56c   : > { %12800 = vmatprep.subr.mxu0 %v2886_v18 }
 0x56d   : > { %12801 = vmatpush3.msra.mxu0 %v2886_v18 }
 0x56e   : > { %12802 = vmatprep.subr.mxu0 %v2885_v19 }
 0x56f   : > { %12803 = vmatpush3.msra.mxu0 %v2885_v19  ;;  %v3422_v19 = vld [vmem:[#allocation32 + $0xf8] sm:$0xff] }
 0x570   : > { %12842 = vmatprep.subr.mxu0 %v16991_v61 }
 0x60c   : > { %v12764_v25 = vpop.f32.mrf.mxu0 }
 0x60e   : > { %v2784_v26 = vpop.f32.mrf.mxu0 }
 0x60f   : > { %12839 = vmatprep.mubr.f32.mxu1 %v2784_v26  ;;  %v3415_v26 = vld [vmem:[#allocation32 + $0xc0] sm:$0xff] }
 0x610   : > { %v12771_v28 = vpop.f32.mrf.mxu0  ;;  %12840 = vmatmul.mubr.f32.vlgmr.msra.gmra.mxu1 %v12764_v25  ;;  %v3416_v25 = vld [vmem:[#allocation32 + $0xc8] sm:$0xff] }
 0x611   : > { %12850 = vmatpush3.msra.mxu1 %v3142_v24  ;;  %v3418_v24 = vld [vmem:[#allocation32 + $0xd8] sm:$0xff] }
 0x612   : > { %v2875_v30 = vpop.f32.mrf.mxu0  ;;  %12851 = vmatprep.subr.mxu1 %v3141_v27 }
 0x613   : > { %12804 = vmatprep.mubr.f32.mxu0 %v2875_v30  ;;  %12852 = vmatpush3.msra.mxu1 %v3141_v27  ;;  %v3413_v27 = vld [vmem:[#allocation32 + $0xb0] sm:$0xff]  ;;  %v3410_v30 = vld [vmem:[#allocation32 + $0x98] sm:$0xff] }
 0x614   : > { %12805 = vmatmul.mubr.f32.vlgmr.msra.gmra.mxu0 %v12771_v28  ;;  %12853 = vmatprep.subr.mxu1 %v3140_v29  ;;  %v3412_v28 = vld [vmem:[#allocation32 + $0xa8] sm:$0xff] }
 0x615   : > { %12843 = vmatpush3.msra.mxu0 %v16991_v61  ;;  %12846 = vmatprep.mubr.msk.f32.mxu0 %vm2182_vm0, %v16968_v22  ;;  %v3318_v61 = vld [vmem:[#allocation32 + $0x18] sm:$0xff] }
 0x616   : > { %12844 = vmatprep.subr.mxu0 %v16993_v63  ;;  %12854 = vmatpush3.msra.mxu1 %v3140_v29  ;;  %v3411_v29 = vld [vmem:[#allocation32 + $0xa0] sm:$0xff] }
 0x617   : > { %12845 = vmatpush3.msra.mxu0 %v16993_v63  ;;  %12855 = vmatprep.subr.mxu1 %v3139_v31 }
 0x618   : > { %12847 = vmatmul.mubr.msk.f32.vlgmr.msra.gmra.mxu0 %vm2182_vm0, %v16975_v23  ;;  %12856 = vmatpush3.msra.mxu1 %v3139_v31  ;;  %v3409_v31 = vld [vmem:[#allocation32 + $0x90] sm:$0xff] }
 0x619   : > { %12857 = vmatprep.subr.mxu1 %v3138_v32  ;;  %12888 = vmatprep.mubr.msk.f32.mxu0 %vm2182_vm0, %v16952_v4  ;;  %v3130_v4 = vld [vmem:[#allocation31 + $0x118] sm:$0xff] }
 0x61a   : > { %12858 = vmatpush3.msra.mxu1 %v3138_v32  ;;  %v3408_v32 = vld [vmem:[#allocation32 + $0x88] sm:$0xff] }
 0x61b   : > { %12859 = vmatprep.subr.mxu1 %v3137_v33 }
 0x61c   : > { %12860 = vmatpush3.msra.mxu1 %v3137_v33  ;;  %v3407_v33 = vld [vmem:[#allocation32 + $0x80] sm:$0xff] }
 0x61d   : > { %12861 = vmatprep.subr.mxu1 %v3136_v34 }
 0x61e   : > { %12862 = vmatpush3.msra.mxu1 %v3136_v34  ;;  %v3316_v34 = vld [vmem:[#allocation32 + $0x8] sm:$0xff] }
 0x61f   : > { %12863 = vmatprep.subr.mxu1 %v3135_v35 }
 0x620   : > { %12864 = vmatpush3.msra.mxu1 %v3135_v35  ;;  %v3315_v35 = vld [vmem:[#allocation32] sm:$0xff] }
 0x621   : > { %12865 = vmatprep.subr.mxu1 %v3134_v36 }
 0x622   : > { %12866 = vmatpush3.msra.mxu1 %v3134_v36 }
 0x623   : > { %12867 = vmatprep.subr.mxu1 %v3133_v37 }
 0x624   : > { %12868 = vmatpush3.msra.mxu1 %v3133_v37 }
 0x625   : > { %12869 = vmatprep.subr.mxu1 %v3132_v38 }
 0x626   : > { %12870 = vmatpush3.msra.mxu1 %v3132_v38 }
 0x627   : > { %12871 = vmatprep.subr.mxu1 %v3131_v39 }
 0x628   : > { %12872 = vmatpush3.msra.mxu1 %v3131_v39 }
 0x629   : > { %12873 = vmatprep.subr.mxu1 %v3130_v4 }
 0x62a   : > { %12874 = vmatpush3.msra.mxu1 %v3130_v4  ;;  %v3664_v4 = vld [vmem:[#allocation32 + $0x178] sm:$0xff] }
 0x62b   : > { %12875 = vmatprep.subr.mxu1 %v3129_v40 }
 0x62c   : > { %12876 = vmatpush3.msra.mxu1 %v3129_v40  ;;  %v3663_v40 = vld [vmem:[#allocation32 + $0x170] sm:$0xff] }
 0x62d   : > { %12877 = vmatprep.subr.mxu1 %v3128_v41 }
 0x62e   : > { %12878 = vmatpush3.msra.mxu1 %v3128_v41  ;;  %v3662_v41 = vld [vmem:[#allocation32 + $0x168] sm:$0xff] }
 0x62f   : > { %12879 = vmatprep.subr.mxu1 %v3127_v42 }
 0x630   : > { %12880 = vmatpush3.msra.mxu1 %v3127_v42  ;;  %v3661_v42 = vld [vmem:[#allocation32 + $0x160] sm:$0xff] }
 0x631   : > { %12933 = vmatprep.subr.mxu1 %v3330_v47 }
 0x6d0   : > { %v12841_v63 = vpop.f32.mrf.mxu1 }
 0x6d2   : > { %v3042_v0 = vpop.f32.mrf.mxu1 }
 0x6d4   : > { %v12806_v43 = vpop.f32.mrf.mxu0 }
 0x6d5   : > { %v3048_v1 = vadd.f32 %v12841_v63, %v12806_v43  ;;  %v3660_v43 = vld [vmem:[#allocation32 + $0x158] sm:$0xff] }
 0x6d6   : > { %v2967_v44 = vpop.f32.mrf.mxu0 }
 0x6d7   : > { %v3043_v8 = vadd.f32 %v3042_v0, %v2967_v44  ;;  %v3658_v44 = vld [vmem:[#allocation32 + $0x148] sm:$0xff] }
 0x6d8   : > { %v12848_v45 = vpop.f32.mrf.mxu0 }
 0x6da   : > { %v3117_v46 = vpop.f32.mrf.mxu0 }
 0x6db   : > { %12881 = vmatprep.mubr.f32.mxu1 %v3117_v46  ;;  %v3655_v46 = vld [vmem:[#allocation32 + $0x130] sm:$0xff] }
 0x6dc   : > { %12882 = vmatmul.mubr.f32.vlgmr.msra.gmra.mxu1 %v12848_v45  ;;  %v3657_v45 = vld [vmem:[#allocation32 + $0x140] sm:$0xff] }
 0x6dd   : > { %12934 = vmatpush3.msra.mxu1 %v3330_v47  ;;  %v3654_v47 = vld [vmem:[#allocation32 + $0x128] sm:$0xff] }
 0x6de   : > { %12935 = vmatprep.subr.mxu1 %v3329_v48 }
 0x6df   : > { %12936 = vmatpush3.msra.mxu1 %v3329_v48  ;;  %v3653_v48 = vld [vmem:[#allocation32 + $0x120] sm:$0xff] }
 0x6e0   : > { %12937 = vmatprep.subr.mxu1 %v3328_v49 }
 0x6e1   : > { %12938 = vmatpush3.msra.mxu1 %v3328_v49  ;;  %v3652_v49 = vld [vmem:[#allocation32 + $0x118] sm:$0xff] }
 0x6e2   : > { %12939 = vmatprep.subr.mxu1 %v3327_v50 }
 0x6e3   : > { %12940 = vmatpush3.msra.mxu1 %v3327_v50  ;;  %v3651_v50 = vld [vmem:[#allocation32 + $0x110] sm:$0xff] }
 0x6e4   : > { %12941 = vmatprep.subr.mxu1 %v3326_v51 }
 0x6e5   : > { %12942 = vmatpush3.msra.mxu1 %v3326_v51  ;;  %v3650_v51 = vld [vmem:[#allocation32 + $0x108] sm:$0xff] }
 0x6e6   : > { %12943 = vmatprep.subr.mxu1 %v3325_v52 }
 0x6e7   : > { %12944 = vmatpush3.msra.mxu1 %v3325_v52  ;;  %v3649_v52 = vld [vmem:[#allocation32 + $0x100] sm:$0xff] }
 0x6e8   : > { %12945 = vmatprep.subr.mxu1 %v3324_v53 }
 0x6e9   : > { %12946 = vmatpush3.msra.mxu1 %v3324_v53 }
 0x6ea   : > { %12947 = vmatprep.subr.mxu1 %v3323_v55 }
 0x6eb   : > { %12948 = vmatpush3.msra.mxu1 %v3323_v55 }
 0x6ec   : > { %12949 = vmatprep.subr.mxu1 %v3322_v56 }
 0x6ed   : > { %12950 = vmatpush3.msra.mxu1 %v3322_v56 }
 0x6ee   : > { %12951 = vmatprep.subr.mxu1 %v3321_v57 }
 0x6ef   : > { %12952 = vmatpush3.msra.mxu1 %v3321_v57 }
 0x6f0   : > { %12953 = vmatprep.subr.mxu1 %v3320_v59 }
 0x6f1   : > { %12954 = vmatpush3.msra.mxu1 %v3320_v59  ;;  %v16201_v59 = vmov 0.0  }
 0x6f2   : > { %12955 = vmatprep.subr.mxu1 %v3319_v60 }
 0x6f3   : > { %12956 = vmatpush3.msra.mxu1 %v3319_v60 }
 0x6f4   : > { %12957 = vmatprep.subr.mxu1 %v3318_v61 }
 0x6f5   : > { %12958 = vmatpush3.msra.mxu1 %v3318_v61 }
 0x6f6   : > { %12959 = vmatprep.subr.mxu1 %v3317_v62 }
 0x6f7   : > { %12960 = vmatpush3.msra.mxu1 %v3317_v62 }
 0x6f8   : > { %12961 = vmatprep.subr.mxu1 %v3316_v34 }
 0x6f9   : > { %12962 = vmatpush3.msra.mxu1 %v3316_v34  ;;  %v3979_v34 = vld [vmem:[#allocation22] sm:$0x1] }
 0x6fa   : > { %12963 = vmatprep.subr.mxu1 %v3315_v35 }
 0x6fb   : > { %12964 = vmatpush3.msra.mxu1 %v3315_v35  ;;  %v3902_v35 = vld [vmem:[#allocation26] sm:$0x1] }
 0x6fc   : > { %13010 = vmatprep.subr.mxu1 %v16201_v59 }
 0x79c   : > { %v12883_v5 = vpop.f32.mrf.mxu1 }
 0x79d   : > { %v3219_v9 = vadd.f32 %v12883_v5, %v3048_v1 }
 0x79e   : > { %v3209_v11 = vpop.f32.mrf.mxu1 }
 0x79f   : > { %v3228_v12 = vmul.f32 %v11786_v7, %v3219_v9  ;;  %v3218_v13 = vadd.f32 %v3209_v11, %v3043_v8  ;;  %v3830_v8 = vld [vmem:[#allocation7 + $0x78] sm:$0xff]  ;;  %v16203_v9 = vmov 0.00390625   ;;  %v3828_v11 = vld [vmem:[#allocation7 + $0x68] sm:$0xff] }
 0x7a1   : > { %v3237_v14 = vadd.f32 %v11787_v10, %v3228_v12  ;;  %v3227_v15 = vmul.f32 %v11786_v7, %v3218_v13  ;;  %v3827_v12 = vld [vmem:[#allocation7 + $0x60] sm:$0xff]  ;;  %v3826_v13 = vld [vmem:[#allocation7 + $0x58] sm:$0xff] }
 0x7a3   : > { %v17019_v16 = vmax.f32 %v3237_v14, 0.0  ;;  %v3236_v17 = vadd.f32 %v11787_v10, %v3227_v15  ;;  %v3829_v10 = vld [vmem:[#allocation7 + $0x70] sm:$0xff]  ;;  %v3824_v15 = vld [vmem:[#allocation7 + $0x48] sm:$0xff] }
 0x7a4   : > { %v3825_v14 = vld [vmem:[#allocation7 + $0x50] sm:$0xff] }
 0x7a5   : > { %v17021_v18 = vmax.f32 %v3236_v17, 0.0  ;;  %12884 = vmatprep.subr.mxu0 %v17019_v16  ;;  %v3822_v17 = vld [vmem:[#allocation7 + $0x38] sm:$0xff] }
 0x7a6   : > { %12885 = vmatpush3.msra.mxu0 %v17019_v16 }
 0x7a7   : > { %12886 = vmatprep.subr.mxu0 %v17021_v18 }
 0x7a8   : > { %12887 = vmatpush3.msra.mxu0 %v17021_v18 }
 0x7a9   : > { %12889 = vmatmul.mubr.msk.f32.vlgmr.msra.gmra.mxu0 %vm2182_vm0, %v16956_v6  ;;  %12891 = vmatprep.subr.mxu0 %v17019_v16  ;;  %v3419_v6 = vld [vmem:[#allocation32 + $0xe0] sm:$0xff] }
 0x7aa   : > { %12892 = vmatpush3.msra.mxu0 %v17019_v16  ;;  %12895 = vmatprep.mubr.msk.f32.mxu0 %vm2182_vm0, %v16941_v2  ;;  %v3417_v2 = vld [vmem:[#allocation32 + $0xd0] sm:$0xff] }
 0x7ab   : > { %12893 = vmatprep.subr.mxu0 %v17021_v18 }
 0x7ac   : > { %12894 = vmatpush3.msra.mxu0 %v17021_v18 }
 0x7ad   : > { %12896 = vmatmul.mubr.msk.f32.vlgmr.msra.gmra.mxu0 %vm2182_vm0, %v16947_v3  ;;  %12898 = vmatprep.subr.mxu0 %v3422_v19  ;;  %v3414_v3 = vld [vmem:[#allocation32 + $0xb8] sm:$0xff] }
 0x7ae   : > { %12899 = vmatpush3.msra.mxu0 %v3422_v19  ;;  %v3820_v19 = vld [vmem:[#allocation7 + $0x28] sm:$0xff] }
 0x7af   : > { %12900 = vmatprep.subr.mxu0 %v3421_v20 }
 0x7b0   : > { %12901 = vmatpush3.msra.mxu0 %v3421_v20  ;;  %v3819_v20 = vld [vmem:[#allocation7 + $0x20] sm:$0xff] }
 0x7b1   : > { %12902 = vmatprep.subr.mxu0 %v3420_v21 }
 0x7b2   : > { %12903 = vmatpush3.msra.mxu0 %v3420_v21  ;;  %v3818_v21 = vld [vmem:[#allocation7 + $0x18] sm:$0xff] }
 0x7b3   : > { %12904 = vmatprep.subr.mxu0 %v3419_v6 }
 0x7b4   : > { %12905 = vmatpush3.msra.mxu0 %v3419_v6  ;;  %v3817_v6 = vld [vmem:[#allocation7 + $0x10] sm:$0xff] }
 0x7b5   : > { %12906 = vmatprep.subr.mxu0 %v3418_v24 }
 0x7b6   : > { %12907 = vmatpush3.msra.mxu0 %v3418_v24  ;;  %v3816_v24 = vld [vmem:[#allocation7 + $0x8] sm:$0xff] }
 0x7b7   : > { %12908 = vmatprep.subr.mxu0 %v3417_v2 }
 0x7b8   : > { %12909 = vmatpush3.msra.mxu0 %v3417_v2  ;;  %v3815_v2 = vld [vmem:[#allocation7] sm:$0xff] }
 0x7b9   : > { %12910 = vmatprep.subr.mxu0 %v3416_v25 }
 0x7ba   : > { %12911 = vmatpush3.msra.mxu0 %v3416_v25 }
 0x7bb   : > { %12912 = vmatprep.subr.mxu0 %v3415_v26 }
 0x7bc   : > { %12913 = vmatpush3.msra.mxu0 %v3415_v26 }
 0x7bd   : > { %12914 = vmatprep.subr.mxu0 %v3414_v3 }
 0x7be   : > { %12915 = vmatpush3.msra.mxu0 %v3414_v3  ;;  %v3901_v3 = vld [vmem:[#allocation28] sm:$0xff] }
 0x7bf   : > { %12916 = vmatprep.subr.mxu0 %v3413_v27 }
 0x7c0   : > { %12917 = vmatpush3.msra.mxu0 %v3413_v27  ;;  %v3978_v27 = vld [vmem:[#allocation23] sm:$0xff] }
 0x7c1   : > { %12918 = vmatprep.subr.mxu0 %v3412_v28 }
 0x7c2   : > { %12919 = vmatpush3.msra.mxu0 %v3412_v28 }
 0x7c3   : > { %12920 = vmatprep.subr.mxu0 %v3411_v29 }
 0x7c4   : > { %12921 = vmatpush3.msra.mxu0 %v3411_v29 }
 0x7c5   : > { %12922 = vmatprep.subr.mxu0 %v3410_v30 }
 0x7c6   : > { %12923 = vmatpush3.msra.mxu0 %v3410_v30  ;;  %v4055_v30 = vld [vmem:[#allocation25] sm:$0x3] }
 0x7c7   : > { %12924 = vmatprep.subr.mxu0 %v3409_v31 }
 0x7c8   : > { %12925 = vmatpush3.msra.mxu0 %v3409_v31  ;;  %v4380_v31 = vld [vmem:[#allocation25 + $0x4] sm:$0x3] }
 0x7c9   : > { %12926 = vmatprep.subr.mxu0 %v3408_v32 }
 0x7ca   : > { %12927 = vmatpush3.msra.mxu0 %v3408_v32 }
 0x7cb   : > { %12928 = vmatprep.subr.mxu0 %v3407_v33 }
 0x7cc   : > { %12929 = vmatpush3.msra.mxu0 %v3407_v33 }
 0x7cd   : > { %12968 = vmatprep.subr.mxu0 %v17019_v16 }
 0x869   : > { %v12890_v36 = vpop.f32.mrf.mxu0 }
 0x86b   : > { %v3306_v37 = vpop.f32.mrf.mxu0 }
 0x86c   : > { %12965 = vmatprep.mubr.f32.mxu1 %v3306_v37 }
 0x86d   : > { %v12897_v38 = vpop.f32.mrf.mxu0  ;;  %12966 = vmatmul.mubr.f32.vlgmr.msra.gmra.mxu1 %v12890_v36 }
 0x86e   : > { %13014 = vmatprep.mubr.msk.f32.mxu1 %vm16202_vm2, %v16201_v59 }
 0x86f   : > { %v3397_v39 = vpop.f32.mrf.mxu0 }
 0x870   : > { %12930 = vmatprep.mubr.f32.mxu0 %v3397_v39 }
 0x871   : > { %12931 = vmatmul.mubr.f32.vlgmr.msra.gmra.mxu0 %v12897_v38 }
 0x872   : > { %12969 = vmatpush3.msra.mxu0 %v17019_v16  ;;  %12972 = vmatprep.mubr.msk.f32.mxu0 %vm2182_vm0, %v16968_v22  ;;  %v3659_v22 = vld [vmem:[#allocation32 + $0x150] sm:$0xff]  ;;  %v3823_v16 = vld [vmem:[#allocation7 + $0x40] sm:$0xff] }
 0x873   : > { %12970 = vmatprep.subr.mxu0 %v17021_v18 }
 0x874   : > { %12971 = vmatpush3.msra.mxu0 %v17021_v18  ;;  %v3821_v18 = vld [vmem:[#allocation7 + $0x30] sm:$0xff] }
 0x875   : > { %12973 = vmatmul.mubr.msk.f32.vlgmr.msra.gmra.mxu0 %vm2182_vm0, %v16975_v23  ;;  %12975 = vmatprep.subr.mxu0 %v3664_v4  ;;  %v3656_v23 = vld [vmem:[#allocation32 + $0x138] sm:$0xff] }
 0x876   : > { %12976 = vmatpush3.msra.mxu0 %v3664_v4 }
 0x877   : > { %12977 = vmatprep.subr.mxu0 %v3663_v40 }
 0x878   : > { %12978 = vmatpush3.msra.mxu0 %v3663_v40  ;;  %v4054_v40 = vld [vmem:[#allocation29] sm:$0x3] }
 0x879   : > { %12979 = vmatprep.subr.mxu0 %v3662_v41 }
 0x87a   : > { %12980 = vmatpush3.msra.mxu0 %v3662_v41  ;;  %v4534_v41 = vld [vmem:[#allocation25 + $0x6] sm:$0x3] }
 0x87b   : > { %12981 = vmatprep.subr.mxu0 %v3661_v42 }
 0x87c   : > { %12982 = vmatpush3.msra.mxu0 %v3661_v42 }
 0x87d   : > { %12983 = vmatprep.subr.mxu0 %v3660_v43 }
 0x87e   : > { %12984 = vmatpush3.msra.mxu0 %v3660_v43  ;;  %v4221_v43 = vld [vmem:[#allocation25 + $0x2] sm:$0x3] }
 0x87f   : > { %12985 = vmatprep.subr.mxu0 %v3659_v22 }
 0x880   : > { %12986 = vmatpush3.msra.mxu0 %v3659_v22  ;;  %v4219_v22 = vld [vmem:[#allocation29 + $0x2] sm:$0x3] }
 0x881   : > { %12987 = vmatprep.subr.mxu0 %v3658_v44 }
 0x882   : > { %12988 = vmatpush3.msra.mxu0 %v3658_v44  ;;  %v4378_v44 = vld [vmem:[#allocation29 + $0x4] sm:$0x3] }
 0x883   : > { %12989 = vmatprep.subr.mxu0 %v3657_v45 }
 0x884   : > { %12990 = vmatpush3.msra.mxu0 %v3657_v45  ;;  %v4532_v45 = vld [vmem:[#allocation29 + $0x6] sm:$0x3] }
 0x885   : > { %12991 = vmatprep.subr.mxu0 %v3656_v23 }
 0x886   : > { %12992 = vmatpush3.msra.mxu0 %v3656_v23  ;;  %v17126_v23 = vld [vmem:[#allocation2] sm:$0xff] }
 0x887   : > { %12993 = vmatprep.subr.mxu0 %v3655_v46 }
 0x888   : > { %12994 = vmatpush3.msra.mxu0 %v3655_v46  ;;  %v4700_v46 = vld [vmem:[#allocation10] sm:$0xff] }
 0x889   : > { %12995 = vmatprep.subr.mxu0 %v3654_v47 }
 0x88a   : > { %12996 = vmatpush3.msra.mxu0 %v3654_v47 }
 0x88b   : > { %12997 = vmatprep.subr.mxu0 %v3653_v48 }
 0x88c   : > { %12998 = vmatpush3.msra.mxu0 %v3653_v48 }
 0x88d   : > { %12999 = vmatprep.subr.mxu0 %v3652_v49 }
 0x88e   : > { %13000 = vmatpush3.msra.mxu0 %v3652_v49 }
 0x88f   : > { %13001 = vmatprep.subr.mxu0 %v3651_v50 }
 0x890   : > { %13002 = vmatpush3.msra.mxu0 %v3651_v50 }
 0x891   : > { %13003 = vmatprep.subr.mxu0 %v3650_v51 }
 0x892   : > { %13004 = vmatpush3.msra.mxu0 %v3650_v51 }
 0x893   : > { %13005 = vmatprep.subr.mxu0 %v3649_v52 }
 0x894   : > { %13006 = vmatpush3.msra.mxu0 %v3649_v52  ;;  %v4210_v52 = vld [vmem:[#allocation20] sm:$0x1] }
 0x895   : > { %13052 = vmatprep.subr.mxu0 %v16201_v59 }
 0x92d   : > { %v12967_v60 = vpop.f32.mrf.mxu1 }
 0x92f   : > { %v3564_v62 = vpop.f32.mrf.mxu1 }
 0x931   : > { %v12932_v53 = vpop.f32.mrf.mxu0 }
 0x932   : > { %v3570_v61 = vadd.f32 %v12967_v60, %v12932_v53 }
 0x933   : > { %v3489_v55 = vpop.f32.mrf.mxu0 }
 0x934   : > { %v3565_v0 = vadd.f32 %v3564_v62, %v3489_v55 }
 0x935   : > { %v12974_v56 = vpop.f32.mrf.mxu0 }
 0x937   : > { %v3639_v57 = vpop.f32.mrf.mxu0 }
 0x938   : > { %13007 = vmatprep.mubr.f32.mxu0 %v3639_v57 }
 0x939   : > { %13008 = vmatmul.mubr.f32.vlgmr.msra.gmra.mxu0 %v12974_v56 }
 0x93a   : > { %13054 = vmatprep.mubr.msk.f32.mxu0 %vm16202_vm2, %v16201_v59  ;;  %13053 = vmatpush3.msra.mxu0 %v3901_v3  ;;  %v4682_v3 = vld [vmem:[#allocation20 + $0x3] sm:$0x1] }
 0x93b   : > { %13057 = vmatprep.subr.mxu0 %v16201_v59 }
 0x9f9   : > { %v13009_v63 = vpop.f32.mrf.mxu0 }
 0x9fa   : > { %v17051_v1 = vadd.f32 %v13009_v63, %v3570_v61 }
 0x9fb   : > { %v3731_v5 = vpop.f32.mrf.mxu0 }
 0x9fc   : > { %v17053_v7 = vadd.f32 %v3731_v5, %v3565_v0  ;;  %13011 = vmatpush3.msra.mxu1 %v17051_v1 }
 0x9fd   : > { %13012 = vmatprep.subr.mxu1 %v16201_v59 }
 0x9fe   : > { %13013 = vmatpush3.msra.mxu1 %v17053_v7 }
 0x9ff   : > { %13015 = vmatmul.mubr.msk.f32.vlgmr.msra.gmra.mxu1 %vm2182_vm0, %v16203_v9  ;;  %13017 = vmatprep.subr.mxu1 %v16201_v59 }
 0xa00   : > { %13018 = vmatpush3.msra.mxu1 %v3830_v8  ;;  %13049 = vmatprep.mubr.msk.f32.mxu1 %vm16202_vm2, %v16201_v59  ;;  %v4369_v8 = vld [vmem:[#allocation20 + $0x1] sm:$0x1] }
 0xa01   : > { %13019 = vmatprep.subr.mxu1 %v16201_v59 }
 0xa02   : > { %13020 = vmatpush3.msra.mxu1 %v3829_v10 }
 0xa03   : > { %13021 = vmatprep.subr.mxu1 %v16201_v59 }
 0xa04   : > { %13022 = vmatpush3.msra.mxu1 %v3828_v11 }
 0xa05   : > { %13023 = vmatprep.subr.mxu1 %v16201_v59 }
 0xa06   : > { %13024 = vmatpush3.msra.mxu1 %v3827_v12 }
 0xa07   : > { %13025 = vmatprep.subr.mxu1 %v16201_v59 }
 0xa08   : > { %13026 = vmatpush3.msra.mxu1 %v3826_v13 }
 0xa09   : > { %13027 = vmatprep.subr.mxu1 %v16201_v59 }
 0xa0a   : > { %13028 = vmatpush3.msra.mxu1 %v3825_v14 }
 0xa0b   : > { %13029 = vmatprep.subr.mxu1 %v16201_v59 }
 0xa0c   : > { %13030 = vmatpush3.msra.mxu1 %v3824_v15 }
 0xa0d   : > { %13031 = vmatprep.subr.mxu1 %v16201_v59 }
 0xa0e   : > { %13032 = vmatpush3.msra.mxu1 %v3823_v16 }
 0xa0f   : > { %13033 = vmatprep.subr.mxu1 %v16201_v59 }
 0xa10   : > { %13034 = vmatpush3.msra.mxu1 %v3822_v17 }
 0xa11   : > { %13035 = vmatprep.subr.mxu1 %v16201_v59 }
 0xa12   : > { %13036 = vmatpush3.msra.mxu1 %v3821_v18 }
 0xa13   : > { %13037 = vmatprep.subr.mxu1 %v16201_v59 }
 0xa14   : > { %13038 = vmatpush3.msra.mxu1 %v3820_v19 }
 0xa15   : > { %13039 = vmatprep.subr.mxu1 %v16201_v59 }
 0xa16   : > { %13040 = vmatpush3.msra.mxu1 %v3819_v20 }
 0xa17   : > { %13041 = vmatprep.subr.mxu1 %v16201_v59 }
 0xa18   : > { %13042 = vmatpush3.msra.mxu1 %v3818_v21  ;;  %v4528_v21 = vld [vmem:[#allocation20 + $0x2] sm:$0x1] }
 0xa19   : > { %13043 = vmatprep.subr.mxu1 %v16201_v59 }
 0xa1a   : > { %13044 = vmatpush3.msra.mxu1 %v3817_v6 }
 0xa1b   : > { %13045 = vmatprep.subr.mxu1 %v16201_v59 }
 0xa1c   : > { %13046 = vmatpush3.msra.mxu1 %v3816_v24 }
 0xa1d   : > { %13047 = vmatprep.subr.mxu1 %v16201_v59 }
 0xa1e   : > { %13048 = vmatpush3.msra.mxu1 %v3815_v2 }
 0xa1f   : > { %13082 = vmatprep.subr.mxu1 %v16201_v59 }
 0xabf   : > { %v3811_v25 = vpop.f32.mrf.mxu1 }
 0xac0   : > { %13050 = vmatmul.mubr.f32.vlgmr.msra.gmra.mxu1 %v3811_v25 }
 0xac1   : > { %v13016_v26 = vpop.f32.mrf.mxu1  ;;  %13084 = vmatprep.mubr.msk.f32.mxu1 %vm16202_vm2, %v16201_v59  ;;  %13083 = vmatpush3.msk.msra.mxu1 %vm4060_vm4, %v4380_v31 }
 0xac2   : > { %13092 = vmatprep.subr.mxu1 %v16201_v59 }
 0xb80   : > { %v3897_v28 = vpop.f32.mrf.mxu1 }
 0xb81   : > { %13055 = vmatmul.mubr.msk.f32.vlgmr.msra.gmra.mxu0 %vm3903_vm3, %v3897_v28 }
 0xb82   : > { %v13051_v29 = vpop.f32.mrf.mxu1  ;;  %13058 = vmatpush3.msra.mxu0 %v3978_v27  ;;  %13059 = vmatprep.mubr.msk.f32.mxu0 %vm16202_vm2, %v16201_v59 }
 0xb83   : > { %13062 = vmatprep.subr.mxu0 %v16201_v59 }
 0xb85   : > { %13060 = vmatmul.mubr.f32.vlgmr.msra.gmra.mxu0 %v16201_v59 }
 0xb86   : > { %13064 = vmatprep.mubr.msk.f32.mxu0 %vm16202_vm2, %v16201_v59  ;;  %13063 = vmatpush3.msk.msra.mxu0 %vm4060_vm4, %v4055_v30 }
 0xb87   : > { %13067 = vmatprep.subr.mxu0 %v16201_v59 }
 0xc41   : > { %v3973_v32 = vpop.f32.mrf.mxu0 }
 0xc42   : > { %v3974_v39 = vadd.f32 %v3973_v32, %v3902_v35 }
 0xc43   : > { %v13056_v33 = vpop.f32.mrf.mxu0 }
 0xc44   : > { %v3977_v42 = vmax.f32 %v3974_v39, 0.0 }
 0xc45   : > { %v4049_v36 = vpop.f32.mrf.mxu0 }
 0xc46   : > { %v4050_v37 = vadd.f32 %v4049_v36, %v3979_v34 }
 0xc47   : > { %v13061_v38 = vpop.f32.mrf.mxu0 }
 0xc48   : > { %v4053_v4 = vmax.f32 %v4050_v37, 0.0 }
 0xc4a   : > { %13065 = vmatmul.mubr.msk.f32.vlgmr.msra.gmra.mxu0 %vm4056_vm5, %v4053_v4  ;;  %13085 = vmatmul.mubr.msk.f32.vlgmr.msra.gmra.mxu1 %vm4056_vm5, %v4053_v4 }
 0xc4b   : > { %13068 = vmatpush3.msk.msra.mxu0 %vm4060_vm4, %v4054_v40  ;;  %13069 = vmatprep.mubr.msk.f32.mxu0 %vm16202_vm2, %v16201_v59 }
 0xc4c   : > { %13093 = vmatpush3.msk.msra.mxu1 %vm4060_vm4, %v4534_v41  ;;  %13094 = vmatprep.mubr.msk.f32.mxu1 %vm16202_vm2, %v16201_v59 }
 0xc4d   : > { %13072 = vmatprep.subr.mxu0 %v16201_v59  ;;  %13102 = vmatprep.subr.mxu1 %v16201_v59 }
 0xc4e   : > { %13070 = vmatmul.mubr.msk.f32.vlgmr.msra.gmra.mxu0 %vm4056_vm5, %v3977_v42  ;;  %13095 = vmatmul.mubr.msk.f32.vlgmr.msra.gmra.mxu1 %vm4056_vm5, %v4053_v4 }
 0xc4f   : > { %13073 = vmatpush3.msk.msra.mxu0 %vm4060_vm4, %v4221_v43  ;;  %13074 = vmatprep.mubr.msk.f32.mxu0 %vm16202_vm2, %v16201_v59 }
 0xc50   : > { %13077 = vmatprep.subr.mxu0 %v16201_v59  ;;  %13104 = vmatprep.mubr.msk.f32.mxu1 %vm16202_vm2, %v16201_v59 }
 0xc51   : > { %13103 = vmatpush3.msra.mxu1 %v4700_v46 }
 0xc52   : > { %13075 = vmatmul.mubr.msk.f32.vlgmr.msra.gmra.mxu0 %vm4056_vm5, %v4053_v4 }
 0xc53   : > { %13078 = vmatpush3.msk.msra.mxu0 %vm4060_vm4, %v4219_v22  ;;  %13079 = vmatprep.mubr.msk.f32.mxu0 %vm16202_vm2, %v16201_v59  ;;  %v17137_v22 = vld [vmem:[#allocation2 + $0x10] sm:$0xff] }
 0xc54   : > { %13087 = vmatprep.subr.mxu0 %v16201_v59 }
 0xc56   : > { %13080 = vmatmul.mubr.msk.f32.vlgmr.msra.gmra.mxu0 %vm4056_vm5, %v3977_v42 }
 0xc57   : > { %13088 = vmatpush3.msk.msra.mxu0 %vm4060_vm4, %v4378_v44  ;;  %13089 = vmatprep.mubr.msk.f32.mxu0 %vm16202_vm2, %v16201_v59  ;;  %v4774_v44 = vlaneseq }
 0xc58   : > { %13097 = vmatprep.subr.mxu0 %v16201_v59 }
 0xc5a   : > { %13090 = vmatmul.mubr.msk.f32.vlgmr.msra.gmra.mxu0 %vm4056_vm5, %v3977_v42 }
 0xc5b   : > { %13098 = vmatpush3.msk.msra.mxu0 %vm4060_vm4, %v4532_v45  ;;  %13099 = vmatprep.mubr.msk.f32.mxu0 %vm16202_vm2, %v16201_v59  ;;  %v4775_v45 = vshrl.u32 %v4774_v44, 7  ;;  %v17176_v44 = vld [vmem:[#allocation2 + $0x20] sm:$0xff] }
 0xc5d   : > { %v17141_v46 = vsub.s32 0, %v4775_v45  ;;  %v5224_v45 = vld [vmem:[#allocation40 + $0x168] sm:$0xff] }
 0xc5e   : > { %13100 = vmatmul.mubr.msk.f32.vlgmr.msra.gmra.mxu0 %vm4056_vm5, %v3977_v42 }
 0xc5f   : > { %13111 = vmatprep.mubr.msk.f32.mxu0 %vm2182_vm0, %v17126_v23 }
 0xd0a   : > { %v4130_v47 = vpop.f32.mrf.mxu0  ;;  %v4450_v48 = vpop.f32.mrf.mxu1 }
 0xd0c   : > { %v13066_v49 = vpop.f32.mrf.mxu0  ;;  %v13086_v50 = vpop.f32.mrf.mxu1 }
 0xd0e   : > { %v4206_v51 = vpop.f32.mrf.mxu0  ;;  %v4604_v53 = vpop.f32.mrf.mxu1 }
 0xd0f   : > { %v4207_v55 = vadd.f32 %v4206_v51, %v4130_v47 }
 0xd10   : > { %v13071_v56 = vpop.f32.mrf.mxu0  ;;  %v13096_v57 = vpop.f32.mrf.mxu1 }
 0xd11   : > { %v4211_v60 = vadd.f32 %v4210_v52, %v4207_v55  ;;  %v11813_v52 = vld [vmem:[#allocation44] ss:$0 sm:$0xff]  ;;  %v11814_v56 = vld [vmem:[#allocation43] ss:$0 sm:$0xff] }
 0xd12   : > { %v4291_v61 = vpop.f32.mrf.mxu0 }
 0xd13   : > { %v4212_v62 = vsub.f32 0.0, %v4211_v60 }
 0xd14   : > { %v13076_v63 = vpop.f32.mrf.mxu0 }
 0xd15   : > { %v4213_v0 = vmul.f32 1.442695, %v4212_v62 }
 0xd16   : > { %v4364_v5 = vpop.f32.mrf.mxu0 }
 0xd17   : > { %v4365_v10 = vadd.f32 %v4364_v5, %v4291_v61  ;;  %14658 = vpow2.f32 %v4213_v0  ;;  %v4983_v5 = vld [vmem:[#allocation40 + $0xf0] sm:$0xff] }
 0xd18   : > { %v13081_v11 = vpop.f32.mrf.mxu0 }
 0xd19   : > { %v4370_v12 = vadd.f32 %v4369_v8, %v4365_v10  ;;  %v4891_v8 = vld [vmem:[#allocation40 + $0x70] sm:$0xff]  ;;  %v4982_v10 = vld [vmem:[#allocation40 + $0xe8] sm:$0xff] }
 0xd1a   : > { %v4523_v13 = vpop.f32.mrf.mxu0  ;;  %v4890_v11 = vld [vmem:[#allocation40 + $0x68] sm:$0xff] }
 0xd1b   : > { %v4371_v14 = vsub.f32 0.0, %v4370_v12  ;;  %v4524_v20 = vadd.f32 %v4523_v13, %v4450_v48  ;;  %v4981_v12 = vld [vmem:[#allocation40 + $0xe0] sm:$0xff] }
 0xd1c   : > { %v13091_v15 = vpop.f32.mrf.mxu0  ;;  %v4889_v13 = vld [vmem:[#allocation40 + $0x60] sm:$0xff] }
 0xd1d   : > { %v4372_v16 = vmul.f32 1.442695, %v4371_v14  ;;  %v4529_v24 = vadd.f32 %v4528_v21, %v4524_v20  ;;  %v4980_v14 = vld [vmem:[#allocation40 + $0xd8] sm:$0xff]  ;;  %v4977_v20 = vld [vmem:[#allocation40 + $0xc0] sm:$0xff] }
 0xd1e   : > { %v4677_v17 = vpop.f32.mrf.mxu0  ;;  %v4888_v15 = vld [vmem:[#allocation40 + $0x58] sm:$0xff]  ;;  %v4885_v21 = vld [vmem:[#allocation40 + $0x40] sm:$0xff] }
 0xd1f   : > { %14660 = vpow2.f32 %v4372_v16  ;;  %v4678_v26 = vadd.f32 %v4677_v17, %v4604_v53  ;;  %v4979_v16 = vld [vmem:[#allocation40 + $0xd0] sm:$0xff] }
 0xd20   : > { %v13101_v18 = vpop.f32.mrf.mxu0  ;;  %v4887_v17 = vld [vmem:[#allocation40 + $0x50] sm:$0xff] }
 0xd21   : > { %v4683_v27 = vadd.f32 %v4682_v3, %v4678_v26  ;;  %v4978_v18 = vld [vmem:[#allocation40 + $0xc8] sm:$0xff] }
 0xd22   : > { %v4974_v26 = vld [vmem:[#allocation40 + $0xa8] sm:$0xff] }
 0xd23   : > { %v4684_v28 = vsub.f32 0.0, %v4683_v27  ;;  %v4882_v3 = vld [vmem:[#allocation40 + $0x28] sm:$0xff]  ;;  %v4973_v27 = vld [vmem:[#allocation40 + $0xa0] sm:$0xff] }
 0xd24   : > { %v14659_v19 = vpop.eup %14658 }
 0xd25   : > { %v4215_v6 = vadd.f32 1.0, %v14659_v19  ;;  %v4685_v32 = vmul.f32 1.442695, %v4684_v28  ;;  %v4886_v19 = vld [vmem:[#allocation40 + $0x48] sm:$0xff]  ;;  %v4881_v28 = vld [vmem:[#allocation40 + $0x20] sm:$0xff] }
 0xd27   : > { %14662 = vrcp.f32 %v4215_v6  ;;  %v4976_v6 = vld [vmem:[#allocation40 + $0xb8] sm:$0xff] }
 0xd28   : > { %14664 = vtanh.f32 %v4529_v24  ;;  %v4884_v24 = vld [vmem:[#allocation40 + $0x38] sm:$0xff] }
 0xd2c   : > { %v14661_v2 = vpop.eup %14660 }
 0xd2d   : > { %v4374_v25 = vadd.f32 1.0, %v14661_v2  ;;  %v4975_v2 = vld [vmem:[#allocation40 + $0xb0] sm:$0xff] }
 0xd2f   : > { %14666 = vrcp.f32 %v4374_v25  ;;  %v4883_v25 = vld [vmem:[#allocation40 + $0x30] sm:$0xff] }
 0xd30   : > { %14668 = vpow2.f32 %v4685_v32  ;;  %v4879_v32 = vld [vmem:[#allocation40 + $0x10] sm:$0xff] }
 0xd34   : > { %v14663_v29 = vpop.eup %14662 }
 0xd35   : > { %v14665_v30 = vpop.eup %14664 }
 0xd36   : > { %v4691_v34 = vmul.f32 %v14665_v30, %v14663_v29  ;;  %v4972_v29 = vld [vmem:[#allocation40 + $0x98] sm:$0xff] }
 0xd37   : > { %v4880_v30 = vld [vmem:[#allocation40 + $0x18] sm:$0xff] }
 0xd3c   : > { %v14667_v31 = vpop.eup %14666 }
 0xd3d   : > { %v4690_v33 = vmul.f32 0.0, %v14667_v31  ;;  %v14669_v38 = vpop.eup %14668  ;;  %v4971_v31 = vld [vmem:[#allocation40 + $0x90] sm:$0xff] }
 0xd3e   : > { %v4687_v39 = vadd.f32 1.0, %v14669_v38  ;;  %v5226_v38 = vld [vmem:[#allocation40 + $0x178] sm:$0xff] }
 0xd3f   : > { %v17130_v35 = vadd.f32 %v4691_v34, %v4690_v33  ;;  %v4970_v33 = vld [vmem:[#allocation40 + $0x88] sm:$0xff]  ;;  %v4969_v34 = vld [vmem:[#allocation40 + $0x80] sm:$0xff] }
 0xd41   : > { %v4693_v36 = vsub.f32 0.0, %v17130_v35 }
 0xd43   : > { %v4694_v37 = vmul.f32 1.442695, %v4693_v36  ;;  %v4878_v36 = vld [vmem:[#allocation40 + $0x8] sm:$0xff] }
 0xd45   : > { %14670 = vpow2.f32 %v4694_v37  ;;  %v4877_v37 = vld [vmem:[#allocation40] sm:$0xff] }
 0xd46   : > { %14672 = vrcp.f32 %v4687_v39 }
 0xd52   : > { %v14671_v4 = vpop.eup %14670 }
 0xd53   : > { %v4696_v40 = vadd.f32 1.0, %v14671_v4  ;;  %v14673_v41 = vpop.eup %14672 }
 0xd55   : > { %14674 = vrcp.f32 %v4696_v40 }
 0xd62   : > { %v14675_v42 = vpop.eup %14674 }
 0xd63   : > { %v17133_v43 = vmul.f32 %v14675_v42, %v14673_v41  ;;  %v5225_v42 = vld [vmem:[#allocation40 + $0x170] sm:$0xff] }
 0xd65   : > { %13105 = vmatmul.mubr.msk.f32.vlgmr.msra.gmra.mxu1 %vm3903_vm3, %v17133_v43 }
 0xd66   : > { %13118 = vmatprep.mubr.msk.f32.mxu1 %vm2182_vm0, %v17137_v22 }
 0xe25   : > { %v4770_v47 = vpop.f32.mrf.mxu1 }
 0xe26   : > { %v4777_v48 = vrot.slane %v4770_v47, %v17141_v46  ;;  %v17182_v47 = vld [vmem:[#allocation2 + $0x28] sm:$0xff] }
 0xe27   : > { %v13106_v49 = vpop.f32.mrf.mxu1 }
 0xe28   : > { %v4778_v50 = vmul.f32 %v4777_v48, %v17053_v7  ;;  %v4779_v51 = vmul.f32 %v4777_v48, %v17051_v1  ;;  %v17166_v1 = vld [vmem:[#allocation2 + $0x8] sm:$0xff]  ;;  %v17170_v7 = vld [vmem:[#allocation2 + $0x18] sm:$0xff] }
 0xe29   : > { %v5223_v48 = vld [vmem:[#allocation40 + $0x160] sm:$0xff]  ;;  %v5222_v49 = vld [vmem:[#allocation40 + $0x158] sm:$0xff] }
 0xe2a   : > { %v17147_v53 = vadd.f32 %v4778_v50, %v16988_v58  ;;  %v17150_v55 = vadd.f32 %v4779_v51, %v16985_v54  ;;  %v4984_v54 = vld [vmem:[#allocation40 + $0xf8] sm:$0xff]  ;;  %v5221_v50 = vld [vmem:[#allocation40 + $0x150] sm:$0xff]  ;;  %v5220_v51 = vld [vmem:[#allocation40 + $0x148] sm:$0xff] }
 0xe2b   : > { %v4892_v58 = vld [vmem:[#allocation40 + $0x78] sm:$0xff] }
 0xe2c   : > { %v4789_v57 = vmul.f32 %v11813_v52, %v17147_v53  ;;  %v4790_v60 = vmul.f32 %v11813_v52, %v17150_v55  ;;  %v5219_v52 = vld [vmem:[#allocation40 + $0x140] sm:$0xff] }
 0xe2e   : > { %v4798_v61 = vadd.f32 %v11814_v56, %v4789_v57  ;;  %v4799_v62 = vadd.f32 %v11814_v56, %v4790_v60  ;;  %v5218_v56 = vld [vmem:[#allocation40 + $0x138] sm:$0xff]  ;;  %v5217_v57 = vld [vmem:[#allocation40 + $0x130] sm:$0xff]  ;;  %v5215_v60 = vld [vmem:[#allocation40 + $0x120] sm:$0xff] }
 0xe30   : > { %v17154_v63 = vmax.f32 %v4799_v62, 0.0  ;;  %v17156_v0 = vmax.f32 %v4798_v61, 0.0  ;;  %v5214_v61 = vld [vmem:[#allocation40 + $0x118] sm:$0xff]  ;;  %v5213_v62 = vld [vmem:[#allocation40 + $0x110] sm:$0xff] }
 0xe32   : > { %13107 = vmatprep.subr.mxu0 %v17154_v63  ;;  %13114 = vmatprep.subr.mxu1 %v17154_v63 }
 0xe33   : > { %13108 = vmatpush3.msra.mxu0 %v17154_v63  ;;  %13115 = vmatpush3.msra.mxu1 %v17154_v63 }
 0xe34   : > { %13109 = vmatprep.subr.mxu0 %v17156_v0  ;;  %13116 = vmatprep.subr.mxu1 %v17156_v0 }
 0xe35   : > { %13110 = vmatpush3.msra.mxu0 %v17156_v0  ;;  %13117 = vmatpush3.msra.mxu1 %v17156_v0 }
 0xe36   : > { %13112 = vmatmul.mubr.msk.f32.vlgmr.msra.gmra.mxu0 %vm2182_vm0, %v17166_v1  ;;  %13119 = vmatmul.mubr.msk.f32.vlgmr.msra.gmra.mxu1 %vm2182_vm0, %v17170_v7 }
 0xe37   : > { %13121 = vmatprep.subr.mxu0 %v4984_v54  ;;  %13156 = vmatprep.subr.mxu1 %v4892_v58 }
 0xe38   : > { %13122 = vmatpush3.msra.mxu0 %v4984_v54  ;;  %13157 = vmatpush3.msra.mxu1 %v4892_v58 }
 0xe39   : > { %13123 = vmatprep.subr.mxu0 %v4983_v5  ;;  %13158 = vmatprep.subr.mxu1 %v4891_v8 }
 0xe3a   : > { %13124 = vmatpush3.msra.mxu0 %v4983_v5  ;;  %13159 = vmatpush3.msra.mxu1 %v4891_v8 }
 0xe3b   : > { %13125 = vmatprep.subr.mxu0 %v4982_v10  ;;  %13160 = vmatprep.subr.mxu1 %v4890_v11 }
 0xe3c   : > { %13126 = vmatpush3.msra.mxu0 %v4982_v10  ;;  %13161 = vmatpush3.msra.mxu1 %v4890_v11  ;;  %v5414_v10 = vld [vmem:[#allocation41 + $0x78] sm:$0xff]  ;;  %v5413_v11 = vld [vmem:[#allocation41 + $0x70] sm:$0xff] }
 0xe3d   : > { %13127 = vmatprep.subr.mxu0 %v4981_v12  ;;  %13162 = vmatprep.subr.mxu1 %v4889_v13 }
 0xe3e   : > { %13128 = vmatpush3.msra.mxu0 %v4981_v12  ;;  %13163 = vmatpush3.msra.mxu1 %v4889_v13  ;;  %v5412_v12 = vld [vmem:[#allocation41 + $0x68] sm:$0xff]  ;;  %v5411_v13 = vld [vmem:[#allocation41 + $0x60] sm:$0xff] }
 0xe3f   : > { %13129 = vmatprep.subr.mxu0 %v4980_v14  ;;  %13164 = vmatprep.subr.mxu1 %v4888_v15 }
 0xe40   : > { %13130 = vmatpush3.msra.mxu0 %v4980_v14  ;;  %13165 = vmatpush3.msra.mxu1 %v4888_v15  ;;  %v5410_v14 = vld [vmem:[#allocation41 + $0x58] sm:$0xff]  ;;  %v5409_v15 = vld [vmem:[#allocation41 + $0x50] sm:$0xff] }
 0xe41   : > { %13131 = vmatprep.subr.mxu0 %v4979_v16  ;;  %13166 = vmatprep.subr.mxu1 %v4887_v17 }
 0xe42   : > { %13132 = vmatpush3.msra.mxu0 %v4979_v16  ;;  %13167 = vmatpush3.msra.mxu1 %v4887_v17  ;;  %v5408_v16 = vld [vmem:[#allocation41 + $0x48] sm:$0xff]  ;;  %v5407_v17 = vld [vmem:[#allocation41 + $0x40] sm:$0xff] }
 0xe43   : > { %13133 = vmatprep.subr.mxu0 %v4978_v18  ;;  %13168 = vmatprep.subr.mxu1 %v4886_v19 }
 0xe44   : > { %13134 = vmatpush3.msra.mxu0 %v4978_v18  ;;  %13169 = vmatpush3.msra.mxu1 %v4886_v19  ;;  %v5406_v18 = vld [vmem:[#allocation41 + $0x38] sm:$0xff]  ;;  %v5405_v19 = vld [vmem:[#allocation41 + $0x30] sm:$0xff] }
 0xe45   : > { %13135 = vmatprep.subr.mxu0 %v4977_v20  ;;  %13170 = vmatprep.subr.mxu1 %v4885_v21 }
 0xe46   : > { %13136 = vmatpush3.msra.mxu0 %v4977_v20  ;;  %13171 = vmatpush3.msra.mxu1 %v4885_v21  ;;  %v5404_v20 = vld [vmem:[#allocation41 + $0x28] sm:$0xff]  ;;  %v5403_v21 = vld [vmem:[#allocation41 + $0x20] sm:$0xff] }
 0xe47   : > { %13137 = vmatprep.subr.mxu0 %v4976_v6  ;;  %13172 = vmatprep.subr.mxu1 %v4884_v24 }
 0xe48   : > { %13138 = vmatpush3.msra.mxu0 %v4976_v6  ;;  %13173 = vmatpush3.msra.mxu1 %v4884_v24  ;;  %v5402_v6 = vld [vmem:[#allocation41 + $0x18] sm:$0xff]  ;;  %v5401_v24 = vld [vmem:[#allocation41 + $0x10] sm:$0xff] }
 0xe49   : > { %13139 = vmatprep.subr.mxu0 %v4975_v2  ;;  %13174 = vmatprep.subr.mxu1 %v4883_v25 }
 0xe4a   : > { %13140 = vmatpush3.msra.mxu0 %v4975_v2  ;;  %13175 = vmatpush3.msra.mxu1 %v4883_v25 }
 0xe4b   : > { %13141 = vmatprep.subr.mxu0 %v4974_v26  ;;  %13176 = vmatprep.subr.mxu1 %v4882_v3 }
 0xe4c   : > { %13142 = vmatpush3.msra.mxu0 %v4974_v26  ;;  %13177 = vmatpush3.msra.mxu1 %v4882_v3 }
 0xe4d   : > { %13143 = vmatprep.subr.mxu0 %v4973_v27  ;;  %13178 = vmatprep.subr.mxu1 %v4881_v28 }
 0xe4e   : > { %13144 = vmatpush3.msra.mxu0 %v4973_v27  ;;  %13179 = vmatpush3.msra.mxu1 %v4881_v28  ;;  %v11821_v27 = vld [vmem:[#allocation47] ss:$0 sm:$0xff] }
 0xe4f   : > { %13145 = vmatprep.subr.mxu0 %v4972_v29  ;;  %13180 = vmatprep.subr.mxu1 %v4880_v30 }
 0xe50   : > { %13146 = vmatpush3.msra.mxu0 %v4972_v29  ;;  %13181 = vmatpush3.msra.mxu1 %v4880_v30  ;;  %v11822_v30 = vld [vmem:[#allocation46] ss:$0 sm:$0xff] }
 0xe51   : > { %13147 = vmatprep.subr.mxu0 %v4971_v31  ;;  %13182 = vmatprep.subr.mxu1 %v4879_v32 }
 0xe52   : > { %13148 = vmatpush3.msra.mxu0 %v4971_v31  ;;  %13183 = vmatpush3.msra.mxu1 %v4879_v32 }
 0xe53   : > { %13149 = vmatprep.subr.mxu0 %v4970_v33  ;;  %13184 = vmatprep.subr.mxu1 %v4878_v36 }
 0xe54   : > { %13150 = vmatpush3.msra.mxu0 %v4970_v33  ;;  %13185 = vmatpush3.msra.mxu1 %v4878_v36 }
 0xe55   : > { %13151 = vmatprep.subr.mxu0 %v4969_v34  ;;  %13186 = vmatprep.subr.mxu1 %v4877_v37 }
 0xe56   : > { %13152 = vmatpush3.msra.mxu0 %v4969_v34  ;;  %13187 = vmatpush3.msra.mxu1 %v4877_v37 }
 0xe57   : > { %13191 = vmatprep.subr.mxu0 %v17154_v63  ;;  %13198 = vmatprep.subr.mxu1 %v5226_v38 }
 0xef6   : > { %v13113_v39 = vpop.f32.mrf.mxu0  ;;  %v13120_v4 = vpop.f32.mrf.mxu1 }
 0xef8   : > { %v4868_v40 = vpop.f32.mrf.mxu0  ;;  %v4959_v41 = vpop.f32.mrf.mxu1 }
 0xef9   : > { %13153 = vmatprep.mubr.f32.mxu0 %v4959_v41  ;;  %13188 = vmatprep.mubr.f32.mxu1 %v4868_v40  ;;  %v5505_v40 = vld [vmem:[#allocation41 + $0xf0] sm:$0xff]  ;;  %v5504_v41 = vld [vmem:[#allocation41 + $0xe8] sm:$0xff] }
 0xefa   : > { %13154 = vmatmul.mubr.f32.vlgmr.msra.gmra.mxu0 %v13120_v4  ;;  %13189 = vmatmul.mubr.f32.vlgmr.msra.gmra.mxu1 %v13113_v39  ;;  %v5506_v4 = vld [vmem:[#allocation41 + $0xf8] sm:$0xff] }
 0xefb   : > { %13192 = vmatpush3.msra.mxu0 %v17154_v63  ;;  %13195 = vmatprep.mubr.msk.f32.mxu0 %vm2182_vm0, %v17176_v44  ;;  %v5212_v63 = vld [vmem:[#allocation40 + $0x108] sm:$0xff] }
 0xefc   : > { %13193 = vmatprep.subr.mxu0 %v17156_v0  ;;  %13199 = vmatpush3.msra.mxu1 %v5226_v38 }
 0xefd   : > { %13194 = vmatpush3.msra.mxu0 %v17156_v0  ;;  %13200 = vmatprep.subr.mxu1 %v5225_v42  ;;  %v5211_v0 = vld [vmem:[#allocation40 + $0x100] sm:$0xff] }
 0xefe   : > { %13196 = vmatmul.mubr.msk.f32.vlgmr.msra.gmra.mxu0 %vm2182_vm0, %v17182_v47  ;;  %13201 = vmatpush3.msra.mxu1 %v5225_v42  ;;  %v5502_v42 = vld [vmem:[#allocation41 + $0xd8] sm:$0xff] }
 0xeff   : > { %13202 = vmatprep.subr.mxu1 %v5224_v45  ;;  %13237 = vmatprep.mubr.msk.f32.mxu0 %vm2182_vm0, %v17126_v23  ;;  %v5216_v23 = vld [vmem:[#allocation40 + $0x128] sm:$0xff] }
 0xf00   : > { %13203 = vmatpush3.msra.mxu1 %v5224_v45  ;;  %v5500_v45 = vld [vmem:[#allocation41 + $0xc8] sm:$0xff] }
 0xf01   : > { %13204 = vmatprep.subr.mxu1 %v5223_v48 }
 0xf02   : > { %13205 = vmatpush3.msra.mxu1 %v5223_v48  ;;  %v5499_v48 = vld [vmem:[#allocation41 + $0xc0] sm:$0xff] }
 0xf03   : > { %13206 = vmatprep.subr.mxu1 %v5222_v49 }
 0xf04   : > { %13207 = vmatpush3.msra.mxu1 %v5222_v49  ;;  %v5497_v49 = vld [vmem:[#allocation41 + $0xb0] sm:$0xff] }
 0xf05   : > { %13208 = vmatprep.subr.mxu1 %v5221_v50 }
 0xf06   : > { %13209 = vmatpush3.msra.mxu1 %v5221_v50  ;;  %v5496_v50 = vld [vmem:[#allocation41 + $0xa8] sm:$0xff] }
 0xf07   : > { %13210 = vmatprep.subr.mxu1 %v5220_v51 }
 0xf08   : > { %13211 = vmatpush3.msra.mxu1 %v5220_v51  ;;  %v5495_v51 = vld [vmem:[#allocation41 + $0xa0] sm:$0xff] }
 0xf09   : > { %13212 = vmatprep.subr.mxu1 %v5219_v52 }
 0xf0a   : > { %13213 = vmatpush3.msra.mxu1 %v5219_v52  ;;  %v5494_v52 = vld [vmem:[#allocation41 + $0x98] sm:$0xff] }
 0xf0b   : > { %13214 = vmatprep.subr.mxu1 %v5218_v56 }
 0xf0c   : > { %13215 = vmatpush3.msra.mxu1 %v5218_v56  ;;  %v5493_v56 = vld [vmem:[#allocation41 + $0x90] sm:$0xff] }
 0xf0d   : > { %13216 = vmatprep.subr.mxu1 %v5217_v57 }
 0xf0e   : > { %13217 = vmatpush3.msra.mxu1 %v5217_v57  ;;  %v5492_v57 = vld [vmem:[#allocation41 + $0x88] sm:$0xff] }
 0xf0f   : > { %13218 = vmatprep.subr.mxu1 %v5216_v23 }
 0xf10   : > { %13219 = vmatpush3.msra.mxu1 %v5216_v23  ;;  %v5491_v23 = vld [vmem:[#allocation41 + $0x80] sm:$0xff] }
 0xf11   : > { %13220 = vmatprep.subr.mxu1 %v5215_v60 }
 0xf12   : > { %13221 = vmatpush3.msra.mxu1 %v5215_v60  ;;  %v5400_v60 = vld [vmem:[#allocation41 + $0x8] sm:$0xff] }
 0xf13   : > { %13222 = vmatprep.subr.mxu1 %v5214_v61 }
 0xf14   : > { %13223 = vmatpush3.msra.mxu1 %v5214_v61  ;;  %v5399_v61 = vld [vmem:[#allocation41] sm:$0xff] }
 0xf15   : > { %13224 = vmatprep.subr.mxu1 %v5213_v62 }
 0xf16   : > { %13225 = vmatpush3.msra.mxu1 %v5213_v62 }
 0xf17   : > { %13226 = vmatprep.subr.mxu1 %v5212_v63 }
 0xf18   : > { %13227 = vmatpush3.msra.mxu1 %v5212_v63 }
 0xf19   : > { %13228 = vmatprep.subr.mxu1 %v5211_v0 }
 0xf1a   : > { %13229 = vmatpush3.msra.mxu1 %v5211_v0 }
 0xf1b   : > { %13282 = vmatprep.subr.mxu1 %v5414_v10 }
 0xfba   : > { %v13155_v54 = vpop.f32.mrf.mxu0  ;;  %v13190_v2 = vpop.f32.mrf.mxu1 }
 0xfbb   : > { %v5132_v26 = vadd.f32 %v13190_v2, %v13155_v54 }
 0xfbc   : > { %v5051_v58 = vpop.f32.mrf.mxu0  ;;  %v5126_v25 = vpop.f32.mrf.mxu1 }
 0xfbd   : > { %v5127_v28 = vadd.f32 %v5126_v25, %v5051_v58  ;;  %v5748_v58 = vld [vmem:[#allocation41 + $0x178] sm:$0xff]  ;;  %v14736_v25 = vld [vmem:[#allocation28] sm:$0xff] }
 0xfbe   : > { %v13197_v5 = vpop.f32.mrf.mxu0 }
 0xfc0   : > { %v5201_v8 = vpop.f32.mrf.mxu0 }
 0xfc1   : > { %13230 = vmatprep.mubr.f32.mxu1 %v5201_v8  ;;  %v5746_v8 = vld [vmem:[#allocation41 + $0x168] sm:$0xff] }
 0xfc2   : > { %13231 = vmatmul.mubr.f32.vlgmr.msra.gmra.mxu1 %v13197_v5  ;;  %v5747_v5 = vld [vmem:[#allocation41 + $0x170] sm:$0xff] }
 0xfc3   : > { %13283 = vmatpush3.msra.mxu1 %v5414_v10  ;;  %v5745_v10 = vld [vmem:[#allocation41 + $0x160] sm:$0xff] }
 0xfc4   : > { %13284 = vmatprep.subr.mxu1 %v5413_v11 }
 0xfc5   : > { %13285 = vmatpush3.msra.mxu1 %v5413_v11  ;;  %v5744_v11 = vld [vmem:[#allocation41 + $0x158] sm:$0xff] }
 0xfc6   : > { %13286 = vmatprep.subr.mxu1 %v5412_v12 }
 0xfc7   : > { %13287 = vmatpush3.msra.mxu1 %v5412_v12  ;;  %v5742_v12 = vld [vmem:[#allocation41 + $0x148] sm:$0xff] }
 0xfc8   : > { %13288 = vmatprep.subr.mxu1 %v5411_v13 }
 0xfc9   : > { %13289 = vmatpush3.msra.mxu1 %v5411_v13  ;;  %v5741_v13 = vld [vmem:[#allocation41 + $0x140] sm:$0xff] }
 0xfca   : > { %13290 = vmatprep.subr.mxu1 %v5410_v14 }
 0xfcb   : > { %13291 = vmatpush3.msra.mxu1 %v5410_v14  ;;  %v5739_v14 = vld [vmem:[#allocation41 + $0x130] sm:$0xff] }
 0xfcc   : > { %13292 = vmatprep.subr.mxu1 %v5409_v15 }
 0xfcd   : > { %13293 = vmatpush3.msra.mxu1 %v5409_v15  ;;  %v5738_v15 = vld [vmem:[#allocation41 + $0x128] sm:$0xff] }
 0xfce   : > { %13294 = vmatprep.subr.mxu1 %v5408_v16 }
 0xfcf   : > { %13295 = vmatpush3.msra.mxu1 %v5408_v16  ;;  %v5737_v16 = vld [vmem:[#allocation41 + $0x120] sm:$0xff] }
 0xfd0   : > { %13296 = vmatprep.subr.mxu1 %v5407_v17 }
 0xfd1   : > { %13297 = vmatpush3.msra.mxu1 %v5407_v17  ;;  %v5736_v17 = vld [vmem:[#allocation41 + $0x118] sm:$0xff] }
 0xfd2   : > { %13298 = vmatprep.subr.mxu1 %v5406_v18 }
 0xfd3   : > { %13299 = vmatpush3.msra.mxu1 %v5406_v18  ;;  %v5735_v18 = vld [vmem:[#allocation41 + $0x110] sm:$0xff] }
 0xfd4   : > { %13300 = vmatprep.subr.mxu1 %v5405_v19 }
 0xfd5   : > { %13301 = vmatpush3.msra.mxu1 %v5405_v19  ;;  %v5734_v19 = vld [vmem:[#allocation41 + $0x108] sm:$0xff] }
 0xfd6   : > { %13302 = vmatprep.subr.mxu1 %v5404_v20 }
 0xfd7   : > { %13303 = vmatpush3.msra.mxu1 %v5404_v20  ;;  %v5733_v20 = vld [vmem:[#allocation41 + $0x100] sm:$0xff] }
 0xfd8   : > { %13304 = vmatprep.subr.mxu1 %v5403_v21 }
 0xfd9   : > { %13305 = vmatpush3.msra.mxu1 %v5403_v21 }
 0xfda   : > { %13306 = vmatprep.subr.mxu1 %v5402_v6 }
 0xfdb   : > { %13307 = vmatpush3.msra.mxu1 %v5402_v6 }
 0xfdc   : > { %13308 = vmatprep.subr.mxu1 %v5401_v24 }
 0xfdd   : > { %13309 = vmatpush3.msra.mxu1 %v5401_v24 }
 0xfde   : > { %13310 = vmatprep.subr.mxu1 %v5400_v60 }
 0xfdf   : > { %13311 = vmatpush3.msra.mxu1 %v5400_v60 }
 0xfe0   : > { %13312 = vmatprep.subr.mxu1 %v5399_v61 }
 0xfe1   : > { %13313 = vmatpush3.msra.mxu1 %v5399_v61 }
 0xfe2   : > { %13359 = vmatprep.subr.mxu1 %v16201_v59 }
0x1082   : > { %v13232_v3 = vpop.f32.mrf.mxu1 }
0x1083   : > { %v5303_v29 = vadd.f32 %v13232_v3, %v5132_v26 }
0x1084   : > { %v5293_v31 = vpop.f32.mrf.mxu1 }
0x1085   : > { %v5312_v32 = vmul.f32 %v11821_v27, %v5303_v29  ;;  %v5302_v33 = vadd.f32 %v5293_v31, %v5127_v28 }
0x1087   : > { %v5321_v34 = vadd.f32 %v11822_v30, %v5312_v32  ;;  %v5311_v36 = vmul.f32 %v11821_v27, %v5302_v33  ;;  %v14737_v33 = vld [vmem:[#allocation7 + $0x78] sm:$0xff] }
0x1089   : > { %v17188_v37 = vmax.f32 %v5321_v34, 0.0  ;;  %v5320_v38 = vadd.f32 %v11822_v30, %v5311_v36  ;;  %v14738_v34 = vld [vmem:[#allocation7 + $0x70] sm:$0xff]  ;;  %v14739_v36 = vld [vmem:[#allocation7 + $0x68] sm:$0xff] }
0x108b   : > { %v17190_v39 = vmax.f32 %v5320_v38, 0.0  ;;  %13233 = vmatprep.subr.mxu0 %v17188_v37  ;;  %v14742_v38 = vld [vmem:[#allocation7 + $0x50] sm:$0xff] }
0x108c   : > { %13234 = vmatpush3.msra.mxu0 %v17188_v37 }
0x108d   : > { %13235 = vmatprep.subr.mxu0 %v17190_v39 }
0x108e   : > { %13236 = vmatpush3.msra.mxu0 %v17190_v39 }
0x108f   : > { %13238 = vmatmul.mubr.msk.f32.vlgmr.msra.gmra.mxu0 %vm2182_vm0, %v17166_v1  ;;  %13240 = vmatprep.subr.mxu0 %v17188_v37  ;;  %v5503_v1 = vld [vmem:[#allocation41 + $0xe0] sm:$0xff] }
0x1090   : > { %13241 = vmatpush3.msra.mxu0 %v17188_v37  ;;  %13244 = vmatprep.mubr.msk.f32.mxu0 %vm2182_vm0, %v17137_v22  ;;  %v5501_v22 = vld [vmem:[#allocation41 + $0xd0] sm:$0xff] }
0x1091   : > { %13242 = vmatprep.subr.mxu0 %v17190_v39 }
0x1092   : > { %13243 = vmatpush3.msra.mxu0 %v17190_v39 }
0x1093   : > { %13245 = vmatmul.mubr.msk.f32.vlgmr.msra.gmra.mxu0 %vm2182_vm0, %v17170_v7  ;;  %13247 = vmatprep.subr.mxu0 %v5506_v4  ;;  %v5498_v7 = vld [vmem:[#allocation41 + $0xb8] sm:$0xff] }
0x1094   : > { %13248 = vmatpush3.msra.mxu0 %v5506_v4  ;;  %v14744_v4 = vld [vmem:[#allocation7 + $0x40] sm:$0xff] }
0x1095   : > { %13249 = vmatprep.subr.mxu0 %v5505_v40 }
0x1096   : > { %13250 = vmatpush3.msra.mxu0 %v5505_v40  ;;  %v14745_v40 = vld [vmem:[#allocation7 + $0x38] sm:$0xff] }
0x1097   : > { %13251 = vmatprep.subr.mxu0 %v5504_v41 }
0x1098   : > { %13252 = vmatpush3.msra.mxu0 %v5504_v41  ;;  %v14746_v41 = vld [vmem:[#allocation7 + $0x30] sm:$0xff] }
0x1099   : > { %13253 = vmatprep.subr.mxu0 %v5503_v1 }
0x109a   : > { %13254 = vmatpush3.msra.mxu0 %v5503_v1  ;;  %v14747_v1 = vld [vmem:[#allocation7 + $0x28] sm:$0xff] }
0x109b   : > { %13255 = vmatprep.subr.mxu0 %v5502_v42 }
0x109c   : > { %13256 = vmatpush3.msra.mxu0 %v5502_v42  ;;  %v14748_v42 = vld [vmem:[#allocation7 + $0x20] sm:$0xff] }
0x109d   : > { %13257 = vmatprep.subr.mxu0 %v5501_v22 }
0x109e   : > { %13258 = vmatpush3.msra.mxu0 %v5501_v22  ;;  %v14749_v22 = vld [vmem:[#allocation7 + $0x18] sm:$0xff] }
0x109f   : > { %13259 = vmatprep.subr.mxu0 %v5500_v45 }
0x10a0   : > { %13260 = vmatpush3.msra.mxu0 %v5500_v45  ;;  %v14750_v45 = vld [vmem:[#allocation7 + $0x10] sm:$0xff] }
0x10a1   : > { %13261 = vmatprep.subr.mxu0 %v5499_v48 }
0x10a2   : > { %13262 = vmatpush3.msra.mxu0 %v5499_v48  ;;  %v14751_v48 = vld [vmem:[#allocation7 + $0x8] sm:$0xff] }
0x10a3   : > { %13263 = vmatprep.subr.mxu0 %v5498_v7 }
0x10a4   : > { %13264 = vmatpush3.msra.mxu0 %v5498_v7  ;;  %v14752_v7 = vld [vmem:[#allocation7] sm:$0xff] }
0x10a5   : > { %13265 = vmatprep.subr.mxu0 %v5497_v49 }
0x10a6   : > { %13266 = vmatpush3.msra.mxu0 %v5497_v49 }
0x10a7   : > { %13267 = vmatprep.subr.mxu0 %v5496_v50 }
0x10a8   : > { %13268 = vmatpush3.msra.mxu0 %v5496_v50 }
0x10a9   : > { %13269 = vmatprep.subr.mxu0 %v5495_v51 }
0x10aa   : > { %13270 = vmatpush3.msra.mxu0 %v5495_v51  ;;  %v14753_v51 = vld [vmem:[#allocation25 + $0x4] sm:$0x3] }
0x10ab   : > { %13271 = vmatprep.subr.mxu0 %v5494_v52 }
0x10ac   : > { %13272 = vmatpush3.msra.mxu0 %v5494_v52 }
0x10ad   : > { %13273 = vmatprep.subr.mxu0 %v5493_v56 }
0x10ae   : > { %13274 = vmatpush3.msra.mxu0 %v5493_v56 }
0x10af   : > { %13275 = vmatprep.subr.mxu0 %v5492_v57 }
0x10b0   : > { %13276 = vmatpush3.msra.mxu0 %v5492_v57  ;;  %v14754_v57 = vld [vmem:[#allocation23] sm:$0xff] }
0x10b1   : > { %13277 = vmatprep.subr.mxu0 %v5491_v23 }
0x10b2   : > { %13278 = vmatpush3.msra.mxu0 %v5491_v23  ;;  %v14755_v23 = vld [vmem:[#allocation25] sm:$0x3] }
0x10b3   : > { %13317 = vmatprep.subr.mxu0 %v17188_v37 }
0x114f   : > { %v13239_v62 = vpop.f32.mrf.mxu0 }
0x1151   : > { %v5390_v63 = vpop.f32.mrf.mxu0 }
0x1152   : > { %13314 = vmatprep.mubr.f32.mxu1 %v5390_v63  ;;  %v14756_v63 = vld [vmem:[#allocation22] sm:$0x1] }
0x1153   : > { %v13246_v0 = vpop.f32.mrf.mxu0  ;;  %13315 = vmatmul.mubr.f32.vlgmr.msra.gmra.mxu1 %v13239_v62 }
0x1154   : > { %13363 = vmatprep.mubr.msk.f32.mxu1 %vm16202_vm2, %v16201_v59 }
0x1155   : > { %v5481_v54 = vpop.f32.mrf.mxu0 }
0x1156   : > { %13279 = vmatprep.mubr.f32.mxu0 %v5481_v54 }
0x1157   : > { %13280 = vmatmul.mubr.f32.vlgmr.msra.gmra.mxu0 %v13246_v0 }
0x1158   : > { %13318 = vmatpush3.msra.mxu0 %v17188_v37  ;;  %13321 = vmatprep.mubr.msk.f32.mxu0 %vm2182_vm0, %v17176_v44  ;;  %v5743_v44 = vld [vmem:[#allocation41 + $0x150] sm:$0xff] }
0x1159   : > { %13319 = vmatprep.subr.mxu0 %v17190_v39  ;;  %v14740_v37 = vld [vmem:[#allocation7 + $0x60] sm:$0xff] }
0x115a   : > { %13320 = vmatpush3.msra.mxu0 %v17190_v39  ;;  %v14743_v39 = vld [vmem:[#allocation7 + $0x48] sm:$0xff] }
0x115b   : > { %13322 = vmatmul.mubr.msk.f32.vlgmr.msra.gmra.mxu0 %vm2182_vm0, %v17182_v47  ;;  %13324 = vmatprep.subr.mxu0 %v5748_v58  ;;  %v5740_v47 = vld [vmem:[#allocation41 + $0x138] sm:$0xff] }
0x115c   : > { %13325 = vmatpush3.msra.mxu0 %v5748_v58  ;;  %v14757_v58 = vld [vmem:[#allocation26] sm:$0x1] }
0x115d   : > { %13326 = vmatprep.subr.mxu0 %v5747_v5 }
0x115e   : > { %13327 = vmatpush3.msra.mxu0 %v5747_v5 }
0x115f   : > { %13328 = vmatprep.subr.mxu0 %v5746_v8 }
0x1160   : > { %13329 = vmatpush3.msra.mxu0 %v5746_v8 }
0x1161   : > { %13330 = vmatprep.subr.mxu0 %v5745_v10 }
0x1162   : > { %13331 = vmatpush3.msra.mxu0 %v5745_v10 }
0x1163   : > { %13332 = vmatprep.subr.mxu0 %v5744_v11 }
0x1164   : > { %13333 = vmatpush3.msra.mxu0 %v5744_v11  ;;  %v14759_v11 = vld [vmem:[#allocation25 + $0x6] sm:$0x3] }
0x1165   : > { %13334 = vmatprep.subr.mxu0 %v5743_v44 }
0x1166   : > { %13335 = vmatpush3.msra.mxu0 %v5743_v44  ;;  %v14760_v44 = vld [vmem:[#allocation25 + $0x2] sm:$0x3] }
0x1167   : > { %13336 = vmatprep.subr.mxu0 %v5742_v12 }
0x1168   : > { %13337 = vmatpush3.msra.mxu0 %v5742_v12  ;;  %v14761_v12 = vld [vmem:[#allocation10] sm:$0xff] }
0x1169   : > { %13338 = vmatprep.subr.mxu0 %v5741_v13 }
0x116a   : > { %13339 = vmatpush3.msra.mxu0 %v5741_v13  ;;  %v14762_v13 = vld [vmem:[#allocation29 + $0x2] sm:$0x3] }
0x116b   : > { %13340 = vmatprep.subr.mxu0 %v5740_v47 }
0x116c   : > { %13341 = vmatpush3.msra.mxu0 %v5740_v47  ;;  %v14763_v47 = vld [vmem:[#allocation29 + $0x4] sm:$0x3] }
0x116d   : > { %13342 = vmatprep.subr.mxu0 %v5739_v14 }
0x116e   : > { %13343 = vmatpush3.msra.mxu0 %v5739_v14  ;;  %v14764_v14 = vld [vmem:[#allocation29 + $0x6] sm:$0x3] }
0x116f   : > { %13344 = vmatprep.subr.mxu0 %v5738_v15 }
0x1170   : > { %13345 = vmatpush3.msra.mxu0 %v5738_v15 }
0x1171   : > { %13346 = vmatprep.subr.mxu0 %v5737_v16 }
0x1172   : > { %13347 = vmatpush3.msra.mxu0 %v5737_v16 }
0x1173   : > { %13348 = vmatprep.subr.mxu0 %v5736_v17 }
0x1174   : > { %13349 = vmatpush3.msra.mxu0 %v5736_v17 }
0x1175   : > { %13350 = vmatprep.subr.mxu0 %v5735_v18 }
0x1176   : > { %13351 = vmatpush3.msra.mxu0 %v5735_v18 }
0x1177   : > { %13352 = vmatprep.subr.mxu0 %v5734_v19 }
0x1178   : > { %13353 = vmatpush3.msra.mxu0 %v5734_v19 }
0x1179   : > { %13354 = vmatprep.subr.mxu0 %v5733_v20 }
0x117a   : > { %13355 = vmatpush3.msra.mxu0 %v5733_v20 }
0x117b   : > { %13401 = vmatprep.subr.mxu0 %v16201_v59 }
0x1213   : > { %v13316_v26 = vpop.f32.mrf.mxu1 }
0x1215   : > { %v5648_v27 = vpop.f32.mrf.mxu1 }
0x1217   : > { %v13281_v21 = vpop.f32.mrf.mxu0 }
0x1218   : > { %v5654_v3 = vadd.f32 %v13316_v26, %v13281_v21 }
0x1219   : > { %v5573_v6 = vpop.f32.mrf.mxu0 }
0x121a   : > { %v5649_v29 = vadd.f32 %v5648_v27, %v5573_v6 }
0x121b   : > { %v13323_v24 = vpop.f32.mrf.mxu0 }
0x121d   : > { %v5723_v2 = vpop.f32.mrf.mxu0 }
0x121e   : > { %13356 = vmatprep.mubr.f32.mxu0 %v5723_v2  ;;  %v14765_v2 = vld [vmem:[#allocation20] sm:$0x1] }
0x121f   : > { %13357 = vmatmul.mubr.f32.vlgmr.msra.gmra.mxu0 %v13323_v24 }
0x1220   : > { %13402 = vmatpush3.msra.mxu0 %v14736_v25  ;;  %13403 = vmatprep.mubr.msk.f32.mxu0 %vm16202_vm2, %v16201_v59 }
0x1221   : > { %13406 = vmatprep.subr.mxu0 %v16201_v59 }
0x12df   : > { %v13358_v28 = vpop.f32.mrf.mxu0 }
0x12e0   : > { %v17221_v30 = vadd.f32 %v13358_v28, %v5654_v3 }
0x12e1   : > { %v5815_v31 = vpop.f32.mrf.mxu0 }
0x12e2   : > { %v17223_v32 = vadd.f32 %v5815_v31, %v5649_v29  ;;  %13360 = vmatpush3.msra.mxu1 %v17221_v30 }
0x12e3   : > { %13361 = vmatprep.subr.mxu1 %v16201_v59 }
0x12e4   : > { %13362 = vmatpush3.msra.mxu1 %v17223_v32 }
0x12e5   : > { %13364 = vmatmul.mubr.msk.f32.vlgmr.msra.gmra.mxu1 %vm2182_vm0, %v16203_v9  ;;  %13366 = vmatprep.subr.mxu1 %v16201_v59  ;;  %v14741_v9 = vld [vmem:[#allocation7 + $0x58] sm:$0xff] }
0x12e6   : > { %13367 = vmatpush3.msra.mxu1 %v14737_v33  ;;  %13398 = vmatprep.mubr.msk.f32.mxu1 %vm16202_vm2, %v16201_v59 }
0x12e7   : > { %13368 = vmatprep.subr.mxu1 %v16201_v59 }
0x12e8   : > { %13369 = vmatpush3.msra.mxu1 %v14738_v34  ;;  %v14766_v34 = vld [vmem:[#allocation20 + $0x1] sm:$0x1] }
0x12e9   : > { %13370 = vmatprep.subr.mxu1 %v16201_v59 }
0x12ea   : > { %13371 = vmatpush3.msra.mxu1 %v14739_v36 }
0x12eb   : > { %13372 = vmatprep.subr.mxu1 %v16201_v59 }
0x12ec   : > { %13373 = vmatpush3.msra.mxu1 %v14740_v37 }
0x12ed   : > { %13374 = vmatprep.subr.mxu1 %v16201_v59 }
0x12ee   : > { %13375 = vmatpush3.msra.mxu1 %v14741_v9 }
0x12ef   : > { %13376 = vmatprep.subr.mxu1 %v16201_v59 }
0x12f0   : > { %13377 = vmatpush3.msra.mxu1 %v14742_v38 }
0x12f1   : > { %13378 = vmatprep.subr.mxu1 %v16201_v59 }
0x12f2   : > { %13379 = vmatpush3.msra.mxu1 %v14743_v39 }
0x12f3   : > { %13380 = vmatprep.subr.mxu1 %v16201_v59 }
0x12f4   : > { %13381 = vmatpush3.msra.mxu1 %v14744_v4 }
0x12f5   : > { %13382 = vmatprep.subr.mxu1 %v16201_v59 }
0x12f6   : > { %13383 = vmatpush3.msra.mxu1 %v14745_v40 }
0x12f7   : > { %13384 = vmatprep.subr.mxu1 %v16201_v59 }
0x12f8   : > { %13385 = vmatpush3.msra.mxu1 %v14746_v41 }
0x12f9   : > { %13386 = vmatprep.subr.mxu1 %v16201_v59 }
0x12fa   : > { %13387 = vmatpush3.msra.mxu1 %v14747_v1 }
0x12fb   : > { %13388 = vmatprep.subr.mxu1 %v16201_v59 }
0x12fc   : > { %13389 = vmatpush3.msra.mxu1 %v14748_v42 }
0x12fd   : > { %13390 = vmatprep.subr.mxu1 %v16201_v59 }
0x12fe   : > { %13391 = vmatpush3.msra.mxu1 %v14749_v22  ;;  %v14767_v22 = vld [vmem:[#allocation20 + $0x2] sm:$0x1] }
0x12ff   : > { %13392 = vmatprep.subr.mxu1 %v16201_v59 }
0x1300   : > { %13393 = vmatpush3.msra.mxu1 %v14750_v45 }
0x1301   : > { %13394 = vmatprep.subr.mxu1 %v16201_v59 }
0x1302   : > { %13395 = vmatpush3.msra.mxu1 %v14751_v48 }
0x1303   : > { %13396 = vmatprep.subr.mxu1 %v16201_v59 }
0x1304   : > { %13397 = vmatpush3.msra.mxu1 %v14752_v7 }
0x1305   : > { %13431 = vmatprep.subr.mxu1 %v16201_v59 }
0x13a5   : > { %v5892_v49 = vpop.f32.mrf.mxu1 }
0x13a6   : > { %13399 = vmatmul.mubr.f32.vlgmr.msra.gmra.mxu1 %v5892_v49 }
0x13a7   : > { %v13365_v50 = vpop.f32.mrf.mxu1  ;;  %13432 = vmatpush3.msk.msra.mxu1 %vm4060_vm4, %v14753_v51  ;;  %13433 = vmatprep.mubr.msk.f32.mxu1 %vm16202_vm2, %v16201_v59 }
0x13a8   : > { %13441 = vmatprep.subr.mxu1 %v16201_v59  ;;  %v14768_v50 = vld [vmem:[#allocation20 + $0x3] sm:$0x1] }
0x1466   : > { %v5962_v52 = vpop.f32.mrf.mxu1 }
0x1467   : > { %13404 = vmatmul.mubr.msk.f32.vlgmr.msra.gmra.mxu0 %vm3903_vm3, %v5962_v52 }
0x1468   : > { %v13400_v56 = vpop.f32.mrf.mxu1  ;;  %13407 = vmatpush3.msra.mxu0 %v14754_v57  ;;  %13408 = vmatprep.mubr.msk.f32.mxu0 %vm16202_vm2, %v16201_v59 }
0x1469   : > { %13411 = vmatprep.subr.mxu0 %v16201_v59 }
0x146b   : > { %13409 = vmatmul.mubr.msk.f32.vlgmr.msra.gmra.mxu0 %vm3903_vm3, %v17133_v43  ;;  %v14758_v43 = vld [vmem:[#allocation29] sm:$0x3] }
0x146c   : > { %13412 = vmatpush3.msk.msra.mxu0 %vm4060_vm4, %v14755_v23  ;;  %13413 = vmatprep.mubr.msk.f32.mxu0 %vm16202_vm2, %v16201_v59 }
0x146d   : > { %13416 = vmatprep.subr.mxu0 %v16201_v59 }
0x1527   : > { %v6035_v60 = vpop.f32.mrf.mxu0 }
0x1528   : > { %v6036_v5 = vadd.f32 %v14757_v58, %v6035_v60 }
0x1529   : > { %v13405_v61 = vpop.f32.mrf.mxu0 }
0x152a   : > { %v6039_v10 = vmax.f32 %v6036_v5, 0.0 }
0x152b   : > { %v6106_v62 = vpop.f32.mrf.mxu0 }
0x152c   : > { %v6107_v0 = vadd.f32 %v14756_v63, %v6106_v62 }
0x152d   : > { %v13410_v54 = vpop.f32.mrf.mxu0 }
0x152e   : > { %v6110_v8 = vmax.f32 %v6107_v0, 0.0 }
0x1530   : > { %13414 = vmatmul.mubr.msk.f32.vlgmr.msra.gmra.mxu0 %vm4056_vm5, %v6110_v8  ;;  %13434 = vmatmul.mubr.msk.f32.vlgmr.msra.gmra.mxu1 %vm4056_vm5, %v6110_v8 }
0x1531   : > { %13417 = vmatpush3.msk.msra.mxu0 %vm4060_vm4, %v14758_v43  ;;  %13418 = vmatprep.mubr.msk.f32.mxu0 %vm16202_vm2, %v16201_v59 }
0x1532   : > { %13442 = vmatpush3.msk.msra.mxu1 %vm4060_vm4, %v14759_v11  ;;  %13443 = vmatprep.mubr.msk.f32.mxu1 %vm16202_vm2, %v16201_v59 }
0x1533   : > { %13421 = vmatprep.subr.mxu0 %v16201_v59  ;;  %13451 = vmatprep.subr.mxu1 %v16201_v59 }
0x1534   : > { %13419 = vmatmul.mubr.msk.f32.vlgmr.msra.gmra.mxu0 %vm4056_vm5, %v6039_v10  ;;  %13444 = vmatmul.mubr.msk.f32.vlgmr.msra.gmra.mxu1 %vm4056_vm5, %v6110_v8 }
0x1535   : > { %13422 = vmatpush3.msk.msra.mxu0 %vm4060_vm4, %v14760_v44  ;;  %13423 = vmatprep.mubr.msk.f32.mxu0 %vm16202_vm2, %v16201_v59 }
0x1536   : > { %13426 = vmatprep.subr.mxu0 %v16201_v59  ;;  %13452 = vmatpush3.msra.mxu1 %v14761_v12 }
0x1537   : > { %13453 = vmatprep.mubr.msk.f32.mxu1 %vm16202_vm2, %v16201_v59  ;;  %13463 = vmatprep.subr.mxu1 %v16201_v59 }
0x1538   : > { %13424 = vmatmul.mubr.msk.f32.vlgmr.msra.gmra.mxu0 %vm4056_vm5, %v6110_v8 }
0x1539   : > { %13427 = vmatpush3.msk.msra.mxu0 %vm4060_vm4, %v14762_v13  ;;  %13428 = vmatprep.mubr.msk.f32.mxu0 %vm16202_vm2, %v16201_v59 }
0x153a   : > { %13436 = vmatprep.subr.mxu0 %v16201_v59 }
0x153c   : > { %13429 = vmatmul.mubr.msk.f32.vlgmr.msra.gmra.mxu0 %vm4056_vm5, %v6039_v10 }
0x153d   : > { %13437 = vmatpush3.msk.msra.mxu0 %vm4060_vm4, %v14763_v47  ;;  %13438 = vmatprep.mubr.msk.f32.mxu0 %vm16202_vm2, %v16201_v59 }
0x153e   : > { %13446 = vmatprep.subr.mxu0 %v16201_v59 }
0x1540   : > { %13439 = vmatmul.mubr.msk.f32.vlgmr.msra.gmra.mxu0 %vm4056_vm5, %v6039_v10 }
0x1541   : > { %13447 = vmatpush3.msk.msra.mxu0 %vm4060_vm4, %v14764_v14  ;;  %13448 = vmatprep.mubr.msk.f32.mxu0 %vm16202_vm2, %v16201_v59 }
0x1542   : > { %13456 = vmatprep.subr.mxu0 %v16201_v59 }
0x1544   : > { %13449 = vmatmul.mubr.msk.f32.vlgmr.msra.gmra.mxu0 %vm4056_vm5, %v6039_v10 }
0x1545   : > { %13460 = vmatprep.mubr.msk.f32.mxu0 %vm16202_vm2, %v16201_v59 }
0x15f0   : > { %v6180_v15 = vpop.f32.mrf.mxu0  ;;  %v6477_v16 = vpop.f32.mrf.mxu1 }
0x15f2   : > { %v13415_v17 = vpop.f32.mrf.mxu0  ;;  %v13435_v18 = vpop.f32.mrf.mxu1 }
0x15f3   : > { %v11850_v18 = vld [vmem:[#allocation64] ss:$0 sm:$0xff] }
0x15f4   : > { %v6253_v19 = vpop.f32.mrf.mxu0  ;;  %v6619_v20 = vpop.f32.mrf.mxu1 }
0x15f5   : > { %v6254_v21 = vadd.f32 %v6253_v19, %v6180_v15  ;;  %v11849_v15 = vld [vmem:[#allocation65] ss:$0 sm:$0xff] }
0x15f6   : > { %v13420_v6 = vpop.f32.mrf.mxu0  ;;  %v13445_v24 = vpop.f32.mrf.mxu1 }
0x15f7   : > { %v6257_v25 = vadd.f32 %v14765_v2, %v6254_v21 }
0x15f8   : > { %v6330_v26 = vpop.f32.mrf.mxu0 }
0x15f9   : > { %v6258_v3 = vsub.f32 0.0, %v6257_v25  ;;  %v6991_v25 = vld [vmem:[#allocation59 + $0xf0] sm:$0xff] }
0x15fa   : > { %v13425_v27 = vpop.f32.mrf.mxu0 }
0x15fb   : > { %v6259_v28 = vmul.f32 1.442695, %v6258_v3  ;;  %v6990_v3 = vld [vmem:[#allocation59 + $0xe8] sm:$0xff] }
0x15fc   : > { %v6400_v29 = vpop.f32.mrf.mxu0  ;;  %v6898_v27 = vld [vmem:[#allocation59 + $0x68] sm:$0xff] }
0x15fd   : > { %v6401_v31 = vadd.f32 %v6400_v29, %v6330_v26  ;;  %14676 = vpow2.f32 %v6259_v28  ;;  %v6899_v26 = vld [vmem:[#allocation59 + $0x70] sm:$0xff]  ;;  %v6989_v28 = vld [vmem:[#allocation59 + $0xe0] sm:$0xff] }
0x15fe   : > { %v13430_v33 = vpop.f32.mrf.mxu0  ;;  %v6897_v29 = vld [vmem:[#allocation59 + $0x60] sm:$0xff] }
0x15ff   : > { %v6404_v36 = vadd.f32 %v14766_v34, %v6401_v31  ;;  %v6988_v31 = vld [vmem:[#allocation59 + $0xd8] sm:$0xff]  ;;  %v6987_v34 = vld [vmem:[#allocation59 + $0xd0] sm:$0xff] }
0x1600   : > { %v6547_v37 = vpop.f32.mrf.mxu0  ;;  %v6896_v33 = vld [vmem:[#allocation59 + $0x58] sm:$0xff] }
0x1601   : > { %v6405_v9 = vsub.f32 0.0, %v6404_v36  ;;  %v6548_v1 = vadd.f32 %v6547_v37, %v6477_v16  ;;  %v6895_v36 = vld [vmem:[#allocation59 + $0x50] sm:$0xff]  ;;  %v6986_v37 = vld [vmem:[#allocation59 + $0xc8] sm:$0xff] }
0x1602   : > { %v13440_v38 = vpop.f32.mrf.mxu0 }
0x1603   : > { %v6406_v39 = vmul.f32 1.442695, %v6405_v9  ;;  %v6551_v45 = vadd.f32 %v14767_v22, %v6548_v1  ;;  %v6894_v9 = vld [vmem:[#allocation59 + $0x48] sm:$0xff]  ;;  %v6985_v38 = vld [vmem:[#allocation59 + $0xc0] sm:$0xff]  ;;  %v6891_v1 = vld [vmem:[#allocation59 + $0x30] sm:$0xff] }
0x1604   : > { %v6689_v4 = vpop.f32.mrf.mxu0  ;;  %v6890_v22 = vld [vmem:[#allocation59 + $0x28] sm:$0xff] }
0x1605   : > { %14678 = vpow2.f32 %v6406_v39  ;;  %v6690_v49 = vadd.f32 %v6689_v4, %v6619_v20  ;;  %v6893_v39 = vld [vmem:[#allocation59 + $0x40] sm:$0xff]  ;;  %v6984_v4 = vld [vmem:[#allocation59 + $0xb8] sm:$0xff] }
0x1606   : > { %v13450_v40 = vpop.f32.mrf.mxu0 }
0x1607   : > { %v6693_v51 = vadd.f32 %v14768_v50, %v6690_v49  ;;  %v6892_v40 = vld [vmem:[#allocation59 + $0x38] sm:$0xff]  ;;  %v6979_v50 = vld [vmem:[#allocation59 + $0x90] sm:$0xff] }
0x1608   : > { %v6888_v49 = vld [vmem:[#allocation59 + $0x18] sm:$0xff] }
0x1609   : > { %v6694_v52 = vsub.f32 0.0, %v6693_v51  ;;  %v6887_v51 = vld [vmem:[#allocation59 + $0x10] sm:$0xff] }
0x160a   : > { %v14677_v41 = vpop.eup %14676 }
0x160b   : > { %v6261_v42 = vadd.f32 1.0, %v14677_v41  ;;  %v6695_v60 = vmul.f32 1.442695, %v6694_v52  ;;  %v6983_v41 = vld [vmem:[#allocation59 + $0xb0] sm:$0xff]  ;;  %v6978_v52 = vld [vmem:[#allocation59 + $0x88] sm:$0xff] }
0x160d   : > { %14680 = vrcp.f32 %v6261_v42  ;;  %v6982_v42 = vld [vmem:[#allocation59 + $0xa8] sm:$0xff] }
0x160e   : > { %14682 = vtanh.f32 %v6551_v45  ;;  %v6981_v45 = vld [vmem:[#allocation59 + $0xa0] sm:$0xff] }
0x1612   : > { %v14679_v48 = vpop.eup %14678 }
0x1613   : > { %v6408_v7 = vadd.f32 1.0, %v14679_v48  ;;  %v6889_v48 = vld [vmem:[#allocation59 + $0x20] sm:$0xff] }
0x1615   : > { %14684 = vrcp.f32 %v6408_v7  ;;  %v6980_v7 = vld [vmem:[#allocation59 + $0x98] sm:$0xff] }
0x1616   : > { %14686 = vpow2.f32 %v6695_v60 }
0x161a   : > { %v14681_v56 = vpop.eup %14680 }
0x161b   : > { %v14683_v57 = vpop.eup %14682 }
0x161c   : > { %v6701_v62 = vmul.f32 %v14683_v57, %v14681_v56  ;;  %v6886_v56 = vld [vmem:[#allocation59 + $0x8] sm:$0xff]  ;;  %v6977_v57 = vld [vmem:[#allocation59 + $0x80] sm:$0xff] }
0x1622   : > { %v14685_v23 = vpop.eup %14684 }
0x1623   : > { %v6700_v61 = vmul.f32 %v14685_v23, %v17130_v35  ;;  %v14687_v58 = vpop.eup %14686  ;;  %v6885_v23 = vld [vmem:[#allocation59] sm:$0xff] }
0x1624   : > { %v6697_v5 = vadd.f32 1.0, %v14687_v58  ;;  %v7223_v58 = vld [vmem:[#allocation59 + $0x170] sm:$0xff] }
0x1625   : > { %v6702_v63 = vadd.f32 %v6701_v62, %v6700_v61  ;;  %v7224_v62 = vld [vmem:[#allocation59 + $0x178] sm:$0xff] }
0x1627   : > { %v6703_v0 = vsub.f32 0.0, %v6702_v63 }
0x1629   : > { %v6704_v54 = vmul.f32 1.442695, %v6703_v0  ;;  %v11854_v0 = vld [vmem:[%s18100_s18 + $0x10] sm:$0xff] }
0x162b   : > { %14688 = vpow2.f32 %v6704_v54 }
0x162c   : > { %14690 = vrcp.f32 %v6697_v5  ;;  %v7222_v5 = vld [vmem:[#allocation59 + $0x168] sm:$0xff] }
0x1638   : > { %v14689_v8 = vpop.eup %14688 }
0x1639   : > { %v6706_v43 = vadd.f32 1.0, %v14689_v8  ;;  %v14691_v10 = vpop.eup %14690  ;;  %v7221_v8 = vld [vmem:[#allocation59 + $0x160] sm:$0xff] }
0x163b   : > { %14692 = vrcp.f32 %v6706_v43  ;;  %v7220_v43 = vld [vmem:[#allocation59 + $0x158] sm:$0xff] }
0x1648   : > { %v14693_v11 = vpop.eup %14692 }
0x1649   : > { %v6709_v44 = vmul.f32 %v14693_v11, %v14691_v10  ;;  %v7219_v10 = vld [vmem:[#allocation59 + $0x150] sm:$0xff]  ;;  %v7218_v11 = vld [vmem:[#allocation59 + $0x148] sm:$0xff] }
0x164b   : > { %13454 = vmatmul.mubr.msk.f32.vlgmr.msra.gmra.mxu1 %vm3903_vm3, %v6709_v44  ;;  %v7217_v44 = vld [vmem:[#allocation59 + $0x140] sm:$0xff] }
0x164c   : > { %13467 = vmatprep.mubr.msk.f32.mxu1 %vm16202_vm2, %v16201_v59 }
0x170b   : > { %v6779_v35 = vpop.f32.mrf.mxu1 }
0x170c   : > { %v6786_v12 = vrot.slane %v6779_v35, %v17141_v46  ;;  %v7216_v35 = vld [vmem:[#allocation59 + $0x138] sm:$0xff] }
0x170d   : > { %v13455_v13 = vpop.f32.mrf.mxu1 }
0x170e   : > { %v6787_v47 = vmul.f32 %v6786_v12, %v17223_v32  ;;  %v6788_v14 = vmul.f32 %v6786_v12, %v17221_v30  ;;  %v6811_v32 = vld [vmem:[%s18100_s18] sm:$0xff]  ;;  %v11852_v30 = vld [vmem:[%s18100_s18 + $0x8] sm:$0xff]  ;;  %v7215_v12 = vld [vmem:[#allocation59 + $0x130] sm:$0xff] }
0x170f   : > { %v7214_v13 = vld [vmem:[#allocation59 + $0x128] sm:$0xff] }
0x1710   : > { %v6789_v16 = vadd.f32 %v6787_v47, %v17147_v53  ;;  %v6790_v17 = vadd.f32 %v6788_v14, %v17150_v55  ;;  %v6992_v53 = vld [vmem:[#allocation59 + $0xf8] sm:$0xff]  ;;  %v7213_v47 = vld [vmem:[#allocation59 + $0x120] sm:$0xff] }
0x1711   : > { %v6900_v55 = vld [vmem:[#allocation59 + $0x78] sm:$0xff] }
0x1712   : > { %v6798_v19 = vmul.f32 %v11849_v15, %v6789_v16  ;;  %v6799_v20 = vmul.f32 %v11849_v15, %v6790_v17  ;;  %v7212_v14 = vld [vmem:[#allocation59 + $0x118] sm:$0xff]  ;;  %v7211_v15 = vld [vmem:[#allocation59 + $0x110] sm:$0xff]  ;;  %v7210_v16 = vld [vmem:[#allocation59 + $0x108] sm:$0xff] }
0x1713   : > { %v7209_v17 = vld [vmem:[#allocation59 + $0x100] sm:$0xff] }
0x1714   : > { %v6808_v21 = vadd.f32 %v11850_v18, %v6799_v20  ;;  %v6807_v6 = vadd.f32 %v11850_v18, %v6798_v19 }
0x1716   : > { %v17309_v24 = vmax.f32 %v6808_v21, 0.0  ;;  %v17313_v2 = vmax.f32 %v6807_v6, 0.0 }
0x1718   : > { %13457 = vmatpush3.msra.mxu0 %v17309_v24  ;;  %13464 = vmatpush3.msra.mxu1 %v17309_v24 }
0x1719   : > { %13458 = vmatprep.subr.mxu0 %v16201_v59  ;;  %13465 = vmatprep.subr.mxu1 %v16201_v59 }
0x171a   : > { %13459 = vmatpush3.msra.mxu0 %v17313_v2  ;;  %13466 = vmatpush3.msra.mxu1 %v17313_v2 }
0x171b   : > { %13461 = vmatmul.mubr.msk.f32.vlgmr.msra.gmra.mxu0 %vm2182_vm0, %v6811_v32  ;;  %13468 = vmatmul.mubr.msk.f32.vlgmr.msra.gmra.mxu1 %vm2182_vm0, %v11852_v30  ;;  %v7402_v32 = vld [vmem:[#allocation61 + $0x78] sm:$0xff]  ;;  %v7401_v30 = vld [vmem:[#allocation61 + $0x70] sm:$0xff] }
0x171c   : > { %13470 = vmatprep.subr.mxu0 %v16201_v59  ;;  %13505 = vmatprep.subr.mxu1 %v16201_v59 }
0x171d   : > { %13471 = vmatpush3.msra.mxu0 %v6992_v53  ;;  %13506 = vmatpush3.msra.mxu1 %v6900_v55  ;;  %v7400_v53 = vld [vmem:[#allocation61 + $0x68] sm:$0xff]  ;;  %v7399_v55 = vld [vmem:[#allocation61 + $0x60] sm:$0xff] }
0x171e   : > { %13472 = vmatprep.subr.mxu0 %v16201_v59  ;;  %13507 = vmatprep.subr.mxu1 %v16201_v59 }
0x171f   : > { %13473 = vmatpush3.msra.mxu0 %v6991_v25  ;;  %13508 = vmatpush3.msra.mxu1 %v6899_v26  ;;  %v7398_v25 = vld [vmem:[#allocation61 + $0x58] sm:$0xff]  ;;  %v7397_v26 = vld [vmem:[#allocation61 + $0x50] sm:$0xff] }
0x1720   : > { %13474 = vmatprep.subr.mxu0 %v16201_v59  ;;  %13509 = vmatprep.subr.mxu1 %v16201_v59 }
0x1721   : > { %13475 = vmatpush3.msra.mxu0 %v6990_v3  ;;  %13510 = vmatpush3.msra.mxu1 %v6898_v27  ;;  %v7396_v3 = vld [vmem:[#allocation61 + $0x48] sm:$0xff]  ;;  %v7395_v27 = vld [vmem:[#allocation61 + $0x40] sm:$0xff] }
0x1722   : > { %13476 = vmatprep.subr.mxu0 %v16201_v59  ;;  %13511 = vmatprep.subr.mxu1 %v16201_v59 }
0x1723   : > { %13477 = vmatpush3.msra.mxu0 %v6989_v28  ;;  %13512 = vmatpush3.msra.mxu1 %v6897_v29  ;;  %v7394_v28 = vld [vmem:[#allocation61 + $0x38] sm:$0xff]  ;;  %v7393_v29 = vld [vmem:[#allocation61 + $0x30] sm:$0xff] }
0x1724   : > { %13478 = vmatprep.subr.mxu0 %v16201_v59  ;;  %13513 = vmatprep.subr.mxu1 %v16201_v59 }
0x1725   : > { %13479 = vmatpush3.msra.mxu0 %v6988_v31  ;;  %13514 = vmatpush3.msra.mxu1 %v6896_v33  ;;  %v7392_v31 = vld [vmem:[#allocation61 + $0x28] sm:$0xff]  ;;  %v7391_v33 = vld [vmem:[#allocation61 + $0x20] sm:$0xff] }
0x1726   : > { %13480 = vmatprep.subr.mxu0 %v16201_v59  ;;  %13515 = vmatprep.subr.mxu1 %v16201_v59 }
0x1727   : > { %13481 = vmatpush3.msra.mxu0 %v6987_v34  ;;  %13516 = vmatpush3.msra.mxu1 %v6895_v36  ;;  %v7390_v34 = vld [vmem:[#allocation61 + $0x18] sm:$0xff]  ;;  %v7389_v36 = vld [vmem:[#allocation61 + $0x10] sm:$0xff] }
0x1728   : > { %13482 = vmatprep.subr.mxu0 %v16201_v59  ;;  %13517 = vmatprep.subr.mxu1 %v16201_v59 }
0x1729   : > { %13483 = vmatpush3.msra.mxu0 %v6986_v37  ;;  %13518 = vmatpush3.msra.mxu1 %v6894_v9  ;;  %v7388_v37 = vld [vmem:[#allocation61 + $0x8] sm:$0xff] }
0x172a   : > { %13484 = vmatprep.subr.mxu0 %v16201_v59  ;;  %13519 = vmatprep.subr.mxu1 %v16201_v59 }
0x172b   : > { %13485 = vmatpush3.msra.mxu0 %v6985_v38  ;;  %13520 = vmatpush3.msra.mxu1 %v6893_v39  ;;  %v11856_v38 = vld [vmem:[#allocation68] ss:$0 sm:$0xff] }
0x172c   : > { %13486 = vmatprep.subr.mxu0 %v16201_v59  ;;  %13521 = vmatprep.subr.mxu1 %v16201_v59 }
0x172d   : > { %13487 = vmatpush3.msra.mxu0 %v6984_v4  ;;  %13522 = vmatpush3.msra.mxu1 %v6892_v40  ;;  %v11857_v4 = vld [vmem:[#allocation67] ss:$0 sm:$0xff] }
0x172e   : > { %13488 = vmatprep.subr.mxu0 %v16201_v59  ;;  %13523 = vmatprep.subr.mxu1 %v16201_v59 }
0x172f   : > { %13489 = vmatpush3.msra.mxu0 %v6983_v41  ;;  %13524 = vmatpush3.msra.mxu1 %v6891_v1 }
0x1730   : > { %13490 = vmatprep.subr.mxu0 %v16201_v59  ;;  %13525 = vmatprep.subr.mxu1 %v16201_v59 }
0x1731   : > { %13491 = vmatpush3.msra.mxu0 %v6982_v42  ;;  %13526 = vmatpush3.msra.mxu1 %v6890_v22  ;;  %v17411_v22 = vld [vmem:[#allocation5] sm:$0xff] }
0x1732   : > { %13492 = vmatprep.subr.mxu0 %v16201_v59  ;;  %13527 = vmatprep.subr.mxu1 %v16201_v59 }
0x1733   : > { %13493 = vmatpush3.msra.mxu0 %v6981_v45  ;;  %13528 = vmatpush3.msra.mxu1 %v6889_v48  ;;  %v17420_v45 = vld [vmem:[#allocation5 + $0x8] sm:$0xff] }
0x1734   : > { %13494 = vmatprep.subr.mxu0 %v16201_v59  ;;  %13529 = vmatprep.subr.mxu1 %v16201_v59  ;;  %v7494_v48 = vld [vmem:[#allocation61 + $0xf8] sm:$0xff] }
0x1735   : > { %13495 = vmatpush3.msra.mxu0 %v6980_v7  ;;  %13530 = vmatpush3.msra.mxu1 %v6888_v49  ;;  %v7493_v7 = vld [vmem:[#allocation61 + $0xf0] sm:$0xff]  ;;  %v7492_v49 = vld [vmem:[#allocation61 + $0xe8] sm:$0xff] }
0x1736   : > { %13496 = vmatprep.subr.mxu0 %v16201_v59  ;;  %13531 = vmatprep.subr.mxu1 %v16201_v59 }
0x1737   : > { %13497 = vmatpush3.msra.mxu0 %v6979_v50  ;;  %13532 = vmatpush3.msra.mxu1 %v6887_v51  ;;  %v7491_v50 = vld [vmem:[#allocation61 + $0xe0] sm:$0xff]  ;;  %v7490_v51 = vld [vmem:[#allocation61 + $0xd8] sm:$0xff] }
0x1738   : > { %13498 = vmatprep.subr.mxu0 %v16201_v59  ;;  %13533 = vmatprep.subr.mxu1 %v16201_v59 }
0x1739   : > { %13499 = vmatpush3.msra.mxu0 %v6978_v52  ;;  %13534 = vmatpush3.msra.mxu1 %v6886_v56  ;;  %v7489_v52 = vld [vmem:[#allocation61 + $0xd0] sm:$0xff]  ;;  %v7488_v56 = vld [vmem:[#allocation61 + $0xc8] sm:$0xff] }
0x173a   : > { %13500 = vmatprep.subr.mxu0 %v16201_v59  ;;  %13535 = vmatprep.subr.mxu1 %v16201_v59 }
0x173b   : > { %13501 = vmatpush3.msra.mxu0 %v6977_v57  ;;  %13502 = vmatprep.mubr.msk.f32.mxu0 %vm16202_vm2, %v16201_v59  ;;  %v7487_v57 = vld [vmem:[#allocation61 + $0xc0] sm:$0xff] }
0x173c   : > { %13537 = vmatprep.mubr.msk.f32.mxu1 %vm16202_vm2, %v16201_v59  ;;  %13540 = vmatprep.subr.mxu0 %v16201_v59 }
0x173d   : > { %13536 = vmatpush3.msra.mxu1 %v6885_v23  ;;  %v7486_v23 = vld [vmem:[#allocation61 + $0xb8] sm:$0xff] }
0x173e   : > { %13547 = vmatprep.subr.mxu1 %v16201_v59 }
0x17db   : > { %v6881_v60 = vpop.f32.mrf.mxu0  ;;  %v17361_v61 = vpop.f32.mrf.mxu1 }
0x17dc   : > { %13503 = vmatmul.mubr.f32.vlgmr.msra.gmra.mxu0 %v17361_v61  ;;  %13538 = vmatmul.mubr.f32.vlgmr.msra.gmra.mxu1 %v6881_v60  ;;  %v7485_v60 = vld [vmem:[#allocation61 + $0xb0] sm:$0xff] }
0x17dd   : > { %13541 = vmatpush3.msra.mxu0 %v17309_v24  ;;  %v13469_v63 = vpop.f32.mrf.mxu1  ;;  %13544 = vmatprep.mubr.msk.f32.mxu0 %vm16202_vm2, %v16201_v59  ;;  %v13462_v54 = vpop.f32.mrf.mxu0 }
0x17de   : > { %13542 = vmatprep.subr.mxu0 %v16201_v59  ;;  %13548 = vmatpush3.msra.mxu1 %v7224_v62  ;;  %v7484_v62 = vld [vmem:[#allocation61 + $0xa8] sm:$0xff]  ;;  %v7483_v63 = vld [vmem:[#allocation61 + $0xa0] sm:$0xff]  ;;  %v7481_v54 = vld [vmem:[#allocation61 + $0x90] sm:$0xff] }
0x17df   : > { %13543 = vmatpush3.msra.mxu0 %v17313_v2  ;;  %13549 = vmatprep.subr.mxu1 %v16201_v59 }
0x17e0   : > { %13545 = vmatmul.mubr.msk.f32.vlgmr.msra.gmra.mxu0 %vm2182_vm0, %v11854_v0  ;;  %13550 = vmatpush3.msra.mxu1 %v7223_v58  ;;  %v7482_v0 = vld [vmem:[#allocation61 + $0x98] sm:$0xff]  ;;  %v7387_v58 = vld [vmem:[#allocation61] sm:$0xff] }
0x17e1   : > { %13551 = vmatprep.subr.mxu1 %v16201_v59  ;;  %13579 = vmatprep.mubr.msk.f32.mxu1 %vm16202_vm2, %v16201_v59 }
0x17e2   : > { %13552 = vmatpush3.msra.mxu1 %v7222_v5  ;;  %13582 = vmatprep.subr.mxu0 %v16201_v59  ;;  %v7480_v5 = vld [vmem:[#allocation61 + $0x88] sm:$0xff] }
0x17e3   : > { %13553 = vmatprep.subr.mxu1 %v16201_v59  ;;  %13584 = vmatprep.mubr.msk.f32.mxu0 %vm16202_vm2, %v16201_v59 }
0x17e4   : > { %13554 = vmatpush3.msra.mxu1 %v7221_v8  ;;  %v7479_v8 = vld [vmem:[#allocation61 + $0x80] sm:$0xff] }
0x17e5   : > { %13555 = vmatprep.subr.mxu1 %v16201_v59 }
0x17e6   : > { %13556 = vmatpush3.msra.mxu1 %v7220_v43 }
0x17e7   : > { %13557 = vmatprep.subr.mxu1 %v16201_v59 }
0x17e8   : > { %13558 = vmatpush3.msra.mxu1 %v7219_v10 }
0x17e9   : > { %13559 = vmatprep.subr.mxu1 %v16201_v59 }
0x17ea   : > { %13560 = vmatpush3.msra.mxu1 %v7218_v11 }
0x17eb   : > { %13561 = vmatprep.subr.mxu1 %v16201_v59 }
0x17ec   : > { %13562 = vmatpush3.msra.mxu1 %v7217_v44 }
0x17ed   : > { %13563 = vmatprep.subr.mxu1 %v16201_v59 }
0x17ee   : > { %13564 = vmatpush3.msra.mxu1 %v7216_v35  ;;  %v17449_v35 = vld [vmem:[#allocation5 + $0x10] sm:$0xff] }
0x17ef   : > { %13565 = vmatprep.subr.mxu1 %v16201_v59 }
0x17f0   : > { %13566 = vmatpush3.msra.mxu1 %v7215_v12  ;;  %v7726_v12 = vld [vmem:[#allocation61 + $0x178] sm:$0xff] }
0x17f1   : > { %13567 = vmatprep.subr.mxu1 %v16201_v59 }
0x17f2   : > { %13568 = vmatpush3.msra.mxu1 %v7214_v13  ;;  %v7725_v13 = vld [vmem:[#allocation61 + $0x170] sm:$0xff] }
0x17f3   : > { %13569 = vmatprep.subr.mxu1 %v16201_v59 }
0x17f4   : > { %13570 = vmatpush3.msra.mxu1 %v7213_v47  ;;  %v7724_v47 = vld [vmem:[#allocation61 + $0x168] sm:$0xff] }
0x17f5   : > { %13571 = vmatprep.subr.mxu1 %v16201_v59 }
0x17f6   : > { %13572 = vmatpush3.msra.mxu1 %v7212_v14  ;;  %v7723_v14 = vld [vmem:[#allocation61 + $0x160] sm:$0xff] }
0x17f7   : > { %13573 = vmatprep.subr.mxu1 %v16201_v59 }
0x17f8   : > { %13574 = vmatpush3.msra.mxu1 %v7211_v15  ;;  %v7722_v15 = vld [vmem:[#allocation61 + $0x158] sm:$0xff] }
0x17f9   : > { %13575 = vmatprep.subr.mxu1 %v16201_v59 }
0x17fa   : > { %13576 = vmatpush3.msra.mxu1 %v7210_v16  ;;  %v7721_v16 = vld [vmem:[#allocation61 + $0x150] sm:$0xff] }
0x17fb   : > { %13577 = vmatprep.subr.mxu1 %v16201_v59 }
0x17fc   : > { %13578 = vmatpush3.msra.mxu1 %v7209_v17  ;;  %v7720_v17 = vld [vmem:[#allocation61 + $0x148] sm:$0xff] }
0x17fd   : > { %13627 = vmatprep.subr.mxu1 %v16201_v59 }
0x189c   : > { %v7059_v18 = vpop.f32.mrf.mxu0  ;;  %v7129_v19 = vpop.f32.mrf.mxu1 }
0x189d   : > { %v7130_v20 = vadd.f32 %v7129_v19, %v7059_v18  ;;  %v7719_v18 = vld [vmem:[#allocation61 + $0x140] sm:$0xff]  ;;  %v7718_v19 = vld [vmem:[#allocation61 + $0x138] sm:$0xff] }
0x189e   : > { %v13504_v21 = vpop.f32.mrf.mxu0  ;;  %v13539_v6 = vpop.f32.mrf.mxu1 }
0x189f   : > { %v7716_v21 = vld [vmem:[#allocation61 + $0x128] sm:$0xff]  ;;  %v7715_v6 = vld [vmem:[#allocation61 + $0x120] sm:$0xff] }
0x18a0   : > { %v7204_v24 = vpop.f32.mrf.mxu0 }
0x18a1   : > { %13580 = vmatmul.mubr.f32.vlgmr.msra.gmra.mxu1 %v7204_v24  ;;  %v7714_v24 = vld [vmem:[#allocation61 + $0x118] sm:$0xff] }
0x18a2   : > { %v13546_v2 = vpop.f32.mrf.mxu0  ;;  %13659 = vmatprep.mubr.msk.f32.mxu1 %vm16202_vm2, %v16201_v59  ;;  %13628 = vmatpush3.msra.mxu1 %v7402_v32  ;;  %v7712_v32 = vld [vmem:[#allocation61 + $0x108] sm:$0xff] }
0x18a3   : > { %13629 = vmatprep.subr.mxu1 %v16201_v59  ;;  %v7713_v2 = vld [vmem:[#allocation61 + $0x110] sm:$0xff] }
0x18a4   : > { %13630 = vmatpush3.msra.mxu1 %v7401_v30  ;;  %v7711_v30 = vld [vmem:[#allocation61 + $0x100] sm:$0xff] }
0x18a5   : > { %13631 = vmatprep.subr.mxu1 %v16201_v59 }
0x18a6   : > { %13632 = vmatpush3.msra.mxu1 %v7400_v53 }
0x18a7   : > { %13633 = vmatprep.subr.mxu1 %v16201_v59 }
0x18a8   : > { %13634 = vmatpush3.msra.mxu1 %v7399_v55 }
0x18a9   : > { %13635 = vmatprep.subr.mxu1 %v16201_v59 }
0x18aa   : > { %13636 = vmatpush3.msra.mxu1 %v7398_v25 }
0x18ab   : > { %13637 = vmatprep.subr.mxu1 %v16201_v59 }
0x18ac   : > { %13638 = vmatpush3.msra.mxu1 %v7397_v26 }
0x18ad   : > { %13639 = vmatprep.subr.mxu1 %v16201_v59 }
0x18ae   : > { %13640 = vmatpush3.msra.mxu1 %v7396_v3 }
0x18af   : > { %13641 = vmatprep.subr.mxu1 %v16201_v59 }
0x18b0   : > { %13642 = vmatpush3.msra.mxu1 %v7395_v27 }
0x18b1   : > { %13643 = vmatprep.subr.mxu1 %v16201_v59 }
0x18b2   : > { %13644 = vmatpush3.msra.mxu1 %v7394_v28 }
0x18b3   : > { %13645 = vmatprep.subr.mxu1 %v16201_v59 }
0x18b4   : > { %13646 = vmatpush3.msra.mxu1 %v7393_v29 }
0x18b5   : > { %13647 = vmatprep.subr.mxu1 %v16201_v59 }
0x18b6   : > { %13648 = vmatpush3.msra.mxu1 %v7392_v31 }
0x18b7   : > { %13649 = vmatprep.subr.mxu1 %v16201_v59 }
0x18b8   : > { %13650 = vmatpush3.msra.mxu1 %v7391_v33 }
0x18b9   : > { %13651 = vmatprep.subr.mxu1 %v16201_v59 }
0x18ba   : > { %13652 = vmatpush3.msra.mxu1 %v7390_v34  ;;  %v7886_v34 = vld [vmem:[#allocation8 + $0x78] sm:$0xff] }
0x18bb   : > { %13653 = vmatprep.subr.mxu1 %v16201_v59 }
0x18bc   : > { %13654 = vmatpush3.msra.mxu1 %v7389_v36  ;;  %v16204_v36 = vmov 0.015625  }
0x18bd   : > { %13655 = vmatprep.subr.mxu1 %v16201_v59 }
0x18be   : > { %13656 = vmatpush3.msra.mxu1 %v7388_v37  ;;  %v7885_v37 = vld [vmem:[#allocation8 + $0x70] sm:$0xff] }
0x18bf   : > { %13657 = vmatprep.subr.mxu1 %v16201_v59 }
0x18c0   : > { %13658 = vmatpush3.msra.mxu1 %v7387_v58  ;;  %v8111_v58 = vld [vmem:[#allocation53] sm:$0xf] }
0x18c1   : > { %13702 = vmatprep.subr.mxu1 %v16201_v59 }
0x1961   : > { %v7291_v9 = vpop.f32.mrf.mxu1 }
0x1962   : > { %v7295_v39 = vadd.f32 %v7291_v9, %v7130_v20  ;;  %v7717_v20 = vld [vmem:[#allocation61 + $0x130] sm:$0xff] }
0x1963   : > { %v13581_v40 = vpop.f32.mrf.mxu1  ;;  %v7884_v9 = vld [vmem:[#allocation8 + $0x68] sm:$0xff] }
0x1964   : > { %v7303_v41 = vmul.f32 %v11856_v38, %v7295_v39  ;;  %v7883_v38 = vld [vmem:[#allocation8 + $0x60] sm:$0xff]  ;;  %v7882_v39 = vld [vmem:[#allocation8 + $0x58] sm:$0xff]  ;;  %v7880_v40 = vld [vmem:[#allocation8 + $0x48] sm:$0xff] }
0x1966   : > { %v7311_v1 = vadd.f32 %v11857_v4, %v7303_v41  ;;  %v7881_v4 = vld [vmem:[#allocation8 + $0x50] sm:$0xff]  ;;  %v7879_v41 = vld [vmem:[#allocation8 + $0x40] sm:$0xff] }
0x1968   : > { %v17409_v42 = vmax.f32 %v7311_v1, 0.0  ;;  %v7878_v1 = vld [vmem:[#allocation8 + $0x38] sm:$0xff] }
0x196a   : > { %13583 = vmatpush3.msra.mxu0 %v17409_v42 }
0x196b   : > { %13585 = vmatmul.mubr.msk.f32.vlgmr.msra.gmra.mxu0 %vm3903_vm3, %v17411_v22  ;;  %13587 = vmatprep.subr.mxu0 %v16201_v59 }
0x196c   : > { %13588 = vmatpush3.msra.mxu0 %v17409_v42  ;;  %13589 = vmatprep.mubr.msk.f32.mxu0 %vm16202_vm2, %v16201_v59 }
0x196d   : > { %13592 = vmatprep.subr.mxu0 %v16201_v59 }
0x196f   : > { %13590 = vmatmul.mubr.msk.f32.vlgmr.msra.gmra.mxu0 %vm3903_vm3, %v17420_v45 }
0x1970   : > { %13593 = vmatpush3.msra.mxu0 %v7494_v48  ;;  %13624 = vmatprep.mubr.msk.f32.mxu0 %vm16202_vm2, %v16201_v59  ;;  %v7876_v48 = vld [vmem:[#allocation8 + $0x28] sm:$0xff] }
0x1971   : > { %13594 = vmatprep.subr.mxu0 %v16201_v59 }
0x1972   : > { %13595 = vmatpush3.msra.mxu0 %v7493_v7  ;;  %v7875_v7 = vld [vmem:[#allocation8 + $0x20] sm:$0xff] }
0x1973   : > { %13596 = vmatprep.subr.mxu0 %v16201_v59 }
0x1974   : > { %13597 = vmatpush3.msra.mxu0 %v7492_v49  ;;  %v7874_v49 = vld [vmem:[#allocation8 + $0x18] sm:$0xff] }
0x1975   : > { %13598 = vmatprep.subr.mxu0 %v16201_v59 }
0x1976   : > { %13599 = vmatpush3.msra.mxu0 %v7491_v50  ;;  %v7873_v50 = vld [vmem:[#allocation8 + $0x10] sm:$0xff] }
0x1977   : > { %13600 = vmatprep.subr.mxu0 %v16201_v59 }
0x1978   : > { %13601 = vmatpush3.msra.mxu0 %v7490_v51  ;;  %v7872_v51 = vld [vmem:[#allocation8 + $0x8] sm:$0xff] }
0x1979   : > { %13602 = vmatprep.subr.mxu0 %v16201_v59 }
0x197a   : > { %13603 = vmatpush3.msra.mxu0 %v7489_v52  ;;  %v7871_v52 = vld [vmem:[#allocation8] sm:$0xff] }
0x197b   : > { %13604 = vmatprep.subr.mxu0 %v16201_v59 }
0x197c   : > { %13605 = vmatpush3.msra.mxu0 %v7488_v56  ;;  %v7958_v56 = vld [vmem:[#allocation56 + $0x8] sm:$0xff] }
0x197d   : > { %13606 = vmatprep.subr.mxu0 %v16201_v59 }
0x197e   : > { %13607 = vmatpush3.msra.mxu0 %v7487_v57 }
0x197f   : > { %13608 = vmatprep.subr.mxu0 %v16201_v59 }
0x1980   : > { %13609 = vmatpush3.msra.mxu0 %v7486_v23 }
0x1981   : > { %13610 = vmatprep.subr.mxu0 %v16201_v59 }
0x1982   : > { %13611 = vmatpush3.msra.mxu0 %v7485_v60  ;;  %v7957_v60 = vld [vmem:[#allocation56] sm:$0xff] }
0x1983   : > { %13612 = vmatprep.subr.mxu0 %v16201_v59 }
0x1984   : > { %13613 = vmatpush3.msra.mxu0 %v7484_v62  ;;  %v8035_v62 = vld [vmem:[#allocation52 + $0x8] sm:$0xff] }
0x1985   : > { %13614 = vmatprep.subr.mxu0 %v16201_v59 }
0x1986   : > { %13615 = vmatpush3.msra.mxu0 %v7483_v63 }
0x1987   : > { %13616 = vmatprep.subr.mxu0 %v16201_v59 }
0x1988   : > { %13617 = vmatpush3.msra.mxu0 %v7482_v0  ;;  %v8034_v0 = vld [vmem:[#allocation52] sm:$0xff] }
0x1989   : > { %13618 = vmatprep.subr.mxu0 %v16201_v59 }
0x198a   : > { %13619 = vmatpush3.msra.mxu0 %v7481_v54 }
0x198b   : > { %13620 = vmatprep.subr.mxu0 %v16201_v59 }
0x198c   : > { %13621 = vmatpush3.msra.mxu0 %v7480_v5  ;;  %v8436_v5 = vld [vmem:[#allocation53 + $0x8] sm:$0xf] }
0x198d   : > { %13622 = vmatprep.subr.mxu0 %v16201_v59 }
0x198e   : > { %13623 = vmatpush3.msra.mxu0 %v7479_v8 }
0x198f   : > { %13662 = vmatprep.subr.mxu0 %v16201_v59 }
0x1a2b   : > { %v7383_v43 = vpop.f32.mrf.mxu0 }
0x1a2c   : > { %13660 = vmatmul.mubr.f32.vlgmr.msra.gmra.mxu1 %v7383_v43 }
0x1a2d   : > { %v13586_v10 = vpop.f32.mrf.mxu0  ;;  %13704 = vmatprep.mubr.msk.f32.mxu1 %vm16202_vm2, %v16201_v59 }
0x1a2e   : > { %v8036_v10 = vld [vmem:[#allocation50] sm:$0x1] }
0x1a2f   : > { %v7474_v11 = vpop.f32.mrf.mxu0 }
0x1a30   : > { %13625 = vmatmul.mubr.f32.vlgmr.msra.gmra.mxu0 %v7474_v11  ;;  %v7959_v11 = vld [vmem:[#allocation55] sm:$0x1] }
0x1a31   : > { %13663 = vmatpush3.msra.mxu0 %v17409_v42  ;;  %v13591_v44 = vpop.f32.mrf.mxu0  ;;  %13664 = vmatprep.mubr.msk.f32.mxu0 %vm16202_vm2, %v16201_v59  ;;  %v7877_v42 = vld [vmem:[#allocation8 + $0x30] sm:$0xff] }
0x1a32   : > { %13667 = vmatprep.subr.mxu0 %v16201_v59 }
0x1a34   : > { %13665 = vmatmul.mubr.msk.f32.vlgmr.msra.gmra.mxu0 %vm3903_vm3, %v17449_v35 }
0x1a35   : > { %13668 = vmatpush3.msra.mxu0 %v7726_v12  ;;  %13699 = vmatprep.mubr.msk.f32.mxu0 %vm16202_vm2, %v16201_v59 }
0x1a36   : > { %13669 = vmatprep.subr.mxu0 %v16201_v59 }
0x1a37   : > { %13670 = vmatpush3.msra.mxu0 %v7725_v13 }
0x1a38   : > { %13671 = vmatprep.subr.mxu0 %v16201_v59 }
0x1a39   : > { %13672 = vmatpush3.msra.mxu0 %v7724_v47 }
0x1a3a   : > { %13673 = vmatprep.subr.mxu0 %v16201_v59 }
0x1a3b   : > { %13674 = vmatpush3.msra.mxu0 %v7723_v14 }
0x1a3c   : > { %13675 = vmatprep.subr.mxu0 %v16201_v59 }
0x1a3d   : > { %13676 = vmatpush3.msra.mxu0 %v7722_v15  ;;  %v8110_v15 = vld [vmem:[#allocation58] sm:$0xf] }
0x1a3e   : > { %13677 = vmatprep.subr.mxu0 %v16201_v59 }
0x1a3f   : > { %13678 = vmatpush3.msra.mxu0 %v7721_v16  ;;  %v8590_v16 = vld [vmem:[#allocation53 + $0xc] sm:$0xf] }
0x1a40   : > { %13679 = vmatprep.subr.mxu0 %v16201_v59 }
0x1a41   : > { %13680 = vmatpush3.msra.mxu0 %v7720_v17 }
0x1a42   : > { %13681 = vmatprep.subr.mxu0 %v16201_v59 }
0x1a43   : > { %13682 = vmatpush3.msra.mxu0 %v7719_v18  ;;  %v8277_v18 = vld [vmem:[#allocation53 + $0x4] sm:$0xf] }
0x1a44   : > { %13683 = vmatprep.subr.mxu0 %v16201_v59 }
0x1a45   : > { %13684 = vmatpush3.msra.mxu0 %v7718_v19  ;;  %v8275_v19 = vld [vmem:[#allocation58 + $0x4] sm:$0xf] }
0x1a46   : > { %13685 = vmatprep.subr.mxu0 %v16201_v59 }
0x1a47   : > { %13686 = vmatpush3.msra.mxu0 %v7717_v20  ;;  %v8434_v20 = vld [vmem:[#allocation58 + $0x8] sm:$0xf] }
0x1a48   : > { %13687 = vmatprep.subr.mxu0 %v16201_v59 }
0x1a49   : > { %13688 = vmatpush3.msra.mxu0 %v7716_v21  ;;  %v8588_v21 = vld [vmem:[#allocation58 + $0xc] sm:$0xf] }
0x1a4a   : > { %13689 = vmatprep.subr.mxu0 %v16201_v59 }
0x1a4b   : > { %13690 = vmatpush3.msra.mxu0 %v7715_v6  ;;  %v8851_v6 = vld [vmem:[#allocation62 + $0x78] sm:$0xff] }
0x1a4c   : > { %13691 = vmatprep.subr.mxu0 %v16201_v59 }
0x1a4d   : > { %13692 = vmatpush3.msra.mxu0 %v7714_v24  ;;  %v8850_v24 = vld [vmem:[#allocation62 + $0x70] sm:$0xff] }
0x1a4e   : > { %13693 = vmatprep.subr.mxu0 %v16201_v59 }
0x1a4f   : > { %13694 = vmatpush3.msra.mxu0 %v7713_v2  ;;  %v8849_v2 = vld [vmem:[#allocation62 + $0x68] sm:$0xff] }
0x1a50   : > { %13695 = vmatprep.subr.mxu0 %v16201_v59 }
0x1a51   : > { %13696 = vmatpush3.msra.mxu0 %v7712_v32  ;;  %v8848_v32 = vld [vmem:[#allocation62 + $0x60] sm:$0xff] }
0x1a52   : > { %13697 = vmatprep.subr.mxu0 %v16201_v59 }
0x1a53   : > { %13698 = vmatpush3.msra.mxu0 %v7711_v30  ;;  %v8847_v30 = vld [vmem:[#allocation62 + $0x58] sm:$0xff] }
0x1a54   : > { %13742 = vmatprep.subr.mxu0 %v16201_v59 }
0x1aec   : > { %v7631_v53 = vpop.f32.mrf.mxu1 }
0x1aee   : > { %v13661_v55 = vpop.f32.mrf.mxu1 }
0x1aef   : > { %v8845_v55 = vld [vmem:[#allocation62 + $0x48] sm:$0xff] }
0x1af0   : > { %v7561_v25 = vpop.f32.mrf.mxu0 }
0x1af1   : > { %v7632_v26 = vadd.f32 %v7631_v53, %v7561_v25  ;;  %v8846_v53 = vld [vmem:[#allocation62 + $0x50] sm:$0xff]  ;;  %v8844_v25 = vld [vmem:[#allocation62 + $0x40] sm:$0xff] }
0x1af2   : > { %v13626_v3 = vpop.f32.mrf.mxu0 }
0x1af3   : > { %v8842_v3 = vld [vmem:[#allocation62 + $0x30] sm:$0xff] }
0x1af4   : > { %v7706_v27 = vpop.f32.mrf.mxu0 }
0x1af5   : > { %13700 = vmatmul.mubr.f32.vlgmr.msra.gmra.mxu0 %v7706_v27  ;;  %v8841_v27 = vld [vmem:[#allocation62 + $0x28] sm:$0xff] }
0x1af6   : > { %v13666_v28 = vpop.f32.mrf.mxu0  ;;  %13746 = vmatprep.mubr.msk.f32.mxu0 %vm16202_vm2, %v16201_v59  ;;  %13743 = vmatpush3.msra.mxu0 %v7958_v56 }
0x1af7   : > { %13744 = vmatprep.subr.mxu0 %v16201_v59  ;;  %v8840_v28 = vld [vmem:[#allocation62 + $0x20] sm:$0xff] }
0x1af8   : > { %13745 = vmatpush3.msra.mxu0 %v7957_v60  ;;  %v8425_v60 = vld [vmem:[#allocation49 + $0x1] sm:$0x1] }
0x1af9   : > { %13749 = vmatprep.subr.mxu0 %v16201_v59 }
0x1bb5   : > { %v7793_v29 = vpop.f32.mrf.mxu0 }
0x1bb6   : > { %v17474_v31 = vadd.f32 %v7793_v29, %v7632_v26  ;;  %v8843_v26 = vld [vmem:[#allocation62 + $0x38] sm:$0xff] }
0x1bb7   : > { %v13701_v33 = vpop.f32.mrf.mxu0  ;;  %v8839_v29 = vld [vmem:[#allocation62 + $0x18] sm:$0xff] }
0x1bb8   : > { %13703 = vmatpush3.msra.mxu1 %v17474_v31  ;;  %v8838_v33 = vld [vmem:[#allocation62 + $0x10] sm:$0xff] }
0x1bb9   : > { %13705 = vmatmul.mubr.msk.f32.vlgmr.msra.gmra.mxu1 %vm3903_vm3, %v16204_v36  ;;  %13707 = vmatprep.subr.mxu1 %v16201_v59 }
0x1bba   : > { %13708 = vmatpush3.msra.mxu1 %v7886_v34  ;;  %13739 = vmatprep.mubr.msk.f32.mxu1 %vm16202_vm2, %v16201_v59  ;;  %v8837_v34 = vld [vmem:[#allocation62 + $0x8] sm:$0xff] }
0x1bbb   : > { %13709 = vmatprep.subr.mxu1 %v16201_v59 }
0x1bbc   : > { %13710 = vmatpush3.msra.mxu1 %v7885_v37  ;;  %v8836_v37 = vld [vmem:[#allocation62] sm:$0xff] }
0x1bbd   : > { %13711 = vmatprep.subr.mxu1 %v16201_v59 }
0x1bbe   : > { %13712 = vmatpush3.msra.mxu1 %v7884_v9  ;;  %v8757_v9 = vld [vmem:[#allocation11 + $0x8] sm:$0xff] }
0x1bbf   : > { %13713 = vmatprep.subr.mxu1 %v16201_v59 }
0x1bc0   : > { %13714 = vmatpush3.msra.mxu1 %v7883_v38  ;;  %v8756_v38 = vld [vmem:[#allocation11] sm:$0xff] }
0x1bc1   : > { %13715 = vmatprep.subr.mxu1 %v16201_v59 }
0x1bc2   : > { %13716 = vmatpush3.msra.mxu1 %v7882_v39 }
0x1bc3   : > { %13717 = vmatprep.subr.mxu1 %v16201_v59 }
0x1bc4   : > { %13718 = vmatpush3.msra.mxu1 %v7881_v4 }
0x1bc5   : > { %13719 = vmatprep.subr.mxu1 %v16201_v59 }
0x1bc6   : > { %13720 = vmatpush3.msra.mxu1 %v7880_v40 }
0x1bc7   : > { %13721 = vmatprep.subr.mxu1 %v16201_v59 }
0x1bc8   : > { %13722 = vmatpush3.msra.mxu1 %v7879_v41 }
0x1bc9   : > { %13723 = vmatprep.subr.mxu1 %v16201_v59 }
0x1bca   : > { %13724 = vmatpush3.msra.mxu1 %v7878_v1 }
0x1bcb   : > { %13725 = vmatprep.subr.mxu1 %v16201_v59 }
0x1bcc   : > { %13726 = vmatpush3.msra.mxu1 %v7877_v42  ;;  %v8266_v42 = vld [vmem:[#allocation49] sm:$0x1] }
0x1bcd   : > { %13727 = vmatprep.subr.mxu1 %v16201_v59 }
0x1bce   : > { %13728 = vmatpush3.msra.mxu1 %v7876_v48 }
0x1bcf   : > { %13729 = vmatprep.subr.mxu1 %v16201_v59 }
0x1bd0   : > { %13730 = vmatpush3.msra.mxu1 %v7875_v7 }
0x1bd1   : > { %13731 = vmatprep.subr.mxu1 %v16201_v59 }
0x1bd2   : > { %13732 = vmatpush3.msra.mxu1 %v7874_v49 }
0x1bd3   : > { %13733 = vmatprep.subr.mxu1 %v16201_v59 }
0x1bd4   : > { %13734 = vmatpush3.msra.mxu1 %v7873_v50 }
0x1bd5   : > { %13735 = vmatprep.subr.mxu1 %v16201_v59 }
0x1bd6   : > { %13736 = vmatpush3.msra.mxu1 %v7872_v51 }
0x1bd7   : > { %13737 = vmatprep.subr.mxu1 %v16201_v59 }
0x1bd8   : > { %13738 = vmatpush3.msra.mxu1 %v7871_v52 }
0x1bd9   : > { %13776 = vmatprep.subr.mxu1 %v16201_v59 }
0x1c79   : > { %v7867_v57 = vpop.f32.mrf.mxu1 }
0x1c7a   : > { %13740 = vmatmul.mubr.f32.vlgmr.msra.gmra.mxu1 %v7867_v57 }
0x1c7b   : > { %v13706_v23 = vpop.f32.mrf.mxu1  ;;  %13778 = vmatprep.mubr.msk.f32.mxu1 %vm16202_vm2, %v16201_v59  ;;  %13777 = vmatpush3.msk.msra.mxu1 %vm8116_vm6, %v8436_v5 }
0x1c7c   : > { %13786 = vmatprep.subr.mxu1 %v16201_v59 }
0x1d3a   : > { %v7953_v63 = vpop.f32.mrf.mxu1 }
0x1d3b   : > { %13747 = vmatmul.mubr.msk.f32.vlgmr.msra.gmra.mxu0 %vm2182_vm0, %v7953_v63 }
0x1d3c   : > { %v13741_v54 = vpop.f32.mrf.mxu1  ;;  %13750 = vmatpush3.msra.mxu0 %v8035_v62  ;;  %13753 = vmatprep.mubr.msk.f32.mxu0 %vm16202_vm2, %v16201_v59 }
0x1d3d   : > { %13751 = vmatprep.subr.mxu0 %v16201_v59 }
0x1d3e   : > { %13752 = vmatpush3.msra.mxu0 %v8034_v0 }
0x1d3f   : > { %13754 = vmatmul.mubr.f32.vlgmr.msra.gmra.mxu0 %v16201_v59  ;;  %13756 = vmatprep.subr.mxu0 %v16201_v59 }
0x1d40   : > { %13758 = vmatprep.mubr.msk.f32.mxu0 %vm16202_vm2, %v16201_v59  ;;  %13757 = vmatpush3.msk.msra.mxu0 %vm8116_vm6, %v8111_v58 }
0x1d41   : > { %13761 = vmatprep.subr.mxu0 %v16201_v59 }
0x1dfb   : > { %v8029_v8 = vpop.f32.mrf.mxu0 }
0x1dfc   : > { %v8030_v47 = vadd.f32 %v8029_v8, %v7959_v11 }
0x1dfd   : > { %v13748_v43 = vpop.f32.mrf.mxu0 }
0x1dfe   : > { %v8033_v17 = vmax.f32 %v8030_v47, 0.0 }
0x1dff   : > { %v8105_v44 = vpop.f32.mrf.mxu0 }
0x1e00   : > { %v8106_v12 = vadd.f32 %v8105_v44, %v8036_v10 }
0x1e01   : > { %v13755_v13 = vpop.f32.mrf.mxu0 }
0x1e02   : > { %v8109_v14 = vmax.f32 %v8106_v12, 0.0  ;;  %v8584_v12 = vld [vmem:[#allocation49 + $0x2] sm:$0x1] }
0x1e04   : > { %13759 = vmatmul.mubr.msk.f32.vlgmr.msra.gmra.mxu0 %vm8112_vm7, %v8109_v14  ;;  %13779 = vmatmul.mubr.msk.f32.vlgmr.msra.gmra.mxu1 %vm8112_vm7, %v8109_v14 }
0x1e05   : > { %13762 = vmatpush3.msk.msra.mxu0 %vm8116_vm6, %v8110_v15  ;;  %13763 = vmatprep.mubr.msk.f32.mxu0 %vm16202_vm2, %v16201_v59 }
0x1e06   : > { %13787 = vmatpush3.msk.msra.mxu1 %vm8116_vm6, %v8590_v16  ;;  %13788 = vmatprep.mubr.msk.f32.mxu1 %vm16202_vm2, %v16201_v59 }
0x1e07   : > { %13766 = vmatprep.subr.mxu0 %v16201_v59  ;;  %13796 = vmatprep.subr.mxu1 %v16201_v59 }
0x1e08   : > { %13764 = vmatmul.mubr.msk.f32.vlgmr.msra.gmra.mxu0 %vm8112_vm7, %v8033_v17  ;;  %13789 = vmatmul.mubr.msk.f32.vlgmr.msra.gmra.mxu1 %vm8112_vm7, %v8109_v14 }
0x1e09   : > { %13767 = vmatpush3.msk.msra.mxu0 %vm8116_vm6, %v8277_v18  ;;  %13768 = vmatprep.mubr.msk.f32.mxu0 %vm16202_vm2, %v16201_v59 }
0x1e0a   : > { %13771 = vmatprep.subr.mxu0 %v16201_v59  ;;  %13800 = vmatprep.mubr.msk.f32.mxu1 %vm16202_vm2, %v16201_v59 }
0x1e0b   : > { %13797 = vmatpush3.msra.mxu1 %v8757_v9  ;;  %v9025_v9 = vld [vmem:[#allocation70 + $0x78] sm:$0xff] }
0x1e0c   : > { %13769 = vmatmul.mubr.msk.f32.vlgmr.msra.gmra.mxu0 %vm8112_vm7, %v8109_v14  ;;  %13798 = vmatprep.subr.mxu1 %v16201_v59 }
0x1e0d   : > { %13772 = vmatpush3.msk.msra.mxu0 %vm8116_vm6, %v8275_v19  ;;  %13773 = vmatprep.mubr.msk.f32.mxu0 %vm16202_vm2, %v16201_v59 }
0x1e0e   : > { %13781 = vmatprep.subr.mxu0 %v16201_v59  ;;  %13799 = vmatpush3.msra.mxu1 %v8756_v38  ;;  %v9024_v38 = vld [vmem:[#allocation70 + $0x70] sm:$0xff] }
0x1e0f   : > { %13838 = vmatprep.subr.mxu1 %v16201_v59 }
0x1e10   : > { %13774 = vmatmul.mubr.msk.f32.vlgmr.msra.gmra.mxu0 %vm8112_vm7, %v8033_v17 }
0x1e11   : > { %13782 = vmatpush3.msk.msra.mxu0 %vm8116_vm6, %v8434_v20  ;;  %13783 = vmatprep.mubr.msk.f32.mxu0 %vm16202_vm2, %v16201_v59 }
0x1e12   : > { %13791 = vmatprep.subr.mxu0 %v16201_v59 }
0x1e14   : > { %13784 = vmatmul.mubr.msk.f32.vlgmr.msra.gmra.mxu0 %vm8112_vm7, %v8033_v17 }
0x1e15   : > { %13792 = vmatpush3.msk.msra.mxu0 %vm8116_vm6, %v8588_v21  ;;  %13793 = vmatprep.mubr.msk.f32.mxu0 %vm16202_vm2, %v16201_v59 }
0x1e16   : > { %13803 = vmatprep.subr.mxu0 %v16201_v59 }
0x1e18   : > { %13794 = vmatmul.mubr.msk.f32.vlgmr.msra.gmra.mxu0 %vm8112_vm7, %v8033_v17  ;;  %v8738_v17 = vld [vmem:[#allocation49 + $0x3] sm:$0x1] }
0x1e19   : > { %13804 = vmatpush3.msra.mxu0 %v8851_v6  ;;  %13835 = vmatprep.mubr.msk.f32.mxu0 %vm16202_vm2, %v16201_v59 }
0x1e1a   : > { %13805 = vmatprep.subr.mxu0 %v16201_v59 }
0x1e1b   : > { %13806 = vmatpush3.msra.mxu0 %v8850_v24 }
0x1e1c   : > { %13807 = vmatprep.subr.mxu0 %v16201_v59 }
0x1e1d   : > { %13808 = vmatpush3.msra.mxu0 %v8849_v2 }
0x1e1e   : > { %13809 = vmatprep.subr.mxu0 %v16201_v59 }
0x1e1f   : > { %13810 = vmatpush3.msra.mxu0 %v8848_v32 }
0x1e20   : > { %13811 = vmatprep.subr.mxu0 %v16201_v59 }
0x1e21   : > { %13812 = vmatpush3.msra.mxu0 %v8847_v30 }
0x1e22   : > { %13813 = vmatprep.subr.mxu0 %v16201_v59 }
0x1e23   : > { %13814 = vmatpush3.msra.mxu0 %v8846_v53 }
0x1e24   : > { %13815 = vmatprep.subr.mxu0 %v16201_v59 }
0x1e25   : > { %13816 = vmatpush3.msra.mxu0 %v8845_v55 }
0x1e26   : > { %13817 = vmatprep.subr.mxu0 %v16201_v59 }
0x1e27   : > { %13818 = vmatpush3.msra.mxu0 %v8844_v25 }
0x1e28   : > { %13819 = vmatprep.subr.mxu0 %v16201_v59 }
0x1e29   : > { %13820 = vmatpush3.msra.mxu0 %v8843_v26 }
0x1e2a   : > { %13821 = vmatprep.subr.mxu0 %v16201_v59 }
0x1e2b   : > { %13822 = vmatpush3.msra.mxu0 %v8842_v3 }
0x1e2c   : > { %13823 = vmatprep.subr.mxu0 %v16201_v59 }
0x1e2d   : > { %13824 = vmatpush3.msra.mxu0 %v8841_v27 }
0x1e2e   : > { %13825 = vmatprep.subr.mxu0 %v16201_v59 }
0x1e2f   : > { %13826 = vmatpush3.msra.mxu0 %v8840_v28 }
0x1e30   : > { %13827 = vmatprep.subr.mxu0 %v16201_v59 }
0x1e31   : > { %13828 = vmatpush3.msra.mxu0 %v8839_v29 }
0x1e32   : > { %13829 = vmatprep.subr.mxu0 %v16201_v59 }
0x1e33   : > { %13830 = vmatpush3.msra.mxu0 %v8838_v33 }
0x1e34   : > { %13831 = vmatprep.subr.mxu0 %v16201_v59 }
0x1e35   : > { %13832 = vmatpush3.msra.mxu0 %v8837_v34 }
0x1e36   : > { %13833 = vmatprep.subr.mxu0 %v16201_v59 }
0x1e37   : > { %13834 = vmatpush3.msra.mxu0 %v8836_v37 }
0x1e38   : > { %13836 = vmatmul.mubr.f32.vlgmr.msra.gmra.mxu0 %v17361_v61  ;;  %13883 = vmatprep.subr.mxu0 %v16201_v59 }
0x1e39   : > { %13915 = vmatprep.mubr.msk.f32.mxu0 %vm16202_vm2, %v16201_v59  ;;  %13884 = vmatpush3.msra.mxu0 %v9025_v9  ;;  %v9326_v9 = vld [vmem:[#allocation70 + $0x110] sm:$0xff] }
0x1e3a   : > { %13885 = vmatprep.subr.mxu0 %v16201_v59 }
0x1e3b   : > { %13886 = vmatpush3.msra.mxu0 %v9024_v38  ;;  %v9325_v38 = vld [vmem:[#allocation70 + $0x108] sm:$0xff] }
0x1e3c   : > { %13887 = vmatprep.subr.mxu0 %v16201_v59 }
0x1ec4   : > { %v8186_v39 = vpop.f32.mrf.mxu0  ;;  %v8506_v4 = vpop.f32.mrf.mxu1 }
0x1ec6   : > { %v13760_v40 = vpop.f32.mrf.mxu0  ;;  %v13780_v41 = vpop.f32.mrf.mxu1 }
0x1ec7   : > { %v9021_v40 = vld [vmem:[#allocation70 + $0x58] sm:$0xff]  ;;  %v9020_v41 = vld [vmem:[#allocation70 + $0x50] sm:$0xff] }
0x1ec8   : > { %v8262_v1 = vpop.f32.mrf.mxu0  ;;  %v8660_v61 = vpop.f32.mrf.mxu1 }
0x1ec9   : > { %v8263_v48 = vadd.f32 %v8262_v1, %v8186_v39  ;;  %v9023_v39 = vld [vmem:[#allocation70 + $0x68] sm:$0xff] }
0x1eca   : > { %v13765_v7 = vpop.f32.mrf.mxu0  ;;  %v13790_v49 = vpop.f32.mrf.mxu1  ;;  %13888 = vmatpush3.msra.mxu0 %v9023_v39  ;;  %v9019_v1 = vld [vmem:[#allocation70 + $0x48] sm:$0xff]  ;;  %v9324_v39 = vld [vmem:[#allocation70 + $0x100] sm:$0xff] }
0x1ecb   : > { %v8267_v50 = vadd.f32 %v8266_v42, %v8263_v48  ;;  %13889 = vmatprep.subr.mxu0 %v16201_v59  ;;  %v9018_v42 = vld [vmem:[#allocation70 + $0x40] sm:$0xff]  ;;  %v9016_v48 = vld [vmem:[#allocation70 + $0x30] sm:$0xff]  ;;  %v9015_v7 = vld [vmem:[#allocation70 + $0x28] sm:$0xff] }
0x1ecc   : > { %v8347_v51 = vpop.f32.mrf.mxu0  ;;  %v9014_v49 = vld [vmem:[#allocation70 + $0x20] sm:$0xff] }
0x1ecd   : > { %v8268_v52 = vsub.f32 0.0, %v8267_v50  ;;  %v9013_v50 = vld [vmem:[#allocation70 + $0x18] sm:$0xff] }
0x1ece   : > { %v13770_v56 = vpop.f32.mrf.mxu0 }
0x1ecf   : > { %v8269_v57 = vmul.f32 1.442695, %v8268_v52  ;;  %v9011_v52 = vld [vmem:[#allocation70 + $0x8] sm:$0xff] }
0x1ed0   : > { %v8420_v23 = vpop.f32.mrf.mxu0 }
0x1ed1   : > { %v8421_v62 = vadd.f32 %v8420_v23, %v8347_v51  ;;  %14694 = vpow2.f32 %v8269_v57  ;;  %v9012_v51 = vld [vmem:[#allocation70 + $0x10] sm:$0xff] }
0x1ed2   : > { %v13775_v63 = vpop.f32.mrf.mxu0 }
0x1ed3   : > { %v8426_v0 = vadd.f32 %v8425_v60, %v8421_v62  ;;  %v11880_v62 = vld [vmem:[#allocation73] ss:$0 sm:$0xff] }
0x1ed4   : > { %v8579_v54 = vpop.f32.mrf.mxu0 }
0x1ed5   : > { %v8427_v58 = vsub.f32 0.0, %v8426_v0  ;;  %v8580_v44 = vadd.f32 %v8579_v54, %v8506_v4  ;;  %v9022_v4 = vld [vmem:[#allocation70 + $0x60] sm:$0xff] }
0x1ed6   : > { %v13785_v5 = vpop.f32.mrf.mxu0  ;;  %13890 = vmatpush3.msra.mxu0 %v9022_v4  ;;  %v11881_v0 = vld [vmem:[#allocation71] ss:$0 sm:$0xff] }
0x1ed7   : > { %v8428_v8 = vmul.f32 1.442695, %v8427_v58  ;;  %v8585_v47 = vadd.f32 %v8584_v12, %v8580_v44  ;;  %13891 = vmatprep.subr.mxu0 %v16201_v59  ;;  %v9105_v44 = vld [vmem:[#allocation70 + $0xc0] sm:$0xff]  ;;  %v9104_v12 = vld [vmem:[#allocation70 + $0xb8] sm:$0xff] }
0x1ed8   : > { %v8733_v43 = vpop.f32.mrf.mxu0  ;;  %13892 = vmatpush3.msra.mxu0 %v9021_v40 }
0x1ed9   : > { %14696 = vpow2.f32 %v8428_v8  ;;  %v8734_v16 = vadd.f32 %v8733_v43, %v8660_v61  ;;  %13893 = vmatprep.subr.mxu0 %v16201_v59  ;;  %v9017_v61 = vld [vmem:[#allocation70 + $0x38] sm:$0xff]  ;;  %v9111_v8 = vld [vmem:[#allocation70 + $0xf0] sm:$0xff]  ;;  %v9109_v43 = vld [vmem:[#allocation70 + $0xe0] sm:$0xff] }
0x1eda   : > { %v13795_v10 = vpop.f32.mrf.mxu0  ;;  %13894 = vmatpush3.msra.mxu0 %v9020_v41 }
0x1edb   : > { %v8739_v18 = vadd.f32 %v8738_v17, %v8734_v16  ;;  %13895 = vmatprep.subr.mxu0 %v16201_v59  ;;  %v9108_v10 = vld [vmem:[#allocation70 + $0xd8] sm:$0xff]  ;;  %v9099_v16 = vld [vmem:[#allocation70 + $0x90] sm:$0xff]  ;;  %v9010_v17 = vld [vmem:[#allocation70] sm:$0xff] }
0x1edc   : > { %13896 = vmatpush3.msra.mxu0 %v9019_v1 }
0x1edd   : > { %v8740_v19 = vsub.f32 0.0, %v8739_v18  ;;  %13897 = vmatprep.subr.mxu0 %v16201_v59  ;;  %v9098_v18 = vld [vmem:[#allocation70 + $0x88] sm:$0xff] }
0x1ede   : > { %v14695_v11 = vpop.eup %14694  ;;  %13898 = vmatpush3.msra.mxu0 %v9018_v42 }
0x1edf   : > { %v8271_v13 = vadd.f32 1.0, %v14695_v11  ;;  %v8741_v24 = vmul.f32 1.442695, %v8740_v19  ;;  %13899 = vmatprep.subr.mxu0 %v16201_v59  ;;  %v9106_v11 = vld [vmem:[#allocation70 + $0xc8] sm:$0xff]  ;;  %v9097_v19 = vld [vmem:[#allocation70 + $0x80] sm:$0xff] }
0x1ee0   : > { %13900 = vmatpush3.msra.mxu0 %v9017_v61 }
0x1ee1   : > { %14698 = vrcp.f32 %v8271_v13  ;;  %13901 = vmatprep.subr.mxu0 %v16201_v59  ;;  %v9103_v13 = vld [vmem:[#allocation70 + $0xb0] sm:$0xff] }
0x1ee2   : > { %14700 = vtanh.f32 %v8585_v47  ;;  %13902 = vmatpush3.msra.mxu0 %v9016_v48  ;;  %v9102_v47 = vld [vmem:[#allocation70 + $0xa8] sm:$0xff] }
0x1ee3   : > { %13903 = vmatprep.subr.mxu0 %v16201_v59 }
0x1ee4   : > { %13904 = vmatpush3.msra.mxu0 %v9015_v7  ;;  %v9513_v7 = vld [vmem:[%s18101_s5 + $0x78] sm:$0xff] }
0x1ee5   : > { %13905 = vmatprep.subr.mxu0 %v16201_v59 }
0x1ee6   : > { %v14697_v14 = vpop.eup %14696  ;;  %13906 = vmatpush3.msra.mxu0 %v9014_v49  ;;  %v9512_v49 = vld [vmem:[%s18101_s5 + $0x70] sm:$0xff] }
0x1ee7   : > { %v8430_v15 = vadd.f32 1.0, %v14697_v14  ;;  %13907 = vmatprep.subr.mxu0 %v16201_v59  ;;  %v9101_v14 = vld [vmem:[#allocation70 + $0xa0] sm:$0xff] }
0x1ee8   : > { %13908 = vmatpush3.msra.mxu0 %v9013_v50  ;;  %v9511_v50 = vld [vmem:[%s18101_s5 + $0x68] sm:$0xff] }
0x1ee9   : > { %14702 = vrcp.f32 %v8430_v15  ;;  %13909 = vmatprep.subr.mxu0 %v16201_v59  ;;  %v9100_v15 = vld [vmem:[#allocation70 + $0x98] sm:$0xff] }
0x1eea   : > { %14704 = vpow2.f32 %v8741_v24  ;;  %13910 = vmatpush3.msra.mxu0 %v9012_v51  ;;  %v9510_v51 = vld [vmem:[%s18101_s5 + $0x60] sm:$0xff] }
0x1eeb   : > { %13911 = vmatprep.subr.mxu0 %v16201_v59 }
0x1eec   : > { %13912 = vmatpush3.msra.mxu0 %v9011_v52  ;;  %v9509_v52 = vld [vmem:[%s18101_s5 + $0x58] sm:$0xff] }
0x1eed   : > { %13913 = vmatprep.subr.mxu0 %v16201_v59 }
0x1eee   : > { %v14699_v20 = vpop.eup %14698  ;;  %13914 = vmatpush3.msra.mxu0 %v9010_v17  ;;  %v11901_v17 = vld [vmem:[%s18101_s5 + $0xe0] sm:$0xff] }
0x1eef   : > { %v14701_v21 = vpop.eup %14700  ;;  %13958 = vmatprep.subr.mxu0 %v16201_v59 }
0x1ef0   : > { %v8747_v32 = vmul.f32 %v14701_v21, %v14699_v20 }
0x1ef6   : > { %v14703_v6 = vpop.eup %14702 }
0x1ef7   : > { %v8746_v2 = vmul.f32 0.0, %v14703_v6  ;;  %v14705_v3 = vpop.eup %14704 }
0x1ef8   : > { %v17571_v30 = vpop.f32.mrf.mxu0  ;;  %v8743_v27 = vadd.f32 1.0, %v14705_v3  ;;  %v9332_v3 = vld [vmem:[#allocation70 + $0x140] sm:$0xff] }
0x1ef9   : > { %v17573_v53 = vadd.f32 %v8747_v32, %v8746_v2  ;;  %v9339_v2 = vld [vmem:[#allocation70 + $0x178] sm:$0xff]  ;;  %v9338_v32 = vld [vmem:[#allocation70 + $0x170] sm:$0xff] }
0x1efa   : > { %v13837_v55 = vpop.f32.mrf.mxu0 }
0x1efb   : > { %v8749_v25 = vsub.f32 0.0, %v17573_v53  ;;  %v9336_v55 = vld [vmem:[#allocation70 + $0x160] sm:$0xff] }
0x1efd   : > { %v8750_v26 = vmul.f32 1.442695, %v8749_v25  ;;  %v9335_v25 = vld [vmem:[#allocation70 + $0x158] sm:$0xff] }
0x1eff   : > { %14706 = vpow2.f32 %v8750_v26  ;;  %v9333_v26 = vld [vmem:[#allocation70 + $0x148] sm:$0xff] }
0x1f00   : > { %14708 = vrcp.f32 %v8743_v27  ;;  %v9331_v27 = vld [vmem:[#allocation70 + $0x138] sm:$0xff] }
0x1f0c   : > { %v14707_v28 = vpop.eup %14706 }
0x1f0d   : > { %v8752_v29 = vadd.f32 1.0, %v14707_v28  ;;  %v14709_v33 = vpop.eup %14708  ;;  %v9330_v28 = vld [vmem:[#allocation70 + $0x130] sm:$0xff] }
0x1f0f   : > { %14710 = vrcp.f32 %v8752_v29  ;;  %v9329_v29 = vld [vmem:[#allocation70 + $0x128] sm:$0xff] }
0x1f1c   : > { %v14711_v34 = vpop.eup %14710 }
0x1f1d   : > { %v17576_v37 = vmul.f32 %v14711_v34, %v14709_v33  ;;  %v9328_v33 = vld [vmem:[#allocation70 + $0x120] sm:$0xff]  ;;  %v9327_v34 = vld [vmem:[#allocation70 + $0x118] sm:$0xff] }
0x1f1f   : > { %13801 = vmatmul.mubr.msk.f32.vlgmr.msra.gmra.mxu1 %vm2182_vm0, %v17576_v37 }
0x1f20   : > { %13840 = vmatprep.mubr.msk.f32.mxu1 %vm16202_vm2, %v16201_v59 }
0x1fdf   : > { %v8827_v56 = vpop.f32.mrf.mxu1 }
0x1fe0   : > { %v8834_v57 = vrot.slane %v8827_v56, %v17141_v46  ;;  %v9508_v56 = vld [vmem:[%s18101_s5 + $0x50] sm:$0xff] }
0x1fe1   : > { %v13802_v23 = vpop.f32.mrf.mxu1 }
0x1fe2   : > { %v8835_v60 = vmul.f32 %v8834_v57, %v17474_v31  ;;  %v9112_v31 = vld [vmem:[#allocation70 + $0xf8] sm:$0xff] }
0x1fe3   : > { %v9507_v57 = vld [vmem:[%s18101_s5 + $0x48] sm:$0xff]  ;;  %v9506_v23 = vld [vmem:[%s18101_s5 + $0x40] sm:$0xff] }
0x1fe4   : > { %v17600_v63 = vadd.f32 %v17571_v30, %v8835_v60  ;;  %v9337_v30 = vld [vmem:[#allocation70 + $0x168] sm:$0xff] }
0x1fe5   : > { %v9505_v60 = vld [vmem:[%s18101_s5 + $0x38] sm:$0xff] }
0x1fe6   : > { %v8930_v54 = vmul.f32 %v11880_v62, %v17600_v63  ;;  %v9504_v62 = vld [vmem:[%s18101_s5 + $0x30] sm:$0xff] }
0x1fe8   : > { %v8938_v58 = vadd.f32 %v11881_v0, %v8930_v54  ;;  %v9503_v0 = vld [vmem:[%s18101_s5 + $0x28] sm:$0xff]  ;;  %v9502_v54 = vld [vmem:[%s18101_s5 + $0x20] sm:$0xff] }
0x1fea   : > { %v17603_v5 = vmax.f32 %v8938_v58, 0.0  ;;  %v9501_v58 = vld [vmem:[%s18101_s5 + $0x18] sm:$0xff] }
0x1fec   : > { %13839 = vmatpush3.msra.mxu1 %v17603_v5 }
0x1fed   : > { %13841 = vmatmul.mubr.msk.f32.vlgmr.msra.gmra.mxu1 %vm3903_vm3, %v17411_v22  ;;  %13843 = vmatprep.subr.mxu1 %v16201_v59  ;;  %v9110_v22 = vld [vmem:[#allocation70 + $0xe8] sm:$0xff] }
0x1fee   : > { %13844 = vmatpush3.msra.mxu1 %v17603_v5  ;;  %13845 = vmatprep.mubr.msk.f32.mxu1 %vm16202_vm2, %v16201_v59 }
0x1fef   : > { %13848 = vmatprep.subr.mxu1 %v16201_v59 }
0x1ff1   : > { %13846 = vmatmul.mubr.msk.f32.vlgmr.msra.gmra.mxu1 %vm3903_vm3, %v17420_v45  ;;  %v9107_v45 = vld [vmem:[#allocation70 + $0xd0] sm:$0xff] }
0x1ff2   : > { %13849 = vmatpush3.msra.mxu1 %v9112_v31  ;;  %13880 = vmatprep.mubr.msk.f32.mxu1 %vm16202_vm2, %v16201_v59  ;;  %v9499_v31 = vld [vmem:[%s18101_s5 + $0x8] sm:$0xff] }
0x1ff3   : > { %13850 = vmatprep.subr.mxu1 %v16201_v59 }
0x1ff4   : > { %13851 = vmatpush3.msra.mxu1 %v9111_v8 }
0x1ff5   : > { %13852 = vmatprep.subr.mxu1 %v16201_v59 }
0x1ff6   : > { %13853 = vmatpush3.msra.mxu1 %v9110_v22  ;;  %v11885_v22 = vld [vmem:[%s16469_s21] ss:$0 sm:$0xff] }
0x1ff7   : > { %13854 = vmatprep.subr.mxu1 %v16201_v59 }
0x1ff8   : > { %13855 = vmatpush3.msra.mxu1 %v9109_v43 }
0x1ff9   : > { %13856 = vmatprep.subr.mxu1 %v16201_v59 }
0x1ffa   : > { %13857 = vmatpush3.msra.mxu1 %v9108_v10  ;;  %v11886_v10 = vld [vmem:[%s16464_s17] ss:$0 sm:$0xff] }
0x1ffb   : > { %13858 = vmatprep.subr.mxu1 %v16201_v59 }
0x1ffc   : > { %13859 = vmatpush3.msra.mxu1 %v9107_v45 }
0x1ffd   : > { %13860 = vmatprep.subr.mxu1 %v16201_v59 }
0x1ffe   : > { %13861 = vmatpush3.msra.mxu1 %v9106_v11 }
0x1fff   : > { %13862 = vmatprep.subr.mxu1 %v16201_v59 }
0x2000   : > { %13863 = vmatpush3.msra.mxu1 %v9105_v44 }
0x2001   : > { %13864 = vmatprep.subr.mxu1 %v16201_v59 }
0x2002   : > { %13865 = vmatpush3.msra.mxu1 %v9104_v12 }
0x2003   : > { %13866 = vmatprep.subr.mxu1 %v16201_v59 }
0x2004   : > { %13867 = vmatpush3.msra.mxu1 %v9103_v13  ;;  %v14769_v13 = vld [vmem:[#allocation5] sm:$0xff] }
0x2005   : > { %13868 = vmatprep.subr.mxu1 %v16201_v59 }
0x2006   : > { %13869 = vmatpush3.msra.mxu1 %v9102_v47  ;;  %v11904_v47 = vld [vmem:[%s18101_s5 + $0xf8] sm:$0xff] }
0x2007   : > { %13870 = vmatprep.subr.mxu1 %v16201_v59 }
0x2008   : > { %13871 = vmatpush3.msra.mxu1 %v9101_v14  ;;  %v14770_v14 = vld [vmem:[#allocation5 + $0x8] sm:$0xff] }
0x2009   : > { %13872 = vmatprep.subr.mxu1 %v16201_v59 }
0x200a   : > { %13873 = vmatpush3.msra.mxu1 %v9100_v15  ;;  %v11903_v15 = vld [vmem:[%s18101_s5 + $0xf0] sm:$0xff] }
0x200b   : > { %13874 = vmatprep.subr.mxu1 %v16201_v59 }
0x200c   : > { %13875 = vmatpush3.msra.mxu1 %v9099_v16  ;;  %v11902_v16 = vld [vmem:[%s18101_s5 + $0xe8] sm:$0xff] }
0x200d   : > { %13876 = vmatprep.subr.mxu1 %v16201_v59 }
0x200e   : > { %13877 = vmatpush3.msra.mxu1 %v9098_v18  ;;  %v11900_v18 = vld [vmem:[%s18101_s5 + $0xd8] sm:$0xff] }
0x200f   : > { %13878 = vmatprep.subr.mxu1 %v16201_v59 }
0x2010   : > { %13879 = vmatpush3.msra.mxu1 %v9097_v19  ;;  %v11899_v19 = vld [vmem:[%s18101_s5 + $0xd0] sm:$0xff] }
0x2011   : > { %13918 = vmatprep.subr.mxu1 %v16201_v59 }
0x20ad   : > { %v9006_v20 = vpop.f32.mrf.mxu1 }
0x20ae   : > { %13916 = vmatmul.mubr.f32.vlgmr.msra.gmra.mxu0 %v9006_v20  ;;  %v11898_v20 = vld [vmem:[%s18101_s5 + $0xc8] sm:$0xff] }
0x20af   : > { %v13842_v21 = vpop.f32.mrf.mxu1  ;;  %13960 = vmatprep.mubr.msk.f32.mxu0 %vm16202_vm2, %v16201_v59 }
0x20b0   : > { %v11897_v21 = vld [vmem:[%s18101_s5 + $0xc0] sm:$0xff] }
0x20b1   : > { %v9092_v6 = vpop.f32.mrf.mxu1 }
0x20b2   : > { %13881 = vmatmul.mubr.f32.vlgmr.msra.gmra.mxu1 %v9092_v6  ;;  %v11896_v6 = vld [vmem:[%s18101_s5 + $0xb8] sm:$0xff] }
0x20b3   : > { %13919 = vmatpush3.msra.mxu1 %v17603_v5  ;;  %v13847_v24 = vpop.f32.mrf.mxu1  ;;  %13920 = vmatprep.mubr.msk.f32.mxu1 %vm16202_vm2, %v16201_v59  ;;  %v9500_v5 = vld [vmem:[%s18101_s5 + $0x10] sm:$0xff] }
0x20b4   : > { %13923 = vmatprep.subr.mxu1 %v16201_v59  ;;  %v11895_v24 = vld [vmem:[%s18101_s5 + $0xb0] sm:$0xff] }
0x20b6   : > { %13921 = vmatmul.mubr.msk.f32.vlgmr.msra.gmra.mxu1 %vm3903_vm3, %v17449_v35  ;;  %v9334_v35 = vld [vmem:[#allocation70 + $0x150] sm:$0xff] }
0x20b7   : > { %13924 = vmatpush3.msra.mxu1 %v9339_v2  ;;  %13955 = vmatprep.mubr.msk.f32.mxu1 %vm16202_vm2, %v16201_v59  ;;  %v11894_v2 = vld [vmem:[%s18101_s5 + $0xa8] sm:$0xff] }
0x20b8   : > { %13925 = vmatprep.subr.mxu1 %v16201_v59 }
0x20b9   : > { %13926 = vmatpush3.msra.mxu1 %v9338_v32  ;;  %v11893_v32 = vld [vmem:[%s18101_s5 + $0xa0] sm:$0xff] }
0x20ba   : > { %13927 = vmatprep.subr.mxu1 %v16201_v59 }
0x20bb   : > { %13928 = vmatpush3.msra.mxu1 %v9337_v30  ;;  %v11892_v30 = vld [vmem:[%s18101_s5 + $0x98] sm:$0xff] }
0x20bc   : > { %13929 = vmatprep.subr.mxu1 %v16201_v59 }
0x20bd   : > { %13930 = vmatpush3.msra.mxu1 %v9336_v55  ;;  %v11891_v55 = vld [vmem:[%s18101_s5 + $0x90] sm:$0xff] }
0x20be   : > { %13931 = vmatprep.subr.mxu1 %v16201_v59 }
0x20bf   : > { %13932 = vmatpush3.msra.mxu1 %v9335_v25  ;;  %v9498_v25 = vld [vmem:[%s18101_s5] sm:$0xff] }
0x20c0   : > { %13933 = vmatprep.subr.mxu1 %v16201_v59 }
0x20c1   : > { %13934 = vmatpush3.msra.mxu1 %v9334_v35  ;;  %v11890_v35 = vld [vmem:[%s18101_s5 + $0x88] sm:$0xff] }
0x20c2   : > { %13935 = vmatprep.subr.mxu1 %v16201_v59 }
0x20c3   : > { %13936 = vmatpush3.msra.mxu1 %v9333_v26  ;;  %v11889_v26 = vld [vmem:[%s18101_s5 + $0x80] sm:$0xff] }
0x20c4   : > { %13937 = vmatprep.subr.mxu1 %v16201_v59 }
0x20c5   : > { %13938 = vmatpush3.msra.mxu1 %v9332_v3 }
0x20c6   : > { %13939 = vmatprep.subr.mxu1 %v16201_v59 }
0x20c7   : > { %13940 = vmatpush3.msra.mxu1 %v9331_v27 }
0x20c8   : > { %13941 = vmatprep.subr.mxu1 %v16201_v59 }
0x20c9   : > { %13942 = vmatpush3.msra.mxu1 %v9330_v28 }
0x20ca   : > { %13943 = vmatprep.subr.mxu1 %v16201_v59 }
0x20cb   : > { %13944 = vmatpush3.msra.mxu1 %v9329_v29 }
0x20cc   : > { %13945 = vmatprep.subr.mxu1 %v16201_v59 }
0x20cd   : > { %13946 = vmatpush3.msra.mxu1 %v9328_v33  ;;  %v11921_v33 = vld [vmem:[%s18101_s5 + $0x178] sm:$0xff] }
0x20ce   : > { %13947 = vmatprep.subr.mxu1 %v16201_v59 }
0x20cf   : > { %13948 = vmatpush3.msra.mxu1 %v9327_v34  ;;  %v14771_v34 = vld [vmem:[#allocation5 + $0x10] sm:$0xff] }
0x20d0   : > { %13949 = vmatprep.subr.mxu1 %v16201_v59 }
0x20d1   : > { %13950 = vmatpush3.msra.mxu1 %v9326_v9  ;;  %v11920_v9 = vld [vmem:[%s18101_s5 + $0x170] sm:$0xff] }
0x20d2   : > { %13951 = vmatprep.subr.mxu1 %v16201_v59 }
0x20d3   : > { %13952 = vmatpush3.msra.mxu1 %v9325_v38  ;;  %v11919_v38 = vld [vmem:[%s18101_s5 + $0x168] sm:$0xff] }
0x20d4   : > { %13953 = vmatprep.subr.mxu1 %v16201_v59 }
0x20d5   : > { %13954 = vmatpush3.msra.mxu1 %v9324_v39  ;;  %v11918_v39 = vld [vmem:[%s18101_s5 + $0x160] sm:$0xff] }
0x20d6   : > { %14003 = vmatprep.subr.mxu1 %v16201_v59 }
0x216e   : > { %v9249_v4 = vpop.f32.mrf.mxu0 }
0x2170   : > { %v13917_v40 = vpop.f32.mrf.mxu0 }
0x2171   : > { %v11916_v40 = vld [vmem:[%s18101_s5 + $0x150] sm:$0xff] }
0x2172   : > { %v9179_v41 = vpop.f32.mrf.mxu1 }
0x2173   : > { %v9250_v1 = vadd.f32 %v9249_v4, %v9179_v41  ;;  %v11917_v4 = vld [vmem:[%s18101_s5 + $0x158] sm:$0xff]  ;;  %v11915_v41 = vld [vmem:[%s18101_s5 + $0x148] sm:$0xff] }
0x2174   : > { %v13882_v42 = vpop.f32.mrf.mxu1 }
0x2175   : > { %v11913_v42 = vld [vmem:[%s18101_s5 + $0x138] sm:$0xff] }
0x2176   : > { %v9319_v61 = vpop.f32.mrf.mxu1 }
0x2177   : > { %13956 = vmatmul.mubr.f32.vlgmr.msra.gmra.mxu1 %v9319_v61  ;;  %v11912_v61 = vld [vmem:[%s18101_s5 + $0x130] sm:$0xff] }
0x2178   : > { %v13922_v48 = vpop.f32.mrf.mxu1  ;;  %14035 = vmatprep.mubr.msk.f32.mxu1 %vm16202_vm2, %v16201_v59  ;;  %14004 = vmatpush3.msra.mxu1 %v9513_v7  ;;  %v11910_v7 = vld [vmem:[%s18101_s5 + $0x120] sm:$0xff] }
0x2179   : > { %14005 = vmatprep.subr.mxu1 %v16201_v59  ;;  %v11911_v48 = vld [vmem:[%s18101_s5 + $0x128] sm:$0xff] }
0x217a   : > { %14006 = vmatpush3.msra.mxu1 %v9512_v49  ;;  %v11909_v49 = vld [vmem:[%s18101_s5 + $0x118] sm:$0xff] }
0x217b   : > { %14007 = vmatprep.subr.mxu1 %v16201_v59 }
0x217c   : > { %14008 = vmatpush3.msra.mxu1 %v9511_v50  ;;  %v11908_v50 = vld [vmem:[%s18101_s5 + $0x110] sm:$0xff] }
0x217d   : > { %14009 = vmatprep.subr.mxu1 %v16201_v59 }
0x217e   : > { %14010 = vmatpush3.msra.mxu1 %v9510_v51  ;;  %v11907_v51 = vld [vmem:[%s18101_s5 + $0x108] sm:$0xff] }
0x217f   : > { %14011 = vmatprep.subr.mxu1 %v16201_v59 }
0x2180   : > { %14012 = vmatpush3.msra.mxu1 %v9509_v52  ;;  %v11906_v52 = vld [vmem:[%s18101_s5 + $0x100] sm:$0xff] }
0x2181   : > { %14013 = vmatprep.subr.mxu1 %v16201_v59 }
0x2182   : > { %14014 = vmatpush3.msra.mxu1 %v9508_v56 }
0x2183   : > { %14015 = vmatprep.subr.mxu1 %v16201_v59 }
0x2184   : > { %14016 = vmatpush3.msra.mxu1 %v9507_v57 }
0x2185   : > { %14017 = vmatprep.subr.mxu1 %v16201_v59 }
0x2186   : > { %14018 = vmatpush3.msra.mxu1 %v9506_v23 }
0x2187   : > { %14019 = vmatprep.subr.mxu1 %v16201_v59 }
0x2188   : > { %14020 = vmatpush3.msra.mxu1 %v9505_v60 }
0x2189   : > { %14021 = vmatprep.subr.mxu1 %v16201_v59 }
0x218a   : > { %14022 = vmatpush3.msra.mxu1 %v9504_v62 }
0x218b   : > { %14023 = vmatprep.subr.mxu1 %v16201_v59 }
0x218c   : > { %14024 = vmatpush3.msra.mxu1 %v9503_v0 }
0x218d   : > { %14025 = vmatprep.subr.mxu1 %v16201_v59 }
0x218e   : > { %14026 = vmatpush3.msra.mxu1 %v9502_v54 }
0x218f   : > { %14027 = vmatprep.subr.mxu1 %v16201_v59 }
0x2190   : > { %14028 = vmatpush3.msra.mxu1 %v9501_v58  ;;  %v14772_v58 = vld [vmem:[#allocation56 + $0x8] sm:$0xff] }
0x2191   : > { %14029 = vmatprep.subr.mxu1 %v16201_v59 }
0x2192   : > { %14030 = vmatpush3.msra.mxu1 %v9500_v5  ;;  %v14773_v5 = vld [vmem:[#allocation56] sm:$0xff] }
0x2193   : > { %14031 = vmatprep.subr.mxu1 %v16201_v59 }
0x2194   : > { %14032 = vmatpush3.msra.mxu1 %v9499_v31 }
0x2195   : > { %14033 = vmatprep.subr.mxu1 %v16201_v59 }
0x2196   : > { %14034 = vmatpush3.msra.mxu1 %v9498_v25  ;;  %v14792_v25 = vld [vmem:[#allocation52] sm:$0xff] }
0x2197   : > { %14078 = vmatprep.subr.mxu1 %v16201_v59 }
0x2237   : > { %v9406_v8 = vpop.f32.mrf.mxu1 }
0x2238   : > { %v9410_v43 = vadd.f32 %v9406_v8, %v9250_v1  ;;  %v11914_v1 = vld [vmem:[%s18101_s5 + $0x140] sm:$0xff] }
0x2239   : > { %v13957_v45 = vpop.f32.mrf.mxu1 }
0x223a   : > { %v9418_v11 = vmul.f32 %v11885_v22, %v9410_v43  ;;  %v17791_v43 = vld [vmem:[#allocation8 + $0x78] sm:$0xff]  ;;  %v17801_v45 = vld [vmem:[#allocation8 + $0x68] sm:$0xff] }
0x223c   : > { %v9426_v44 = vadd.f32 %v11886_v10, %v9418_v11  ;;  %v17797_v10 = vld [vmem:[#allocation8 + $0x70] sm:$0xff]  ;;  %v17805_v11 = vld [vmem:[#allocation8 + $0x60] sm:$0xff] }
0x223e   : > { %v17694_v12 = vmax.f32 %v9426_v44, 0.0  ;;  %v17809_v44 = vld [vmem:[#allocation8 + $0x58] sm:$0xff] }
0x2240   : > { %13959 = vmatpush3.msra.mxu0 %v17694_v12 }
0x2241   : > { %13961 = vmatmul.mubr.msk.f32.vlgmr.msra.gmra.mxu0 %vm3903_vm3, %v14769_v13  ;;  %13963 = vmatprep.subr.mxu0 %v16201_v59  ;;  %v17817_v13 = vld [vmem:[#allocation8 + $0x48] sm:$0xff] }
0x2242   : > { %13964 = vmatpush3.msra.mxu0 %v17694_v12  ;;  %13965 = vmatprep.mubr.msk.f32.mxu0 %vm16202_vm2, %v16201_v59 }
0x2243   : > { %13968 = vmatprep.subr.mxu0 %v16201_v59 }
0x2245   : > { %13966 = vmatmul.mubr.msk.f32.vlgmr.msra.gmra.mxu0 %vm3903_vm3, %v14770_v14  ;;  %v17825_v14 = vld [vmem:[#allocation8 + $0x38] sm:$0xff] }
0x2246   : > { %13969 = vmatpush3.msra.mxu0 %v11904_v47  ;;  %14000 = vmatprep.mubr.msk.f32.mxu0 %vm16202_vm2, %v16201_v59  ;;  %v17821_v47 = vld [vmem:[#allocation8 + $0x40] sm:$0xff] }
0x2247   : > { %13970 = vmatprep.subr.mxu0 %v16201_v59 }
0x2248   : > { %13971 = vmatpush3.msra.mxu0 %v11903_v15  ;;  %v17829_v15 = vld [vmem:[#allocation8 + $0x30] sm:$0xff] }
0x2249   : > { %13972 = vmatprep.subr.mxu0 %v16201_v59 }
0x224a   : > { %13973 = vmatpush3.msra.mxu0 %v11902_v16  ;;  %v17833_v16 = vld [vmem:[#allocation8 + $0x28] sm:$0xff] }
0x224b   : > { %13974 = vmatprep.subr.mxu0 %v16201_v59 }
0x224c   : > { %13975 = vmatpush3.msra.mxu0 %v11901_v17  ;;  %v17837_v17 = vld [vmem:[#allocation8 + $0x20] sm:$0xff] }
0x224d   : > { %13976 = vmatprep.subr.mxu0 %v16201_v59 }
0x224e   : > { %13977 = vmatpush3.msra.mxu0 %v11900_v18  ;;  %v17841_v18 = vld [vmem:[#allocation8 + $0x18] sm:$0xff] }
0x224f   : > { %13978 = vmatprep.subr.mxu0 %v16201_v59 }
0x2250   : > { %13979 = vmatpush3.msra.mxu0 %v11899_v19  ;;  %v17845_v19 = vld [vmem:[#allocation8 + $0x10] sm:$0xff] }
0x2251   : > { %13980 = vmatprep.subr.mxu0 %v16201_v59 }
0x2252   : > { %13981 = vmatpush3.msra.mxu0 %v11898_v20  ;;  %v17849_v20 = vld [vmem:[#allocation8 + $0x8] sm:$0xff] }
0x2253   : > { %13982 = vmatprep.subr.mxu0 %v16201_v59 }
0x2254   : > { %13983 = vmatpush3.msra.mxu0 %v11897_v21  ;;  %v17853_v21 = vld [vmem:[#allocation8] sm:$0xff] }
0x2255   : > { %13984 = vmatprep.subr.mxu0 %v16201_v59 }
0x2256   : > { %13985 = vmatpush3.msra.mxu0 %v11896_v6 }
0x2257   : > { %13986 = vmatprep.subr.mxu0 %v16201_v59 }
0x2258   : > { %13987 = vmatpush3.msra.mxu0 %v11895_v24 }
0x2259   : > { %13988 = vmatprep.subr.mxu0 %v16201_v59 }
0x225a   : > { %13989 = vmatpush3.msra.mxu0 %v11894_v2  ;;  %v14790_v2 = vld [vmem:[#allocation53] sm:$0xf] }
0x225b   : > { %13990 = vmatprep.subr.mxu0 %v16201_v59 }
0x225c   : > { %13991 = vmatpush3.msra.mxu0 %v11893_v32 }
0x225d   : > { %13992 = vmatprep.subr.mxu0 %v16201_v59 }
0x225e   : > { %13993 = vmatpush3.msra.mxu0 %v11892_v30 }
0x225f   : > { %13994 = vmatprep.subr.mxu0 %v16201_v59 }
0x2260   : > { %13995 = vmatpush3.msra.mxu0 %v11891_v55  ;;  %v14791_v55 = vld [vmem:[#allocation52 + $0x8] sm:$0xff] }
0x2261   : > { %13996 = vmatprep.subr.mxu0 %v16201_v59 }
0x2262   : > { %13997 = vmatpush3.msra.mxu0 %v11890_v35  ;;  %v14793_v35 = vld [vmem:[#allocation58] sm:$0xf] }
0x2263   : > { %13998 = vmatprep.subr.mxu0 %v16201_v59 }
0x2264   : > { %13999 = vmatpush3.msra.mxu0 %v11889_v26 }
0x2265   : > { %14038 = vmatprep.subr.mxu0 %v16201_v59 }
0x2301   : > { %v9494_v3 = vpop.f32.mrf.mxu0 }
0x2302   : > { %14036 = vmatmul.mubr.f32.vlgmr.msra.gmra.mxu1 %v9494_v3  ;;  %v14794_v3 = vld [vmem:[#allocation55] sm:$0x1] }
0x2303   : > { %v13962_v27 = vpop.f32.mrf.mxu0  ;;  %14080 = vmatprep.mubr.msk.f32.mxu1 %vm16202_vm2, %v16201_v59 }
0x2305   : > { %v9580_v28 = vpop.f32.mrf.mxu0 }
0x2306   : > { %14001 = vmatmul.mubr.f32.vlgmr.msra.gmra.mxu0 %v9580_v28 }
0x2307   : > { %14039 = vmatpush3.msra.mxu0 %v17694_v12  ;;  %v13967_v29 = vpop.f32.mrf.mxu0  ;;  %14040 = vmatprep.mubr.msk.f32.mxu0 %vm16202_vm2, %v16201_v59  ;;  %v17813_v12 = vld [vmem:[#allocation8 + $0x50] sm:$0xff] }
0x2308   : > { %14043 = vmatprep.subr.mxu0 %v16201_v59 }
0x230a   : > { %14041 = vmatmul.mubr.msk.f32.vlgmr.msra.gmra.mxu0 %vm3903_vm3, %v14771_v34  ;;  %v14795_v34 = vld [vmem:[#allocation50] sm:$0x1] }
0x230b   : > { %14044 = vmatpush3.msra.mxu0 %v11921_v33  ;;  %14075 = vmatprep.mubr.msk.f32.mxu0 %vm16202_vm2, %v16201_v59 }
0x230c   : > { %14045 = vmatprep.subr.mxu0 %v16201_v59 }
0x230d   : > { %14046 = vmatpush3.msra.mxu0 %v11920_v9 }
0x230e   : > { %14047 = vmatprep.subr.mxu0 %v16201_v59 }
0x230f   : > { %14048 = vmatpush3.msra.mxu0 %v11919_v38  ;;  %v14796_v38 = vld [vmem:[#allocation58 + $0x4] sm:$0xf] }
0x2310   : > { %14049 = vmatprep.subr.mxu0 %v16201_v59 }
0x2311   : > { %14050 = vmatpush3.msra.mxu0 %v11918_v39 }
0x2312   : > { %14051 = vmatprep.subr.mxu0 %v16201_v59 }
0x2313   : > { %14052 = vmatpush3.msra.mxu0 %v11917_v4  ;;  %v14797_v4 = vld [vmem:[#allocation53 + $0x4] sm:$0xf] }
0x2314   : > { %14053 = vmatprep.subr.mxu0 %v16201_v59 }
0x2315   : > { %14054 = vmatpush3.msra.mxu0 %v11916_v40  ;;  %v14798_v40 = vld [vmem:[#allocation58 + $0x8] sm:$0xf] }
0x2316   : > { %14055 = vmatprep.subr.mxu0 %v16201_v59 }
0x2317   : > { %14056 = vmatpush3.msra.mxu0 %v11915_v41  ;;  %v14799_v41 = vld [vmem:[#allocation53 + $0x8] sm:$0xf] }
0x2318   : > { %14057 = vmatprep.subr.mxu0 %v16201_v59 }
0x2319   : > { %14058 = vmatpush3.msra.mxu0 %v11914_v1  ;;  %v14800_v1 = vld [vmem:[#allocation58 + $0xc] sm:$0xf] }
0x231a   : > { %14059 = vmatprep.subr.mxu0 %v16201_v59 }
0x231b   : > { %14060 = vmatpush3.msra.mxu0 %v11913_v42  ;;  %v14801_v42 = vld [vmem:[#allocation53 + $0xc] sm:$0xf] }
0x231c   : > { %14061 = vmatprep.subr.mxu0 %v16201_v59 }
0x231d   : > { %14062 = vmatpush3.msra.mxu0 %v11912_v61  ;;  %v14802_v61 = vld [vmem:[#allocation11 + $0x8] sm:$0xff] }
0x231e   : > { %14063 = vmatprep.subr.mxu0 %v16201_v59 }
0x231f   : > { %14064 = vmatpush3.msra.mxu0 %v11911_v48  ;;  %v14803_v48 = vld [vmem:[#allocation11] sm:$0xff] }
0x2320   : > { %14065 = vmatprep.subr.mxu0 %v16201_v59 }
0x2321   : > { %14066 = vmatpush3.msra.mxu0 %v11910_v7 }
0x2322   : > { %14067 = vmatprep.subr.mxu0 %v16201_v59 }
0x2323   : > { %14068 = vmatpush3.msra.mxu0 %v11909_v49 }
0x2324   : > { %14069 = vmatprep.subr.mxu0 %v16201_v59 }
0x2325   : > { %14070 = vmatpush3.msra.mxu0 %v11908_v50 }
0x2326   : > { %14071 = vmatprep.subr.mxu0 %v16201_v59 }
0x2327   : > { %14072 = vmatpush3.msra.mxu0 %v11907_v51 }
0x2328   : > { %14073 = vmatprep.subr.mxu0 %v16201_v59 }
0x2329   : > { %14074 = vmatpush3.msra.mxu0 %v11906_v52 }
0x232a   : > { %14118 = vmatprep.subr.mxu0 %v16201_v59 }
0x23c2   : > { %v9737_v56 = vpop.f32.mrf.mxu1 }
0x23c4   : > { %v14037_v57 = vpop.f32.mrf.mxu1 }
0x23c6   : > { %v9667_v23 = vpop.f32.mrf.mxu0 }
0x23c7   : > { %v9738_v60 = vadd.f32 %v9737_v56, %v9667_v23  ;;  %v14804_v23 = vld [vmem:[#allocation49] sm:$0x1] }
0x23c8   : > { %v14002_v62 = vpop.f32.mrf.mxu0 }
0x23ca   : > { %v9807_v0 = vpop.f32.mrf.mxu0 }
0x23cb   : > { %14076 = vmatmul.mubr.f32.vlgmr.msra.gmra.mxu0 %v9807_v0 }
0x23cc   : > { %v14042_v54 = vpop.f32.mrf.mxu0  ;;  %14119 = vmatpush3.msra.mxu0 %v14772_v58  ;;  %14122 = vmatprep.mubr.msk.f32.mxu0 %vm16202_vm2, %v16201_v59 }
0x23cd   : > { %14120 = vmatprep.subr.mxu0 %v16201_v59 }
0x23ce   : > { %14121 = vmatpush3.msra.mxu0 %v14773_v5 }
0x23cf   : > { %14125 = vmatprep.subr.mxu0 %v16201_v59 }
0x248b   : > { %v9894_v31 = vpop.f32.mrf.mxu0 }
0x248c   : > { %v17785_v8 = vadd.f32 %v9894_v31, %v9738_v60 }
0x248d   : > { %v14077_v22 = vpop.f32.mrf.mxu0 }
0x248e   : > { %14079 = vmatpush3.msra.mxu1 %v17785_v8 }
0x248f   : > { %14081 = vmatmul.mubr.msk.f32.vlgmr.msra.gmra.mxu1 %vm3903_vm3, %v16204_v36  ;;  %14083 = vmatprep.subr.mxu1 %v16201_v59 }
0x2490   : > { %14084 = vmatpush3.msra.mxu1 %v17791_v43  ;;  %14115 = vmatprep.mubr.msk.f32.mxu1 %vm16202_vm2, %v16201_v59 }
0x2491   : > { %14085 = vmatprep.subr.mxu1 %v16201_v59 }
0x2492   : > { %14086 = vmatpush3.msra.mxu1 %v17797_v10 }
0x2493   : > { %14087 = vmatprep.subr.mxu1 %v16201_v59 }
0x2494   : > { %14088 = vmatpush3.msra.mxu1 %v17801_v45 }
0x2495   : > { %14089 = vmatprep.subr.mxu1 %v16201_v59 }
0x2496   : > { %14090 = vmatpush3.msra.mxu1 %v17805_v11 }
0x2497   : > { %14091 = vmatprep.subr.mxu1 %v16201_v59 }
0x2498   : > { %14092 = vmatpush3.msra.mxu1 %v17809_v44 }
0x2499   : > { %14093 = vmatprep.subr.mxu1 %v16201_v59 }
0x249a   : > { %14094 = vmatpush3.msra.mxu1 %v17813_v12 }
0x249b   : > { %14095 = vmatprep.subr.mxu1 %v16201_v59 }
0x249c   : > { %14096 = vmatpush3.msra.mxu1 %v17817_v13 }
0x249d   : > { %14097 = vmatprep.subr.mxu1 %v16201_v59 }
0x249e   : > { %14098 = vmatpush3.msra.mxu1 %v17821_v47 }
0x249f   : > { %14099 = vmatprep.subr.mxu1 %v16201_v59 }
0x24a0   : > { %14100 = vmatpush3.msra.mxu1 %v17825_v14 }
0x24a1   : > { %14101 = vmatprep.subr.mxu1 %v16201_v59 }
0x24a2   : > { %14102 = vmatpush3.msra.mxu1 %v17829_v15 }
0x24a3   : > { %14103 = vmatprep.subr.mxu1 %v16201_v59 }
0x24a4   : > { %14104 = vmatpush3.msra.mxu1 %v17833_v16 }
0x24a5   : > { %14105 = vmatprep.subr.mxu1 %v16201_v59 }
0x24a6   : > { %14106 = vmatpush3.msra.mxu1 %v17837_v17 }
0x24a7   : > { %14107 = vmatprep.subr.mxu1 %v16201_v59 }
0x24a8   : > { %14108 = vmatpush3.msra.mxu1 %v17841_v18 }
0x24a9   : > { %14109 = vmatprep.subr.mxu1 %v16201_v59 }
0x24aa   : > { %14110 = vmatpush3.msra.mxu1 %v17845_v19 }
0x24ab   : > { %14111 = vmatprep.subr.mxu1 %v16201_v59 }
0x24ac   : > { %14112 = vmatpush3.msra.mxu1 %v17849_v20 }
0x24ad   : > { %14113 = vmatprep.subr.mxu1 %v16201_v59 }
0x24ae   : > { %14114 = vmatpush3.msra.mxu1 %v17853_v21 }
0x24af   : > { %14132 = vmatprep.subr.mxu1 %v16201_v59 }
0x254f   : > { %v9965_v6 = vpop.f32.mrf.mxu1 }
0x2550   : > { %14116 = vmatmul.mubr.f32.vlgmr.msra.gmra.mxu1 %v9965_v6  ;;  %v14805_v6 = vld [vmem:[#allocation49 + $0x1] sm:$0x1] }
0x2551   : > { %v14082_v24 = vpop.f32.mrf.mxu1  ;;  %14133 = vmatpush3.msk.msra.mxu1 %vm8116_vm6, %v14790_v2  ;;  %14134 = vmatprep.mubr.msk.f32.mxu1 %vm16202_vm2, %v16201_v59 }
0x2552   : > { %14142 = vmatprep.subr.mxu1 %v16201_v59 }
0x2610   : > { %v10035_v32 = vpop.f32.mrf.mxu1 }
0x2611   : > { %14123 = vmatmul.mubr.msk.f32.vlgmr.msra.gmra.mxu0 %vm2182_vm0, %v10035_v32 }
0x2612   : > { %v14117_v30 = vpop.f32.mrf.mxu1  ;;  %14126 = vmatpush3.msra.mxu0 %v14791_v55  ;;  %14129 = vmatprep.mubr.msk.f32.mxu0 %vm16202_vm2, %v16201_v59 }
0x2613   : > { %14127 = vmatprep.subr.mxu0 %v16201_v59 }
0x2614   : > { %14128 = vmatpush3.msra.mxu0 %v14792_v25 }
0x2615   : > { %14130 = vmatmul.mubr.msk.f32.vlgmr.msra.gmra.mxu0 %vm2182_vm0, %v17576_v37  ;;  %14137 = vmatprep.subr.mxu0 %v16201_v59 }
0x2616   : > { %14138 = vmatpush3.msk.msra.mxu0 %vm8116_vm6, %v14793_v35  ;;  %14139 = vmatprep.mubr.msk.f32.mxu0 %vm16202_vm2, %v16201_v59 }
0x2617   : > { %14147 = vmatprep.subr.mxu0 %v16201_v59 }
0x26d1   : > { %v10108_v26 = vpop.f32.mrf.mxu0 }
0x26d2   : > { %v10109_v27 = vadd.f32 %v14794_v3, %v10108_v26 }
0x26d3   : > { %v14124_v28 = vpop.f32.mrf.mxu0 }
0x26d4   : > { %v10112_v29 = vmax.f32 %v10109_v27, 0.0 }
0x26d5   : > { %v10179_v33 = vpop.f32.mrf.mxu0 }
0x26d6   : > { %v10180_v9 = vadd.f32 %v14795_v34, %v10179_v33  ;;  %14140 = vmatmul.mubr.msk.f32.vlgmr.msra.gmra.mxu0 %vm8112_vm7, %v10112_v29  ;;  %v14806_v33 = vld [vmem:[#allocation49 + $0x2] sm:$0x1] }
0x26d7   : > { %v14131_v37 = vpop.f32.mrf.mxu0  ;;  %14148 = vmatpush3.msk.msra.mxu0 %vm8116_vm6, %v14796_v38  ;;  %14149 = vmatprep.mubr.msk.f32.mxu0 %vm16202_vm2, %v16201_v59 }
0x26d8   : > { %v10183_v39 = vmax.f32 %v10180_v9, 0.0  ;;  %14157 = vmatprep.subr.mxu0 %v16201_v59 }
0x26da   : > { %14135 = vmatmul.mubr.msk.f32.vlgmr.msra.gmra.mxu1 %vm8112_vm7, %v10183_v39  ;;  %14150 = vmatmul.mubr.msk.f32.vlgmr.msra.gmra.mxu0 %vm8112_vm7, %v10112_v29 }
0x26db   : > { %14143 = vmatpush3.msk.msra.mxu1 %vm8116_vm6, %v14797_v4  ;;  %14144 = vmatprep.mubr.msk.f32.mxu1 %vm16202_vm2, %v16201_v59 }
0x26dc   : > { %14158 = vmatpush3.msk.msra.mxu0 %vm8116_vm6, %v14798_v40  ;;  %14159 = vmatprep.mubr.msk.f32.mxu0 %vm16202_vm2, %v16201_v59 }
0x26dd   : > { %14152 = vmatprep.subr.mxu1 %v16201_v59  ;;  %14167 = vmatprep.subr.mxu0 %v16201_v59 }
0x26de   : > { %14145 = vmatmul.mubr.msk.f32.vlgmr.msra.gmra.mxu1 %vm8112_vm7, %v10183_v39  ;;  %14160 = vmatmul.mubr.msk.f32.vlgmr.msra.gmra.mxu0 %vm8112_vm7, %v10112_v29 }
0x26df   : > { %14153 = vmatpush3.msk.msra.mxu1 %vm8116_vm6, %v14799_v41  ;;  %14154 = vmatprep.mubr.msk.f32.mxu1 %vm16202_vm2, %v16201_v59 }
0x26e0   : > { %14168 = vmatpush3.msk.msra.mxu0 %vm8116_vm6, %v14800_v1  ;;  %14169 = vmatprep.mubr.msk.f32.mxu0 %vm16202_vm2, %v16201_v59 }
0x26e1   : > { %14162 = vmatprep.subr.mxu1 %v16201_v59  ;;  %14179 = vmatprep.subr.mxu0 %v16201_v59 }
0x26e2   : > { %14155 = vmatmul.mubr.msk.f32.vlgmr.msra.gmra.mxu1 %vm8112_vm7, %v10183_v39  ;;  %14170 = vmatmul.mubr.msk.f32.vlgmr.msra.gmra.mxu0 %vm8112_vm7, %v10112_v29 }
0x26e3   : > { %14163 = vmatpush3.msk.msra.mxu1 %vm8116_vm6, %v14801_v42  ;;  %14164 = vmatprep.mubr.msk.f32.mxu1 %vm16202_vm2, %v16201_v59 }
0x26e4   : > { %14172 = vmatprep.subr.mxu1 %v16201_v59  ;;  %14181 = vmatprep.mubr.msk.f32.mxu0 %vm16202_vm2, %v16201_v59 }
0x26e6   : > { %14165 = vmatmul.mubr.msk.f32.vlgmr.msra.gmra.mxu1 %vm8112_vm7, %v10183_v39  ;;  %v14807_v39 = vld [vmem:[#allocation49 + $0x3] sm:$0x1] }
0x26e7   : > { %14173 = vmatpush3.msra.mxu1 %v14802_v61  ;;  %14176 = vmatprep.mubr.msk.f32.mxu1 %vm16202_vm2, %v16201_v59 }
0x26e8   : > { %14174 = vmatprep.subr.mxu1 %v16201_v59 }
0x26e9   : > { %14175 = vmatpush3.msra.mxu1 %v14803_v48 }
0x26ea   : > { %14184 = vmatprep.subr.mxu1 %v16201_v59 }
0x2796   : > { %v10326_v7 = vpop.f32.mrf.mxu0 }
0x2798   : > { %v14141_v49 = vpop.f32.mrf.mxu0 }
0x279a   : > { %v10253_v50 = vpop.f32.mrf.mxu1  ;;  %v10473_v51 = vpop.f32.mrf.mxu0 }
0x279b   : > { %v10327_v52 = vadd.f32 %v10326_v7, %v10253_v50 }
0x279c   : > { %v14136_v56 = vpop.f32.mrf.mxu1  ;;  %v14151_v57 = vpop.f32.mrf.mxu0 }
0x279d   : > { %v10330_v60 = vadd.f32 %v14804_v23, %v10327_v52 }
0x279e   : > { %v10403_v62 = vpop.f32.mrf.mxu1  ;;  %v10620_v0 = vpop.f32.mrf.mxu0 }
0x279f   : > { %v10331_v54 = vsub.f32 0.0, %v10330_v60  ;;  %v10474_v58 = vadd.f32 %v10473_v51, %v10403_v62 }
0x27a0   : > { %v14146_v5 = vpop.f32.mrf.mxu1  ;;  %v14161_v31 = vpop.f32.mrf.mxu0 }
0x27a1   : > { %v10332_v22 = vmul.f32 1.442695, %v10331_v54  ;;  %v10477_v24 = vadd.f32 %v14805_v6, %v10474_v58 }
0x27a2   : > { %v10550_v2 = vpop.f32.mrf.mxu1  ;;  %v10762_v32 = vpop.f32.mrf.mxu0 }
0x27a3   : > { %14712 = vpow2.f32 %v10332_v22  ;;  %v10478_v30 = vsub.f32 0.0, %v10477_v24  ;;  %v10621_v27 = vadd.f32 %v10620_v0, %v10550_v2 }
0x27a4   : > { %v14156_v55 = vpop.f32.mrf.mxu1  ;;  %v14171_v25 = vpop.f32.mrf.mxu0 }
0x27a5   : > { %v10479_v35 = vmul.f32 1.442695, %v10478_v30  ;;  %v10624_v34 = vadd.f32 %v14806_v33, %v10621_v27 }
0x27a6   : > { %v10692_v26 = vpop.f32.mrf.mxu1 }
0x27a7   : > { %14714 = vpow2.f32 %v10479_v35  ;;  %v10763_v38 = vadd.f32 %v10762_v32, %v10692_v26 }
0x27a8   : > { %v14166_v3 = vpop.f32.mrf.mxu1 }
0x27a9   : > { %v10766_v4 = vadd.f32 %v14807_v39, %v10763_v38 }
0x27ab   : > { %v10767_v40 = vsub.f32 0.0, %v10766_v4 }
0x27ad   : > { %v10768_v61 = vmul.f32 1.442695, %v10767_v40 }
0x27b0   : > { %v14713_v28 = vpop.eup %14712 }
0x27b1   : > { %v10334_v29 = vadd.f32 1.0, %v14713_v28 }
0x27b3   : > { %14716 = vrcp.f32 %v10334_v29 }
0x27b4   : > { %v14715_v9 = vpop.eup %14714  ;;  %14718 = vtanh.f32 %v10624_v34 }
0x27b5   : > { %v10481_v37 = vadd.f32 1.0, %v14715_v9 }
0x27b7   : > { %14720 = vrcp.f32 %v10481_v37 }
0x27b8   : > { %14722 = vpow2.f32 %v10768_v61 }
0x27c0   : > { %v14717_v41 = vpop.eup %14716 }
0x27c1   : > { %v14719_v1 = vpop.eup %14718 }
0x27c2   : > { %v10774_v7 = vmul.f32 %v14719_v1, %v14717_v41 }
0x27c4   : > { %v14721_v42 = vpop.eup %14720 }
0x27c5   : > { %v10773_v48 = vmul.f32 %v14721_v42, %v17573_v53  ;;  %v14723_v52 = vpop.eup %14722 }
0x27c6   : > { %v10770_v56 = vadd.f32 1.0, %v14723_v52 }
0x27c7   : > { %v10775_v49 = vadd.f32 %v10774_v7, %v10773_v48 }
0x27c9   : > { %v10776_v50 = vsub.f32 0.0, %v10775_v49 }
0x27cb   : > { %v10777_v51 = vmul.f32 1.442695, %v10776_v50 }
0x27cd   : > { %14724 = vpow2.f32 %v10777_v51 }
0x27ce   : > { %14726 = vrcp.f32 %v10770_v56 }
0x27da   : > { %v14725_v57 = vpop.eup %14724 }
0x27db   : > { %v10779_v23 = vadd.f32 1.0, %v14725_v57  ;;  %v14727_v60 = vpop.eup %14726 }
0x27dd   : > { %14728 = vrcp.f32 %v10779_v23 }
0x27ea   : > { %v14729_v62 = vpop.eup %14728 }
0x27eb   : > { %v10782_v0 = vmul.f32 %v14729_v62, %v14727_v60 }
0x27ed   : > { %14177 = vmatmul.mubr.msk.f32.vlgmr.msra.gmra.mxu1 %vm2182_vm0, %v10782_v0 }
0x27ee   : > { %14185 = vmatpush3.msra.mxu1 %v17791_v43  ;;  %14216 = vmatprep.mubr.msk.f32.mxu1 %vm16202_vm2, %v16201_v59 }
0x27ef   : > { %14186 = vmatprep.subr.mxu1 %v16201_v59 }
0x27f0   : > { %14187 = vmatpush3.msra.mxu1 %v17797_v10 }
0x27f1   : > { %14188 = vmatprep.subr.mxu1 %v16201_v59 }
0x27f2   : > { %14189 = vmatpush3.msra.mxu1 %v17801_v45 }
0x27f3   : > { %14190 = vmatprep.subr.mxu1 %v16201_v59 }
0x27f4   : > { %14191 = vmatpush3.msra.mxu1 %v17805_v11  ;;  %v11942_v11 = vld [vmem:[#allocation19] ss:$0 sm:$0xff] }
0x27f5   : > { %14192 = vmatprep.subr.mxu1 %v16201_v59 }
0x27f6   : > { %14193 = vmatpush3.msra.mxu1 %v17809_v44 }
0x27f7   : > { %14194 = vmatprep.subr.mxu1 %v16201_v59 }
0x27f8   : > { %14195 = vmatpush3.msra.mxu1 %v17813_v12  ;;  %v11943_v12 = vld [vmem:[#allocation17] ss:$0 sm:$0xff] }
0x27f9   : > { %14196 = vmatprep.subr.mxu1 %v16201_v59 }
0x27fa   : > { %14197 = vmatpush3.msra.mxu1 %v17817_v13 }
0x27fb   : > { %14198 = vmatprep.subr.mxu1 %v16201_v59 }
0x27fc   : > { %14199 = vmatpush3.msra.mxu1 %v17821_v47 }
0x27fd   : > { %14200 = vmatprep.subr.mxu1 %v16201_v59 }
0x27fe   : > { %14201 = vmatpush3.msra.mxu1 %v17825_v14 }
0x27ff   : > { %14202 = vmatprep.subr.mxu1 %v16201_v59 }
0x2800   : > { %14203 = vmatpush3.msra.mxu1 %v17829_v15  ;;  %v11019_v15 = vld [vmem:[#allocation14] sm:$0xff] }
0x2801   : > { %14204 = vmatprep.subr.mxu1 %v16201_v59 }
0x2802   : > { %14205 = vmatpush3.msra.mxu1 %v17833_v16 }
0x2803   : > { %14206 = vmatprep.subr.mxu1 %v16201_v59 }
0x2804   : > { %14207 = vmatpush3.msra.mxu1 %v17837_v17  ;;  %v11021_v17 = vld [vmem:[#allocation13] sm:$0x1] }
0x2805   : > { %14208 = vmatprep.subr.mxu1 %v16201_v59 }
0x2806   : > { %14209 = vmatpush3.msra.mxu1 %v17841_v18 }
0x2807   : > { %14210 = vmatprep.subr.mxu1 %v16201_v59 }
0x2808   : > { %14211 = vmatpush3.msra.mxu1 %v17845_v19 }
0x2809   : > { %14212 = vmatprep.subr.mxu1 %v16201_v59 }
0x280a   : > { %14213 = vmatpush3.msra.mxu1 %v17849_v20 }
0x280b   : > { %14214 = vmatprep.subr.mxu1 %v16201_v59 }
0x280c   : > { %14215 = vmatpush3.msra.mxu1 %v17853_v21 }
0x28ad   : > { %v10852_v53 = vpop.f32.mrf.mxu1 }
0x28ae   : > { %v10859_v43 = vrot.slane %v10852_v53, %v17141_v46  ;;  %v11020_v46 = vld [vmem:[#allocation14 + $0x8] sm:$0xff] }
0x28af   : > { %v14178_v10 = vpop.f32.mrf.mxu1 }
0x28b0   : > { %v10860_v45 = vmul.f32 %v10859_v43, %v17785_v8 }
0x28b2   : > { %v10861_v44 = vadd.f32 %v10860_v45, %v17600_v63 }
0x28b4   : > { %v10869_v13 = vmul.f32 %v11942_v11, %v10861_v44 }
0x28b6   : > { %v10877_v47 = vadd.f32 %v11943_v12, %v10869_v13 }
0x28b8   : > { %v10878_v14 = vmax.f32 %v10877_v47, 0.0 }
0x28ba   : > { %14180 = vmatpush3.msra.mxu0 %v10878_v14 }
0x28bb   : > { %14182 = vmatmul.mubr.msk.f32.vlgmr.msra.gmra.mxu0 %vm3903_vm3, %v16204_v36  ;;  %14219 = vmatprep.subr.mxu0 %v16201_v59 }
0x28bc   : > { %14223 = vmatprep.mubr.msk.f32.mxu0 %vm16202_vm2, %v16201_v59  ;;  %14220 = vmatpush3.msra.mxu0 %v11020_v46 }
0x28bd   : > { %14221 = vmatprep.subr.mxu0 %v16201_v59 }
0x28be   : > { %14222 = vmatpush3.msra.mxu0 %v11019_v15 }
0x297b   : > { %v10945_v63 = vpop.f32.mrf.mxu0 }
0x297c   : > { %14217 = vmatmul.mubr.f32.vlgmr.msra.gmra.mxu1 %v10945_v63 }
0x297d   : > { %v14183_v8 = vpop.f32.mrf.mxu0 }
0x2a3c   : > { %v11015_v16 = vpop.f32.mrf.mxu1 }
0x2a3d   : > { %14224 = vmatmul.mubr.msk.f32.vlgmr.msra.gmra.mxu0 %vm2182_vm0, %v11015_v16 }
0x2a3e   : > { %v14218_v36 = vpop.f32.mrf.mxu1 }
0x2afd   : > { %v11091_v18 = vpop.f32.mrf.mxu0 }
0x2afe   : > { %v11092_v19 = vadd.f32 %v11091_v18, %v11021_v17 }
0x2aff   : > { %v14225_v59 = vpop.f32.mrf.mxu0 }
0x2b00   : > { %11096 = vst.msk [vmem:[%s2172_s13] sm:$0x1] %vm11095_vm8, %v11092_v19 }
0x2b01   : > { %15949 = shalt.err (!%p15946_p0)
}
0x2b02   : > { %s15950_s23 = scalar_lea.hbm %s17958_s11, 16  ;;  %s15954_s1 = scalar_lea.hbm %s16474_s27, 32 }
0x2b03   : > { %p15951_p1 = scmp.ne.s32.totalorder %s17958_s11, %s15950_s23  ;;  %p15955_p3 = scmp.lt.s32.totalorder %s17958_s11, %s16474_s27 }
0x2b04   : > { %p15956_p7 = scmp.lt.s32.totalorder %s15954_s1, %s15950_s23 }
0x2b05   : > { %p15952_p2 = pnand %p15951_p1, %p18102_p8 }
0x2b06   : > { %p15957_p9 = por %p15956_p7, %p15955_p3 }
0x2b07   : > { %p15953_p4 = pneg %p15952_p2 }
0x2b09   : > { %p15958_p10 = pnand %p15957_p9, %p15953_p4 }
0x2b0b   : > { %15961 = shalt.err (!%p15958_p10)
}
0x2b0c   : > { %14414 = dma.vmem_to_hbm [thread:$0]  (%p18102_p8), %s11111_s3, 16, %s17958_s11, %s11098_s4  }
0x2b0d PF: > { %s18103_s16 = sld [smem:[#allocation139_spill]]  ;;  %p14514_p6 = scmp.ge.s32.totalorder %s16092_s2, 2 }
0x2b0e   : > { %s18104_s10 = sld [smem:[#allocation143_spill]] }
0x2b13   : > { %s11122_s13 = sand.u32 1, %s18103_s16  }
0x2b14   : > { %p18105_p5 = scmp.ne.s32.totalorder %s18104_s10, 0  ;;  %s11123_s15 = scalar_lea.sflag [#allocation4], %s11122_s13 }
0x2b16   : > { %p14417_p11 = pnand %p14514_p6, %p18105_p5 }
0x2b18   : > { %p14418_p12 = pneg %p14417_p11 }
0x2b1a   : > { %16075 = dma.done.wait (%p14418_p12), %s11123_s15, 16  }
0x2b1b   : > { %16077 = vsyncadd (%p14418_p12), %s11123_s15, 4294967280  ;;  %s18106_s2 = sld [smem:[#allocation141_spill]]  ;;  %s18109_s0 = smov %s16084_s28 }
0x2b1c   : > { %s18107_s26 = sld [smem:[#allocation140_spill]] }
0x2b1d   : > { %s18108_s1 = sld [smem:[#allocation142_spill]] }
0x2b21   : > { %p139_p13 = scmp.ge.s32.totalorder %s18106_s2, 4  }
0x2b22   : > { %s18110_s28 = smov %s18107_s26 }
0x2b23   :  { %141 = sbr.rel (!%p139_p13) target bundleno = 125 (0x7d), region = 546 }
0x2b28   :  { %11127 = vsyncpa [#allocation3], 1 }
0x2b29   :  { %11129 = vsyncpa [#allocation3 + $0x1], 1 }
0x2b2a   :  { %11130 = vsyncpa [#allocation6], 1 }
0x2b2b   :  { %11131 = vsyncpa [#allocation9], 1 }
0x2b2c   :  { %11132 = vsyncpa [#allocation12], 1 }
0x2b2d   :  { %11133 = vsyncpa [#allocation15], 1 }
0x2b2e   :  { %11134 = vsyncpa [#allocation18], 1 }
0x2b2f   :  { %11135 = vsyncpa [#allocation21], 1 }
0x2b30   :  { %11136 = vsyncpa [#allocation24], 1 }
0x2b31   :  { %11137 = vsyncpa [#allocation27], 1 }
0x2b32   :  { %11138 = vsyncpa [#allocation30], 1 }
0x2b33   :  { %11139 = vsyncpa [#allocation33], 1 }
0x2b34   :  { %11140 = vsyncpa [#allocation36], 1 }
0x2b35   :  { %11141 = vsyncpa [#allocation39], 1 }
0x2b36   :  { %11142 = vsyncpa [#allocation42], 1 }
0x2b37   :  { %11143 = vsyncpa [#allocation45], 1 }
0x2b38   :  { %11144 = vsyncpa [#allocation48], 1 }
0x2b39   :  { %11145 = vsyncpa [#allocation51], 1 }
0x2b3a   :  { %11146 = vsyncpa [#allocation54], 1 }
0x2b3b   :  { %11147 = vsyncpa [#allocation57], 1 }
0x2b3c   :  { %11148 = vsyncpa [#allocation60], 1 }
0x2b3d   :  { %11149 = vsyncpa [#allocation63], 1 }
0x2b3e   :  { %11150 = vsyncpa [#allocation66], 1 }
0x2b3f   :  { %11151 = vsyncpa [#allocation69], 1 }
0x2b40   :  { %11152 = vsyncpa [#allocation72], 1 }
0x2b41   :  { %11153 = vsyncpa [#allocation4], 1 }
0x2b42   :  { %11155 = vsyncpa [#allocation4 + $0x1], 1 }

</bundles_post_ra>
